<compile_context>
chip_gen: v6e
topology: v6e:2x2x1
jax: 0.10.0
libtpu: 0.0.40
codegen_flags: <defaults>
</compile_context>

<pallas_src>
import functools

import numpy as np
import jax
import jax.numpy as jnp
from jax import lax
from jax.experimental import pallas as pl
from jax.experimental.pallas import tpu as pltpu


# Static geometry of the network.
_C1_OUT = 30            # conv1 output H/W
_P1 = 15                # pooled1 H/W (valid)
_P1W = 16               # pooled1 width padded to 16 (flat row index = h*16 + w)
_P1_ROWSTRIDE = 256     # rows per image in the flat pooled1 buffer (16*16)
_S1 = _P1 * _P1W        # 240 valid pooled1 rows per image
_C2_OUT = 13            # conv2 output H/W (valid)


def _conv2_m(batch):
    """Flat conv2-output row count (image b lives at rows b*256 + h*16 + w)."""
    need = (batch - 1) * _P1_ROWSTRIDE + (_C2_OUT - 1) * _P1W + _P1W
    return (need + 127) // 128 * 128          # -> 256 * batch


# ----------------------------------------------------------------------------
# Fused kernel
# ----------------------------------------------------------------------------
def _lenet_kernel(x_ref, w1_ref, b1_ref, w2_ref, b2_ref, p2_ref,
                  wf1_ref, bf1_ref, wf2_ref, bf2_ref, wf3_ref, bf3_ref,
                  o_ref, pool1_ref, p2s_ref, feat_ref,
                  *, batch, m2, pool1_rows):
    f32, bf16 = jnp.float32, jnp.bfloat16

    # ---- Stage 1: conv1 (one whole-batch matmul) + ReLU + 2x2 avg pool ------
    # x_ref rows are ordered (b, quadrant=(dy,dx), hp, wp[pad 16]); the 2x2
    # average pool is therefore three slab adds on contiguous 240-row blocks.
    yy = jnp.dot(x_ref[...], w1_ref[...],
                 preferred_element_type=f32) + b1_ref[...]        # (B*960,128)
    yy = jnp.maximum(yy, 0.0)
    for b in range(batch):
        o = b * 4 * _S1
        pooled = 0.25 * (yy[o:o + _S1] + yy[o + _S1:o + 2 * _S1]
                         + yy[o + 2 * _S1:o + 3 * _S1]
                         + yy[o + 3 * _S1:o + 4 * _S1])           # (240,128) f32
        r = b * _P1_ROWSTRIDE
        pool1_ref[r:r + _S1, :] = pooled.astype(bf16)
        # zero the h==15 pad rows so conv2's over-reads stay finite
        pool1_ref[r + _S1:r + _P1_ROWSTRIDE, :] = jnp.zeros(
            (_P1_ROWSTRIDE - _S1, 128), bf16)
    pool1_ref[batch * _P1_ROWSTRIDE:, :] = jnp.zeros(
        (pool1_rows - batch * _P1_ROWSTRIDE, 128), bf16)

    # ---- Stage 2: conv2 as 9 per-tap (m2,128)@(128,128) matmuls + ReLU ------
    acc = None
    for kh in range(3):
        for kw in range(3):
            off = kh * _P1W + kw
            d = jnp.dot(pool1_ref[off:off + m2, :], w2_ref[kh * 3 + kw],
                        preferred_element_type=f32)
            acc = d if acc is None else acc + d
    y2 = jnp.maximum(acc + b2_ref[...], 0.0).astype(bf16)         # (m2,128)

    # ---- 2x2 avg pool of conv2 output via one bf16 pooling matmul -----------
    pooled2 = jnp.dot(p2_ref[...], y2, preferred_element_type=f32)  # (36B,128)
    p2s_ref[...] = pooled2.astype(bf16)

    # ---- flatten (h2, w2, c) into lane-major fc1 features (36 row copies) ---
    for s in range(36):
        feat_ref[:, s * 128:(s + 1) * 128] = p2s_ref[s * batch:(s + 1) * batch, :]

    # ---- FC tail, batched over the whole batch (3 matmuls) ------------------
    h = jnp.dot(feat_ref[...], wf1_ref[...],
                preferred_element_type=f32) + bf1_ref[...]
    h = jnp.maximum(h, 0.0).astype(bf16)
    h = jnp.dot(h, wf2_ref[...], preferred_element_type=f32) + bf2_ref[...]
    h = jnp.maximum(h, 0.0).astype(bf16)
    o_ref[...] = jnp.dot(h, wf3_ref[...],
                         preferred_element_type=f32) + bf3_ref[...]


# ----------------------------------------------------------------------------
# One-time weight repacking (outside the jitted forward)
# ----------------------------------------------------------------------------
def prepare_params(p):
    bf16, f32 = jnp.bfloat16, jnp.float32

    def row_vec(v):                       # (n,) -> (1,128) f32, zero padded
        return jnp.pad(v[None, :].astype(f32), ((0, 0), (0, 128 - v.shape[0])))

    def fc_mat(w):                        # (out, in) -> (128,128) bf16
        wt = w.T
        return jnp.pad(wt, ((0, 128 - wt.shape[0]),
                            (0, 128 - wt.shape[1]))).astype(bf16)

    # conv1: rows k = (kh*3+kw)*3 + ci  (matches the wrapper's patch columns)
    w1 = jnp.transpose(p["conv1_w"], (2, 3, 1, 0)).reshape(27, 6)
    w1 = jnp.pad(w1, ((0, 128 - 27), (0, 128 - 6))).astype(bf16)

    # conv2: nine per-tap (Cin pad 128, Cout pad 128) matrices
    w2 = jnp.transpose(p["conv2_w"], (2, 3, 1, 0))                  # (3,3,6,16)
    w2 = jnp.pad(w2, ((0, 0), (0, 0), (0, 128 - 6), (0, 128 - 16)))
    w2 = w2.reshape(9, 128, 128).astype(bf16)

    # fc1: permute its 576 input columns from torch (c,h,w) flatten order to
    # the kernel's lane-major feature order ((h2*6+w2)*128 + c).
    wf1 = p["fc1_w"].reshape(120, 16, 6, 6)
    wf1 = jnp.transpose(wf1, (2, 3, 1, 0))                          # (6,6,16,120)
    wf1 = jnp.pad(wf1, ((0, 0), (0, 0), (0, 128 - 16), (0, 128 - 120)))
    wf1 = wf1.reshape(36 * 128, 128).astype(bf16)

    return {
        "w1": w1, "b1": row_vec(p["conv1_b"]),
        "w2": w2, "b2": row_vec(p["conv2_b"]),
        "wf1": wf1, "bf1": row_vec(p["fc1_b"]),
        "wf2": fc_mat(p["fc2_w"]), "bf2": row_vec(p["fc2_b"]),
        "wf3": fc_mat(p["fc3_w"]), "bf3": row_vec(p["fc3_b"]),
    }


# ----------------------------------------------------------------------------
# Wrapper-side layout prep (conv1 im2col) and the pool-2 matrix constant
# ----------------------------------------------------------------------------
def _pool2_matrix(batch, m2):
    """(36*batch, m2) avg-pool matrix; row (h2*6+w2)*batch + b pools image b."""
    P = np.zeros((36 * batch, m2), np.float32)
    for b in range(batch):
        for h2 in range(6):
            for w2 in range(6):
                row = (h2 * 6 + w2) * batch + b
                for dy in range(2):
                    for dx in range(2):
                        col = b * _P1_ROWSTRIDE + (2 * h2 + dy) * _P1W + (2 * w2 + dx)
                        P[row, col] = 0.25
    return jnp.asarray(P, jnp.bfloat16)


def _conv1_patches(x):
    """im2col: rows (b, (dy,dx), hp, wp[pad 16]); cols K=(kh,kw,ci) padded to 128."""
    B = x.shape[0]
    pat = jnp.stack([x[:, :, kh:kh + _C1_OUT, kw:kw + _C1_OUT]
                     for kh in range(3) for kw in range(3)], axis=-1)  # (B,3,30,30,9)
    pat = jnp.transpose(pat, (0, 2, 3, 4, 1)).reshape(B, _C1_OUT, _C1_OUT, 27)
    slabs = [pat[:, dy::2, dx::2, :] for dy in (0, 1) for dx in (0, 1)]
    pat = jnp.stack(slabs, axis=1)                                     # (B,4,15,15,27)
    pat = jnp.pad(pat, ((0, 0), (0, 0), (0, 0), (0, _P1W - _P1), (0, 128 - 27)))
    return pat.reshape(B * 4 * _S1, 128).astype(jnp.bfloat16)          # (B*960,128)


def lenet_relu_forward(prepped, x):
    """x: (B, 3, 32, 32) float NCHW -> (B, 10) float32 logits."""
    assert x.shape[1:] == (3, 32, 32), x.shape
    B = x.shape[0]
    m2 = _conv2_m(B)
    pool1_rows = m2 + 64                  # covers the +34 row over-read, 16-aligned

    pat = _conv1_patches(x)               # runtime XLA layout op (cheap, lane-dense)
    p2 = _pool2_matrix(B, m2)             # numpy at trace time -> compile constant

    vmem = pl.BlockSpec(memory_space=pltpu.MemorySpace.VMEM)
    out = pl.pallas_call(
        functools.partial(_lenet_kernel, batch=B, m2=m2, pool1_rows=pool1_rows),
        out_shape=jax.ShapeDtypeStruct((B, 128), jnp.float32),
        in_specs=[vmem] * 12,
        out_specs=vmem,
        scratch_shapes=[
            pltpu.VMEM((pool1_rows, 128), jnp.bfloat16),   # pooled conv1 activation
            pltpu.VMEM((36 * B, 128), jnp.bfloat16),       # pooled conv2 activation
            pltpu.VMEM((B, 36 * 128), jnp.bfloat16),       # lane-major fc1 features
        ],
    )(pat, prepped["w1"], prepped["b1"], prepped["w2"], prepped["b2"], p2,
      prepped["wf1"], prepped["bf1"], prepped["wf2"], prepped["bf2"],
      prepped["wf3"], prepped["bf3"])
    return out[:, :10]


# ----------------------------------------------------------------------------
# Deterministic parameter init (PyTorch-style uniform(-1/sqrt(fan_in), ...))
# ----------------------------------------------------------------------------
def init_params(key):
    def uinit(k, shape, fan_in):
        bound = 1.0 / jnp.sqrt(fan_in)
        return jax.random.uniform(k, shape, jnp.float32, -bound, bound)

    ks = jax.random.split(key, 10)
    return {
        "conv1_w": uinit(ks[0], (6, 3, 3, 3), 3 * 3 * 3),
        "conv1_b": uinit(ks[1], (6,), 3 * 3 * 3),
        "conv2_w": uinit(ks[2], (16, 6, 3, 3), 6 * 3 * 3),
        "conv2_b": uinit(ks[3], (16,), 6 * 3 * 3),
        "fc1_w": uinit(ks[4], (120, 576), 576),
        "fc1_b": uinit(ks[5], (120,), 576),
        "fc2_w": uinit(ks[6], (84, 120), 120),
        "fc2_b": uinit(ks[7], (84,), 120),
        "fc3_w": uinit(ks[8], (10, 84), 84),
        "fc3_b": uinit(ks[9], (10,), 84),
    }


# ----------------------------------------------------------------------------
# Pure-JAX reference (same math as the PyTorch module), for a sanity check
# ----------------------------------------------------------------------------
def _avgpool_ref(y):
    B, C, H, W = y.shape
    Hp, Wp = H // 2, W // 2
    y = y[:, :, :2 * Hp, :2 * Wp].reshape(B, C, Hp, 2, Wp, 2)
    return y.mean(axis=(3, 5))


def lenet_relu_reference(params, x):
    dn = ("NCHW", "OIHW", "NCHW")
    y = lax.conv_general_dilated(x, params["conv1_w"], (1, 1), "VALID",
                                 dimension_numbers=dn)
    y = jax.nn.relu(y + params["conv1_b"][None, :, None, None])
    y = _avgpool_ref(y)
    y = lax.conv_general_dilated(y, params["conv2_w"], (1, 1), "VALID",
                                 dimension_numbers=dn)
    y = jax.nn.relu(y + params["conv2_b"][None, :, None, None])
    y = _avgpool_ref(y)
    y = y.reshape(y.shape[0], -1)
    y = jax.nn.relu(y @ params["fc1_w"].T + params["fc1_b"])
    y = jax.nn.relu(y @ params["fc2_w"].T + params["fc2_b"])
    return y @ params["fc3_w"].T + params["fc3_b"]


if __name__ == "__main__":
    key = jax.random.PRNGKey(0)
    pkey, xkey = jax.random.split(key)
    params = init_params(pkey)
    # batch=2, NCHW, 3x32x32 (spatial size fixed by fc1 in_features = 576)
    x = jax.random.normal(xkey, (2, 3, 32, 32), dtype=jnp.float32)

    prepped = prepare_params(params)            # one-time weight repack
    fwd = jax.jit(lenet_relu_forward)
    out = jax.block_until_ready(fwd(prepped, x))

    assert out.shape == (2, 10), out.shape
    assert out.dtype == jnp.float32

    ref = jax.block_until_ready(jax.jit(lenet_relu_reference)(params, x))
    # bf16 MXU inputs (+ bf16 pooling matmul) vs the f32 reference -> small
    # deviations; a real indexing bug would be orders of magnitude larger.
    assert bool(jnp.allclose(out, ref, atol=0.08, rtol=0.08)), (
        f"mismatch vs reference: max abs err {float(jnp.max(jnp.abs(out - ref)))}")

    print("KERNEL_OK")
</pallas_src>

<mosaic_0001>
module attributes {stable_mosaic.version = 11 : i64} {
  func.func @_lenet_kernel(%arg0: memref<1920x128xbf16, #tpu.memory_space<vmem>>, %arg1: memref<128x128xbf16, #tpu.memory_space<vmem>>, %arg2: memref<1x128xf32, #tpu.memory_space<vmem>>, %arg3: memref<9x128x128xbf16, #tpu.memory_space<vmem>>, %arg4: memref<1x128xf32, #tpu.memory_space<vmem>>, %arg5: memref<72x512xbf16, #tpu.memory_space<vmem>>, %arg6: memref<4608x128xbf16, #tpu.memory_space<vmem>>, %arg7: memref<1x128xf32, #tpu.memory_space<vmem>>, %arg8: memref<128x128xbf16, #tpu.memory_space<vmem>>, %arg9: memref<1x128xf32, #tpu.memory_space<vmem>>, %arg10: memref<128x128xbf16, #tpu.memory_space<vmem>>, %arg11: memref<1x128xf32, #tpu.memory_space<vmem>>, %arg12: memref<2x128xf32, #tpu.memory_space<vmem>>, %arg13: memref<576x128xbf16, #tpu.memory_space<vmem>>, %arg14: memref<72x128xbf16, #tpu.memory_space<vmem>>, %arg15: memref<2x4608xbf16, #tpu.memory_space<vmem>>) attributes {dimension_semantics = [], scalar_prefetch = 0 : i64, scratch_operands = 3 : i64, tpu.core_type = #tpu.core_type<tc>} {
    %c0 = arith.constant 0 : index
    %c0_0 = arith.constant 0 : index
    %0 = vector.load %arg0[%c0, %c0_0] : memref<1920x128xbf16, #tpu.memory_space<vmem>>, vector<1920x128xbf16>
    %c0_1 = arith.constant 0 : index
    %c0_2 = arith.constant 0 : index
    %1 = vector.load %arg1[%c0_1, %c0_2] : memref<128x128xbf16, #tpu.memory_space<vmem>>, vector<128x128xbf16>
    %cst = arith.constant dense<0.000000e+00> : vector<1920x128xf32>
    %2 = tpu.matmul %0, %1, %cst {dimension_numbers = #tpu.dot_dimension_numbers<[1], [0], [0], [1], [0, 0, 1, 1], [], []>} : vector<1920x128xbf16>, vector<128x128xbf16>, vector<1920x128xf32> -> vector<1920x128xf32>
    %c0_3 = arith.constant 0 : index
    %c0_4 = arith.constant 0 : index
    %3 = vector.load %arg2[%c0_3, %c0_4] : memref<1x128xf32, #tpu.memory_space<vmem>>, vector<1x128xf32>
    %4 = vector.broadcast %3 : vector<1x128xf32> to vector<1920x128xf32>
    %5 = arith.addf %2, %4 : vector<1920x128xf32>
    %cst_5 = arith.constant 0.000000e+00 : f32
    %6 = vector.broadcast %cst_5 : f32 to vector<1920x128xf32>
    %7 = arith.maximumf %5, %6 : vector<1920x128xf32>
    %8 = vector.extract_strided_slice %7 {offsets = [0, 0], sizes = [240, 128], strides = [1, 1]} : vector<1920x128xf32> to vector<240x128xf32>
    %9 = vector.extract_strided_slice %7 {offsets = [240, 0], sizes = [240, 128], strides = [1, 1]} : vector<1920x128xf32> to vector<240x128xf32>
    %10 = arith.addf %8, %9 : vector<240x128xf32>
    %11 = vector.extract_strided_slice %7 {offsets = [480, 0], sizes = [240, 128], strides = [1, 1]} : vector<1920x128xf32> to vector<240x128xf32>
    %12 = arith.addf %10, %11 : vector<240x128xf32>
    %13 = vector.extract_strided_slice %7 {offsets = [720, 0], sizes = [240, 128], strides = [1, 1]} : vector<1920x128xf32> to vector<240x128xf32>
    %14 = arith.addf %12, %13 : vector<240x128xf32>
    %cst_6 = arith.constant 2.500000e-01 : f32
    %15 = vector.broadcast %cst_6 : f32 to vector<240x128xf32>
    %16 = arith.mulf %15, %14 : vector<240x128xf32>
    %17 = arith.truncf %16 : vector<240x128xf32> to vector<240x128xbf16>
    %c0_7 = arith.constant 0 : index
    %c0_8 = arith.constant 0 : index
    %18 = vector.load %arg13[%c0_7, %c0_8] : memref<576x128xbf16, #tpu.memory_space<vmem>>, vector<240x128xbf16>
    tpu.vector_store %arg13[%c0_7, %c0_8], %17 {strides = array<i32>} : memref<576x128xbf16, #tpu.memory_space<vmem>>, vector<240x128xbf16>,
    %cst_9 = arith.constant 0.000000e+00 : bf16
    %19 = vector.broadcast %cst_9 : bf16 to vector<16x128xbf16>
    %c240 = arith.constant 240 : index
    %c0_10 = arith.constant 0 : index
    %20 = vector.load %arg13[%c240, %c0_10] : memref<576x128xbf16, #tpu.memory_space<vmem>>, vector<16x128xbf16>
    tpu.vector_store %arg13[%c240, %c0_10], %19 {strides = array<i32>} : memref<576x128xbf16, #tpu.memory_space<vmem>>, vector<16x128xbf16>,
    %21 = vector.extract_strided_slice %7 {offsets = [960, 0], sizes = [240, 128], strides = [1, 1]} : vector<1920x128xf32> to vector<240x128xf32>
    %22 = vector.extract_strided_slice %7 {offsets = [1200, 0], sizes = [240, 128], strides = [1, 1]} : vector<1920x128xf32> to vector<240x128xf32>
    %23 = arith.addf %21, %22 : vector<240x128xf32>
    %24 = vector.extract_strided_slice %7 {offsets = [1440, 0], sizes = [240, 128], strides = [1, 1]} : vector<1920x128xf32> to vector<240x128xf32>
    %25 = arith.addf %23, %24 : vector<240x128xf32>
    %26 = vector.extract_strided_slice %7 {offsets = [1680, 0], sizes = [240, 128], strides = [1, 1]} : vector<1920x128xf32> to vector<240x128xf32>
    %27 = arith.addf %25, %26 : vector<240x128xf32>
    %cst_11 = arith.constant 2.500000e-01 : f32
    %28 = vector.broadcast %cst_11 : f32 to vector<240x128xf32>
    %29 = arith.mulf %28, %27 : vector<240x128xf32>
    %30 = arith.truncf %29 : vector<240x128xf32> to vector<240x128xbf16>
    %c256 = arith.constant 256 : index
    %c0_12 = arith.constant 0 : index
    %31 = vector.load %arg13[%c256, %c0_12] : memref<576x128xbf16, #tpu.memory_space<vmem>>, vector<240x128xbf16>
    tpu.vector_store %arg13[%c256, %c0_12], %30 {strides = array<i32>} : memref<576x128xbf16, #tpu.memory_space<vmem>>, vector<240x128xbf16>,
    %cst_13 = arith.constant 0.000000e+00 : bf16
    %32 = vector.broadcast %cst_13 : bf16 to vector<16x128xbf16>
    %c496 = arith.constant 496 : index
    %c0_14 = arith.constant 0 : index
    %33 = vector.load %arg13[%c496, %c0_14] : memref<576x128xbf16, #tpu.memory_space<vmem>>, vector<16x128xbf16>
    tpu.vector_store %arg13[%c496, %c0_14], %32 {strides = array<i32>} : memref<576x128xbf16, #tpu.memory_space<vmem>>, vector<16x128xbf16>,
    %cst_15 = arith.constant 0.000000e+00 : bf16
    %34 = vector.broadcast %cst_15 : bf16 to vector<64x128xbf16>
    %c512 = arith.constant 512 : index
    %c0_16 = arith.constant 0 : index
    %35 = vector.load %arg13[%c512, %c0_16] : memref<576x128xbf16, #tpu.memory_space<vmem>>, vector<64x128xbf16>
    tpu.vector_store %arg13[%c512, %c0_16], %34 {strides = array<i32>} : memref<576x128xbf16, #tpu.memory_space<vmem>>, vector<64x128xbf16>,
    %c0_17 = arith.constant 0 : index
    %c0_18 = arith.constant 0 : index
    %36 = vector.load %arg13[%c0_17, %c0_18] : memref<576x128xbf16, #tpu.memory_space<vmem>>, vector<512x128xbf16>
    %c0_19 = arith.constant 0 : index
    %c0_20 = arith.constant 0 : index
    %c0_21 = arith.constant 0 : index
    %37 = vector.load %arg3[%c0_19, %c0_20, %c0_21] : memref<9x128x128xbf16, #tpu.memory_space<vmem>>, vector<1x128x128xbf16>
    %38 = vector.shape_cast %37 : vector<1x128x128xbf16> to vector<128x128xbf16>
    %cst_22 = arith.constant dense<0.000000e+00> : vector<512x128xf32>
    %39 = tpu.matmul %36, %38, %cst_22 {dimension_numbers = #tpu.dot_dimension_numbers<[1], [0], [0], [1], [0, 0, 1, 1], [], []>} : vector<512x128xbf16>, vector<128x128xbf16>, vector<512x128xf32> -> vector<512x128xf32>
    %c1 = arith.constant 1 : index
    %c0_23 = arith.constant 0 : index
    %40 = vector.load %arg13[%c1, %c0_23] : memref<576x128xbf16, #tpu.memory_space<vmem>>, vector<512x128xbf16>
    %c1_24 = arith.constant 1 : index
    %c0_25 = arith.constant 0 : index
    %c0_26 = arith.constant 0 : index
    %41 = vector.load %arg3[%c1_24, %c0_25, %c0_26] : memref<9x128x128xbf16, #tpu.memory_space<vmem>>, vector<1x128x128xbf16>
    %42 = vector.shape_cast %41 : vector<1x128x128xbf16> to vector<128x128xbf16>
    %cst_27 = arith.constant dense<0.000000e+00> : vector<512x128xf32>
    %43 = tpu.matmul %40, %42, %cst_27 {dimension_numbers = #tpu.dot_dimension_numbers<[1], [0], [0], [1], [0, 0, 1, 1], [], []>} : vector<512x128xbf16>, vector<128x128xbf16>, vector<512x128xf32> -> vector<512x128xf32>
    %44 = arith.addf %39, %43 : vector<512x128xf32>
    %c2 = arith.constant 2 : index
    %c0_28 = arith.constant 0 : index
    %45 = vector.load %arg13[%c2, %c0_28] : memref<576x128xbf16, #tpu.memory_space<vmem>>, vector<512x128xbf16>
    %c2_29 = arith.constant 2 : index
    %c0_30 = arith.constant 0 : index
    %c0_31 = arith.constant 0 : index
    %46 = vector.load %arg3[%c2_29, %c0_30, %c0_31] : memref<9x128x128xbf16, #tpu.memory_space<vmem>>, vector<1x128x128xbf16>
    %47 = vector.shape_cast %46 : vector<1x128x128xbf16> to vector<128x128xbf16>
    %cst_32 = arith.constant dense<0.000000e+00> : vector<512x128xf32>
    %48 = tpu.matmul %45, %47, %cst_32 {dimension_numbers = #tpu.dot_dimension_numbers<[1], [0], [0], [1], [0, 0, 1, 1], [], []>} : vector<512x128xbf16>, vector<128x128xbf16>, vector<512x128xf32> -> vector<512x128xf32>
    %49 = arith.addf %44, %48 : vector<512x128xf32>
    %c16 = arith.constant 16 : index
    %c0_33 = arith.constant 0 : index
    %50 = vector.load %arg13[%c16, %c0_33] : memref<576x128xbf16, #tpu.memory_space<vmem>>, vector<512x128xbf16>
    %c3 = arith.constant 3 : index
    %c0_34 = arith.constant 0 : index
    %c0_35 = arith.constant 0 : index
    %51 = vector.load %arg3[%c3, %c0_34, %c0_35] : memref<9x128x128xbf16, #tpu.memory_space<vmem>>, vector<1x128x128xbf16>
    %52 = vector.shape_cast %51 : vector<1x128x128xbf16> to vector<128x128xbf16>
    %cst_36 = arith.constant dense<0.000000e+00> : vector<512x128xf32>
    %53 = tpu.matmul %50, %52, %cst_36 {dimension_numbers = #tpu.dot_dimension_numbers<[1], [0], [0], [1], [0, 0, 1, 1], [], []>} : vector<512x128xbf16>, vector<128x128xbf16>, vector<512x128xf32> -> vector<512x128xf32>
    %54 = arith.addf %49, %53 : vector<512x128xf32>
    %c17 = arith.constant 17 : index
    %c0_37 = arith.constant 0 : index
    %55 = vector.load %arg13[%c17, %c0_37] : memref<576x128xbf16, #tpu.memory_space<vmem>>, vector<512x128xbf16>
    %c4 = arith.constant 4 : index
    %c0_38 = arith.constant 0 : index
    %c0_39 = arith.constant 0 : index
    %56 = vector.load %arg3[%c4, %c0_38, %c0_39] : memref<9x128x128xbf16, #tpu.memory_space<vmem>>, vector<1x128x128xbf16>
    %57 = vector.shape_cast %56 : vector<1x128x128xbf16> to vector<128x128xbf16>
    %cst_40 = arith.constant dense<0.000000e+00> : vector<512x128xf32>
    %58 = tpu.matmul %55, %57, %cst_40 {dimension_numbers = #tpu.dot_dimension_numbers<[1], [0], [0], [1], [0, 0, 1, 1], [], []>} : vector<512x128xbf16>, vector<128x128xbf16>, vector<512x128xf32> -> vector<512x128xf32>
    %59 = arith.addf %54, %58 : vector<512x128xf32>
    %c18 = arith.constant 18 : index
    %c0_41 = arith.constant 0 : index
    %60 = vector.load %arg13[%c18, %c0_41] : memref<576x128xbf16, #tpu.memory_space<vmem>>, vector<512x128xbf16>
    %c5 = arith.constant 5 : index
    %c0_42 = arith.constant 0 : index
    %c0_43 = arith.constant 0 : index
    %61 = vector.load %arg3[%c5, %c0_42, %c0_43] : memref<9x128x128xbf16, #tpu.memory_space<vmem>>, vector<1x128x128xbf16>
    %62 = vector.shape_cast %61 : vector<1x128x128xbf16> to vector<128x128xbf16>
    %cst_44 = arith.constant dense<0.000000e+00> : vector<512x128xf32>
    %63 = tpu.matmul %60, %62, %cst_44 {dimension_numbers = #tpu.dot_dimension_numbers<[1], [0], [0], [1], [0, 0, 1, 1], [], []>} : vector<512x128xbf16>, vector<128x128xbf16>, vector<512x128xf32> -> vector<512x128xf32>
    %64 = arith.addf %59, %63 : vector<512x128xf32>
    %c32 = arith.constant 32 : index
    %c0_45 = arith.constant 0 : index
    %65 = vector.load %arg13[%c32, %c0_45] : memref<576x128xbf16, #tpu.memory_space<vmem>>, vector<512x128xbf16>
    %c6 = arith.constant 6 : index
    %c0_46 = arith.constant 0 : index
    %c0_47 = arith.constant 0 : index
    %66 = vector.load %arg3[%c6, %c0_46, %c0_47] : memref<9x128x128xbf16, #tpu.memory_space<vmem>>, vector<1x128x128xbf16>
    %67 = vector.shape_cast %66 : vector<1x128x128xbf16> to vector<128x128xbf16>
    %cst_48 = arith.constant dense<0.000000e+00> : vector<512x128xf32>
    %68 = tpu.matmul %65, %67, %cst_48 {dimension_numbers = #tpu.dot_dimension_numbers<[1], [0], [0], [1], [0, 0, 1, 1], [], []>} : vector<512x128xbf16>, vector<128x128xbf16>, vector<512x128xf32> -> vector<512x128xf32>
    %69 = arith.addf %64, %68 : vector<512x128xf32>
    %c33 = arith.constant 33 : index
    %c0_49 = arith.constant 0 : index
    %70 = vector.load %arg13[%c33, %c0_49] : memref<576x128xbf16, #tpu.memory_space<vmem>>, vector<512x128xbf16>
    %c7 = arith.constant 7 : index
    %c0_50 = arith.constant 0 : index
    %c0_51 = arith.constant 0 : index
    %71 = vector.load %arg3[%c7, %c0_50, %c0_51] : memref<9x128x128xbf16, #tpu.memory_space<vmem>>, vector<1x128x128xbf16>
    %72 = vector.shape_cast %71 : vector<1x128x128xbf16> to vector<128x128xbf16>
    %cst_52 = arith.constant dense<0.000000e+00> : vector<512x128xf32>
    %73 = tpu.matmul %70, %72, %cst_52 {dimension_numbers = #tpu.dot_dimension_numbers<[1], [0], [0], [1], [0, 0, 1, 1], [], []>} : vector<512x128xbf16>, vector<128x128xbf16>, vector<512x128xf32> -> vector<512x128xf32>
    %74 = arith.addf %69, %73 : vector<512x128xf32>
    %c34 = arith.constant 34 : index
    %c0_53 = arith.constant 0 : index
    %75 = vector.load %arg13[%c34, %c0_53] : memref<576x128xbf16, #tpu.memory_space<vmem>>, vector<512x128xbf16>
    %c8 = arith.constant 8 : index
    %c0_54 = arith.constant 0 : index
    %c0_55 = arith.constant 0 : index
    %76 = vector.load %arg3[%c8, %c0_54, %c0_55] : memref<9x128x128xbf16, #tpu.memory_space<vmem>>, vector<1x128x128xbf16>
    %77 = vector.shape_cast %76 : vector<1x128x128xbf16> to vector<128x128xbf16>
    %cst_56 = arith.constant dense<0.000000e+00> : vector<512x128xf32>
    %78 = tpu.matmul %75, %77, %cst_56 {dimension_numbers = #tpu.dot_dimension_numbers<[1], [0], [0], [1], [0, 0, 1, 1], [], []>} : vector<512x128xbf16>, vector<128x128xbf16>, vector<512x128xf32> -> vector<512x128xf32>
    %79 = arith.addf %74, %78 : vector<512x128xf32>
    %c0_57 = arith.constant 0 : index
    %c0_58 = arith.constant 0 : index
    %80 = vector.load %arg4[%c0_57, %c0_58] : memref<1x128xf32, #tpu.memory_space<vmem>>, vector<1x128xf32>
    %81 = vector.broadcast %80 : vector<1x128xf32> to vector<512x128xf32>
    %82 = arith.addf %79, %81 : vector<512x128xf32>
    %cst_59 = arith.constant 0.000000e+00 : f32
    %83 = vector.broadcast %cst_59 : f32 to vector<512x128xf32>
    %84 = arith.maximumf %82, %83 : vector<512x128xf32>
    %85 = arith.truncf %84 : vector<512x128xf32> to vector<512x128xbf16>
    %c0_60 = arith.constant 0 : index
    %c0_61 = arith.constant 0 : index
    %86 = vector.load %arg5[%c0_60, %c0_61] : memref<72x512xbf16, #tpu.memory_space<vmem>>, vector<72x512xbf16>
    %cst_62 = arith.constant dense<0.000000e+00> : vector<72x128xf32>
    %87 = tpu.matmul %86, %85, %cst_62 {dimension_numbers = #tpu.dot_dimension_numbers<[1], [0], [0], [1], [0, 0, 1, 1], [], []>} : vector<72x512xbf16>, vector<512x128xbf16>, vector<72x128xf32> -> vector<72x128xf32>
    %88 = arith.truncf %87 : vector<72x128xf32> to vector<72x128xbf16>
    %c0_63 = arith.constant 0 : index
    %c0_64 = arith.constant 0 : index
    %89 = vector.load %arg14[%c0_63, %c0_64] : memref<72x128xbf16, #tpu.memory_space<vmem>>, vector<72x128xbf16>
    tpu.vector_store %arg14[%c0_63, %c0_64], %88 {strides = array<i32>} : memref<72x128xbf16, #tpu.memory_space<vmem>>, vector<72x128xbf16>,
    %c0_65 = arith.constant 0 : index
    %c0_66 = arith.constant 0 : index
    %90 = vector.load %arg14[%c0_65, %c0_66] : memref<72x128xbf16, #tpu.memory_space<vmem>>, vector<2x128xbf16>
    %c0_67 = arith.constant 0 : index
    %c0_68 = arith.constant 0 : index
    %91 = vector.load %arg15[%c0_67, %c0_68] : memref<2x4608xbf16, #tpu.memory_space<vmem>>, vector<2x128xbf16>
    tpu.vector_store %arg15[%c0_67, %c0_68], %90 {strides = array<i32>} : memref<2x4608xbf16, #tpu.memory_space<vmem>>, vector<2x128xbf16>,
    %c2_69 = arith.constant 2 : index
    %c0_70 = arith.constant 0 : index
    %92 = vector.load %arg14[%c2_69, %c0_70] : memref<72x128xbf16, #tpu.memory_space<vmem>>, vector<2x128xbf16>
    %c0_71 = arith.constant 0 : index
    %c128 = arith.constant 128 : index
    %93 = vector.load %arg15[%c0_71, %c128] : memref<2x4608xbf16, #tpu.memory_space<vmem>>, vector<2x128xbf16>
    tpu.vector_store %arg15[%c0_71, %c128], %92 {strides = array<i32>} : memref<2x4608xbf16, #tpu.memory_space<vmem>>, vector<2x128xbf16>,
    %c4_72 = arith.constant 4 : index
    %c0_73 = arith.constant 0 : index
    %94 = vector.load %arg14[%c4_72, %c0_73] : memref<72x128xbf16, #tpu.memory_space<vmem>>, vector<2x128xbf16>
    %c0_74 = arith.constant 0 : index
    %c256_75 = arith.constant 256 : index
    %95 = vector.load %arg15[%c0_74, %c256_75] : memref<2x4608xbf16, #tpu.memory_space<vmem>>, vector<2x128xbf16>
    tpu.vector_store %arg15[%c0_74, %c256_75], %94 {strides = array<i32>} : memref<2x4608xbf16, #tpu.memory_space<vmem>>, vector<2x128xbf16>,
    %c6_76 = arith.constant 6 : index
    %c0_77 = arith.constant 0 : index
    %96 = vector.load %arg14[%c6_76, %c0_77] : memref<72x128xbf16, #tpu.memory_space<vmem>>, vector<2x128xbf16>
    %c0_78 = arith.constant 0 : index
    %c384 = arith.constant 384 : index
    %97 = vector.load %arg15[%c0_78, %c384] : memref<2x4608xbf16, #tpu.memory_space<vmem>>, vector<2x128xbf16>
    tpu.vector_store %arg15[%c0_78, %c384], %96 {strides = array<i32>} : memref<2x4608xbf16, #tpu.memory_space<vmem>>, vector<2x128xbf16>,
    %c8_79 = arith.constant 8 : index
    %c0_80 = arith.constant 0 : index
    %98 = vector.load %arg14[%c8_79, %c0_80] : memref<72x128xbf16, #tpu.memory_space<vmem>>, vector<2x128xbf16>
    %c0_81 = arith.constant 0 : index
    %c512_82 = arith.constant 512 : index
    %99 = vector.load %arg15[%c0_81, %c512_82] : memref<2x4608xbf16, #tpu.memory_space<vmem>>, vector<2x128xbf16>
    tpu.vector_store %arg15[%c0_81, %c512_82], %98 {strides = array<i32>} : memref<2x4608xbf16, #tpu.memory_space<vmem>>, vector<2x128xbf16>,
    %c10 = arith.constant 10 : index
    %c0_83 = arith.constant 0 : index
    %100 = vector.load %arg14[%c10, %c0_83] : memref<72x128xbf16, #tpu.memory_space<vmem>>, vector<2x128xbf16>
    %c0_84 = arith.constant 0 : index
    %c640 = arith.constant 640 : index
    %101 = vector.load %arg15[%c0_84, %c640] : memref<2x4608xbf16, #tpu.memory_space<vmem>>, vector<2x128xbf16>
    tpu.vector_store %arg15[%c0_84, %c640], %100 {strides = array<i32>} : memref<2x4608xbf16, #tpu.memory_space<vmem>>, vector<2x128xbf16>,
    %c12 = arith.constant 12 : index
    %c0_85 = arith.constant 0 : index
    %102 = vector.load %arg14[%c12, %c0_85] : memref<72x128xbf16, #tpu.memory_space<vmem>>, vector<2x128xbf16>
    %c0_86 = arith.constant 0 : index
    %c768 = arith.constant 768 : index
    %103 = vector.load %arg15[%c0_86, %c768] : memref<2x4608xbf16, #tpu.memory_space<vmem>>, vector<2x128xbf16>
    tpu.vector_store %arg15[%c0_86, %c768], %102 {strides = array<i32>} : memref<2x4608xbf16, #tpu.memory_space<vmem>>, vector<2x128xbf16>,
    %c14 = arith.constant 14 : index
    %c0_87 = arith.constant 0 : index
    %104 = vector.load %arg14[%c14, %c0_87] : memref<72x128xbf16, #tpu.memory_space<vmem>>, vector<2x128xbf16>
    %c0_88 = arith.constant 0 : index
    %c896 = arith.constant 896 : index
    %105 = vector.load %arg15[%c0_88, %c896] : memref<2x4608xbf16, #tpu.memory_space<vmem>>, vector<2x128xbf16>
    tpu.vector_store %arg15[%c0_88, %c896], %104 {strides = array<i32>} : memref<2x4608xbf16, #tpu.memory_space<vmem>>, vector<2x128xbf16>,
    %c16_89 = arith.constant 16 : index
    %c0_90 = arith.constant 0 : index
    %106 = vector.load %arg14[%c16_89, %c0_90] : memref<72x128xbf16, #tpu.memory_space<vmem>>, vector<2x128xbf16>
    %c0_91 = arith.constant 0 : index
    %c1024 = arith.constant 1024 : index
    %107 = vector.load %arg15[%c0_91, %c1024] : memref<2x4608xbf16, #tpu.memory_space<vmem>>, vector<2x128xbf16>
    tpu.vector_store %arg15[%c0_91, %c1024], %106 {strides = array<i32>} : memref<2x4608xbf16, #tpu.memory_space<vmem>>, vector<2x128xbf16>,
    %c18_92 = arith.constant 18 : index
    %c0_93 = arith.constant 0 : index
    %108 = vector.load %arg14[%c18_92, %c0_93] : memref<72x128xbf16, #tpu.memory_space<vmem>>, vector<2x128xbf16>
    %c0_94 = arith.constant 0 : index
    %c1152 = arith.constant 1152 : index
    %109 = vector.load %arg15[%c0_94, %c1152] : memref<2x4608xbf16, #tpu.memory_space<vmem>>, vector<2x128xbf16>
    tpu.vector_store %arg15[%c0_94, %c1152], %108 {strides = array<i32>} : memref<2x4608xbf16, #tpu.memory_space<vmem>>, vector<2x128xbf16>,
    %c20 = arith.constant 20 : index
    %c0_95 = arith.constant 0 : index
    %110 = vector.load %arg14[%c20, %c0_95] : memref<72x128xbf16, #tpu.memory_space<vmem>>, vector<2x128xbf16>
    %c0_96 = arith.constant 0 : index
    %c1280 = arith.constant 1280 : index
    %111 = vector.load %arg15[%c0_96, %c1280] : memref<2x4608xbf16, #tpu.memory_space<vmem>>, vector<2x128xbf16>
    tpu.vector_store %arg15[%c0_96, %c1280], %110 {strides = array<i32>} : memref<2x4608xbf16, #tpu.memory_space<vmem>>, vector<2x128xbf16>,
    %c22 = arith.constant 22 : index
    %c0_97 = arith.constant 0 : index
    %112 = vector.load %arg14[%c22, %c0_97] : memref<72x128xbf16, #tpu.memory_space<vmem>>, vector<2x128xbf16>
    %c0_98 = arith.constant 0 : index
    %c1408 = arith.constant 1408 : index
    %113 = vector.load %arg15[%c0_98, %c1408] : memref<2x4608xbf16, #tpu.memory_space<vmem>>, vector<2x128xbf16>
    tpu.vector_store %arg15[%c0_98, %c1408], %112 {strides = array<i32>} : memref<2x4608xbf16, #tpu.memory_space<vmem>>, vector<2x128xbf16>,
    %c24 = arith.constant 24 : index
    %c0_99 = arith.constant 0 : index
    %114 = vector.load %arg14[%c24, %c0_99] : memref<72x128xbf16, #tpu.memory_space<vmem>>, vector<2x128xbf16>
    %c0_100 = arith.constant 0 : index
    %c1536 = arith.constant 1536 : index
    %115 = vector.load %arg15[%c0_100, %c1536] : memref<2x4608xbf16, #tpu.memory_space<vmem>>, vector<2x128xbf16>
    tpu.vector_store %arg15[%c0_100, %c1536], %114 {strides = array<i32>} : memref<2x4608xbf16, #tpu.memory_space<vmem>>, vector<2x128xbf16>,
    %c26 = arith.constant 26 : index
    %c0_101 = arith.constant 0 : index
    %116 = vector.load %arg14[%c26, %c0_101] : memref<72x128xbf16, #tpu.memory_space<vmem>>, vector<2x128xbf16>
    %c0_102 = arith.constant 0 : index
    %c1664 = arith.constant 1664 : index
    %117 = vector.load %arg15[%c0_102, %c1664] : memref<2x4608xbf16, #tpu.memory_space<vmem>>, vector<2x128xbf16>
    tpu.vector_store %arg15[%c0_102, %c1664], %116 {strides = array<i32>} : memref<2x4608xbf16, #tpu.memory_space<vmem>>, vector<2x128xbf16>,
    %c28 = arith.constant 28 : index
    %c0_103 = arith.constant 0 : index
    %118 = vector.load %arg14[%c28, %c0_103] : memref<72x128xbf16, #tpu.memory_space<vmem>>, vector<2x128xbf16>
    %c0_104 = arith.constant 0 : index
    %c1792 = arith.constant 1792 : index
    %119 = vector.load %arg15[%c0_104, %c1792] : memref<2x4608xbf16, #tpu.memory_space<vmem>>, vector<2x128xbf16>
    tpu.vector_store %arg15[%c0_104, %c1792], %118 {strides = array<i32>} : memref<2x4608xbf16, #tpu.memory_space<vmem>>, vector<2x128xbf16>,
    %c30 = arith.constant 30 : index
    %c0_105 = arith.constant 0 : index
    %120 = vector.load %arg14[%c30, %c0_105] : memref<72x128xbf16, #tpu.memory_space<vmem>>, vector<2x128xbf16>
    %c0_106 = arith.constant 0 : index
    %c1920 = arith.constant 1920 : index
    %121 = vector.load %arg15[%c0_106, %c1920] : memref<2x4608xbf16, #tpu.memory_space<vmem>>, vector<2x128xbf16>
    tpu.vector_store %arg15[%c0_106, %c1920], %120 {strides = array<i32>} : memref<2x4608xbf16, #tpu.memory_space<vmem>>, vector<2x128xbf16>,
    %c32_107 = arith.constant 32 : index
    %c0_108 = arith.constant 0 : index
    %122 = vector.load %arg14[%c32_107, %c0_108] : memref<72x128xbf16, #tpu.memory_space<vmem>>, vector<2x128xbf16>
    %c0_109 = arith.constant 0 : index
    %c2048 = arith.constant 2048 : index
    %123 = vector.load %arg15[%c0_109, %c2048] : memref<2x4608xbf16, #tpu.memory_space<vmem>>, vector<2x128xbf16>
    tpu.vector_store %arg15[%c0_109, %c2048], %122 {strides = array<i32>} : memref<2x4608xbf16, #tpu.memory_space<vmem>>, vector<2x128xbf16>,
    %c34_110 = arith.constant 34 : index
    %c0_111 = arith.constant 0 : index
    %124 = vector.load %arg14[%c34_110, %c0_111] : memref<72x128xbf16, #tpu.memory_space<vmem>>, vector<2x128xbf16>
    %c0_112 = arith.constant 0 : index
    %c2176 = arith.constant 2176 : index
    %125 = vector.load %arg15[%c0_112, %c2176] : memref<2x4608xbf16, #tpu.memory_space<vmem>>, vector<2x128xbf16>
    tpu.vector_store %arg15[%c0_112, %c2176], %124 {strides = array<i32>} : memref<2x4608xbf16, #tpu.memory_space<vmem>>, vector<2x128xbf16>,
    %c36 = arith.constant 36 : index
    %c0_113 = arith.constant 0 : index
    %126 = vector.load %arg14[%c36, %c0_113] : memref<72x128xbf16, #tpu.memory_space<vmem>>, vector<2x128xbf16>
    %c0_114 = arith.constant 0 : index
    %c2304 = arith.constant 2304 : index
    %127 = vector.load %arg15[%c0_114, %c2304] : memref<2x4608xbf16, #tpu.memory_space<vmem>>, vector<2x128xbf16>
    tpu.vector_store %arg15[%c0_114, %c2304], %126 {strides = array<i32>} : memref<2x4608xbf16, #tpu.memory_space<vmem>>, vector<2x128xbf16>,
    %c38 = arith.constant 38 : index
    %c0_115 = arith.constant 0 : index
    %128 = vector.load %arg14[%c38, %c0_115] : memref<72x128xbf16, #tpu.memory_space<vmem>>, vector<2x128xbf16>
    %c0_116 = arith.constant 0 : index
    %c2432 = arith.constant 2432 : index
    %129 = vector.load %arg15[%c0_116, %c2432] : memref<2x4608xbf16, #tpu.memory_space<vmem>>, vector<2x128xbf16>
    tpu.vector_store %arg15[%c0_116, %c2432], %128 {strides = array<i32>} : memref<2x4608xbf16, #tpu.memory_space<vmem>>, vector<2x128xbf16>,
    %c40 = arith.constant 40 : index
    %c0_117 = arith.constant 0 : index
    %130 = vector.load %arg14[%c40, %c0_117] : memref<72x128xbf16, #tpu.memory_space<vmem>>, vector<2x128xbf16>
    %c0_118 = arith.constant 0 : index
    %c2560 = arith.constant 2560 : index
    %131 = vector.load %arg15[%c0_118, %c2560] : memref<2x4608xbf16, #tpu.memory_space<vmem>>, vector<2x128xbf16>
    tpu.vector_store %arg15[%c0_118, %c2560], %130 {strides = array<i32>} : memref<2x4608xbf16, #tpu.memory_space<vmem>>, vector<2x128xbf16>,
    %c42 = arith.constant 42 : index
    %c0_119 = arith.constant 0 : index
    %132 = vector.load %arg14[%c42, %c0_119] : memref<72x128xbf16, #tpu.memory_space<vmem>>, vector<2x128xbf16>
    %c0_120 = arith.constant 0 : index
    %c2688 = arith.constant 2688 : index
    %133 = vector.load %arg15[%c0_120, %c2688] : memref<2x4608xbf16, #tpu.memory_space<vmem>>, vector<2x128xbf16>
    tpu.vector_store %arg15[%c0_120, %c2688], %132 {strides = array<i32>} : memref<2x4608xbf16, #tpu.memory_space<vmem>>, vector<2x128xbf16>,
    %c44 = arith.constant 44 : index
    %c0_121 = arith.constant 0 : index
    %134 = vector.load %arg14[%c44, %c0_121] : memref<72x128xbf16, #tpu.memory_space<vmem>>, vector<2x128xbf16>
    %c0_122 = arith.constant 0 : index
    %c2816 = arith.constant 2816 : index
    %135 = vector.load %arg15[%c0_122, %c2816] : memref<2x4608xbf16, #tpu.memory_space<vmem>>, vector<2x128xbf16>
    tpu.vector_store %arg15[%c0_122, %c2816], %134 {strides = array<i32>} : memref<2x4608xbf16, #tpu.memory_space<vmem>>, vector<2x128xbf16>,
    %c46 = arith.constant 46 : index
    %c0_123 = arith.constant 0 : index
    %136 = vector.load %arg14[%c46, %c0_123] : memref<72x128xbf16, #tpu.memory_space<vmem>>, vector<2x128xbf16>
    %c0_124 = arith.constant 0 : index
    %c2944 = arith.constant 2944 : index
    %137 = vector.load %arg15[%c0_124, %c2944] : memref<2x4608xbf16, #tpu.memory_space<vmem>>, vector<2x128xbf16>
    tpu.vector_store %arg15[%c0_124, %c2944], %136 {strides = array<i32>} : memref<2x4608xbf16, #tpu.memory_space<vmem>>, vector<2x128xbf16>,
    %c48 = arith.constant 48 : index
    %c0_125 = arith.constant 0 : index
    %138 = vector.load %arg14[%c48, %c0_125] : memref<72x128xbf16, #tpu.memory_space<vmem>>, vector<2x128xbf16>
    %c0_126 = arith.constant 0 : index
    %c3072 = arith.constant 3072 : index
    %139 = vector.load %arg15[%c0_126, %c3072] : memref<2x4608xbf16, #tpu.memory_space<vmem>>, vector<2x128xbf16>
    tpu.vector_store %arg15[%c0_126, %c3072], %138 {strides = array<i32>} : memref<2x4608xbf16, #tpu.memory_space<vmem>>, vector<2x128xbf16>,
    %c50 = arith.constant 50 : index
    %c0_127 = arith.constant 0 : index
    %140 = vector.load %arg14[%c50, %c0_127] : memref<72x128xbf16, #tpu.memory_space<vmem>>, vector<2x128xbf16>
    %c0_128 = arith.constant 0 : index
    %c3200 = arith.constant 3200 : index
    %141 = vector.load %arg15[%c0_128, %c3200] : memref<2x4608xbf16, #tpu.memory_space<vmem>>, vector<2x128xbf16>
    tpu.vector_store %arg15[%c0_128, %c3200], %140 {strides = array<i32>} : memref<2x4608xbf16, #tpu.memory_space<vmem>>, vector<2x128xbf16>,
    %c52 = arith.constant 52 : index
    %c0_129 = arith.constant 0 : index
    %142 = vector.load %arg14[%c52, %c0_129] : memref<72x128xbf16, #tpu.memory_space<vmem>>, vector<2x128xbf16>
    %c0_130 = arith.constant 0 : index
    %c3328 = arith.constant 3328 : index
    %143 = vector.load %arg15[%c0_130, %c3328] : memref<2x4608xbf16, #tpu.memory_space<vmem>>, vector<2x128xbf16>
    tpu.vector_store %arg15[%c0_130, %c3328], %142 {strides = array<i32>} : memref<2x4608xbf16, #tpu.memory_space<vmem>>, vector<2x128xbf16>,
    %c54 = arith.constant 54 : index
    %c0_131 = arith.constant 0 : index
    %144 = vector.load %arg14[%c54, %c0_131] : memref<72x128xbf16, #tpu.memory_space<vmem>>, vector<2x128xbf16>
    %c0_132 = arith.constant 0 : index
    %c3456 = arith.constant 3456 : index
    %145 = vector.load %arg15[%c0_132, %c3456] : memref<2x4608xbf16, #tpu.memory_space<vmem>>, vector<2x128xbf16>
    tpu.vector_store %arg15[%c0_132, %c3456], %144 {strides = array<i32>} : memref<2x4608xbf16, #tpu.memory_space<vmem>>, vector<2x128xbf16>,
    %c56 = arith.constant 56 : index
    %c0_133 = arith.constant 0 : index
    %146 = vector.load %arg14[%c56, %c0_133] : memref<72x128xbf16, #tpu.memory_space<vmem>>, vector<2x128xbf16>
    %c0_134 = arith.constant 0 : index
    %c3584 = arith.constant 3584 : index
    %147 = vector.load %arg15[%c0_134, %c3584] : memref<2x4608xbf16, #tpu.memory_space<vmem>>, vector<2x128xbf16>
    tpu.vector_store %arg15[%c0_134, %c3584], %146 {strides = array<i32>} : memref<2x4608xbf16, #tpu.memory_space<vmem>>, vector<2x128xbf16>,
    %c58 = arith.constant 58 : index
    %c0_135 = arith.constant 0 : index
    %148 = vector.load %arg14[%c58, %c0_135] : memref<72x128xbf16, #tpu.memory_space<vmem>>, vector<2x128xbf16>
    %c0_136 = arith.constant 0 : index
    %c3712 = arith.constant 3712 : index
    %149 = vector.load %arg15[%c0_136, %c3712] : memref<2x4608xbf16, #tpu.memory_space<vmem>>, vector<2x128xbf16>
    tpu.vector_store %arg15[%c0_136, %c3712], %148 {strides = array<i32>} : memref<2x4608xbf16, #tpu.memory_space<vmem>>, vector<2x128xbf16>,
    %c60 = arith.constant 60 : index
    %c0_137 = arith.constant 0 : index
    %150 = vector.load %arg14[%c60, %c0_137] : memref<72x128xbf16, #tpu.memory_space<vmem>>, vector<2x128xbf16>
    %c0_138 = arith.constant 0 : index
    %c3840 = arith.constant 3840 : index
    %151 = vector.load %arg15[%c0_138, %c3840] : memref<2x4608xbf16, #tpu.memory_space<vmem>>, vector<2x128xbf16>
    tpu.vector_store %arg15[%c0_138, %c3840], %150 {strides = array<i32>} : memref<2x4608xbf16, #tpu.memory_space<vmem>>, vector<2x128xbf16>,
    %c62 = arith.constant 62 : index
    %c0_139 = arith.constant 0 : index
    %152 = vector.load %arg14[%c62, %c0_139] : memref<72x128xbf16, #tpu.memory_space<vmem>>, vector<2x128xbf16>
    %c0_140 = arith.constant 0 : index
    %c3968 = arith.constant 3968 : index
    %153 = vector.load %arg15[%c0_140, %c3968] : memref<2x4608xbf16, #tpu.memory_space<vmem>>, vector<2x128xbf16>
    tpu.vector_store %arg15[%c0_140, %c3968], %152 {strides = array<i32>} : memref<2x4608xbf16, #tpu.memory_space<vmem>>, vector<2x128xbf16>,
    %c64 = arith.constant 64 : index
    %c0_141 = arith.constant 0 : index
    %154 = vector.load %arg14[%c64, %c0_141] : memref<72x128xbf16, #tpu.memory_space<vmem>>, vector<2x128xbf16>
    %c0_142 = arith.constant 0 : index
    %c4096 = arith.constant 4096 : index
    %155 = vector.load %arg15[%c0_142, %c4096] : memref<2x4608xbf16, #tpu.memory_space<vmem>>, vector<2x128xbf16>
    tpu.vector_store %arg15[%c0_142, %c4096], %154 {strides = array<i32>} : memref<2x4608xbf16, #tpu.memory_space<vmem>>, vector<2x128xbf16>,
    %c66 = arith.constant 66 : index
    %c0_143 = arith.constant 0 : index
    %156 = vector.load %arg14[%c66, %c0_143] : memref<72x128xbf16, #tpu.memory_space<vmem>>, vector<2x128xbf16>
    %c0_144 = arith.constant 0 : index
    %c4224 = arith.constant 4224 : index
    %157 = vector.load %arg15[%c0_144, %c4224] : memref<2x4608xbf16, #tpu.memory_space<vmem>>, vector<2x128xbf16>
    tpu.vector_store %arg15[%c0_144, %c4224], %156 {strides = array<i32>} : memref<2x4608xbf16, #tpu.memory_space<vmem>>, vector<2x128xbf16>,
    %c68 = arith.constant 68 : index
    %c0_145 = arith.constant 0 : index
    %158 = vector.load %arg14[%c68, %c0_145] : memref<72x128xbf16, #tpu.memory_space<vmem>>, vector<2x128xbf16>
    %c0_146 = arith.constant 0 : index
    %c4352 = arith.constant 4352 : index
    %159 = vector.load %arg15[%c0_146, %c4352] : memref<2x4608xbf16, #tpu.memory_space<vmem>>, vector<2x128xbf16>
    tpu.vector_store %arg15[%c0_146, %c4352], %158 {strides = array<i32>} : memref<2x4608xbf16, #tpu.memory_space<vmem>>, vector<2x128xbf16>,
    %c70 = arith.constant 70 : index
    %c0_147 = arith.constant 0 : index
    %160 = vector.load %arg14[%c70, %c0_147] : memref<72x128xbf16, #tpu.memory_space<vmem>>, vector<2x128xbf16>
    %c0_148 = arith.constant 0 : index
    %c4480 = arith.constant 4480 : index
    %161 = vector.load %arg15[%c0_148, %c4480] : memref<2x4608xbf16, #tpu.memory_space<vmem>>, vector<2x128xbf16>
    tpu.vector_store %arg15[%c0_148, %c4480], %160 {strides = array<i32>} : memref<2x4608xbf16, #tpu.memory_space<vmem>>, vector<2x128xbf16>,
    %c0_149 = arith.constant 0 : index
    %c0_150 = arith.constant 0 : index
    %162 = vector.load %arg15[%c0_149, %c0_150] : memref<2x4608xbf16, #tpu.memory_space<vmem>>, vector<2x4608xbf16>
    %c0_151 = arith.constant 0 : index
    %c0_152 = arith.constant 0 : index
    %163 = vector.load %arg6[%c0_151, %c0_152] : memref<4608x128xbf16, #tpu.memory_space<vmem>>, vector<4608x128xbf16>
    %cst_153 = arith.constant dense<0.000000e+00> : vector<2x128xf32>
    %164 = tpu.matmul %162, %163, %cst_153 {dimension_numbers = #tpu.dot_dimension_numbers<[1], [0], [0], [1], [0, 0, 1, 1], [], []>} : vector<2x4608xbf16>, vector<4608x128xbf16>, vector<2x128xf32> -> vector<2x128xf32>
    %c0_154 = arith.constant 0 : index
    %c0_155 = arith.constant 0 : index
    %165 = vector.load %arg7[%c0_154, %c0_155] : memref<1x128xf32, #tpu.memory_space<vmem>>, vector<1x128xf32>
    %166 = vector.broadcast %165 : vector<1x128xf32> to vector<2x128xf32>
    %167 = arith.addf %164, %166 : vector<2x128xf32>
    %cst_156 = arith.constant 0.000000e+00 : f32
    %168 = vector.broadcast %cst_156 : f32 to vector<2x128xf32>
    %169 = arith.maximumf %167, %168 : vector<2x128xf32>
    %170 = arith.truncf %169 : vector<2x128xf32> to vector<2x128xbf16>
    %c0_157 = arith.constant 0 : index
    %c0_158 = arith.constant 0 : index
    %171 = vector.load %arg8[%c0_157, %c0_158] : memref<128x128xbf16, #tpu.memory_space<vmem>>, vector<128x128xbf16>
    %cst_159 = arith.constant dense<0.000000e+00> : vector<2x128xf32>
    %172 = tpu.matmul %170, %171, %cst_159 {dimension_numbers = #tpu.dot_dimension_numbers<[1], [0], [0], [1], [0, 0, 1, 1], [], []>} : vector<2x128xbf16>, vector<128x128xbf16>, vector<2x128xf32> -> vector<2x128xf32>
    %c0_160 = arith.constant 0 : index
    %c0_161 = arith.constant 0 : index
    %173 = vector.load %arg9[%c0_160, %c0_161] : memref<1x128xf32, #tpu.memory_space<vmem>>, vector<1x128xf32>
    %174 = vector.broadcast %173 : vector<1x128xf32> to vector<2x128xf32>
    %175 = arith.addf %172, %174 : vector<2x128xf32>
    %cst_162 = arith.constant 0.000000e+00 : f32
    %176 = vector.broadcast %cst_162 : f32 to vector<2x128xf32>
    %177 = arith.maximumf %175, %176 : vector<2x128xf32>
    %178 = arith.truncf %177 : vector<2x128xf32> to vector<2x128xbf16>
    %c0_163 = arith.constant 0 : index
    %c0_164 = arith.constant 0 : index
    %179 = vector.load %arg10[%c0_163, %c0_164] : memref<128x128xbf16, #tpu.memory_space<vmem>>, vector<128x128xbf16>
    %cst_165 = arith.constant dense<0.000000e+00> : vector<2x128xf32>
    %180 = tpu.matmul %178, %179, %cst_165 {dimension_numbers = #tpu.dot_dimension_numbers<[1], [0], [0], [1], [0, 0, 1, 1], [], []>} : vector<2x128xbf16>, vector<128x128xbf16>, vector<2x128xf32> -> vector<2x128xf32>
    %c0_166 = arith.constant 0 : index
    %c0_167 = arith.constant 0 : index
    %181 = vector.load %arg11[%c0_166, %c0_167] : memref<1x128xf32, #tpu.memory_space<vmem>>, vector<1x128xf32>
    %182 = vector.broadcast %181 : vector<1x128xf32> to vector<2x128xf32>
    %183 = arith.addf %180, %182 : vector<2x128xf32>
    %c0_168 = arith.constant 0 : index
    %c0_169 = arith.constant 0 : index
    %184 = vector.load %arg12[%c0_168, %c0_169] : memref<2x128xf32, #tpu.memory_space<vmem>>, vector<2x128xf32>
    tpu.vector_store %arg12[%c0_168, %c0_169], %183 {strides = array<i32>} : memref<2x128xf32, #tpu.memory_space<vmem>>, vector<2x128xf32>,
    return
  }
}

</mosaic_0001>

<bundles_post_ra>
// kernel: lenet_relu_forward.1
= control target key start
LH: loop header
LB: loop body
LE: loop exit
PB: predicated region body
PF: predicated region fallthrough
CT: control target
= control target key end

     0   :  { %vm3120_vm0 = vsmask.f32 7424  ;;  %vm4140_vm1 = vcmask 1046528   ;;  %s22597_s0 = inlined_call_operand.vmem [shape: bf16[1920,128], index: 0, kind: input, shape index: {}]   ;;  %s22598_s1 = inlined_call_operand.vmem [shape: bf16[128,128], index: 1, kind: input, shape index: {}]   ;;  %s22599_s2 = inlined_call_operand.vmem [shape: f32[1,128], index: 2, kind: input, shape index: {}]   ;;  %s22600_s3 = inlined_call_operand.vmem [shape: bf16[9,128,128], index: 3, kind: input, shape index: {}]   ;;  %s22601_s4 = inlined_call_operand.vmem [shape: f32[1,128], index: 4, kind: input, shape index: {}]   ;;  %s22602_s5 = inlined_call_operand.vmem [shape: bf16[72,512], index: 5, kind: input, shape index: {}]   ;;  %s22603_s6 = inlined_call_operand.vmem [shape: bf16[4608,128], index: 6, kind: input, shape index: {}]   ;;  %s22604_s7 = inlined_call_operand.vmem [shape: f32[1,128], index: 7, kind: input, shape index: {}]   ;;  %s22605_s8 = inlined_call_operand.vmem [shape: bf16[128,128], index: 8, kind: input, shape index: {}]   ;;  %s22606_s9 = inlined_call_operand.vmem [shape: f32[1,128], index: 9, kind: input, shape index: {}]   ;;  %s22607_s10 = inlined_call_operand.vmem [shape: bf16[128,128], index: 10, kind: input, shape index: {}]   ;;  %s22608_s11 = inlined_call_operand.vmem [shape: f32[1,128], index: 11, kind: input, shape index: {}]   ;;  %s22609_s12 = inlined_call_operand.hbm [shape: f32[2,128], index: 12, kind: output, shape index: {}]  }
   0x1   :  { %v16663_v0 = vld [vmem:[%s22598_s1 + $0x38] sm:$0xff]   ;;  %v16664_v1 = vld [vmem:[%s22598_s1 + $0x30] sm:$0xff]   ;;  %v16665_v2 = vld [vmem:[%s22598_s1 + $0x28] sm:$0xff]  }
   0x2   :  { %15642 = vmatprep.subr.bf16.mxu0 %v16663_v0  ;;  %v16666_v3 = vld [vmem:[%s22598_s1 + $0x20] sm:$0xff]   ;;  %v16667_v5 = vld [vmem:[%s22598_s1 + $0x18] sm:$0xff]   ;;  %v16668_v6 = vld [vmem:[%s22598_s1 + $0x10] sm:$0xff]  }
   0x3   :  { %15643 = vmatpush3.bf16.msra.mxu0 %v16663_v0  ;;  %v16671_v4 = vld [vmem:[%s22597_s0] sm:$0xff]   ;;  %v16669_v7 = vld [vmem:[%s22598_s1 + $0x8] sm:$0xff]   ;;  %v16673_v10 = vld [vmem:[%s22597_s0 + $0x10] sm:$0xff]  }
   0x4   :  { %15644 = vmatprep.subr.bf16.mxu0 %v16664_v1  ;;  %15658 = vmatprep.mubr.bf16.mxu0 %v16671_v4  ;;  %v16670_v8 = vld [vmem:[%s22598_s1] sm:$0xff]   ;;  %v16672_v9 = vld [vmem:[%s22597_s0 + $0x8] sm:$0xff]   ;;  %v16674_v11 = vld [vmem:[%s22597_s0 + $0x18] sm:$0xff]  }
   0x5   :  { %v16675_v12 = vld [vmem:[%s22597_s0 + $0x20] sm:$0xff]   ;;  %v16676_v13 = vld [vmem:[%s22597_s0 + $0x28] sm:$0xff]   ;;  %v16677_v14 = vld [vmem:[%s22597_s0 + $0x30] sm:$0xff]  }
   0x6   :  { %v16678_v15 = vld [vmem:[%s22597_s0 + $0x38] sm:$0xff]   ;;  %v16679_v16 = vld [vmem:[%s22597_s0 + $0x40] sm:$0xff]   ;;  %v16680_v17 = vld [vmem:[%s22597_s0 + $0x48] sm:$0xff]  }
   0x7   :  { %15645 = vmatpush3.bf16.msra.mxu0 %v16664_v1  ;;  %v16681_v18 = vld [vmem:[%s22597_s0 + $0x50] sm:$0xff]   ;;  %v16682_v19 = vld [vmem:[%s22597_s0 + $0x58] sm:$0xff]   ;;  %v16683_v20 = vld [vmem:[%s22597_s0 + $0x60] sm:$0xff]  }
   0x8   :  { %15646 = vmatprep.subr.bf16.mxu0 %v16665_v2  ;;  %v16684_v21 = vld [vmem:[%s22597_s0 + $0x68] sm:$0xff]   ;;  %v16685_v22 = vld [vmem:[%s22597_s0 + $0x70] sm:$0xff]   ;;  %v16686_v23 = vld [vmem:[%s22597_s0 + $0x78] sm:$0xff]  }
   0x9   :  { %v16687_v24 = vld [vmem:[%s22597_s0 + $0x80] sm:$0xff]   ;;  %v16688_v25 = vld [vmem:[%s22597_s0 + $0x88] sm:$0xff]   ;;  %v16689_v26 = vld [vmem:[%s22597_s0 + $0x90] sm:$0xff]  }
   0xa   :  { %v16690_v27 = vld [vmem:[%s22597_s0 + $0x98] sm:$0xff]   ;;  %v16691_v28 = vld [vmem:[%s22597_s0 + $0xa0] sm:$0xff]   ;;  %v16692_v29 = vld [vmem:[%s22597_s0 + $0xa8] sm:$0xff]  }
   0xb   :  { %15647 = vmatpush3.bf16.msra.mxu0 %v16665_v2  ;;  %v16693_v30 = vld [vmem:[%s22597_s0 + $0xb0] sm:$0xff]   ;;  %v16694_v31 = vld [vmem:[%s22597_s0 + $0xb8] sm:$0xff]   ;;  %v16695_v32 = vld [vmem:[%s22597_s0 + $0xc0] sm:$0xff]  }
   0xc   :  { %15648 = vmatprep.subr.bf16.mxu0 %v16666_v3  ;;  %v16696_v33 = vld [vmem:[%s22597_s0 + $0xc8] sm:$0xff]   ;;  %v16697_v34 = vld [vmem:[%s22597_s0 + $0xd0] sm:$0xff]   ;;  %v16698_v35 = vld [vmem:[%s22597_s0 + $0xd8] sm:$0xff]  }
   0xd   :  { %v16699_v36 = vld [vmem:[%s22597_s0 + $0xe0] sm:$0xff]   ;;  %v16700_v37 = vld [vmem:[%s22597_s0 + $0xe8] sm:$0xff]   ;;  %v16701_v38 = vld [vmem:[%s22597_s0 + $0xf0] sm:$0xff]  }
   0xe   :  { %v16702_v39 = vld [vmem:[%s22597_s0 + $0xf8] sm:$0xff]   ;;  %v16703_v40 = vld [vmem:[%s22597_s0 + $0x100] sm:$0xff]   ;;  %v16704_v41 = vld [vmem:[%s22597_s0 + $0x108] sm:$0xff]  }
   0xf   :  { %15649 = vmatpush3.bf16.msra.mxu0 %v16666_v3  ;;  %v16705_v42 = vld [vmem:[%s22597_s0 + $0x110] sm:$0xff]   ;;  %v16706_v43 = vld [vmem:[%s22597_s0 + $0x118] sm:$0xff]   ;;  %v16707_v44 = vld [vmem:[%s22597_s0 + $0x120] sm:$0xff]  }
  0x10   :  { %15650 = vmatprep.subr.bf16.mxu0 %v16667_v5  ;;  %v16708_v45 = vld [vmem:[%s22597_s0 + $0x128] sm:$0xff]   ;;  %v16709_v46 = vld [vmem:[%s22597_s0 + $0x130] sm:$0xff]   ;;  %v16710_v47 = vld [vmem:[%s22597_s0 + $0x138] sm:$0xff]  }
  0x11   :  { %v16711_v48 = vld [vmem:[%s22597_s0 + $0x140] sm:$0xff]   ;;  %v16712_v49 = vld [vmem:[%s22597_s0 + $0x148] sm:$0xff]   ;;  %v16713_v50 = vld [vmem:[%s22597_s0 + $0x150] sm:$0xff]  }
  0x12   :  { %v16714_v51 = vld [vmem:[%s22597_s0 + $0x158] sm:$0xff]   ;;  %v16715_v52 = vld [vmem:[%s22597_s0 + $0x160] sm:$0xff]   ;;  %v16716_v53 = vld [vmem:[%s22597_s0 + $0x168] sm:$0xff]  }
  0x13   :  { %15651 = vmatpush3.bf16.msra.mxu0 %v16667_v5  ;;  %v16717_v54 = vld [vmem:[%s22597_s0 + $0x170] sm:$0xff]   ;;  %v16718_v55 = vld [vmem:[%s22597_s0 + $0x178] sm:$0xff]   ;;  %v16719_v56 = vld [vmem:[%s22597_s0 + $0x180] sm:$0xff]  }
  0x14   :  { %15652 = vmatprep.subr.bf16.mxu0 %v16668_v6  ;;  %v16720_v57 = vld [vmem:[%s22597_s0 + $0x188] sm:$0xff]   ;;  %v16721_v58 = vld [vmem:[%s22597_s0 + $0x190] sm:$0xff]   ;;  %v16722_v61 = vld [vmem:[%s22597_s0 + $0x198] sm:$0xff]  }
  0x15   :  { %v16723_v63 = vld [vmem:[%s22597_s0 + $0x1a0] sm:$0xff]   ;;  %v16724_v3 = vld [vmem:[%s22597_s0 + $0x1a8] sm:$0xff]   ;;  %v16725_v5 = vld [vmem:[%s22597_s0 + $0x1b0] sm:$0xff]  }
  0x17   :  { %15653 = vmatpush3.bf16.msra.mxu0 %v16668_v6 }
  0x18   :  { %15654 = vmatprep.subr.bf16.mxu0 %v16669_v7 }
  0x1b   :  { %15655 = vmatpush3.bf16.msra.mxu0 %v16669_v7 }
  0x1c   :  { %15656 = vmatprep.subr.bf16.mxu0 %v16670_v8 }
  0x1f   :  { %15657 = vmatpush3.bf16.msra.mxu0 %v16670_v8 }
  0x22   :  { %15659 = vmatmul.mubr.bf16.vlgmr.msra.gmra.mxu0 %v16672_v9  ;;  %v16726_v9 = vld [vmem:[%s22597_s0 + $0x1b8] sm:$0xff]  }
  0x23   :  { %15662 = vmatprep.mubr.bf16.mxu0 %v16673_v10 }
  0x2a   :  { %15663 = vmatmul.mubr.bf16.gmra.mxu0 %v16674_v11  ;;  %v16727_v11 = vld [vmem:[%s22597_s0 + $0x1c0] sm:$0xff]  }
  0x2b   :  { %15666 = vmatprep.mubr.bf16.mxu0 %v16675_v12 }
  0x32   :  { %15667 = vmatmul.mubr.bf16.gmra.mxu0 %v16676_v13 }
  0x33   :  { %15670 = vmatprep.mubr.bf16.mxu0 %v16677_v14 }
  0x3a   :  { %15671 = vmatmul.mubr.bf16.gmra.mxu0 %v16678_v15  ;;  %v16728_v15 = vld [vmem:[%s22597_s0 + $0x1c8] sm:$0xff]  }
  0x3b   :  { %15674 = vmatprep.mubr.bf16.mxu0 %v16679_v16 }
  0x42   :  { %15675 = vmatmul.mubr.bf16.gmra.mxu0 %v16680_v17  ;;  %v16729_v17 = vld [vmem:[%s22597_s0 + $0x1d0] sm:$0xff]  }
  0x43   :  { %15678 = vmatprep.mubr.bf16.mxu0 %v16681_v18 }
  0x4a   :  { %15679 = vmatmul.mubr.bf16.gmra.mxu0 %v16682_v19 }
  0x4b   :  { %15682 = vmatprep.mubr.bf16.mxu0 %v16683_v20 }
  0x52   :  { %15683 = vmatmul.mubr.bf16.gmra.mxu0 %v16684_v21  ;;  %v16730_v21 = vld [vmem:[%s22597_s0 + $0x1d8] sm:$0xff]  }
  0x53   :  { %15686 = vmatprep.mubr.bf16.mxu0 %v16685_v22 }
  0x5a   :  { %15687 = vmatmul.mubr.bf16.gmra.mxu0 %v16686_v23  ;;  %v16731_v23 = vld [vmem:[%s22597_s0 + $0x1e0] sm:$0xff]  }
  0x5b   :  { %15690 = vmatprep.mubr.bf16.mxu0 %v16687_v24 }
  0x62   :  { %15691 = vmatmul.mubr.bf16.gmra.mxu0 %v16688_v25 }
  0x63   :  { %15694 = vmatprep.mubr.bf16.mxu0 %v16689_v26 }
  0x6a   :  { %15695 = vmatmul.mubr.bf16.gmra.mxu0 %v16690_v27  ;;  %v16732_v27 = vld [vmem:[%s22597_s0 + $0x1e8] sm:$0xff]  }
  0x6b   :  { %15698 = vmatprep.mubr.bf16.mxu0 %v16691_v28 }
  0x72   :  { %15699 = vmatmul.mubr.bf16.gmra.mxu0 %v16692_v29  ;;  %v16733_v29 = vld [vmem:[%s22597_s0 + $0x1f0] sm:$0xff]  }
  0x73   :  { %15702 = vmatprep.mubr.bf16.mxu0 %v16693_v30 }
  0x7a   :  { %15703 = vmatmul.mubr.bf16.gmra.mxu0 %v16694_v31 }
  0x7b   :  { %15706 = vmatprep.mubr.bf16.mxu0 %v16695_v32  ;;  %v17785_v32 = vld [vmem:[%s22599_s2] ss:$0 sm:$0xff] }
  0x82   :  { %15707 = vmatmul.mubr.bf16.gmra.mxu0 %v16696_v33 }
  0x83   :  { %15710 = vmatprep.mubr.bf16.mxu0 %v16697_v34  ;;  %v16734_v34 = vld [vmem:[%s22597_s0 + $0x1f8] sm:$0xff]  }
  0x8a   :  { %15711 = vmatmul.mubr.bf16.gmra.mxu0 %v16698_v35 }
  0x8b   :  { %15714 = vmatprep.mubr.bf16.mxu0 %v16699_v36 }
  0x92   :  { %15715 = vmatmul.mubr.bf16.gmra.mxu0 %v16700_v37  ;;  %v16735_v37 = vld [vmem:[%s22597_s0 + $0x200] sm:$0xff]  }
  0x93   :  { %15718 = vmatprep.mubr.bf16.mxu0 %v16701_v38 }
  0x9a   :  { %15719 = vmatmul.mubr.bf16.gmra.mxu0 %v16702_v39  ;;  %v16767_v39 = vld [vmem:[%s22600_s3 + $0x78] sm:$0xff]  }
  0x9b   :  { %15722 = vmatprep.mubr.bf16.mxu0 %v16703_v40  ;;  %15898 = vmatprep.subr.bf16.mxu1 %v16767_v39 }
  0x9c   :  { %15899 = vmatpush3.bf16.msra.mxu1 %v16767_v39 }
  0xa2   :  { %15723 = vmatmul.mubr.bf16.gmra.mxu0 %v16704_v41 }
  0xa3   :  { %15726 = vmatprep.mubr.bf16.mxu0 %v16705_v42 }
  0xaa   :  { %15727 = vmatmul.mubr.bf16.gmra.mxu0 %v16706_v43 }
  0xab   :  { %15730 = vmatprep.mubr.bf16.mxu0 %v16707_v44 }
  0xb2   :  { %15731 = vmatmul.mubr.bf16.gmra.mxu0 %v16708_v45  ;;  %v16736_v45 = vld [vmem:[%s22597_s0 + $0x208] sm:$0xff]  }
  0xb3   :  { %15734 = vmatprep.mubr.bf16.mxu0 %v16709_v46 }
  0xba   :  { %15735 = vmatmul.mubr.bf16.gmra.mxu0 %v16710_v47  ;;  %v16768_v47 = vld [vmem:[%s22600_s3 + $0x70] sm:$0xff]  }
  0xbb   :  { %15738 = vmatprep.mubr.bf16.mxu0 %v16711_v48  ;;  %15900 = vmatprep.subr.bf16.mxu1 %v16768_v47 }
  0xbc   :  { %15901 = vmatpush3.bf16.msra.mxu1 %v16768_v47 }
  0xc2   :  { %15739 = vmatmul.mubr.bf16.gmra.mxu0 %v16712_v49 }
  0xc3   :  { %15742 = vmatprep.mubr.bf16.mxu0 %v16713_v50 }
  0xca   :  { %15743 = vmatmul.mubr.bf16.gmra.mxu0 %v16714_v51  ;;  %v16737_v51 = vld [vmem:[%s22597_s0 + $0x210] sm:$0xff]  }
  0xcb   :  { %15746 = vmatprep.mubr.bf16.mxu0 %v16715_v52 }
  0xd2   :  { %15747 = vmatmul.mubr.bf16.gmra.mxu0 %v16716_v53 }
  0xd3   :  { %15750 = vmatprep.mubr.bf16.mxu0 %v16717_v54 }
  0xda   :  { %15751 = vmatmul.mubr.bf16.gmra.mxu0 %v16718_v55 }
  0xdb   :  { %15754 = vmatprep.mubr.bf16.mxu0 %v16719_v56  ;;  %v16771_v56 = vld [vmem:[%s22600_s3 + $0x68] sm:$0xff]  }
  0xdc   :  { %15902 = vmatprep.subr.bf16.mxu1 %v16771_v56 }
  0xdd   :  { %15903 = vmatpush3.bf16.msra.mxu1 %v16771_v56 }
  0xe2   :  { %v17700_v59 = vpop.f32.mrf.mxu0  ;;  %15755 = vmatmul.mubr.bf16.gmra.mxu0 %v16720_v57 }
  0xe3   :  { %15758 = vmatprep.mubr.bf16.mxu0 %v16721_v58  ;;  %v1117_v57 = vadd.f32 %v17700_v59, %v17785_v32 }
  0xe4   :  { %v1108_v60 = vpop.f32.mrf.mxu0 }
  0xe5   :  { %v1109_v36 = vadd.f32 %v17785_v32, %v1108_v60 }
  0xe6   :  { %v17705_v62 = vpop.f32.mrf.mxu0 }
  0xe7   :  { %v2067_v41 = vmax.f32 %v1109_v36, 0.0 }
  0xe8   :  { %v1111_v0 = vpop.f32.mrf.mxu0 }
  0xe9   :  { %v1112_v43 = vadd.f32 %v17785_v32, %v1111_v0  ;;  %v16738_v0 = vld [vmem:[%s22597_s0 + $0x218] sm:$0xff]  }
  0xea   :  { %v17710_v1 = vpop.f32.mrf.mxu0  ;;  %15759 = vmatmul.mubr.bf16.gmra.mxu0 %v16722_v61 }
  0xeb   :  { %15762 = vmatprep.mubr.bf16.mxu0 %v16723_v63  ;;  %v2068_v52 = vmax.f32 %v1112_v43, 0.0 }
  0xec   :  { %v17712_v2 = vpop.f32.mrf.mxu0 }
  0xed   :  { %v1125_v54 = vadd.f32 %v17785_v32, %v17712_v2 }
  0xee   :  { %v17717_v4 = vpop.f32.mrf.mxu0 }
  0xef   :  { %v2071_v2 = vmax.f32 %v1125_v54, 0.0  ;;  %v16740_v54 = vld [vmem:[%s22597_s0 + $0x228] sm:$0xff]   ;;  %v1136_v56 = vadd.f32 %v17717_v4, %v17785_v32 }
  0xf0   :  { %v17722_v6 = vpop.f32.mrf.mxu0 }
  0xf2   :  { %v17724_v7 = vpop.f32.mrf.mxu0  ;;  %15763 = vmatmul.mubr.bf16.gmra.mxu0 %v16724_v3  ;;  %v1128_v3 = vadd.f32 %v17785_v32, %v17722_v6 }
  0xf3   :  { %15766 = vmatprep.mubr.bf16.mxu0 %v16725_v5 }
  0xf4   :  { %v17726_v8 = vpop.f32.mrf.mxu0 }
  0xf6   :  { %v17731_v10 = vpop.f32.mrf.mxu0 }
  0xf8   :  { %v17736_v12 = vpop.f32.mrf.mxu0 }
  0xfa   :  { %v17738_v13 = vpop.f32.mrf.mxu0  ;;  %15767 = vmatmul.mubr.bf16.gmra.mxu0 %v16726_v9  ;;  %v2069_v9 = vmax.f32 %v1117_v57, 0.0 }
  0xfb   :  { %15770 = vmatprep.mubr.bf16.mxu0 %v16727_v11  ;;  %v1120_v11 = vadd.f32 %v17705_v62, %v17785_v32  ;;  %v2072_v62 = vmax.f32 %v1128_v3, 0.0 }
  0xfc   :  { %v17740_v14 = vpop.f32.mrf.mxu0 }
  0xfe   :  { %v17745_v16 = vpop.f32.mrf.mxu0 }
 0x100   :  { %v17750_v18 = vpop.f32.mrf.mxu0 }
 0x102   :  { %v17752_v19 = vpop.f32.mrf.mxu0  ;;  %15771 = vmatmul.mubr.bf16.gmra.mxu0 %v16728_v15 }
 0x103   :  { %15774 = vmatprep.mubr.bf16.mxu0 %v16729_v17  ;;  %v16772_v17 = vld [vmem:[%s22600_s3 + $0x60] sm:$0xff]  }
 0x104   :  { %v17754_v20 = vpop.f32.mrf.mxu0  ;;  %15904 = vmatprep.subr.bf16.mxu1 %v16772_v17 }
 0x105   :  { %15905 = vmatpush3.bf16.msra.mxu1 %v16772_v17  ;;  %v16779_v17 = vld [vmem:[%s22600_s3 + $0x48] sm:$0xff]  }
 0x106   :  { %v17759_v22 = vpop.f32.mrf.mxu0 }
 0x108   :  { %v17764_v24 = vpop.f32.mrf.mxu0 }
 0x10a   :  { %v17766_v25 = vpop.f32.mrf.mxu0  ;;  %15775 = vmatmul.mubr.bf16.gmra.mxu0 %v16730_v21  ;;  %v1141_v21 = vadd.f32 %v17785_v32, %v17726_v8  ;;  %v1133_v8 = vadd.f32 %v17710_v1, %v17785_v32 }
 0x10b   :  { %15778 = vmatprep.mubr.bf16.mxu0 %v16731_v23 }
 0x10c   :  { %v17768_v26 = vpop.f32.mrf.mxu0  ;;  %v2075_v43 = vmax.f32 %v1141_v21, 0.0 }
 0x10e   :  { %v17773_v28 = vpop.f32.mrf.mxu0 }
 0x110   :  { %v17778_v30 = vpop.f32.mrf.mxu0 }
 0x112   :  { %v17780_v31 = vpop.f32.mrf.mxu0  ;;  %15779 = vmatmul.mubr.bf16.gmra.mxu0 %v16732_v27 }
 0x113   :  { %15782 = vmatprep.mubr.bf16.mxu0 %v16733_v29  ;;  %v16739_v29 = vld [vmem:[%s22597_s0 + $0x220] sm:$0xff]  }
 0x114   :  { %v17787_v33 = vpop.f32.mrf.mxu0 }
 0x116   :  { %v17792_v35 = vpop.f32.mrf.mxu0 }
 0x118   :  { %v17798_v38 = vpop.f32.mrf.mxu0 }
 0x11a   :  { %v15688_v40 = vpop.f32.mrf.mxu0  ;;  %15783 = vmatmul.mubr.bf16.gmra.mxu0 %v16734_v34 }
 0x11b   :  { %v1229_v42 = vadd.f32 %v15688_v40, %v17785_v32  ;;  %15786 = vmatprep.mubr.bf16.mxu0 %v16735_v37  ;;  %v2070_v40 = vmax.f32 %v1120_v11, 0.0  ;;  %v2074_v11 = vmax.f32 %v1136_v56, 0.0 }
 0x11c   :  { %v17805_v44 = vpop.f32.mrf.mxu0 }
 0x11d   :  { %v2097_v46 = vmax.f32 %v1229_v42, 0.0  ;;  %v16775_v42 = vld [vmem:[%s22600_s3 + $0x58] sm:$0xff]  }
 0x11e   :  { %v15689_v48 = vpop.f32.mrf.mxu0  ;;  %15906 = vmatprep.subr.bf16.mxu1 %v16775_v42 }
 0x11f   :  { %v17813_v49 = vadd.f32 %v2097_v46, %v2067_v41  ;;  %v1232_v50 = vadd.f32 %v15689_v48, %v17785_v32  ;;  %15907 = vmatpush3.bf16.msra.mxu1 %v16775_v42 }
 0x120   :  { %v17819_v53 = vpop.f32.mrf.mxu0 }
 0x121   :  { %v2098_v55 = vmax.f32 %v1232_v50, 0.0  ;;  %v1144_v50 = vadd.f32 %v17785_v32, %v17736_v12  ;;  %v1157_v12 = vadd.f32 %v17785_v32, %v17740_v14  ;;  %v1149_v14 = vadd.f32 %v17724_v7, %v17785_v32 }
 0x122   :  { %v15692_v58 = vpop.f32.mrf.mxu0  ;;  %15787 = vmatmul.mubr.bf16.gmra.mxu0 %v16736_v45 }
 0x123   :  { %v17828_v60 = vadd.f32 %v2098_v55, %v2068_v52  ;;  %v1245_v61 = vadd.f32 %v15692_v58, %v17785_v32  ;;  %15790 = vmatprep.mubr.bf16.mxu0 %v16737_v51  ;;  %v2073_v55 = vmax.f32 %v1133_v8, 0.0  ;;  %v16776_v58 = vld [vmem:[%s22600_s3 + $0x50] sm:$0xff]   ;;  %v2076_v4 = vmax.f32 %v1144_v50, 0.0 }
 0x124   :  { %v1236_v63 = vpop.f32.mrf.mxu0  ;;  %15908 = vmatprep.subr.bf16.mxu1 %v16776_v58  ;;  %v2079_v21 = vmax.f32 %v1157_v12, 0.0  ;;  %v2077_v42 = vmax.f32 %v1149_v14, 0.0 }
 0x125   :  { %v2101_v5 = vmax.f32 %v1245_v61, 0.0  ;;  %v1237_v59 = vadd.f32 %v17785_v32, %v1236_v63  ;;  %15909 = vmatpush3.bf16.msra.mxu1 %v16776_v58 }
 0x126   :  { %v15693_v15 = vpop.f32.mrf.mxu0  ;;  %15910 = vmatprep.subr.bf16.mxu1 %v16779_v17 }
 0x127   :  { %v17844_v23 = vadd.f32 %v2101_v5, %v2071_v2  ;;  %v2099_v27 = vmax.f32 %v1237_v59, 0.0  ;;  %v1248_v6 = vadd.f32 %v15693_v15, %v17785_v32  ;;  %v16741_v2 = vld [vmem:[%s22597_s0 + $0x230] sm:$0xff]  }
 0x128   :  { %v1239_v34 = vpop.f32.mrf.mxu0 }
 0x129   :  { %v17850_v36 = vadd.f32 %v2099_v27, %v2069_v9  ;;  %v2102_v37 = vmax.f32 %v1248_v6, 0.0  ;;  %v1240_v39 = vadd.f32 %v17785_v32, %v1239_v34  ;;  %v1152_v34 = vadd.f32 %v17731_v10, %v17785_v32  ;;  %15911 = vmatpush3.bf16.msra.mxu1 %v16779_v17 }
 0x12a   :  { %v15696_v41 = vpop.f32.mrf.mxu0  ;;  %15791 = vmatmul.mubr.bf16.gmra.mxu0 %v16738_v0 }
 0x12b   :  { %v17858_v45 = vadd.f32 %v2102_v37, %v2072_v62  ;;  %v2100_v46 = vmax.f32 %v1240_v39, 0.0  ;;  %v1261_v47 = vadd.f32 %v15696_v41, %v17785_v32  ;;  %15794 = vmatprep.mubr.bf16.mxu0 %v16739_v29  ;;  %v1165_v62 = vadd.f32 %v17738_v13, %v17785_v32  ;;  %v16742_v41 = vld [vmem:[%s22597_s0 + $0x238] sm:$0xff]   ;;  %v16780_v13 = vld [vmem:[%s22600_s3 + $0x40] sm:$0xff]  }
 0x12c   :  { %v1252_v48 = vpop.f32.mrf.mxu0  ;;  %v1160_v37 = vadd.f32 %v17785_v32, %v17750_v18  ;;  %v2078_v50 = vmax.f32 %v1152_v34, 0.0  ;;  %15912 = vmatprep.subr.bf16.mxu1 %v16780_v13 }
 0x12d   :  { %v17863_v51 = vadd.f32 %v2100_v46, %v2070_v40  ;;  %v2105_v1 = vmax.f32 %v1261_v47, 0.0  ;;  %v1253_v52 = vadd.f32 %v17785_v32, %v1252_v48  ;;  %v16743_v48 = vld [vmem:[%s22597_s0 + $0x240] sm:$0xff]   ;;  %15913 = vmatpush3.bf16.msra.mxu1 %v16780_v13 }
 0x12e   :  { %v15697_v57 = vpop.f32.mrf.mxu0 }
 0x12f   :  { %v17876_v61 = vadd.f32 %v2105_v1, %v2075_v43  ;;  %v2103_v63 = vmax.f32 %v1253_v52, 0.0  ;;  %v1264_v0 = vadd.f32 %v15697_v57, %v17785_v32  ;;  %v1173_v43 = vadd.f32 %v17785_v32, %v17754_v20 }
 0x130   :  { %v1255_v3 = vpop.f32.mrf.mxu0  ;;  %v2081_v1 = vmax.f32 %v1165_v62, 0.0 }
 0x131   :  { %v17882_v5 = vadd.f32 %v2103_v63, %v2073_v55  ;;  %v2106_v59 = vmax.f32 %v1264_v0, 0.0  ;;  %v1256_v9 = vadd.f32 %v17785_v32, %v1255_v3  ;;  %v2083_v58 = vmax.f32 %v1173_v43, 0.0 }
 0x132   :  { %v15700_v15 = vpop.f32.mrf.mxu0  ;;  %15795 = vmatmul.mubr.bf16.gmra.mxu0 %v16740_v54  ;;  %v2080_v54 = vmax.f32 %v1160_v37, 0.0  ;;  %v1181_v3 = vadd.f32 %v17752_v19, %v17785_v32 }
 0x133   :  { %v17890_v27 = vadd.f32 %v2106_v59, %v2076_v4  ;;  %v2104_v6 = vmax.f32 %v1256_v9, 0.0  ;;  %v1277_v29 = vadd.f32 %v15700_v15, %v17785_v32  ;;  %15798 = vmatprep.mubr.bf16.mxu0 %v16741_v2  ;;  %v1168_v2 = vadd.f32 %v17745_v16, %v17785_v32  ;;  %v16744_v15 = vld [vmem:[%s22597_s0 + $0x248] sm:$0xff]  }
 0x134   :  { %v1268_v7 = vpop.f32.mrf.mxu0  ;;  %v1176_v59 = vadd.f32 %v17785_v32, %v17764_v24  ;;  %v1189_v16 = vadd.f32 %v17785_v32, %v17768_v26  ;;  %v16745_v24 = vld [vmem:[%s22597_s0 + $0x250] sm:$0xff]   ;;  %v2085_v34 = vmax.f32 %v1181_v3, 0.0 }
 0x135   :  { %v17899_v39 = vadd.f32 %v2104_v6, %v2074_v11  ;;  %v2109_v40 = vmax.f32 %v1277_v29, 0.0  ;;  %v1269_v8 = vadd.f32 %v17785_v32, %v1268_v7  ;;  %v2082_v29 = vmax.f32 %v1168_v2, 0.0 }
 0x136   :  { %v15701_v10 = vpop.f32.mrf.mxu0  ;;  %v2084_v7 = vmax.f32 %v1176_v59, 0.0  ;;  %v2087_v26 = vmax.f32 %v1189_v16, 0.0 }
 0x137   :  { %v17910_v18 = vadd.f32 %v2109_v40, %v2079_v21  ;;  %v2107_v46 = vmax.f32 %v1269_v8, 0.0  ;;  %v1280_v47 = vadd.f32 %v15701_v10, %v17785_v32 }
 0x138   :  { %v1271_v52 = vpop.f32.mrf.mxu0 }
 0x139   :  { %v17916_v55 = vadd.f32 %v2107_v46, %v2077_v42  ;;  %v2110_v56 = vmax.f32 %v1280_v47, 0.0  ;;  %v1272_v57 = vadd.f32 %v17785_v32, %v1271_v52  ;;  %v1192_v46 = vadd.f32 %v17785_v32, %v17778_v30  ;;  %v16747_v30 = vld [vmem:[%s22597_s0 + $0x260] sm:$0xff]  }
 0x13a   :  { %v15704_v20 = vpop.f32.mrf.mxu0  ;;  %15799 = vmatmul.mubr.bf16.gmra.mxu0 %v16742_v41 }
 0x13b   :  { %v17919_v12 = vadd.f32 %v2110_v56, %v2080_v54  ;;  %v2108_v63 = vmax.f32 %v1272_v57, 0.0  ;;  %v1293_v0 = vadd.f32 %v15704_v20, %v17785_v32  ;;  %15802 = vmatprep.mubr.bf16.mxu0 %v16743_v48  ;;  %v1184_v54 = vadd.f32 %v17759_v22, %v17785_v32 }
 0x13c   :  { %v1284_v4 = vpop.f32.mrf.mxu0  ;;  %v2088_v2 = vmax.f32 %v1192_v46, 0.0 }
 0x13d   :  { %v17928_v9 = vadd.f32 %v2108_v63, %v2078_v50  ;;  %v2113_v11 = vmax.f32 %v1293_v0, 0.0  ;;  %v1285_v14 = vadd.f32 %v17785_v32, %v1284_v4  ;;  %v1205_v63 = vadd.f32 %v17785_v32, %v17787_v33 }
 0x13e   :  { %v15705_v17 = vpop.f32.mrf.mxu0  ;;  %v1208_v33 = vadd.f32 %v17785_v32, %v17798_v38  ;;  %v16749_v38 = vld [vmem:[%s22597_s0 + $0x270] sm:$0xff]  }
 0x13f   :  { %v17936_v21 = vadd.f32 %v2113_v11, %v2083_v58  ;;  %v2111_v19 = vmax.f32 %v1285_v14, 0.0  ;;  %v1296_v6 = vadd.f32 %v15705_v17, %v17785_v32  ;;  %v1197_v58 = vadd.f32 %v17766_v25, %v17785_v32 }
 0x140   :  { %v1287_v62 = vpop.f32.mrf.mxu0  ;;  %v2086_v11 = vmax.f32 %v1184_v54, 0.0  ;;  %v2091_v16 = vmax.f32 %v1205_v63, 0.0 }
 0x141   :  { %v17942_v37 = vadd.f32 %v2111_v19, %v2081_v1  ;;  %v2114_v40 = vmax.f32 %v1296_v6, 0.0  ;;  %v1288_v8 = vadd.f32 %v17785_v32, %v1287_v62  ;;  %v16746_v1 = vld [vmem:[%s22597_s0 + $0x258] sm:$0xff]   ;;  %v2089_v25 = vmax.f32 %v1197_v58, 0.0 }
 0x142   :  { %v15708_v41 = vpop.f32.mrf.mxu0  ;;  %15803 = vmatmul.mubr.bf16.gmra.mxu0 %v16744_v15 }
 0x143   :  { %v17945_v42 = vadd.f32 %v2114_v40, %v2084_v7  ;;  %v2112_v10 = vmax.f32 %v1288_v8, 0.0  ;;  %v1309_v13 = vadd.f32 %v15708_v41, %v17785_v32  ;;  %15806 = vmatprep.mubr.bf16.mxu0 %v16745_v24  ;;  %v1200_v7 = vadd.f32 %v17773_v28, %v17785_v32 }
 0x144   :  { %v1300_v43 = vpop.f32.mrf.mxu0 }
 0x145   :  { %v17950_v47 = vadd.f32 %v2112_v10, %v2082_v29  ;;  %v2117_v48 = vmax.f32 %v1309_v13, 0.0  ;;  %v1301_v50 = vadd.f32 %v17785_v32, %v1300_v43  ;;  %v1221_v10 = vadd.f32 %v17785_v32, %v17805_v44 }
 0x146   :  { %v15709_v52 = vpop.f32.mrf.mxu0  ;;  %v2092_v43 = vmax.f32 %v1208_v33, 0.0  ;;  %v1224_v44 = vadd.f32 %v17785_v32, %v17819_v53  ;;  %v16751_v53 = vld [vmem:[%s22597_s0 + $0x280] sm:$0xff]  }
 0x147   :  { %v17958_v56 = vadd.f32 %v2117_v48, %v2087_v26  ;;  %v2115_v57 = vmax.f32 %v1301_v50, 0.0  ;;  %v1312_v20 = vadd.f32 %v15709_v52, %v17785_v32  ;;  %v1213_v26 = vadd.f32 %v17780_v31, %v17785_v32 }
 0x148   :  { %v1303_v0 = vpop.f32.mrf.mxu0 }
 0x149   :  { %v17968_v3 = vadd.f32 %v2115_v57, %v2085_v34  ;;  %v2118_v22 = vmax.f32 %v1312_v20, 0.0  ;;  %v1304_v4 = vadd.f32 %v17785_v32, %v1303_v0  ;;  %v16748_v34 = vld [vmem:[%s22597_s0 + $0x268] sm:$0xff]   ;;  %v2093_v31 = vmax.f32 %v1213_v26, 0.0 }
 0x14a   :  { %v15712_v59 = vpop.f32.mrf.mxu0  ;;  %15807 = vmatmul.mubr.bf16.gmra.mxu0 %v16746_v1  ;;  %v2090_v1 = vmax.f32 %v1200_v7, 0.0  ;;  %v2095_v20 = vmax.f32 %v1221_v10, 0.0  ;;  %v17453_v26 = vmov 0  }
 0x14b   :  { %v17971_v14 = vadd.f32 %v2118_v22, %v2088_v2  ;;  %v2116_v15 = vmax.f32 %v1304_v4, 0.0  ;;  %v1325_v17 = vadd.f32 %v15712_v59, %v17785_v32  ;;  %15810 = vmatprep.mubr.bf16.mxu0 %v16747_v30  ;;  %v16750_v2 = vld [vmem:[%s22597_s0 + $0x278] sm:$0xff]   ;;  %v1216_v4 = vadd.f32 %v17792_v35, %v17785_v32  ;;  %2577 = vst [vmem:[#allocation2 + $0x78] sm:$0xf] %v17453_v26 }
 0x14c   :  { %v1316_v19 = vpop.f32.mrf.mxu0  ;;  %2578 = vst [vmem:[#allocation2 + $0x7c] sm:$0xf] %v17453_v26  ;;  %2849 = vst [vmem:[#allocation2 + $0xf8] sm:$0xf] %v17453_v26 }
 0x14d   :  { %v17976_v6 = vadd.f32 %v2116_v15, %v2086_v11  ;;  %v2121_v24 = vmax.f32 %v1325_v17, 0.0  ;;  %v1317_v29 = vadd.f32 %v17785_v32, %v1316_v19  ;;  %2850 = vst [vmem:[#allocation2 + $0xfc] sm:$0xf] %v17453_v26  ;;  %2851 = vst [vmem:[#allocation2 + $0x100] sm:$0xf] %v17453_v26 }
 0x14e   :  { %v15713_v62 = vpop.f32.mrf.mxu0  ;;  %2852 = vst [vmem:[#allocation2 + $0x104] sm:$0xf] %v17453_v26  ;;  %2853 = vst [vmem:[#allocation2 + $0x108] sm:$0xf] %v17453_v26 }
 0x14f   :  { %v17984_v40 = vadd.f32 %v2121_v24, %v2091_v16  ;;  %v2119_v8 = vmax.f32 %v1317_v29, 0.0  ;;  %v1328_v41 = vadd.f32 %v15713_v62, %v17785_v32  ;;  %v2094_v29 = vmax.f32 %v1216_v4, 0.0  ;;  %2854 = vst [vmem:[#allocation2 + $0x10c] sm:$0xf] %v17453_v26  ;;  %2855 = vst [vmem:[#allocation2 + $0x110] sm:$0xf] %v17453_v26 }
 0x150   :  { %v1319_v13 = vpop.f32.mrf.mxu0 }
 0x151   :  { %v17994_v46 = vadd.f32 %v2119_v8, %v2089_v25  ;;  %v2122_v28 = vmax.f32 %v1328_v41, 0.0  ;;  %v1320_v48 = vadd.f32 %v17785_v32, %v1319_v13  ;;  %v2096_v25 = vmax.f32 %v1224_v44, 0.0 }
 0x152   :  { %v15716_v50 = vpop.f32.mrf.mxu0  ;;  %15811 = vmatmul.mubr.bf16.gmra.mxu0 %v16748_v34 }
 0x153   :  { %v17997_v52 = vadd.f32 %v2122_v28, %v2092_v43  ;;  %v2120_v54 = vmax.f32 %v1320_v48, 0.0  ;;  %v1341_v57 = vadd.f32 %v15716_v50, %v17785_v32  ;;  %15814 = vmatprep.mubr.bf16.mxu0 %v16749_v38  ;;  %v16752_v38 = vld [vmem:[%s22597_s0 + $0x288] sm:$0xff]   ;;  %v16753_v28 = vld [vmem:[%s22597_s0 + $0x290] sm:$0xff]  }
 0x154   :  { %v1332_v30 = vpop.f32.mrf.mxu0 }
 0x155   :  { %v18002_v58 = vadd.f32 %v2120_v54, %v2090_v1  ;;  %v2125_v63 = vmax.f32 %v1341_v57, 0.0  ;;  %v1333_v0 = vadd.f32 %v17785_v32, %v1332_v30  ;;  %v16754_v30 = vld [vmem:[%s22597_s0 + $0x298] sm:$0xff]  }
 0x156   :  { %v15717_v22 = vpop.f32.mrf.mxu0 }
 0x157   :  { %v18010_v59 = vadd.f32 %v2125_v63, %v2095_v20  ;;  %v2123_v11 = vmax.f32 %v1333_v0, 0.0  ;;  %v1344_v15 = vadd.f32 %v15717_v22, %v17785_v32  ;;  %v16755_v0 = vld [vmem:[%s22597_s0 + $0x2a0] sm:$0xff]   ;;  %v16807_v22 = vld [vmem:[%s22600_s3 + $0x130] sm:$0xff]  }
 0x158   :  { %v1335_v17 = vpop.f32.mrf.mxu0 }
 0x159   :  { %v18016_v16 = vadd.f32 %v2123_v11, %v2093_v31  ;;  %v2126_v19 = vmax.f32 %v1344_v15, 0.0  ;;  %v1336_v33 = vadd.f32 %v17785_v32, %v1335_v17  ;;  %v16811_v17 = vld [vmem:[%s22600_s3 + $0x128] sm:$0xff]  }
 0x15a   :  { %v15720_v24 = vpop.f32.mrf.mxu0  ;;  %15815 = vmatmul.mubr.bf16.gmra.mxu0 %v16750_v2 }
 0x15b   :  { %v18019_v35 = vadd.f32 %v2126_v19, %v2096_v25  ;;  %v2124_v34 = vmax.f32 %v1336_v33, 0.0  ;;  %v1357_v62 = vadd.f32 %v15720_v24, %v17785_v32  ;;  %15818 = vmatprep.mubr.bf16.mxu0 %v16751_v53  ;;  %v16756_v19 = vld [vmem:[%s22597_s0 + $0x2a8] sm:$0xff]  }
 0x15c   :  { %v18022_v7 = vpop.f32.mrf.mxu0 }
 0x15d   :  { %v18024_v8 = vadd.f32 %v2124_v34, %v2094_v29  ;;  %v2129_v41 = vmax.f32 %v1357_v62, 0.0  ;;  %v16757_v29 = vld [vmem:[%s22597_s0 + $0x2b0] sm:$0xff]   ;;  %v16814_v62 = vld [vmem:[%s22600_s3 + $0x120] sm:$0xff]  }
 0x15e   :  { %v15721_v10 = vpop.f32.mrf.mxu0 }
 0x15f   :  { %v18030_v13 = vadd.f32 %v17850_v36, %v2129_v41  ;;  %v1360_v43 = vadd.f32 %v15721_v10, %v17785_v32  ;;  %v16805_v36 = vld [vmem:[%s22600_s3 + $0x138] sm:$0xff]  }
 0x160   :  { %v18036_v48 = vpop.f32.mrf.mxu0  ;;  %16218 = vmatprep.subr.bf16.mxu0 %v16805_v36 }
 0x161   :  { %v2130_v50 = vmax.f32 %v1360_v43, 0.0  ;;  %16219 = vmatpush3.bf16.msra.mxu0 %v16805_v36  ;;  %v16817_v43 = vld [vmem:[%s22600_s3 + $0x118] sm:$0xff]   ;;  %v16759_v36 = vld [vmem:[%s22597_s0 + $0x2c0] sm:$0xff]  }
 0x162   :  { %v15724_v1 = vpop.f32.mrf.mxu0  ;;  %15819 = vmatmul.mubr.bf16.gmra.mxu0 %v16752_v38  ;;  %16220 = vmatprep.subr.bf16.mxu0 %v16807_v22 }
 0x163   :  { %v18039_v54 = vadd.f32 %v17863_v51, %v2130_v50  ;;  %v1373_v57 = vadd.f32 %v15724_v1, %v17785_v32  ;;  %15822 = vmatprep.mubr.bf16.mxu0 %v16753_v28 }
 0x164   :  { %v18042_v31 = vpop.f32.mrf.mxu0 }
 0x165   :  { %v2133_v20 = vmax.f32 %v1373_v57, 0.0  ;;  %16221 = vmatpush3.bf16.msra.mxu0 %v16807_v22 }
 0x166   :  { %v15725_v44 = vpop.f32.mrf.mxu0  ;;  %16222 = vmatprep.subr.bf16.mxu0 %v16811_v17 }
 0x167   :  { %v18051_v63 = vadd.f32 %v17882_v5, %v2133_v20  ;;  %v1376_v51 = vadd.f32 %v15725_v44, %v17785_v32 }
 0x168   :  { %v18057_v2 = vpop.f32.mrf.mxu0 }
 0x169   :  { %v2134_v4 = vmax.f32 %v1376_v51, 0.0  ;;  %16223 = vmatpush3.bf16.msra.mxu0 %v16811_v17 }
 0x16a   :  { %v15728_v11 = vpop.f32.mrf.mxu0  ;;  %15823 = vmatmul.mubr.bf16.gmra.mxu0 %v16754_v30  ;;  %16224 = vmatprep.subr.bf16.mxu0 %v16814_v62  ;;  %v16818_v30 = vld [vmem:[%s22600_s3 + $0x110] sm:$0xff]  }
 0x16b   :  { %v18063_v5 = vadd.f32 %v17899_v39, %v2134_v4  ;;  %v1389_v15 = vadd.f32 %v15728_v11, %v17785_v32  ;;  %15826 = vmatprep.mubr.bf16.mxu0 %v16755_v0  ;;  %v16821_v4 = vld [vmem:[%s22600_s3 + $0x108] sm:$0xff]  }
 0x16c   :  { %v18066_v53 = vpop.f32.mrf.mxu0 }
 0x16d   :  { %v2137_v25 = vmax.f32 %v1389_v15, 0.0  ;;  %16225 = vmatpush3.bf16.msra.mxu0 %v16814_v62  ;;  %v16760_v15 = vld [vmem:[%s22597_s0 + $0x2c8] sm:$0xff]  }
 0x16e   :  { %v15729_v33 = vpop.f32.mrf.mxu0  ;;  %16226 = vmatprep.subr.bf16.mxu0 %v16817_v43 }
 0x16f   :  { %v18075_v39 = vadd.f32 %v17916_v55, %v2137_v25  ;;  %v1392_v24 = vadd.f32 %v15729_v33, %v17785_v32  ;;  %v18092_v32 = vld [vmem:[%s22599_s2] ss:$0 sm:$0xff] }
 0x170   :  { %v18081_v34 = vpop.f32.mrf.mxu0 }
 0x171   :  { %v2138_v41 = vmax.f32 %v1392_v24, 0.0  ;;  %16227 = vmatpush3.bf16.msra.mxu0 %v16817_v43  ;;  %v16762_v43 = vld [vmem:[%s22597_s0 + $0x2d8] sm:$0xff]  }
 0x172   :  { %v15732_v38 = vpop.f32.mrf.mxu0  ;;  %15827 = vmatmul.mubr.bf16.gmra.mxu0 %v16756_v19  ;;  %16228 = vmatprep.subr.bf16.mxu0 %v16818_v30  ;;  %v16761_v19 = vld [vmem:[%s22597_s0 + $0x2d0] sm:$0xff]  }
 0x173   :  { %v18087_v55 = vadd.f32 %v17928_v9, %v2138_v41  ;;  %v1405_v26 = vadd.f32 %v18092_v32, %v15732_v38  ;;  %15830 = vmatprep.mubr.bf16.mxu0 %v16757_v29  ;;  %v16758_v9 = vld [vmem:[%s22597_s0 + $0x2b8] sm:$0xff]   ;;  %v16824_v29 = vld [vmem:[%s22600_s3 + $0x100] sm:$0xff]  }
 0x174   :  { %v18095_v10 = vpop.f32.mrf.mxu0 }
 0x175   :  { %v2141_v28 = vmax.f32 %v1405_v26, 0.0  ;;  %16229 = vmatpush3.bf16.msra.mxu0 %v16818_v30 }
 0x176   :  { %v15733_v50 = vpop.f32.mrf.mxu0  ;;  %16230 = vmatprep.subr.bf16.mxu0 %v16821_v4 }
 0x177   :  { %v18104_v1 = vadd.f32 %v17942_v37, %v2141_v28  ;;  %v1408_v57 = vadd.f32 %v18092_v32, %v15733_v50 }
 0x178   :  { %v18110_v20 = vpop.f32.mrf.mxu0 }
 0x179   :  { %v2142_v44 = vmax.f32 %v1408_v57, 0.0  ;;  %16231 = vmatpush3.bf16.msra.mxu0 %v16821_v4 }
 0x17a   :  { %v15736_v51 = vpop.f32.mrf.mxu0  ;;  %15831 = vmatmul.mubr.bf16.gmra.mxu0 %v16758_v9  ;;  %16232 = vmatprep.subr.bf16.mxu0 %v16824_v29 }
 0x17b   :  { %v18116_v37 = vadd.f32 %v17950_v47, %v2142_v44  ;;  %v1421_v0 = vadd.f32 %v18092_v32, %v15736_v51  ;;  %15834 = vmatprep.mubr.bf16.mxu0 %v16759_v36 }
 0x17c   :  { %v18119_v22 = vpop.f32.mrf.mxu0 }
 0x17d   :  { %v2145_v11 = vmax.f32 %v1421_v0, 0.0  ;;  %16233 = vmatpush3.bf16.msra.mxu0 %v16824_v29 }
 0x17e   :  { %v15737_v17 = vpop.f32.mrf.mxu0 }
 0x17f   :  { %v18128_v47 = vadd.f32 %v17968_v3, %v2145_v11  ;;  %v1424_v25 = vadd.f32 %v18092_v32, %v15737_v17  ;;  %v16764_v11 = vld [vmem:[%s22597_s0 + $0x2e8] sm:$0xff]  }
 0x180   :  { %v18134_v33 = vpop.f32.mrf.mxu0 }
 0x181   :  { %v2146_v24 = vmax.f32 %v1424_v25, 0.0  ;;  %v16765_v25 = vld [vmem:[%s22597_s0 + $0x2f0] sm:$0xff]  }
 0x182   :  { %v15740_v62 = vpop.f32.mrf.mxu0  ;;  %15835 = vmatmul.mubr.bf16.gmra.mxu0 %v16760_v15 }
 0x183   :  { %v18140_v41 = vadd.f32 %v17976_v6, %v2146_v24  ;;  %v1437_v3 = vadd.f32 %v18092_v32, %v15740_v62  ;;  %15838 = vmatprep.mubr.bf16.mxu0 %v16761_v19  ;;  %v16763_v6 = vld [vmem:[%s22597_s0 + $0x2e0] sm:$0xff]  }
 0x184   :  { %v18143_v38 = vpop.f32.mrf.mxu0 }
 0x185   :  { %v2149_v26 = vmax.f32 %v1437_v3, 0.0 }
 0x186   :  { %v15741_v28 = vpop.f32.mrf.mxu0 }
 0x187   :  { %v18149_v9 = vadd.f32 %v17994_v46, %v2149_v26  ;;  %v1440_v50 = vadd.f32 %v18092_v32, %v15741_v28  ;;  %v1349_v46 = vadd.f32 %v18092_v32, %v18022_v7  ;;  %v1352_v7 = vadd.f32 %v18092_v32, %v18036_v48 }
 0x188   :  { %v18155_v57 = vpop.f32.mrf.mxu0  ;;  %v1365_v48 = vadd.f32 %v18092_v32, %v18042_v31 }
 0x189   :  { %v2150_v36 = vmax.f32 %v1440_v50, 0.0  ;;  %v2127_v24 = vmax.f32 %v1349_v46, 0.0  ;;  %v2128_v50 = vmax.f32 %v1352_v7, 0.0  ;;  %v16769_v46 = vld [vmem:[%s22597_s0 + $0x300] sm:$0xff]  }
 0x18a   :  { %v15744_v30 = vpop.f32.mrf.mxu0  ;;  %15839 = vmatmul.mubr.bf16.gmra.mxu0 %v16762_v43  ;;  %v16766_v43 = vld [vmem:[%s22597_s0 + $0x2f8] sm:$0xff]  }
 0x18b   :  { %v18158_v44 = vadd.f32 %v18002_v58, %v2150_v36  ;;  %v1453_v51 = vadd.f32 %v18092_v32, %v15744_v30  ;;  %15842 = vmatprep.mubr.bf16.mxu0 %v16763_v6  ;;  %v2337_v28 = vadd.f32 %v17813_v49, %v2127_v24  ;;  %v2338_v49 = vadd.f32 %v17828_v60, %v2128_v50 }
 0x18c   :  { %v18161_v0 = vpop.f32.mrf.mxu0 }
 0x18d   :  { %v2153_v4 = vmax.f32 %v1453_v51, 0.0 }
 0x18e   :  { %v15745_v15 = vpop.f32.mrf.mxu0 }
 0x18f   :  { %v18169_v17 = vadd.f32 %v18016_v16, %v2153_v4  ;;  %v1456_v58 = vadd.f32 %v18092_v32, %v15745_v15 }
 0x190   :  { %v18175_v19 = vpop.f32.mrf.mxu0 }
 0x191   :  { %v2154_v29 = vmax.f32 %v1456_v58, 0.0 }
 0x192   :  { %v15748_v62 = vpop.f32.mrf.mxu0  ;;  %15843 = vmatmul.mubr.bf16.gmra.mxu0 %v16764_v11  ;;  %v2131_v11 = vmax.f32 %v1365_v48, 0.0  ;;  %v1384_v48 = vadd.f32 %v18092_v32, %v18081_v34 }
 0x193   :  { %v18180_v3 = vadd.f32 %v18024_v8, %v2154_v29  ;;  %v1469_v16 = vadd.f32 %v18092_v32, %v15748_v62  ;;  %15846 = vmatprep.mubr.bf16.mxu0 %v16765_v25  ;;  %v1368_v8 = vadd.f32 %v18092_v32, %v18057_v2  ;;  %v16770_v29 = vld [vmem:[%s22597_s0 + $0x308] sm:$0xff]  }
 0x194   :  { %v18183_v26 = vpop.f32.mrf.mxu0  ;;  %v2341_v60 = vadd.f32 %v17844_v23, %v2131_v11 }
 0x195   :  { %v2157_v6 = vmax.f32 %v1469_v16, 0.0  ;;  %v2132_v31 = vmax.f32 %v1368_v8, 0.0 }
 0x196   :  { %v15749_v36 = vpop.f32.mrf.mxu0 }
 0x197   :  { %v2367_v30 = vadd.f32 %v2337_v28, %v2157_v6  ;;  %v1472_v51 = vadd.f32 %v18092_v32, %v15749_v36 }
 0x198   :  { %v18197_v4 = vpop.f32.mrf.mxu0 }
 0x199   :  { %v2158_v15 = vmax.f32 %v1472_v51, 0.0  ;;  %v2397_v25 = vmul.f32 0.25, %v2367_v30  ;;  %v16773_v30 = vld [vmem:[%s22597_s0 + $0x310] sm:$0xff]  }
 0x19a   :  { %v15752_v58 = vpop.f32.mrf.mxu0  ;;  %15847 = vmatmul.mubr.bf16.gmra.mxu0 %v16766_v43  ;;  %v1381_v43 = vadd.f32 %v18092_v32, %v18066_v53 }
 0x19b   :  { %v2368_v24 = vadd.f32 %v2338_v49, %v2158_v15  ;;  %v1485_v2 = vadd.f32 %v18092_v32, %v15752_v58  ;;  %15850 = vmatprep.mubr.bf16.mxu0 %v16769_v46  ;;  %v2342_v49 = vadd.f32 %v17858_v45, %v2132_v31  ;;  %v2136_v58 = vmax.f32 %v1384_v48, 0.0 }
 0x19c   :  { %v1476_v7 = vpop.f32.mrf.mxu0  ;;  %v2135_v15 = vmax.f32 %v1381_v43, 0.0  ;;  %v16777_v43 = vld [vmem:[%s22597_s0 + $0x320] sm:$0xff]  }
 0x19d   :  { %v2398_v62 = vmul.f32 0.25, %v2368_v24  ;;  %v2161_v16 = vmax.f32 %v1485_v2, 0.0  ;;  %v1477_v28 = vadd.f32 %v18092_v32, %v1476_v7  ;;  %v1397_v7 = vadd.f32 %v18092_v32, %v18095_v10 }
 0x19e   :  { %v15753_v50 = vpop.f32.mrf.mxu0  ;;  %v1400_v10 = vadd.f32 %v18092_v32, %v18110_v20 }
 0x19f   :  { %v14449_v6 = vpack.c.bf16 %v2398_v62, %v2397_v25  ;;  %v2159_v36 = vmax.f32 %v1477_v28, 0.0  ;;  %v1488_v8 = vadd.f32 %v18092_v32, %v15753_v50  ;;  %v2371_v51 = vadd.f32 %v2341_v60, %v2161_v16 }
 0x1a0   :  { %v1479_v46 = vpop.f32.mrf.mxu0  ;;  %v2345_v50 = vadd.f32 %v17876_v61, %v2135_v15  ;;  %v2346_v61 = vadd.f32 %v17890_v27, %v2136_v58  ;;  %v18244_v58 = vadd.f32 %v18092_v32, %v18143_v38 }
 0x1a1   :  { %14450 = vst [vmem:[#allocation2] sm:$0xff] %v14449_v6   ;;  %v2369_v23 = vadd.f32 %v18030_v13, %v2159_v36  ;;  %v2162_v53 = vmax.f32 %v1488_v8, 0.0  ;;  %v1480_v11 = vadd.f32 %v18092_v32, %v1479_v46  ;;  %v2401_v62 = vmul.f32 0.25, %v2371_v51  ;;  %v16774_v13 = vld [vmem:[%s22597_s0 + $0x318] sm:$0xff]  }
 0x1a2   :  { %v15756_v34 = vpop.f32.mrf.mxu0  ;;  %15851 = vmatmul.mubr.bf16.gmra.mxu0 %v16770_v29  ;;  %v1413_v6 = vadd.f32 %v18092_v32, %v18119_v22  ;;  %v2140_v22 = vmax.f32 %v1400_v10, 0.0 }
 0x1a3   :  { %v2372_v25 = vadd.f32 %v2342_v49, %v2162_v53  ;;  %v2160_v24 = vmax.f32 %v1480_v11, 0.0  ;;  %v1501_v2 = vadd.f32 %v18092_v32, %v15756_v34  ;;  %15854 = vmatprep.mubr.bf16.mxu0 %v16773_v30  ;;  %v2399_v45 = vmul.f32 0.25, %v2369_v23 }
 0x1a4   :  { %v1492_v31 = vpop.f32.mrf.mxu0  ;;  %v2139_v11 = vmax.f32 %v1397_v7, 0.0 }
 0x1a5   :  { %v2402_v16 = vmul.f32 0.25, %v2372_v25  ;;  %v2370_v28 = vadd.f32 %v18039_v54, %v2160_v24  ;;  %v2165_v29 = vmax.f32 %v1501_v2, 0.0  ;;  %v1493_v60 = vadd.f32 %v18092_v32, %v1492_v31 }
 0x1a6   :  { %v15757_v48 = vpop.f32.mrf.mxu0  ;;  %v1416_v54 = vadd.f32 %v18092_v32, %v18134_v33  ;;  %v2143_v2 = vmax.f32 %v1413_v6, 0.0 }
 0x1a7   :  { %v14459_v36 = vpack.c.bf16 %v2402_v16, %v2401_v62  ;;  %v2400_v8 = vmul.f32 0.25, %v2370_v28  ;;  %v2163_v30 = vmax.f32 %v1493_v60, 0.0  ;;  %v2375_v51 = vadd.f32 %v2345_v50, %v2165_v29  ;;  %v16781_v60 = vld [vmem:[%s22597_s0 + $0x330] sm:$0xff]  }
 0x1a8   :  { %v1504_v46 = vadd.f32 %v18092_v32, %v15757_v48  ;;  %v1495_v49 = vpop.f32.mrf.mxu0  ;;  %v2859_v23 = vld [vmem:[#allocation2] sm:$0xf]  ;;  %v2860_v53 = vld [vmem:[#allocation2 + $0x4] sm:$0xf]  ;;  %v2144_v27 = vmax.f32 %v1416_v54, 0.0  ;;  %v18258_v50 = vadd.f32 %v18092_v32, %v18155_v57  ;;  %v2147_v54 = vmax.f32 %v18244_v58, 0.0 }
 0x1a9   :  { %14617 = vst [vmem:[#allocation2 + $0x10] sm:$0xff] %v14459_v36   ;;  %v14454_v20 = vpack.c.bf16 %v2400_v8, %v2399_v45  ;;  %v1496_v15 = vadd.f32 %v18092_v32, %v1495_v49  ;;  %v2373_v34 = vadd.f32 %v18051_v63, %v2163_v30  ;;  %v18239_v33 = vcombine.low %v2859_v23, %v2860_v53  ;;  %v16778_v63 = vld [vmem:[%s22597_s0 + $0x328] sm:$0xff]  }
 0x1aa   :  { %v2166_v25 = vmax.f32 %v1504_v46, 0.0  ;;  %v15760_v24 = vpop.f32.mrf.mxu0  ;;  %15855 = vmatmul.mubr.bf16.gmra.mxu0 %v16774_v13  ;;  %v2405_v7 = vmul.f32 0.25, %v2375_v51  ;;  %v2350_v30 = vadd.f32 %v17919_v12, %v2140_v22 }
 0x1ab   :  { %22624 = vst [vmem:[#allocation8_spill] sm:$0xff] %v18239_v33  ;;  %14616 = vst [vmem:[#allocation2 + $0x8] sm:$0xff] %v14454_v20   ;;  %v2164_v62 = vmax.f32 %v1496_v15, 0.0  ;;  %v1517_v31 = vadd.f32 %v18092_v32, %v15760_v24  ;;  %15858 = vmatprep.mubr.bf16.mxu0 %v16777_v43  ;;  %v3124_v38 = vshll.u32 %v18239_v33, 16  ;;  %v2349_v43 = vadd.f32 %v17910_v18, %v2139_v11 }
 0x1ac   :  { %v2376_v45 = vadd.f32 %v2346_v61, %v2166_v25  ;;  %v1508_v16 = vpop.f32.mrf.mxu0  ;;  %v2403_v10 = vmul.f32 0.25, %v2373_v34  ;;  %v2353_v18 = vadd.f32 %v17936_v21, %v2143_v2  ;;  %v2354_v11 = vadd.f32 %v17945_v42, %v2144_v27 }
 0x1ad   :  { %v2374_v13 = vadd.f32 %v18063_v5, %v2164_v62  ;;  %v2169_v28 = vmax.f32 %v1517_v31, 0.0  ;;  %v1509_v29 = vadd.f32 %v18092_v32, %v1508_v16  ;;  %v3126_v61 = vrot.slane %v3124_v38, 1 }
 0x1ae   :  { %v2406_v48 = vmul.f32 0.25, %v2376_v45  ;;  %v15761_v6 = vpop.f32.mrf.mxu0  ;;  %v2148_v20 = vmax.f32 %v18258_v50, 0.0  ;;  %v3122_v21 = vshrl.u32 %v18239_v33, 16  ;;  %v18275_v42 = vadd.f32 %v18092_v32, %v18161_v0 }
 0x1af   :  { %v2404_v5 = vmul.f32 0.25, %v2374_v13  ;;  %v2167_v36 = vmax.f32 %v1509_v29, 0.0  ;;  %v1520_v8 = vadd.f32 %v18092_v32, %v15761_v6  ;;  %v2379_v46 = vadd.f32 %v2349_v43, %v2169_v28  ;;  %v16782_v29 = vld [vmem:[%s22597_s0 + $0x338] sm:$0xff]   ;;  %v16786_v6 = vld [vmem:[%s22597_s0 + $0x340] sm:$0xff]  }
 0x1b0   :  { %v14469_v51 = vpack.c.bf16 %v2406_v48, %v2405_v7  ;;  %v1511_v49 = vpop.f32.mrf.mxu0  ;;  %v18263_v23 = vld [vmem:[#allocation2 + $0x10] sm:$0xff]   ;;  %v3127_v16 = vor.u32 %v3126_v61, %v3122_v21 }
 0x1b1   :  { %v14464_v57 = vpack.c.bf16 %v2404_v5, %v2403_v10  ;;  %v2170_v53 = vmax.f32 %v1520_v8, 0.0  ;;  %v2377_v15 = vadd.f32 %v18075_v39, %v2167_v36  ;;  %v1512_v12 = vadd.f32 %v18092_v32, %v1511_v49 }
 0x1b2   :  { %14619 = vst [vmem:[#allocation2 + $0x20] sm:$0xff] %v14469_v51   ;;  %v15764_v22 = vpop.f32.mrf.mxu0  ;;  %15859 = vmatmul.mubr.bf16.gmra.mxu0 %v16778_v63  ;;  %v16784_v34 = vld [vmem:[#allocation2 + $0x8] sm:$0xff]   ;;  %v3137_v2 = vshll.u32 %v18263_v23, 16  ;;  %v2409_v62 = vmul.f32 0.25, %v2379_v46  ;;  %v2357_v51 = vadd.f32 %v17958_v56, %v2147_v54  ;;  %v2151_v46 = vmax.f32 %v18275_v42, 0.0 }
 0x1b3   :  { %14618 = vst [vmem:[#allocation2 + $0x18] sm:$0xff] %v14464_v57   ;;  %v2380_v25 = vadd.f32 %v2350_v30, %v2170_v53  ;;  %v1533_v24 = vadd.f32 %v18092_v32, %v15764_v22  ;;  %15862 = vmatprep.mubr.bf16.mxu0 %v16781_v60  ;;  %v2168_v39 = vmax.f32 %v1512_v12, 0.0  ;;  %v3129_v27 = vshll.u32 %v16784_v34, 16 }
 0x1b4   :  { %v1524_v31 = vpop.f32.mrf.mxu0  ;;  %v2407_v63 = vmul.f32 0.25, %v2377_v15  ;;  %v3133_v0 = vshrl.u32 %v16784_v34, 16  ;;  %v3139_v48 = vrot.slane %v3137_v2, 1  ;;  %v3141_v22 = vshrl.u32 %v18263_v23, 16 }
 0x1b5   :  { %v2410_v58 = vmul.f32 0.25, %v2380_v25  ;;  %v2173_v7 = vmax.f32 %v1533_v24, 0.0  ;;  %v1525_v45 = vadd.f32 %v18092_v32, %v1524_v31  ;;  %v2378_v13 = vadd.f32 %v18087_v55, %v2168_v39 }
 0x1b6   :  { %v15765_v28 = vpop.f32.mrf.mxu0  ;;  %v3131_v60 = vrot.slane %v3129_v27, 1  ;;  %v18295_v56 = vadd.f32 %v18092_v32, %v18175_v19  ;;  %v16787_v19 = vld [vmem:[%s22597_s0 + $0x348] sm:$0xff]   ;;  %v3143_v23 = vor.u32 %v3141_v22, %v3139_v48  ;;  %v2361_v50 = vadd.f32 %v17984_v40, %v2151_v46  ;;  %v16791_v22 = vld [vmem:[%s22597_s0 + $0x358] sm:$0xff]  }
 0x1b7   :  { %v14479_v38 = vpack.c.bf16 %v2410_v58, %v2409_v62  ;;  %v2171_v43 = vmax.f32 %v1525_v45, 0.0  ;;  %v1536_v10 = vadd.f32 %v18092_v32, %v15765_v28  ;;  %v2408_v5 = vmul.f32 0.25, %v2378_v13 }
 0x1b8   :  { %v2383_v36 = vadd.f32 %v2353_v18, %v2173_v7  ;;  %v1527_v8 = vpop.f32.mrf.mxu0  ;;  %v3132_v55 = vsel %vm3120_vm0, %v3127_v16, %v3131_v60  ;;  %v3135_v30 = vor.u32 %v3133_v0, %v3131_v60 }
 0x1b9   :  { %14621 = vst [vmem:[#allocation2 + $0x30] sm:$0xff] %v14479_v38   ;;  %v2174_v49 = vmax.f32 %v1536_v10, 0.0  ;;  %v1528_v57 = vadd.f32 %v18092_v32, %v1527_v8  ;;  %15914 = vmatprep.mubr.bf16.mxu1 %v3132_v55  ;;  %v14474_v53 = vpack.c.bf16 %v2408_v5, %v2407_v63  ;;  %v2381_v61 = vadd.f32 %v18104_v1, %v2171_v43  ;;  %v18298_v24 = vld [vmem:[#allocation2 + $0x20] sm:$0xff]  }
 0x1ba   :  { %v15768_v15 = vpop.f32.mrf.mxu0  ;;  %15863 = vmatmul.mubr.bf16.gmra.mxu0 %v16782_v29  ;;  %v3140_v18 = vsel %vm3120_vm0, %v3135_v30, %v3139_v48  ;;  %v16788_v12 = vld [vmem:[#allocation2 + $0x18] sm:$0xff]   ;;  %v18302_v1 = vadd.f32 %v18092_v32, %v18183_v26  ;;  %v2413_v21 = vmul.f32 0.25, %v2383_v36  ;;  %v3153_v45 = vshll.u32 %v18298_v24, 16  ;;  %v16790_v29 = vld [vmem:[%s22597_s0 + $0x350] sm:$0xff]  }
 0x1bb   :  { %v2384_v54 = vadd.f32 %v2354_v11, %v2174_v49  ;;  %v2172_v34 = vmax.f32 %v1528_v57, 0.0  ;;  %v1549_v25 = vadd.f32 %v18092_v32, %v15768_v15  ;;  %15915 = vmatmul.mubr.bf16.vlgmr.msra.gmra.mxu1 %v3140_v18  ;;  %15866 = vmatprep.mubr.bf16.mxu0 %v16786_v6  ;;  %14620 = vst [vmem:[#allocation2 + $0x28] sm:$0xff] %v14474_v53   ;;  %v3145_v11 = vshll.u32 %v16788_v12, 16 }
 0x1bc   :  { %v1540_v2 = vpop.f32.mrf.mxu0  ;;  %v2411_v27 = vmul.f32 0.25, %v2381_v61  ;;  %v3149_v26 = vshrl.u32 %v16788_v12, 16  ;;  %v3155_v43 = vrot.slane %v3153_v45, 1  ;;  %v2358_v10 = vadd.f32 %v17971_v14, %v2148_v20 }
 0x1bd   :  { %v2414_v42 = vmul.f32 0.25, %v2384_v54  ;;  %v2382_v62 = vadd.f32 %v18116_v37, %v2172_v34  ;;  %v2177_v39 = vmax.f32 %v1549_v25, 0.0  ;;  %v1541_v31 = vadd.f32 %v18092_v32, %v1540_v2 }
 0x1be   :  { %v15769_v58 = vpop.f32.mrf.mxu0  ;;  %v3147_v7 = vrot.slane %v3145_v11, 1  ;;  %v2152_v36 = vmax.f32 %v18295_v56, 0.0  ;;  %v2155_v14 = vmax.f32 %v18302_v1, 0.0  ;;  %v18329_v57 = vadd.f32 %v18092_v32, %v18197_v4  ;;  %v16794_v4 = vld [vmem:[%s22597_s0 + $0x360] sm:$0xff]  }
 0x1bf   :  { %v14489_v16 = vpack.c.bf16 %v2414_v42, %v2413_v21  ;;  %v2412_v63 = vmul.f32 0.25, %v2382_v62  ;;  %v2387_v13 = vadd.f32 %v2357_v51, %v2177_v39  ;;  %v2175_v28 = vmax.f32 %v1541_v31, 0.0 }
 0x1c0   :  { %v1552_v60 = vadd.f32 %v18092_v32, %v15769_v58  ;;  %v1543_v37 = vpop.f32.mrf.mxu0  ;;  %v3148_v0 = vsel %vm3120_vm0, %v3143_v23, %v3147_v7  ;;  %v3151_v38 = vor.u32 %v3149_v26, %v3147_v7  ;;  %v18319_v5 = vld [vmem:[#allocation2 + $0x30] sm:$0xff]   ;;  %v3157_v18 = vshrl.u32 %v18298_v24, 16 }
 0x1c1   :  { %14623 = vst [vmem:[#allocation2 + $0x40] sm:$0xff] %v14489_v16   ;;  %v14484_v48 = vpack.c.bf16 %v2412_v63, %v2411_v27  ;;  %v1544_v6 = vadd.f32 %v18092_v32, %v1543_v37  ;;  %15918 = vmatprep.mubr.bf16.mxu1 %v3148_v0  ;;  %v2385_v8 = vadd.f32 %v18128_v47, %v2175_v28  ;;  %v2417_v47 = vmul.f32 0.25, %v2387_v13 }
 0x1c2   :  { %v2178_v55 = vmax.f32 %v1552_v60, 0.0  ;;  %v15772_v30 = vpop.f32.mrf.mxu0  ;;  %15867 = vmatmul.mubr.bf16.gmra.mxu0 %v16787_v19  ;;  %v3156_v51 = vsel %vm3120_vm0, %v3151_v38, %v3155_v43  ;;  %v16792_v15 = vld [vmem:[#allocation2 + $0x28] sm:$0xff]   ;;  %v3169_v56 = vshll.u32 %v18319_v5, 16  ;;  %v2365_v23 = vadd.f32 %v18010_v59, %v2155_v14  ;;  %v18353_v60 = vld [vmem:[%s22599_s2] ss:$0 sm:$0xff] }
 0x1c3   :  { %14622 = vst [vmem:[#allocation2 + $0x38] sm:$0xff] %v14484_v48   ;;  %v2176_v20 = vmax.f32 %v1544_v6, 0.0  ;;  %v1565_v49 = vadd.f32 %v18092_v32, %v15772_v30  ;;  %15919 = vmatmul.mubr.bf16.gmra.mxu1 %v3156_v51  ;;  %15870 = vmatprep.mubr.bf16.mxu0 %v16790_v29  ;;  %v2415_v54 = vmul.f32 0.25, %v2385_v8  ;;  %v3161_v1 = vshll.u32 %v16792_v15, 16 }
 0x1c4   :  { %v2388_v53 = vadd.f32 %v2358_v10, %v2178_v55  ;;  %v1556_v61 = vpop.f32.mrf.mxu0  ;;  %v3165_v24 = vshrl.u32 %v16792_v15, 16  ;;  %v3159_v62 = vor.u32 %v3157_v18, %v3155_v43  ;;  %v2156_v27 = vmax.f32 %v18329_v57, 0.0 }
 0x1c5   :  { %v2386_v40 = vadd.f32 %v18140_v41, %v2176_v20  ;;  %v2181_v46 = vmax.f32 %v1565_v49, 0.0  ;;  %v1557_v12 = vadd.f32 %v18092_v32, %v1556_v61  ;;  %v2362_v41 = vadd.f32 %v17997_v52, %v2152_v36  ;;  %v16798_v20 = vld [vmem:[%s22597_s0 + $0x370] sm:$0xff]  }
 0x1c6   :  { %v2418_v34 = vmul.f32 0.25, %v2388_v53  ;;  %v15773_v25 = vpop.f32.mrf.mxu0  ;;  %v3163_v39 = vrot.slane %v3161_v1, 1  ;;  %v3171_v59 = vrot.slane %v3169_v56, 1 }
 0x1c7   :  { %v2416_v21 = vmul.f32 0.25, %v2386_v40  ;;  %v2179_v2 = vmax.f32 %v1557_v12, 0.0  ;;  %v1568_v19 = vadd.f32 %v18092_v32, %v15773_v25  ;;  %v2391_v7 = vadd.f32 %v2361_v50, %v2181_v46 }
 0x1c8   :  { %v14499_v11 = vpack.c.bf16 %v2418_v34, %v2417_v47  ;;  %v1559_v42 = vpop.f32.mrf.mxu0  ;;  %v18344_v31 = vld [vmem:[#allocation2 + $0x40] sm:$0xff]   ;;  %v3164_v16 = vsel %vm3120_vm0, %v3159_v62, %v3163_v39  ;;  %v3167_v63 = vor.u32 %v3165_v24, %v3163_v39  ;;  %v2366_v46 = vadd.f32 %v18019_v35, %v2156_v27 }
 0x1c9   :  { %v14494_v58 = vpack.c.bf16 %v2416_v21, %v2415_v54  ;;  %v2182_v26 = vmax.f32 %v1568_v19, 0.0  ;;  %v1560_v52 = vadd.f32 %v18092_v32, %v1559_v42  ;;  %v2389_v28 = vadd.f32 %v18149_v9, %v2179_v2  ;;  %15922 = vmatprep.mubr.bf16.mxu1 %v3164_v16 }
 0x1ca   :  { %14625 = vst [vmem:[#allocation2 + $0x50] sm:$0xff] %v14499_v11   ;;  %v15776_v45 = vpop.f32.mrf.mxu0  ;;  %15871 = vmatmul.mubr.bf16.gmra.mxu0 %v16791_v22  ;;  %v16796_v13 = vld [vmem:[#allocation2 + $0x38] sm:$0xff]   ;;  %v3173_v32 = vshrl.u32 %v18319_v5, 16  ;;  %v3172_v43 = vsel %vm3120_vm0, %v3167_v63, %v3171_v59  ;;  %v3185_v48 = vshll.u32 %v18344_v31, 16  ;;  %v2421_v9 = vmul.f32 0.25, %v2391_v7  ;;  %v16795_v5 = vld [vmem:[%s22597_s0 + $0x368] sm:$0xff]  }
 0x1cb   :  { %14624 = vst [vmem:[#allocation2 + $0x48] sm:$0xff] %v14494_v58   ;;  %v2392_v29 = vadd.f32 %v2362_v41, %v2182_v26  ;;  %v1581_v37 = vadd.f32 %v18353_v60, %v15776_v45  ;;  %15874 = vmatprep.mubr.bf16.mxu0 %v16794_v4  ;;  %v2180_v0 = vmax.f32 %v1560_v52, 0.0  ;;  %v3177_v10 = vshll.u32 %v16796_v13, 16  ;;  %15923 = vmatmul.mubr.bf16.gmra.mxu1 %v3172_v43 }
 0x1cc   :  { %v1572_v38 = vpop.f32.mrf.mxu0  ;;  %v3175_v51 = vor.u32 %v3173_v32, %v3171_v59  ;;  %v3181_v14 = vshrl.u32 %v16796_v13, 16  ;;  %v2419_v49 = vmul.f32 0.25, %v2389_v28  ;;  %v3187_v40 = vrot.slane %v3185_v48, 1 }
 0x1cd   :  { %v2422_v6 = vmul.f32 0.25, %v2392_v29  ;;  %v2185_v36 = vmax.f32 %v1581_v37, 0.0  ;;  %v1573_v8 = vadd.f32 %v18353_v60, %v1572_v38  ;;  %v2390_v55 = vadd.f32 %v18158_v44, %v2180_v0 }
 0x1ce   :  { %v15777_v30 = vpop.f32.mrf.mxu0  ;;  %v3179_v50 = vrot.slane %v3177_v10, 1  ;;  %v3189_v2 = vshrl.u32 %v18344_v31, 16  ;;  %v16802_v31 = vld [vmem:[%s22597_s0 + $0x380] sm:$0xff]  }
 0x1cf   :  { %v14509_v57 = vpack.c.bf16 %v2422_v6, %v2421_v9  ;;  %v2183_v47 = vmax.f32 %v1573_v8, 0.0  ;;  %v1584_v53 = vadd.f32 %v18353_v60, %v15777_v30  ;;  %v2420_v61 = vmul.f32 0.25, %v2390_v55  ;;  %v16803_v9 = vld [vmem:[%s22597_s0 + $0x388] sm:$0xff]   ;;  %v16808_v55 = vld [vmem:[%s22597_s0 + $0x390] sm:$0xff]  }
 0x1d0   :  { %v1575_v15 = vpop.f32.mrf.mxu0  ;;  %v3180_v44 = vsel %vm3120_vm0, %v3175_v51, %v3179_v50  ;;  %v3183_v18 = vor.u32 %v3181_v14, %v3179_v50  ;;  %v2395_v12 = vadd.f32 %v2365_v23, %v2185_v36  ;;  %v3191_v39 = vor.u32 %v3189_v2, %v3187_v40 }
 0x1d1   :  { %14627 = vst [vmem:[#allocation2 + $0x60] sm:$0xff] %v14509_v57   ;;  %v2186_v22 = vmax.f32 %v1584_v53, 0.0  ;;  %v1576_v56 = vadd.f32 %v18353_v60, %v1575_v15  ;;  %15926 = vmatprep.mubr.bf16.mxu1 %v3180_v44  ;;  %v14504_v4 = vpack.c.bf16 %v2420_v61, %v2419_v49  ;;  %v2393_v1 = vadd.f32 %v18169_v17, %v2183_v47  ;;  %v16801_v21 = vld [vmem:[#allocation2 + $0x50] sm:$0xff]   ;;  %v16799_v17 = vld [vmem:[%s22597_s0 + $0x378] sm:$0xff]  }
 0x1d2   :  { %v18371_v54 = vpop.f32.mrf.mxu0  ;;  %15875 = vmatmul.mubr.bf16.gmra.mxu0 %v16795_v5  ;;  %v3188_v34 = vsel %vm3120_vm0, %v3183_v18, %v3187_v40  ;;  %v16800_v25 = vld [vmem:[#allocation2 + $0x48] sm:$0xff]   ;;  %v2425_v23 = vmul.f32 0.25, %v2395_v12  ;;  %v3201_v7 = vshll.u32 %v16801_v21, 16  ;;  %v3205_v38 = vshrl.u32 %v16801_v21, 16 }
 0x1d3   :  { %v2396_v24 = vadd.f32 %v2366_v46, %v2186_v22  ;;  %v2184_v41 = vmax.f32 %v1576_v56, 0.0  ;;  %15878 = vmatprep.mubr.bf16.mxu0 %v16798_v20  ;;  %14626 = vst [vmem:[#allocation2 + $0x58] sm:$0xff] %v14504_v4   ;;  %v3193_v19 = vshll.u32 %v16800_v25, 16  ;;  %15927 = vmatmul.mubr.bf16.gmra.mxu1 %v3188_v34  ;;  %v3197_v58 = vshrl.u32 %v16800_v25, 16  ;;  %v16813_v20 = vld [vmem:[#allocation2 + $0x78] sm:$0xff]  }
 0x1d4   :  { %v18375_v35 = vpop.f32.mrf.mxu0  ;;  %v2423_v26 = vmul.f32 0.25, %v2393_v1  ;;  %v3203_v59 = vrot.slane %v3201_v7, 1  ;;  %v3241_v18 = vshll.u32 %v16813_v20, 16  ;;  %v5313_v40 = vld [vmem:[#allocation2 + $0x8] sm:$0xf]  ;;  %v16809_v46 = vld [vmem:[%s22597_s0 + $0x398] sm:$0xff]  }
 0x1d5   :  { %v2426_v11 = vmul.f32 0.25, %v2396_v24  ;;  %v2394_v42 = vadd.f32 %v18180_v3, %v2184_v41  ;;  %v3195_v27 = vrot.slane %v3193_v19, 1  ;;  %v5314_v22 = vld [vmem:[#allocation2 + $0xc] sm:$0xf]  ;;  %v16815_v24 = vld [vmem:[%s22597_s0 + $0x3a0] sm:$0xff]   ;;  %v16823_v7 = vld [vmem:[#allocation2 + $0x10] sm:$0xff]  }
 0x1d6   :  { %v18379_v62 = vpop.f32.mrf.mxu0  ;;  %v3207_v6 = vor.u32 %v3205_v38, %v3203_v59  ;;  %v18447_v38 = vld [vmem:[#allocation2 + $0x78] sm:$0xff]  }
 0x1d7   :  { %v14519_v52 = vpack.c.bf16 %v2426_v11, %v2425_v23  ;;  %v2424_v45 = vmul.f32 0.25, %v2394_v42  ;;  %v3196_v3 = vsel %vm3120_vm0, %v3191_v39, %v3195_v27  ;;  %v3199_v63 = vor.u32 %v3197_v58, %v3195_v27  ;;  %v16816_v58 = vld [vmem:[%s22597_s0 + $0x3a8] sm:$0xff]   ;;  %v18464_v20 = vld [vmem:[#allocation2 + $0x38] sm:$0xff]  }
 0x1d8   :  { %v18387_v16 = vpop.f32.mrf.mxu0  ;;  %15930 = vmatprep.mubr.bf16.mxu1 %v3196_v3  ;;  %v16806_v28 = vld [vmem:[#allocation2 + $0x60] sm:$0xff]   ;;  %v18422_v23 = vrot.slane %v3241_v18, 1  ;;  %v13799_v11 = vcombine.low %v5313_v40, %v5314_v22 }
 0x1d9   :  { %14629 = vst [vmem:[#allocation2 + $0x70] sm:$0xff] %v14519_v52   ;;  %v14514_v13 = vpack.c.bf16 %v2424_v45, %v2423_v26  ;;  %v3204_v37 = vsel %vm3120_vm0, %v3199_v63, %v3203_v59  ;;  %v3217_v10 = vshll.u32 %v16806_v28, 16  ;;  %v3221_v15 = vshrl.u32 %v16806_v28, 16  ;;  %v16825_v52 = vld [vmem:[#allocation2 + $0x18] sm:$0xff]   ;;  %v16819_v45 = vld [vmem:[%s22597_s0 + $0x3b0] sm:$0xff]  }
 0x1da   :  { %v18390_v29 = vpop.f32.mrf.mxu0  ;;  %15879 = vmatmul.mubr.bf16.gmra.mxu0 %v16799_v17  ;;  %v16804_v32 = vld [vmem:[#allocation2 + $0x58] sm:$0xff]   ;;  %22625 = vst [vmem:[#allocation9_spill] sm:$0xff] %v18422_v23  ;;  %v5566_v59 = vshll.u32 %v16823_v7, 16  ;;  %v5574_v28 = vshll.u32 %v16825_v52, 16  ;;  %v5578_v18 = vshrl.u32 %v16825_v52, 16 }
 0x1db   :  { %14628 = vst [vmem:[#allocation2 + $0x68] sm:$0xff] %v14514_v13   ;;  %15882 = vmatprep.mubr.bf16.mxu0 %v16802_v31  ;;  %15931 = vmatmul.mubr.bf16.gmra.mxu1 %v3204_v37  ;;  %v3209_v43 = vshll.u32 %v16804_v32, 16  ;;  %v3213_v8 = vshrl.u32 %v16804_v32, 16  ;;  %v3219_v14 = vrot.slane %v3217_v10, 1  ;;  %v5561_v31 = vshll.u32 %v13799_v11, 16  ;;  %v18443_v37 = vld [vmem:[#allocation2 + $0x20] sm:$0xff]  }
 0x1dc   :  { %v18393_v0 = vpop.f32.mrf.mxu0  ;;  %22626 = vst [vmem:[#allocation10_spill] sm:$0xff] %v18443_v37  ;;  %v18445_v32 = vld [vmem:[#allocation2 + $0x28] sm:$0xff]   ;;  %v16820_v10 = vld [vmem:[%s22597_s0 + $0x3b8] sm:$0xff]   ;;  %v5586_v40 = vshrl.u32 %v18443_v37, 16 }
 0x1dd   :  { %v3211_v36 = vrot.slane %v3209_v43, 1  ;;  %v3223_v4 = vor.u32 %v3221_v15, %v3219_v14  ;;  %v5563_v63 = vrot.slane %v5561_v31, 1  ;;  %v18477_v15 = vadd.f32 %v18353_v60, %v18387_v16 }
 0x1de   :  { %v18395_v48 = vpop.f32.mrf.mxu0  ;;  %v5594_v31 = vshrl.u32 %v18445_v32, 16 }
 0x1df   :  { %v3212_v51 = vsel %vm3120_vm0, %v3207_v6, %v3211_v36  ;;  %v3215_v50 = vor.u32 %v3213_v8, %v3211_v36  ;;  %v18456_v6 = vadd.f32 %v18353_v60, %v18371_v54  ;;  %v18458_v36 = vld [vmem:[#allocation2 + $0x30] sm:$0xff]   ;;  %v18472_v54 = vadd.f32 %v18353_v60, %v18379_v62 }
 0x1e0   :  { %v18403_v30 = vpop.f32.mrf.mxu0  ;;  %v16812_v5 = vld [vmem:[#allocation2 + $0x70] sm:$0xff]   ;;  %15934 = vmatprep.mubr.bf16.mxu1 %v3212_v51  ;;  %v5568_v51 = vrot.slane %v5566_v59, 1  ;;  %v18489_v62 = vadd.f32 %v18353_v60, %v18390_v29  ;;  %v5598_v22 = vshll.u32 %v18458_v36, 16 }
 0x1e1   :  { %v3233_v47 = vshll.u32 %v16812_v5, 16  ;;  %v3220_v53 = vsel %vm3120_vm0, %v3215_v50, %v3219_v14  ;;  %v3237_v1 = vshrl.u32 %v16812_v5, 16  ;;  %v5576_v50 = vrot.slane %v5574_v28, 1  ;;  %v18514_v28 = vld [vmem:[#allocation2 + $0x58] sm:$0xff]  }
 0x1e2   :  { %v18406_v49 = vpop.f32.mrf.mxu0  ;;  %15883 = vmatmul.mubr.bf16.gmra.mxu0 %v16803_v9  ;;  %v16810_v57 = vld [vmem:[#allocation2 + $0x68] sm:$0xff]   ;;  %v5559_v9 = vshrl.u32 %v13799_v11, 16  ;;  %v5582_v14 = vshll.u32 %v18443_v37, 16  ;;  %v5600_v52 = vrot.slane %v5598_v22, 1  ;;  %v5610_v22 = vshrl.u32 %v18464_v20, 16 }
 0x1e3   :  { %15886 = vmatprep.mubr.bf16.mxu0 %v16808_v55  ;;  %v3225_v44 = vshll.u32 %v16810_v57, 16  ;;  %15935 = vmatmul.mubr.bf16.gmra.mxu1 %v3220_v53  ;;  %v3235_v12 = vrot.slane %v3233_v47, 1  ;;  %v3229_v25 = vshrl.u32 %v16810_v57, 16  ;;  %v18468_v57 = vadd.f32 %v18353_v60, %v18375_v35  ;;  %v18484_v35 = vld [vmem:[#allocation2 + $0x48] sm:$0xff]  }
 0x1e4   :  { %v18409_v61 = vpop.f32.mrf.mxu0  ;;  %v5564_v5 = vor.u32 %v5563_v63, %v5559_v9  ;;  %v5570_v47 = vshrl.u32 %v16823_v7, 16  ;;  %v5590_v53 = vshll.u32 %v18445_v32, 16  ;;  %v7445_v9 = vld [vmem:[#allocation2 + $0x14] sm:$0xf] }
 0x1e5   :  { %v3227_v34 = vrot.slane %v3225_v44, 1  ;;  %v3239_v19 = vor.u32 %v3237_v1, %v3235_v12  ;;  %v5606_v1 = vshll.u32 %v18464_v20, 16 }
 0x1e6   :  { %v18414_v56 = vpop.f32.mrf.mxu0  ;;  %v5569_v16 = vsel %vm3120_vm0, %v5564_v5, %v5568_v51  ;;  %v5592_v29 = vrot.slane %v5590_v53, 1  ;;  %v18521_v53 = vadd.f32 %v18353_v60, %v18403_v30  ;;  %v18535_v30 = vadd.f32 %v18353_v60, %v18409_v61 }
 0x1e7   :  { %v3228_v21 = vsel %vm3120_vm0, %v3223_v4, %v3227_v34  ;;  %v3231_v2 = vor.u32 %v3229_v25, %v3227_v34  ;;  %v3244_v27 = vsel %vm3120_vm0, %v3239_v19, %v18422_v23  ;;  %v5580_v34 = vor.u32 %v5578_v18, %v5576_v50  ;;  %v18502_v19 = vld [vmem:[#allocation2 + $0x50] sm:$0xff]  }
 0x1e8   :  { %v18419_v41 = vpop.f32.mrf.mxu0  ;;  %15938 = vmatprep.mubr.bf16.mxu1 %v3228_v21  ;;  %v5584_v25 = vrot.slane %v5582_v14, 1  ;;  %v5608_v59 = vrot.slane %v5606_v1, 1  ;;  %v5596_v14 = vor.u32 %v5594_v31, %v5592_v29  ;;  %v18525_v18 = vadd.f32 %v18353_v60, %v18406_v49  ;;  %v18530_v1 = vld [vmem:[#allocation2 + $0x60] sm:$0xff]  }
 0x1e9   :  { %v3236_v17 = vsel %vm3120_vm0, %v3231_v2, %v3235_v12  ;;  %v18500_v2 = vadd.f32 %v18353_v60, %v18393_v0  ;;  %v5630_v8 = vshll.u32 %v18502_v19, 16  ;;  %v18539_v49 = vadd.f32 %v18353_v60, %v18419_v41 }
 0x1ea   :  { %v18424_v42 = vpop.f32.mrf.mxu0  ;;  %15887 = vmatmul.mubr.bf16.gmra.mxu0 %v16809_v46  ;;  %v18482_v46 = vld [vmem:[#allocation2 + $0x40] sm:$0xff]   ;;  %v5634_v61 = vshrl.u32 %v18502_v19, 16 }
 0x1eb   :  { %15890 = vmatprep.mubr.bf16.mxu0 %v16815_v24  ;;  %15939 = vmatmul.mubr.bf16.gmra.mxu1 %v3236_v17  ;;  %v5572_v17 = vor.u32 %v5570_v47, %v5568_v51  ;;  %v5585_v51 = vsel %vm3120_vm0, %v5580_v34, %v5584_v25  ;;  %v5602_v47 = vshrl.u32 %v18458_v36, 16  ;;  %v5618_v21 = vshrl.u32 %v18482_v46, 16 }
 0x1ec   :  { %v18427_v39 = vpop.f32.mrf.mxu0  ;;  %15942 = vmatprep.mubr.bf16.mxu1 %v3244_v27 }
 0x1ed   :  { %v5577_v63 = vsel %vm3120_vm0, %v5572_v17, %v5576_v50  ;;  %v5588_v17 = vor.u32 %v5586_v40, %v5584_v25  ;;  %v5604_v34 = vor.u32 %v5602_v47, %v5600_v52  ;;  %v5626_v25 = vshrl.u32 %v18484_v35, 16 }
 0x1ee   :  { %v18434_v26 = vpop.f32.mrf.mxu0 }
 0x1ef   :  { %v5593_v40 = vsel %vm3120_vm0, %v5588_v17, %v5592_v29  ;;  %v5632_v29 = vrot.slane %v5630_v8, 1  ;;  %v5646_v17 = vshll.u32 %v18530_v1, 16 }
 0x1f0   :  { %v18439_v3 = vpop.f32.mrf.mxu0 }
 0x1f2   :  { %v18441_v13 = vpop.f32.mrf.mxu0  ;;  %15891 = vmatmul.mubr.bf16.gmra.mxu0 %v16816_v58  ;;  %v5614_v58 = vshll.u32 %v18482_v46, 16 }
 0x1f3   :  { %15894 = vmatprep.mubr.bf16.mxu0 %v16819_v45  ;;  %v5622_v45 = vshll.u32 %v18484_v35, 16 }
 0x1f4   :  { %v18449_v43 = vpop.f32.mrf.mxu0 }
 0x1f5   :  { %v5624_v31 = vrot.slane %v5622_v45, 1  ;;  %v5638_v45 = vshll.u32 %v18514_v28, 16 }
 0x1f6   :  { %v18461_v55 = vpop.f32.mrf.mxu0 }
 0x1f7   :  { %v5628_v5 = vor.u32 %v5626_v25, %v5624_v31  ;;  %v5640_v8 = vrot.slane %v5638_v45, 1 }
 0x1f8   :  { %v18479_v44 = vpop.f32.mrf.mxu0 }
 0x1fa   :  { %v18492_v4 = vpop.f32.mrf.mxu0  ;;  %15895 = vmatmul.mubr.bf16.gmra.mxu0 %v16820_v10  ;;  %v7444_v10 = vld [vmem:[#allocation2 + $0x10] sm:$0xf] }
 0x1fb   :  { %16234 = vmatprep.mubr.bf16.mxu0 %v5569_v16  ;;  %v5616_v16 = vrot.slane %v5614_v58, 1  ;;  %v5612_v58 = vor.u32 %v5610_v22, %v5608_v59  ;;  %v18547_v47 = vcombine.low %v7444_v10, %v7445_v9  ;;  %v18555_v22 = vsel %vm3120_vm0, %v5604_v34, %v5608_v59 }
 0x1fc   :  { %v18505_v27 = vpop.f32.mrf.mxu0  ;;  %v5642_v59 = vshrl.u32 %v18514_v28, 16 }
 0x1fd   :  { %v18563_v41 = vsel %vm3120_vm0, %v5612_v58, %v5616_v16 }
 0x1fe   :  { %v18511_v0 = vpop.f32.mrf.mxu0 }
 0x1ff   :  { %22627 = vst [vmem:[#allocation11_spill] sm:$0xff] %v18511_v0 }
 0x200   :  { %v18527_v50 = vpop.f32.mrf.mxu0 }
 0x202   :  { %v18541_v7 = vpop.f32.mrf.mxu0  ;;  %16235 = vmatmul.mubr.bf16.vlgmr.msra.gmra.mxu0 %v5577_v63  ;;  %v5601_v63 = vsel %vm3120_vm0, %v5596_v14, %v5600_v52  ;;  %v18568_v52 = vadd.f32 %v18353_v60, %v18427_v39  ;;  %v18574_v14 = vld [vmem:[#allocation2 + $0x68] sm:$0xff]  }
 0x203   :  { %16238 = vmatprep.mubr.bf16.mxu0 %v5585_v51  ;;  %v5620_v51 = vor.u32 %v5618_v21, %v5616_v16 }
 0x204   :  { %v18551_v12 = vpop.f32.mrf.mxu0 }
 0x205   :  { %v18571_v21 = vsel %vm3120_vm0, %v5620_v51, %v5624_v31 }
 0x206   :  { %v18560_v9 = vpop.f32.mrf.mxu0 }
 0x207   :  { %22628 = vst [vmem:[#allocation12_spill] sm:$0xff] %v18560_v9 }
 0x208   :  { %17 = vsyncpa [#allocation6], 0  ;;  %v18576_v34 = vpop.f32.mrf.mxu0  ;;  %v22611_v16 = vrot.slane %v18443_v37, 1  ;;  %v6279_v58 = vrot.slane %v18445_v32, 1  ;;  %v6281_v25 = vrot.slane %v18458_v36, 1  ;;  %v6283_v39 = vrot.slane %v18464_v20, 1 }
 0x209   :  { %v18583_v10 = vsel %vm3120_vm0, %v5628_v5, %v5632_v29  ;;  %v5636_v31 = vor.u32 %v5634_v61, %v5632_v29  ;;  %v18585_v45 = vrot.slane %v5646_v17, 1  ;;  %v5650_v51 = vshrl.u32 %v18530_v1, 16  ;;  %v18588_v24 = vld [vmem:[#allocation2 + $0x70] sm:$0xff]   ;;  %v16944_v33 = vld [vmem:[#allocation2 + $0x38] sm:$0xff]  }
 0x20a   :  { %v15808_v11 = vpop.f32.mrf.mxu0  ;;  %16239 = vmatmul.mubr.bf16.gmra.mxu0 %v5593_v40  ;;  %22629 = vst [vmem:[#allocation13_spill] sm:$0xff] %v18588_v24  ;;  %v18593_v32 = vsel %vm4140_vm1, %v22611_v16, %v6279_v58  ;;  %v18596_v36 = vsel %vm4140_vm1, %v6279_v58, %v6281_v25  ;;  %v18599_v20 = vsel %vm4140_vm1, %v6281_v25, %v6283_v39  ;;  %v6285_v5 = vrot.slane %v18482_v46, 1 }
 0x20b   :  { %22630 = vst [vmem:[#allocation14_spill] sm:$0xff] %v18593_v32  ;;  %22631 = vst [vmem:[#allocation15_spill] sm:$0xff] %v18596_v36  ;;  %v1709_v29 = vadd.f32 %v18353_v60, %v15808_v11  ;;  %16242 = vmatprep.mubr.bf16.mxu0 %v5601_v63  ;;  %v5654_v40 = vshll.u32 %v18574_v14, 16  ;;  %v6287_v17 = vrot.slane %v18484_v35, 1  ;;  %v6289_v58 = vrot.slane %v18502_v19, 1  ;;  %v16938_v11 = vld [vmem:[#allocation2 + $0x18] sm:$0xff]  }
 0x20c   :  { %22632 = vst [vmem:[#allocation16_spill] sm:$0xff] %v18599_v20  ;;  %v18606_v37 = vpop.f32.mrf.mxu0  ;;  %v18609_v16 = vsel %vm4140_vm1, %v6283_v39, %v6285_v5  ;;  %v6291_v25 = vrot.slane %v18514_v28, 1  ;;  %v6293_v46 = vrot.slane %v18530_v1, 1  ;;  %v18614_v61 = vor.u32 %v5642_v59, %v5640_v8  ;;  %v16941_v32 = vld [vmem:[#allocation2 + $0x20] sm:$0xff]   ;;  %v16942_v1 = vld [vmem:[#allocation2 + $0x28] sm:$0xff]  }
 0x20d   :  { %22633 = vst [vmem:[#allocation17_spill] sm:$0xff] %v18609_v16  ;;  %v2217_v20 = vmax.f32 %v1709_v29, 0.0  ;;  %v18617_v63 = vsel %vm4140_vm1, %v6285_v5, %v6287_v17  ;;  %v6295_v35 = vrot.slane %v18574_v14, 1  ;;  %v18621_v39 = vsel %vm4140_vm1, %v6287_v17, %v6289_v58 }
 0x20e   :  { %22634 = vst [vmem:[#allocation18_spill] sm:$0xff] %v18617_v63  ;;  %v15809_v36 = vpop.f32.mrf.mxu0  ;;  %22635 = vst [vmem:[#allocation19_spill] sm:$0xff] %v18621_v39  ;;  %v18624_v19 = vsel %vm4140_vm1, %v6289_v58, %v6291_v25  ;;  %v18627_v28 = vsel %vm4140_vm1, %v6291_v25, %v6293_v46  ;;  %v22638_v59 = vmax.f32 %v18468_v57, 0.0  ;;  %v18642_v58 = vsel %vm3120_vm0, %v5636_v31, %v5640_v8 }
 0x20f   :  { %22636 = vst [vmem:[#allocation20_spill] sm:$0xff] %v18624_v19  ;;  %22637 = vst [vmem:[#allocation21_spill] sm:$0xff] %v18627_v28  ;;  %v1712_v5 = vadd.f32 %v18353_v60, %v15809_v36  ;;  %v18637_v16 = vsel %vm4140_vm1, %v6293_v46, %v6295_v35  ;;  %v18645_v25 = vor.u32 %v5650_v51, %v18585_v45  ;;  %v22641_v57 = vrot.slane %v18588_v24, 1 }
 0x210   :  { %v18632_v29 = vadd.f32 %v2217_v20, %v22638_v59  ;;  %22640 = vst [vmem:[#allocation23_spill] sm:$0xff] %v18637_v16  ;;  %v18639_v17 = vpop.f32.mrf.mxu0  ;;  %v7692_v36 = vshll.u32 %v18547_v47, 16  ;;  %v18653_v63 = vrot.slane %v5654_v40, 1  ;;  %v16943_v16 = vld [vmem:[#allocation2 + $0x30] sm:$0xff]   ;;  %v7697_v28 = vshll.u32 %v16938_v11, 16 }
 0x211   :  { %v18650_v20 = vsel %vm4140_vm1, %v6295_v35, %v22641_v57  ;;  %v2218_v59 = vmax.f32 %v1712_v5, 0.0  ;;  %v7690_v31 = vshrl.u32 %v18547_v47, 16  ;;  %v7701_v19 = vshrl.u32 %v16938_v11, 16 }
 0x212   :  { %22639 = vst [vmem:[#allocation22_spill] sm:$0xff] %v18632_v29  ;;  %22642 = vst [vmem:[#allocation24_spill] sm:$0xff] %v18650_v20  ;;  %v15812_v8 = vpop.f32.mrf.mxu0  ;;  %16243 = vmatmul.mubr.bf16.gmra.mxu0 %v18555_v22  ;;  %v7694_v51 = vrot.slane %v7692_v36, 1  ;;  %v7705_v39 = vshll.u32 %v16941_v32, 16  ;;  %v22643_v35 = vmax.f32 %v18477_v15, 0.0  ;;  %v7699_v40 = vrot.slane %v7697_v28, 1 }
 0x213   :  { %v1725_v5 = vadd.f32 %v18353_v60, %v15812_v8  ;;  %16246 = vmatprep.mubr.bf16.mxu0 %v18563_v41  ;;  %v7709_v46 = vshrl.u32 %v16941_v32, 16  ;;  %v7713_v22 = vshll.u32 %v16942_v1, 16  ;;  %v7717_v9 = vshrl.u32 %v16942_v1, 16 }
 0x214   :  { %v18660_v57 = vadd.f32 %v2218_v59, %v22643_v35  ;;  %v1716_v20 = vpop.f32.mrf.mxu0  ;;  %v7695_v23 = vor.u32 %v7694_v51, %v7690_v31  ;;  %v7707_v29 = vrot.slane %v7705_v39, 1  ;;  %v7703_v36 = vor.u32 %v7701_v19, %v7699_v40  ;;  %v16945_v59 = vld [vmem:[#allocation2 + $0x40] sm:$0xff]  }
 0x215   :  { %v2221_v47 = vmax.f32 %v1725_v5, 0.0  ;;  %v1717_v11 = vadd.f32 %v18353_v60, %v1716_v20  ;;  %v7721_v0 = vshll.u32 %v16943_v16, 16  ;;  %v7715_v41 = vrot.slane %v7713_v22, 1  ;;  %v16946_v20 = vld [vmem:[#allocation2 + $0x48] sm:$0xff]  }
 0x216   :  { %22644 = vst [vmem:[#allocation25_spill] sm:$0xff] %v18660_v57  ;;  %v15813_v15 = vpop.f32.mrf.mxu0  ;;  %v18666_v35 = vsel %vm3120_vm0, %v7695_v23, %v7699_v40  ;;  %v7711_v8 = vor.u32 %v7709_v46, %v7707_v29  ;;  %v7725_v28 = vshrl.u32 %v16943_v16, 16  ;;  %v22646_v32 = vmax.f32 %v18500_v2, 0.0 }
 0x217   :  { %22645 = vst [vmem:[#allocation26_spill] sm:$0xff] %v18666_v35  ;;  %v2219_v39 = vmax.f32 %v1717_v11, 0.0  ;;  %v1728_v1 = vadd.f32 %v18353_v60, %v15813_v15  ;;  %v18674_v31 = vsel %vm3120_vm0, %v7703_v36, %v7707_v29  ;;  %v7719_v23 = vor.u32 %v7717_v9, %v7715_v41  ;;  %v16947_v29 = vld [vmem:[#allocation2 + $0x50] sm:$0xff]  }
 0x218   :  { %v18670_v57 = vadd.f32 %v2221_v47, %v22646_v32  ;;  %22647 = vst [vmem:[#allocation27_spill] sm:$0xff] %v18674_v31  ;;  %v1719_v19 = vpop.f32.mrf.mxu0  ;;  %v18677_v51 = vsel %vm3120_vm0, %v7711_v8, %v7715_v41  ;;  %v7723_v5 = vrot.slane %v7721_v0, 1  ;;  %v7729_v46 = vshll.u32 %v16944_v33, 16 }
 0x219   :  { %22648 = vst [vmem:[#allocation28_spill] sm:$0xff] %v18677_v51  ;;  %v22649_v16 = vmax.f32 %v18456_v6, 0.0  ;;  %v2222_v2 = vmax.f32 %v1728_v1, 0.0  ;;  %v1720_v22 = vadd.f32 %v18353_v60, %v1719_v19  ;;  %v7733_v47 = vshrl.u32 %v16944_v33, 16  ;;  %v16948_v1 = vld [vmem:[#allocation2 + $0x58] sm:$0xff]  }
 0x21a   :  { %v15816_v11 = vpop.f32.mrf.mxu0  ;;  %16247 = vmatmul.mubr.bf16.gmra.mxu0 %v18571_v21  ;;  %v18686_v36 = vsel %vm3120_vm0, %v7719_v23, %v7723_v5  ;;  %v7727_v15 = vor.u32 %v7725_v28, %v7723_v5  ;;  %v7731_v8 = vrot.slane %v7729_v46, 1  ;;  %v7737_v9 = vshll.u32 %v16945_v59, 16 }
 0x21b   :  { %v18681_v40 = vadd.f32 %v2219_v39, %v22649_v16  ;;  %22650 = vst [vmem:[#allocation29_spill] sm:$0xff] %v18686_v36  ;;  %v22651_v0 = vmax.f32 %v18521_v53, 0.0  ;;  %v2220_v6 = vmax.f32 %v1720_v22, 0.0  ;;  %v1741_v32 = vadd.f32 %v18353_v60, %v15816_v11  ;;  %16250 = vmatprep.mubr.bf16.mxu0 %v18583_v10  ;;  %v16949_v11 = vld [vmem:[#allocation2 + $0x60] sm:$0xff]  }
 0x21c   :  { %v7741_v33 = vshrl.u32 %v16945_v59, 16  ;;  %v1732_v39 = vpop.f32.mrf.mxu0  ;;  %v18695_v21 = vsel %vm3120_vm0, %v7727_v15, %v7731_v8  ;;  %v7735_v19 = vor.u32 %v7733_v47, %v7731_v8  ;;  %v7739_v23 = vrot.slane %v7737_v9, 1 }
 0x21d   :  { %v18690_v41 = vadd.f32 %v2222_v2, %v22651_v0  ;;  %22652 = vst [vmem:[#allocation30_spill] sm:$0xff] %v18695_v21  ;;  %v7745_v28 = vshll.u32 %v16946_v20, 16  ;;  %v22653_v5 = vmax.f32 %v18472_v54, 0.0  ;;  %v2225_v53 = vmax.f32 %v1741_v32, 0.0  ;;  %v17367_v21 = vld [vmem:[#allocation2 + $0x78] sm:$0xff]  }
 0x21e   :  { %v1733_v16 = vadd.f32 %v18353_v60, %v1732_v39  ;;  %v7749_v2 = vshrl.u32 %v16946_v20, 16  ;;  %v15817_v22 = vpop.f32.mrf.mxu0  ;;  %v18703_v10 = vsel %vm3120_vm0, %v7735_v19, %v7739_v23  ;;  %v7743_v59 = vor.u32 %v7741_v33, %v7739_v23  ;;  %v16950_v39 = vld [vmem:[#allocation2 + $0x68] sm:$0xff]  }
 0x21f   :  { %v18699_v46 = vadd.f32 %v2220_v6, %v22653_v5  ;;  %22654 = vst [vmem:[#allocation31_spill] sm:$0xff] %v18703_v10  ;;  %v7747_v0 = vrot.slane %v7745_v28, 1  ;;  %v7753_v15 = vshll.u32 %v16947_v29, 16  ;;  %v22655_v47 = vmax.f32 %v18535_v30, 0.0 }
 0x220   :  { %v2223_v9 = vmax.f32 %v1733_v16, 0.0  ;;  %v1744_v54 = vadd.f32 %v18353_v60, %v15817_v22  ;;  %v7757_v6 = vshrl.u32 %v16947_v29, 16  ;;  %v18710_v32 = vpop.f32.mrf.mxu0  ;;  %v7761_v10 = vshll.u32 %v16948_v1, 16  ;;  %v16951_v16 = vld [vmem:[#allocation2 + $0x70] sm:$0xff]  }
 0x221   :  { %v18707_v8 = vadd.f32 %v2225_v53, %v22655_v47  ;;  %v18713_v20 = vsel %vm3120_vm0, %v7743_v59, %v7747_v0  ;;  %v7751_v5 = vor.u32 %v7749_v2, %v7747_v0  ;;  %v7755_v19 = vrot.slane %v7753_v15, 1 }
 0x222   :  { %22656 = vst [vmem:[#allocation32_spill] sm:$0xff] %v18713_v20  ;;  %v22657_v33 = vmax.f32 %v18489_v62, 0.0  ;;  %v2226_v30 = vmax.f32 %v1744_v54, 0.0  ;;  %v5649_v28 = vsel %vm3120_vm0, %v18614_v61, %v18585_v45  ;;  %v7765_v53 = vshrl.u32 %v16948_v1, 16  ;;  %v15820_v29 = vpop.f32.mrf.mxu0  ;;  %16251 = vmatmul.mubr.bf16.gmra.mxu0 %v18642_v58 }
 0x223   :  { %v18724_v22 = vsel %vm3120_vm0, %v7751_v5, %v7755_v19  ;;  %v7759_v2 = vor.u32 %v7757_v6, %v7755_v19  ;;  %v7763_v59 = vrot.slane %v7761_v10, 1  ;;  %v7769_v0 = vshll.u32 %v16949_v11, 16  ;;  %16254 = vmatprep.mubr.bf16.mxu0 %v5649_v28 }
 0x224   :  { %v18717_v23 = vadd.f32 %v2223_v9, %v22657_v33  ;;  %22658 = vst [vmem:[#allocation33_spill] sm:$0xff] %v18724_v22  ;;  %v1640_v62 = vadd.f32 %v18353_v60, %v18439_v3  ;;  %v22659_v15 = vmax.f32 %v18539_v49, 0.0  ;;  %v1757_v45 = vadd.f32 %v18353_v60, %v15820_v29  ;;  %v1748_v1 = vpop.f32.mrf.mxu0 }
 0x225   :  { %v7773_v61 = vshrl.u32 %v16949_v11, 16  ;;  %v18734_v58 = vsel %vm3120_vm0, %v7759_v2, %v7763_v59  ;;  %v7767_v9 = vor.u32 %v7765_v53, %v7763_v59  ;;  %v7771_v54 = vrot.slane %v7769_v0, 1 }
 0x226   :  { %v18730_v47 = vadd.f32 %v2226_v30, %v22659_v15  ;;  %22660 = vst [vmem:[#allocation34_spill] sm:$0xff] %v18734_v58  ;;  %v7777_v6 = vshll.u32 %v16950_v39, 16  ;;  %v2229_v10 = vmax.f32 %v1757_v45, 0.0  ;;  %v1749_v5 = vadd.f32 %v18353_v60, %v1748_v1  ;;  %v15821_v33 = vpop.f32.mrf.mxu0  ;;  %v22671_v58 = vld [vmem:[#allocation12_spill] sm:$0xff] }
 0x227   :  { %v22661_v3 = vshrl.u32 %v18574_v14, 16  ;;  %v7781_v19 = vshrl.u32 %v16950_v39, 16  ;;  %v18741_v30 = vsel %vm3120_vm0, %v7767_v9, %v7771_v54  ;;  %v7775_v11 = vor.u32 %v7773_v61, %v7771_v54 }
 0x228   :  { %22662 = vst [vmem:[#allocation35_spill] sm:$0xff] %v18741_v30  ;;  %v7779_v28 = vrot.slane %v7777_v6, 1  ;;  %v7785_v29 = vshll.u32 %v16951_v16, 16  ;;  %v22663_v2 = vmax.f32 %v18568_v52, 0.0  ;;  %v2227_v59 = vmax.f32 %v1749_v5, 0.0  ;;  %v18751_v15 = vpop.f32.mrf.mxu0 }
 0x229   :  { %v5660_v49 = vor.u32 %v22661_v3, %v18653_v63  ;;  %v1760_v0 = vadd.f32 %v18353_v60, %v15821_v33  ;;  %v5657_v14 = vsel %vm3120_vm0, %v18645_v25, %v18653_v63  ;;  %v22664_v39 = vshll.u32 %v18588_v24, 16 }
 0x22a   :  { %v18745_v53 = vadd.f32 %v2229_v10, %v22663_v2  ;;  %v18756_v61 = vsel %vm3120_vm0, %v7775_v11, %v7779_v28  ;;  %v7783_v16 = vor.u32 %v7781_v19, %v7779_v28  ;;  %v18758_v1 = vrot.slane %v7785_v29, 1  ;;  %v15824_v25 = vpop.f32.mrf.mxu0  ;;  %16255 = vmatmul.mubr.bf16.gmra.mxu0 %v5657_v14 }
 0x22b   :  { %v5664_v45 = vrot.slane %v22664_v39, 1  ;;  %22665 = vst [vmem:[#allocation36_spill] sm:$0xff] %v18756_v61  ;;  %v2200_v52 = vmax.f32 %v1640_v62, 0.0  ;;  %v1653_v9 = vadd.f32 %v18353_v60, %v18449_v43  ;;  %v22667_v54 = vmax.f32 %v18525_v18, 0.0  ;;  %v18775_v62 = vld [vmem:[%s22599_s2] ss:$0 sm:$0xff] }
 0x22c   :  { %22666 = vst [vmem:[#allocation37_spill] sm:$0xff] %v18758_v1  ;;  %v2230_v63 = vmax.f32 %v1760_v0, 0.0  ;;  %v5666_v5 = vshrl.u32 %v18588_v24, 16  ;;  %v18770_v3 = vsel %vm3120_vm0, %v7783_v16, %v18758_v1  ;;  %v1645_v60 = vadd.f32 %v18775_v62, %v18424_v42 }
 0x22d   :  { %v18764_v6 = vadd.f32 %v2227_v59, %v22667_v54  ;;  %v5665_v10 = vsel %vm3120_vm0, %v5660_v49, %v5664_v45  ;;  %22668 = vst [vmem:[#allocation38_spill] sm:$0xff] %v18770_v3  ;;  %v1773_v18 = vadd.f32 %v18775_v62, %v15824_v25  ;;  %v1764_v49 = vpop.f32.mrf.mxu0  ;;  %v22669_v33 = vshll.u32 %v18447_v38, 16 }
 0x22e   :  { %v18779_v43 = vadd.f32 %v2230_v63, %v2200_v52  ;;  %16258 = vmatprep.mubr.bf16.mxu0 %v5665_v10  ;;  %v5668_v19 = vor.u32 %v5666_v5, %v5664_v45  ;;  %v2203_v28 = vmax.f32 %v1653_v9, 0.0  ;;  %v1656_v29 = vadd.f32 %v18775_v62, %v18479_v44 }
 0x22f   :  { %v18784_v11 = vrot.slane %v22669_v33, 1  ;;  %v2233_v2 = vmax.f32 %v1773_v18, 0.0  ;;  %v1765_v59 = vadd.f32 %v18775_v62, %v1764_v49  ;;  %v15825_v0 = vpop.f32.mrf.mxu0  ;;  %v2201_v42 = vmax.f32 %v1645_v60, 0.0 }
 0x230   :  { %v1776_v16 = vadd.f32 %v18775_v62, %v15825_v0  ;;  %v2204_v45 = vmax.f32 %v1656_v29, 0.0  ;;  %v1669_v9 = vadd.f32 %v18775_v62, %v18505_v27  ;;  %v1661_v25 = vadd.f32 %v18775_v62, %v18441_v13 }
 0x231   :  { %v18789_v14 = vadd.f32 %v2233_v2, %v2203_v28  ;;  %v2231_v39 = vmax.f32 %v1765_v59, 0.0  ;;  %v18792_v52 = vpop.f32.mrf.mxu0  ;;  %v5673_v38 = vsel %vm3120_vm0, %v5668_v19, %v18784_v11  ;;  %v1672_v49 = vadd.f32 %v18775_v62, %v18527_v50 }
 0x232   :  { %v2234_v54 = vmax.f32 %v1776_v16, 0.0  ;;  %16259 = vmatmul.mubr.bf16.gmra.mxu0 %v5673_v38  ;;  %v2207_v18 = vmax.f32 %v1669_v9, 0.0  ;;  %v2205_v28 = vmax.f32 %v1661_v25, 0.0  ;;  %v1677_v38 = vadd.f32 %v18775_v62, %v18492_v4 }
 0x233   :  { %v18798_v44 = vadd.f32 %v2231_v39, %v2201_v42  ;;  %v15828_v63 = vpop.f32.mrf.mxu0  ;;  %v2208_v0 = vmax.f32 %v1672_v49, 0.0  ;;  %v1685_v42 = vadd.f32 %v18775_v62, %v18551_v12  ;;  %v1688_v12 = vadd.f32 %v18775_v62, %v18576_v34 }
 0x234   :  { %v18802_v10 = vadd.f32 %v2234_v54, %v2204_v45  ;;  %v1789_v5 = vadd.f32 %v18775_v62, %v15828_v63  ;;  %v16847_v54 = vld [vmem:[%s22600_s3 + $0x38] sm:$0xff]   ;;  %v2209_v4 = vmax.f32 %v1677_v38, 0.0  ;;  %vm17456_vm2 = vmmov 0  }
 0x235   :  { %v1780_v60 = vpop.f32.mrf.mxu0  ;;  %v2211_v25 = vmax.f32 %v1685_v42, 0.0  ;;  %15978 = vmatprep.subr.bf16.mxu1 %v16847_v54  ;;  %v1693_v42 = vadd.f32 %v18775_v62, %v18541_v7 }
 0x236   :  { %v2237_v19 = vmax.f32 %v1789_v5, 0.0  ;;  %v1781_v27 = vadd.f32 %v18775_v62, %v1780_v60  ;;  %15979 = vmatpush3.bf16.msra.mxu1 %v16847_v54  ;;  %v1704_v54 = vadd.f32 %v18775_v62, %v18639_v17 }
 0x237   :  { %v15829_v33 = vpop.f32.mrf.mxu0 }
 0x238   :  { %v18808_v29 = vadd.f32 %v2237_v19, %v2207_v18  ;;  %v2235_v2 = vmax.f32 %v1781_v27, 0.0  ;;  %v1792_v59 = vadd.f32 %v18775_v62, %v15829_v33 }
 0x239   :  { %v18811_v13 = vpop.f32.mrf.mxu0 }
 0x23a   :  { %v18815_v39 = vadd.f32 %v2235_v2, %v2205_v28  ;;  %v2238_v16 = vmax.f32 %v1792_v59, 0.0  ;;  %v2212_v28 = vmax.f32 %v1688_v12, 0.0  ;;  %v1701_v2 = vadd.f32 %v18775_v62, %v18606_v37 }
 0x23b   :  { %v15832_v50 = vpop.f32.mrf.mxu0  ;;  %v2213_v12 = vmax.f32 %v1693_v42, 0.0  ;;  %v1784_v3 = vadd.f32 %v18775_v62, %v18811_v13 }
 0x23c   :  { %v18819_v45 = vadd.f32 %v2238_v16, %v2208_v0  ;;  %v1805_v9 = vadd.f32 %v18775_v62, %v15832_v50 }
 0x23d   :  { %v1796_v63 = vpop.f32.mrf.mxu0 }
 0x23e   :  { %v2241_v5 = vmax.f32 %v1805_v9, 0.0  ;;  %v1797_v60 = vadd.f32 %v18775_v62, %v1796_v63  ;;  %v2215_v9 = vmax.f32 %v1701_v2, 0.0 }
 0x23f   :  { %v15833_v18 = vpop.f32.mrf.mxu0 }
 0x240   :  { %v18828_v49 = vadd.f32 %v2241_v5, %v2211_v25  ;;  %v2239_v19 = vmax.f32 %v1797_v60, 0.0  ;;  %v1808_v27 = vadd.f32 %v18775_v62, %v15833_v18 }
 0x241   :  { %v18831_v33 = vpop.f32.mrf.mxu0 }
 0x242   :  { %v18835_v59 = vadd.f32 %v2239_v19, %v2209_v4  ;;  %v2242_v34 = vmax.f32 %v1808_v27, 0.0  ;;  %v2216_v4 = vmax.f32 %v1704_v54, 0.0  ;;  %v1800_v1 = vadd.f32 %v18775_v62, %v18831_v33  ;;  %v16889_v33 = vld [vmem:[%s22600_s3 + $0x180] sm:$0xff]  }
 0x243   :  { %v15836_v0 = vpop.f32.mrf.mxu0 }
 0x244   :  { %v18839_v16 = vadd.f32 %v2242_v34, %v2212_v28  ;;  %v1821_v50 = vadd.f32 %v18775_v62, %v15836_v0  ;;  %v16856_v34 = vld [vmem:[%s22600_s3 + $0x30] sm:$0xff]  }
 0x245   :  { %v1812_v38 = vpop.f32.mrf.mxu0  ;;  %15980 = vmatprep.subr.bf16.mxu1 %v16856_v34 }
 0x246   :  { %v2245_v63 = vmax.f32 %v1821_v50, 0.0  ;;  %v1813_v25 = vadd.f32 %v18775_v62, %v1812_v38  ;;  %15981 = vmatpush3.bf16.msra.mxu1 %v16856_v34 }
 0x247   :  { %v15837_v37 = vpop.f32.mrf.mxu0 }
 0x248   :  { %v18845_v5 = vadd.f32 %v2245_v63, %v2215_v9  ;;  %v2243_v60 = vmax.f32 %v1813_v25, 0.0  ;;  %v1824_v18 = vadd.f32 %v18775_v62, %v15837_v37  ;;  %v1736_v63 = vadd.f32 %v18775_v62, %v18710_v32 }
 0x249   :  { %v18848_v7 = vpop.f32.mrf.mxu0 }
 0x24a   :  { %v18850_v19 = vadd.f32 %v2243_v60, %v2213_v12  ;;  %v2246_v27 = vmax.f32 %v1824_v18, 0.0  ;;  %v1616_v12 = vadd.f32 %v18775_v62, %v18395_v48  ;;  %v1752_v48 = vadd.f32 %v18775_v62, %v18751_v15  ;;  %v16868_v15 = vld [vmem:[%s22600_s3 + $0x1b0] sm:$0xff]  }
 0x24b   :  { %v15840_v28 = vpop.f32.mrf.mxu0 }
 0x24c   :  { %v18852_v2 = vadd.f32 %v2246_v27, %v2216_v4  ;;  %v1837_v17 = vadd.f32 %v18775_v62, %v15840_v28 }
 0x24d   :  { %v18858_v0 = vpop.f32.mrf.mxu0 }
 0x24e   :  { %v2249_v42 = vmax.f32 %v1837_v17, 0.0  ;;  %v2194_v17 = vmax.f32 %v1616_v12, 0.0  ;;  %v16866_v12 = vld [vmem:[%s22600_s3 + $0x28] sm:$0xff]  }
 0x24f   :  { %v15841_v50 = vpop.f32.mrf.mxu0  ;;  %15982 = vmatprep.subr.bf16.mxu1 %v16866_v12 }
 0x250   :  { %v18861_v38 = vadd.f32 %v18681_v40, %v2249_v42  ;;  %v1840_v9 = vadd.f32 %v18775_v62, %v15841_v50  ;;  %v2224_v40 = vmax.f32 %v1736_v63, 0.0  ;;  %15983 = vmatpush3.bf16.msra.mxu1 %v16866_v12 }
 0x251   :  { %v18864_v54 = vpop.f32.mrf.mxu0 }
 0x252   :  { %v2250_v25 = vmax.f32 %v1840_v9, 0.0  ;;  %v2586_v50 = vadd.f32 %v2224_v40, %v2194_v17  ;;  %v16864_v9 = vld [vmem:[%s22600_s3 + $0x1b8] sm:$0xff]  }
 0x253   :  { %v15844_v37 = vpop.f32.mrf.mxu0  ;;  %16378 = vmatprep.subr.bf16.mxu0 %v16864_v9 }
 0x254   :  { %v18871_v60 = vadd.f32 %v18699_v46, %v2250_v25  ;;  %v1853_v18 = vadd.f32 %v18775_v62, %v15844_v37  ;;  %v1632_v25 = vadd.f32 %v18775_v62, %v18414_v56  ;;  %16379 = vmatpush3.bf16.msra.mxu0 %v16864_v9  ;;  %v2228_v56 = vmax.f32 %v1752_v48, 0.0 }
 0x255   :  { %v18874_v4 = vpop.f32.mrf.mxu0  ;;  %16380 = vmatprep.subr.bf16.mxu0 %v16868_v15  ;;  %v1768_v9 = vadd.f32 %v18775_v62, %v18792_v52 }
 0x256   :  { %v2253_v27 = vmax.f32 %v1853_v18, 0.0  ;;  %v16869_v18 = vld [vmem:[%s22600_s3 + $0x20] sm:$0xff]   ;;  %v2198_v17 = vmax.f32 %v1632_v25, 0.0 }
 0x257   :  { %v15845_v28 = vpop.f32.mrf.mxu0  ;;  %15984 = vmatprep.subr.bf16.mxu1 %v16869_v18 }
 0x258   :  { %v18877_v34 = vadd.f32 %v18717_v23, %v2253_v27  ;;  %v1856_v32 = vadd.f32 %v18775_v62, %v15845_v28  ;;  %16381 = vmatpush3.bf16.msra.mxu0 %v16868_v15  ;;  %15985 = vmatpush3.bf16.msra.mxu1 %v16869_v18  ;;  %v16874_v15 = vld [vmem:[%s22600_s3 + $0x18] sm:$0xff]   ;;  %v2232_v18 = vmax.f32 %v1768_v9, 0.0 }
 0x259   :  { %v18880_v42 = vpop.f32.mrf.mxu0  ;;  %15986 = vmatprep.subr.bf16.mxu1 %v16874_v15 }
 0x25a   :  { %v2254_v46 = vmax.f32 %v1856_v32, 0.0 }
 0x25b   :  { %v15848_v63 = vpop.f32.mrf.mxu0 }
 0x25c   :  { %v18889_v37 = vadd.f32 %v2586_v50, %v2254_v46  ;;  %v1869_v23 = vadd.f32 %v18775_v62, %v15848_v63  ;;  %v2590_v63 = vadd.f32 %v2228_v56, %v2198_v17  ;;  %v16877_v56 = vld [vmem:[%s22600_s3 + $0x1a0] sm:$0xff]   ;;  %15987 = vmatpush3.bf16.msra.mxu1 %v16874_v15 }
 0x25d   :  { %v18901_v40 = vpop.f32.mrf.mxu0 }
 0x25e   :  { %v2257_v27 = vmax.f32 %v1869_v23, 0.0  ;;  %v16872_v23 = vld [vmem:[%s22600_s3 + $0x1a8] sm:$0xff]  }
 0x25f   :  { %v15849_v28 = vpop.f32.mrf.mxu0  ;;  %16382 = vmatprep.subr.bf16.mxu0 %v16872_v23 }
 0x260   :  { %v18904_v32 = vadd.f32 %v18764_v6, %v2257_v27  ;;  %v1872_v50 = vadd.f32 %v18775_v62, %v15849_v28  ;;  %v1648_v6 = vadd.f32 %v18775_v62, %v18434_v26  ;;  %16383 = vmatpush3.bf16.msra.mxu0 %v16872_v23  ;;  %v16878_v26 = vld [vmem:[%s22600_s3 + $0x10] sm:$0xff]  }
 0x261   :  { %v18907_v46 = vpop.f32.mrf.mxu0  ;;  %16384 = vmatprep.subr.bf16.mxu0 %v16877_v56  ;;  %15988 = vmatprep.subr.bf16.mxu1 %v16878_v26 }
 0x262   :  { %v2258_v48 = vmax.f32 %v1872_v50, 0.0  ;;  %v2202_v50 = vmax.f32 %v1648_v6, 0.0  ;;  %15989 = vmatpush3.bf16.msra.mxu1 %v16878_v26  ;;  %v2236_v26 = vmax.f32 %v1784_v3, 0.0 }
 0x263   :  { %v15852_v12 = vpop.f32.mrf.mxu0 }
 0x264   :  { %v18916_v25 = vadd.f32 %v2590_v63, %v2258_v48  ;;  %v1885_v27 = vadd.f32 %v18775_v62, %v15852_v12  ;;  %16385 = vmatpush3.bf16.msra.mxu0 %v16877_v56  ;;  %v2594_v12 = vadd.f32 %v2232_v18, %v2202_v50  ;;  %v16882_v56 = vld [vmem:[%s22600_s3 + $0x8] sm:$0xff]   ;;  %v16883_v18 = vld [vmem:[%s22600_s3 + $0x190] sm:$0xff]  }
 0x265   :  { %v18922_v52 = vpop.f32.mrf.mxu0  ;;  %15990 = vmatprep.subr.bf16.mxu1 %v16882_v56 }
 0x266   :  { %v2261_v28 = vmax.f32 %v1885_v27, 0.0  ;;  %v16880_v27 = vld [vmem:[%s22600_s3 + $0x198] sm:$0xff]   ;;  %15991 = vmatpush3.bf16.msra.mxu1 %v16882_v56 }
 0x267   :  { %v15853_v17 = vpop.f32.mrf.mxu0  ;;  %16386 = vmatprep.subr.bf16.mxu0 %v16880_v27 }
 0x268   :  { %v18931_v63 = vadd.f32 %v18798_v44, %v2261_v28  ;;  %v1888_v48 = vadd.f32 %v18775_v62, %v15853_v17  ;;  %v1664_v44 = vadd.f32 %v18775_v62, %v18461_v55  ;;  %16387 = vmatpush3.bf16.msra.mxu0 %v16880_v27  ;;  %v16884_v55 = vld [vmem:[%s22600_s3] sm:$0xff]  }
 0x269   :  { %v18934_v23 = vpop.f32.mrf.mxu0  ;;  %16388 = vmatprep.subr.bf16.mxu0 %v16883_v18  ;;  %15992 = vmatprep.subr.bf16.mxu1 %v16884_v55 }
 0x26a   :  { %v2262_v9 = vmax.f32 %v1888_v48, 0.0  ;;  %v2206_v48 = vmax.f32 %v1664_v44, 0.0  ;;  %15993 = vmatpush3.bf16.msra.mxu1 %v16884_v55  ;;  %v22670_v44 = vld [vmem:[#allocation11_spill] sm:$0xff] }
 0x26b   :  { %v15856_v15 = vpop.f32.mrf.mxu0 }
 0x26c   :  { %v18943_v6 = vadd.f32 %v2594_v12, %v2262_v9  ;;  %v1901_v28 = vadd.f32 %v18775_v62, %v15856_v15  ;;  %16389 = vmatpush3.bf16.msra.mxu0 %v16883_v18  ;;  %v2598_v15 = vadd.f32 %v2236_v26, %v2206_v48  ;;  %v2240_v26 = vmax.f32 %v1800_v1, 0.0 }
 0x26d   :  { %v18949_v13 = vpop.f32.mrf.mxu0  ;;  %v1696_v1 = vadd.f32 %v18775_v62, %v22671_v58 }
 0x26e   :  { %v2265_v17 = vmax.f32 %v1901_v28, 0.0  ;;  %v16887_v28 = vld [vmem:[%s22600_s3 + $0x188] sm:$0xff]  }
 0x26f   :  { %v15857_v50 = vpop.f32.mrf.mxu0  ;;  %16390 = vmatprep.subr.bf16.mxu0 %v16887_v28  ;;  %v2214_v20 = vmax.f32 %v1696_v1, 0.0 }
 0x270   :  { %v18958_v12 = vadd.f32 %v18815_v39, %v2265_v17  ;;  %v1904_v9 = vadd.f32 %v18775_v62, %v15857_v50  ;;  %v1680_v39 = vadd.f32 %v18775_v62, %v22670_v44  ;;  %16391 = vmatpush3.bf16.msra.mxu0 %v16887_v28  ;;  %v1816_v28 = vadd.f32 %v18775_v62, %v18848_v7 }
 0x271   :  { %v18961_v27 = vpop.f32.mrf.mxu0  ;;  %16392 = vmatprep.subr.bf16.mxu0 %v16889_v33 }
 0x272   :  { %v2266_v3 = vmax.f32 %v1904_v9, 0.0  ;;  %v2210_v55 = vmax.f32 %v1680_v39, 0.0 }
 0x273   :  { %v15860_v56 = vpop.f32.mrf.mxu0 }
 0x274   :  { %v18970_v17 = vadd.f32 %v2598_v15, %v2266_v3  ;;  %v1917_v50 = vadd.f32 %v18775_v62, %v15860_v56  ;;  %16393 = vmatpush3.bf16.msra.mxu0 %v16889_v33  ;;  %v2602_v56 = vadd.f32 %v2240_v26, %v2210_v55  ;;  %v1829_v33 = vadd.f32 %v18775_v62, %v18858_v0 }
 0x275   :  { %v18973_v18 = vpop.f32.mrf.mxu0  ;;  %v1845_v0 = vadd.f32 %v18775_v62, %v18874_v4  ;;  %v1861_v4 = vadd.f32 %v18775_v62, %v18901_v40 }
 0x276   :  { %v2269_v48 = vmax.f32 %v1917_v50, 0.0 }
 0x277   :  { %v15861_v9 = vpop.f32.mrf.mxu0  ;;  %v2255_v24 = vmax.f32 %v1861_v4, 0.0 }
 0x278   :  { %v18979_v61 = vadd.f32 %v18835_v59, %v2269_v48  ;;  %v1920_v15 = vadd.f32 %v18775_v62, %v15861_v9  ;;  %v2244_v48 = vmax.f32 %v1816_v28, 0.0  ;;  %v2247_v28 = vmax.f32 %v1829_v33, 0.0 }
 0x279   :  { %v18982_v3 = vpop.f32.mrf.mxu0 }
 0x27a   :  { %v2270_v44 = vmax.f32 %v1920_v15, 0.0  ;;  %v2606_v58 = vadd.f32 %v2244_v48, %v2214_v20  ;;  %v3245_v20 = vshrl.u32 %v17367_v21, 16  ;;  %v22673_v48 = vld [vmem:[#allocation22_spill] sm:$0xff] }
 0x27b   :  { %v15864_v30 = vpop.f32.mrf.mxu0  ;;  %v2609_v36 = vadd.f32 %v22673_v48, %v2247_v28 }
 0x27c   :  { %v18988_v50 = vadd.f32 %v2602_v56, %v2270_v44  ;;  %v1933_v39 = vadd.f32 %v18775_v62, %v15864_v30  ;;  %v1832_v30 = vadd.f32 %v18775_v62, %v18864_v54  ;;  %v1848_v54 = vadd.f32 %v18775_v62, %v18880_v42 }
 0x27d   :  { %v18991_v59 = vpop.f32.mrf.mxu0  ;;  %v1880_v42 = vadd.f32 %v18775_v62, %v18934_v23 }
 0x27e   :  { %v2273_v9 = vmax.f32 %v1933_v39, 0.0  ;;  %v2248_v39 = vmax.f32 %v1832_v30, 0.0  ;;  %v1864_v30 = vadd.f32 %v18775_v62, %v18907_v46  ;;  %v2252_v31 = vmax.f32 %v1848_v54, 0.0 }
 0x27f   :  { %v15865_v22 = vpop.f32.mrf.mxu0  ;;  %v1896_v54 = vadd.f32 %v18775_v62, %v18961_v27 }
 0x280   :  { %v18996_v7 = vadd.f32 %v18850_v19, %v2273_v9  ;;  %v1936_v26 = vadd.f32 %v18775_v62, %v15865_v22 }
 0x281   :  { %v18999_v55 = vpop.f32.mrf.mxu0 }
 0x282   :  { %v2274_v15 = vmax.f32 %v1936_v26, 0.0  ;;  %v17368_v26 = vld [vmem:[#allocation2 + $0x78] sm:$0xff]  }
 0x283   :  { %v15868_v56 = vpop.f32.mrf.mxu0 }
 0x284   :  { %v19003_v44 = vadd.f32 %v2606_v58, %v2274_v15  ;;  %v1949_v1 = vadd.f32 %v18775_v62, %v15868_v56  ;;  %v5674_v58 = vshrl.u32 %v17368_v26, 16  ;;  %v2251_v15 = vmax.f32 %v1845_v0, 0.0  ;;  %v22675_v26 = vld [vmem:[#allocation9_spill] sm:$0xff] }
 0x285   :  { %v19008_v19 = vpop.f32.mrf.mxu0  ;;  %v1877_v56 = vadd.f32 %v18775_v62, %v18922_v52  ;;  %v19024_v0 = vor.u32 %v3245_v20, %v22675_v26  ;;  %v2260_v20 = vmax.f32 %v1880_v42, 0.0 }
 0x286   :  { %22672 = vst [vmem:[#allocation11_spill] sm:$0xff] %v19003_v44  ;;  %v2277_v22 = vmax.f32 %v1949_v1, 0.0  ;;  %v22674_v1 = vld [vmem:[#allocation25_spill] sm:$0xff]  ;;  %v19028_v46 = vor.u32 %v5674_v58, %v18784_v11  ;;  %v2613_v52 = vadd.f32 %v18670_v57, %v2251_v15  ;;  %v1909_v11 = vadd.f32 %v18775_v62, %v18973_v18 }
 0x287   :  { %v15869_v9 = vpop.f32.mrf.mxu0  ;;  %v2610_v28 = vadd.f32 %v22674_v1, %v2248_v39  ;;  %v2256_v39 = vmax.f32 %v1864_v30, 0.0  ;;  %v2614_v58 = vadd.f32 %v18690_v41, %v2252_v31 }
 0x288   :  { %v1952_v33 = vadd.f32 %v18775_v62, %v15869_v9  ;;  %v2639_v48 = vadd.f32 %v2609_v36, %v2277_v22  ;;  %v2259_v36 = vmax.f32 %v1877_v56, 0.0  ;;  %v1912_v56 = vadd.f32 %v18775_v62, %v18982_v3 }
 0x289   :  { %v1943_v21 = vpop.f32.mrf.mxu0  ;;  %v2267_v3 = vmax.f32 %v1909_v11, 0.0 }
 0x28a   :  { %v2278_v51 = vmax.f32 %v1952_v33, 0.0  ;;  %v2669_v33 = vmul.f32 0.25, %v2639_v48  ;;  %v2618_v48 = vadd.f32 %v18730_v47, %v2256_v39  ;;  %v19047_v18 = vadd.f32 %v18745_v53, %v2259_v36 }
 0x28b   :  { %v15872_v9 = vpop.f32.mrf.mxu0 }
 0x28c   :  { %v2640_v40 = vadd.f32 %v2610_v28, %v2278_v51  ;;  %v1965_v35 = vadd.f32 %v18775_v62, %v15872_v9  ;;  %v1893_v51 = vadd.f32 %v18775_v62, %v18949_v13  ;;  %v1925_v13 = vadd.f32 %v18775_v62, %v18991_v59 }
 0x28d   :  { %v1956_v22 = vpop.f32.mrf.mxu0 }
 0x28e   :  { %v2670_v1 = vmul.f32 0.25, %v2640_v40  ;;  %v2281_v23 = vmax.f32 %v1965_v35, 0.0  ;;  %v1957_v44 = vadd.f32 %v18775_v62, %v1956_v22  ;;  %v2617_v35 = vadd.f32 %v18707_v8, %v2255_v24 }
 0x28f   :  { %v15873_v57 = vpop.f32.mrf.mxu0  ;;  %v2263_v24 = vmax.f32 %v1893_v51, 0.0  ;;  %v2264_v8 = vmax.f32 %v1896_v54, 0.0  ;;  %v2268_v40 = vmax.f32 %v1912_v56, 0.0  ;;  %v2271_v53 = vmax.f32 %v1925_v13, 0.0 }
 0x290   :  { %v14524_v15 = vpack.c.bf16 %v2670_v1, %v2669_v33  ;;  %v2279_v4 = vmax.f32 %v1957_v44, 0.0  ;;  %v1968_v30 = vadd.f32 %v18775_v62, %v15873_v57  ;;  %v2643_v28 = vadd.f32 %v2613_v52, %v2281_v23 }
 0x291   :  { %v1959_v27 = vpop.f32.mrf.mxu0  ;;  %v19051_v44 = vadd.f32 %v18779_v43, %v2260_v20  ;;  %v1928_v52 = vadd.f32 %v18775_v62, %v18999_v55  ;;  %v19060_v23 = vadd.f32 %v18789_v14, %v2263_v24  ;;  %v1941_v20 = vadd.f32 %v18775_v62, %v19008_v19 }
 0x292   :  { %14630 = vst [vmem:[#allocation2 + $0x80] sm:$0xff] %v14524_v15   ;;  %v2282_v31 = vmax.f32 %v1968_v30, 0.0  ;;  %v1960_v41 = vadd.f32 %v18775_v62, %v1959_v27  ;;  %v2641_v59 = vadd.f32 %v18861_v38, %v2279_v4  ;;  %v2673_v39 = vmul.f32 0.25, %v2643_v28 }
 0x293   :  { %v15876_v42 = vpop.f32.mrf.mxu0  ;;  %v19063_v38 = vadd.f32 %v18802_v10, %v2264_v8  ;;  %v1944_v51 = vadd.f32 %v18775_v62, %v1943_v21  ;;  %v2272_v15 = vmax.f32 %v1928_v52, 0.0  ;;  %v19073_v56 = vadd.f32 %v18819_v45, %v2268_v40 }
 0x294   :  { %v2644_v9 = vadd.f32 %v2614_v58, %v2282_v31  ;;  %v2280_v26 = vmax.f32 %v1960_v41, 0.0  ;;  %v1981_v47 = vadd.f32 %v18775_v62, %v15876_v42  ;;  %v2671_v54 = vmul.f32 0.25, %v2641_v59 }
 0x295   :  { %v1972_v36 = vpop.f32.mrf.mxu0  ;;  %v19076_v19 = vadd.f32 %v18828_v49, %v2271_v53  ;;  %v2275_v27 = vmax.f32 %v1941_v20, 0.0  ;;  %v2276_v24 = vmax.f32 %v1944_v51, 0.0  ;;  %v19082_v49 = vadd.f32 %v18839_v16, %v2272_v15 }
 0x296   :  { %v2674_v22 = vmul.f32 0.25, %v2644_v9  ;;  %v2642_v43 = vadd.f32 %v18871_v60, %v2280_v26  ;;  %v2285_v33 = vmax.f32 %v1981_v47, 0.0  ;;  %v1973_v1 = vadd.f32 %v18775_v62, %v1972_v36 }
 0x297   :  { %v15877_v55 = vpop.f32.mrf.mxu0  ;;  %v19069_v60 = vadd.f32 %v18808_v29, %v2267_v3  ;;  %v19099_v15 = vadd.f32 %v18852_v2, %v2276_v24 }
 0x298   :  { %v14534_v11 = vpack.c.bf16 %v2674_v22, %v2673_v39  ;;  %v2672_v57 = vmul.f32 0.25, %v2642_v43  ;;  %v2283_v58 = vmax.f32 %v1973_v1, 0.0  ;;  %v2647_v4 = vadd.f32 %v2617_v35, %v2285_v33 }
 0x299   :  { %v1984_v14 = vadd.f32 %v18775_v62, %v15877_v55  ;;  %v1975_v30 = vpop.f32.mrf.mxu0  ;;  %v16838_v10 = vld [vmem:[#allocation2 + $0x80] sm:$0xff]  }
 0x29a   :  { %14632 = vst [vmem:[#allocation2 + $0x90] sm:$0xff] %v14534_v11   ;;  %v14529_v21 = vpack.c.bf16 %v2672_v57, %v2671_v54  ;;  %v1976_v13 = vadd.f32 %v18775_v62, %v1975_v30  ;;  %v16839_v28 = vld [vmem:[#allocation2 + $0x80] sm:$0xff]   ;;  %v2645_v29 = vadd.f32 %v18877_v34, %v2283_v58  ;;  %v3249_v41 = vshll.u32 %v16838_v10, 16 }
 0x29b   :  { %v2286_v31 = vmax.f32 %v1984_v14, 0.0  ;;  %v15880_v35 = vpop.f32.mrf.mxu0  ;;  %v5678_v3 = vshll.u32 %v16839_v28, 16  ;;  %v2677_v42 = vmul.f32 0.25, %v2647_v4  ;;  %v3253_v43 = vshrl.u32 %v16838_v10, 16 }
 0x29c   :  { %14631 = vst [vmem:[#allocation2 + $0x88] sm:$0xff] %v14529_v21   ;;  %v2284_v8 = vmax.f32 %v1976_v13, 0.0  ;;  %v1997_v45 = vadd.f32 %v18775_v62, %v15880_v35  ;;  %v3251_v26 = vrot.slane %v3249_v41, 1  ;;  %v2675_v52 = vmul.f32 0.25, %v2645_v29 }
 0x29d   :  { %v2648_v59 = vadd.f32 %v2618_v48, %v2286_v31  ;;  %v1988_v9 = vpop.f32.mrf.mxu0  ;;  %v5680_v53 = vrot.slane %v5678_v3, 1  ;;  %v5682_v54 = vshrl.u32 %v16839_v28, 16 }
 0x29e   :  { %v2646_v47 = vadd.f32 %v18889_v37, %v2284_v8  ;;  %v2289_v40 = vmax.f32 %v1997_v45, 0.0  ;;  %v1989_v34 = vadd.f32 %v18775_v62, %v1988_v9  ;;  %v3252_v22 = vsel %vm3120_vm0, %v19024_v0, %v3251_v26 }
 0x29f   :  { %v2678_v39 = vmul.f32 0.25, %v2648_v59  ;;  %v15881_v36 = vpop.f32.mrf.mxu0  ;;  %15943 = vmatmul.mubr.bf16.gmra.mxu1 %v3252_v22  ;;  %v19091_v37 = vadd.f32 %v18845_v5, %v2275_v27  ;;  %v5681_v55 = vsel %vm3120_vm0, %v19028_v46, %v5680_v53  ;;  %v3255_v30 = vor.u32 %v3253_v43, %v3251_v26 }
 0x2a0   :  { %v2676_v33 = vmul.f32 0.25, %v2646_v47  ;;  %v2651_v16 = vadd.f32 %v19047_v18, %v2289_v40  ;;  %v2287_v1 = vmax.f32 %v1989_v34, 0.0  ;;  %v2000_v48 = vadd.f32 %v18775_v62, %v15881_v36  ;;  %16262 = vmatprep.mubr.bf16.mxu0 %v5681_v55 }
 0x2a1   :  { %v14544_v20 = vpack.c.bf16 %v2678_v39, %v2677_v42  ;;  %v1991_v51 = vpop.f32.mrf.mxu0  ;;  %v19095_v11 = vld [vmem:[#allocation2 + $0x90] sm:$0xff]   ;;  %v5684_v28 = vor.u32 %v5682_v54, %v5680_v53 }
 0x2a2   :  { %v14539_v0 = vpack.c.bf16 %v2676_v33, %v2675_v52  ;;  %v2681_v57 = vmul.f32 0.25, %v2651_v16  ;;  %v2649_v58 = vadd.f32 %v18904_v32, %v2287_v1  ;;  %v2290_v18 = vmax.f32 %v2000_v48, 0.0  ;;  %v16843_v41 = vld [vmem:[#allocation2 + $0x90] sm:$0xff]  }
 0x2a3   :  { %14634 = vst [vmem:[#allocation2 + $0xa0] sm:$0xff] %v14544_v20   ;;  %v1992_v5 = vadd.f32 %v18775_v62, %v1991_v51  ;;  %v15884_v4 = vpop.f32.mrf.mxu0  ;;  %v16840_v14 = vld [vmem:[#allocation2 + $0x88] sm:$0xff]   ;;  %v3265_v46 = vshll.u32 %v19095_v11, 16  ;;  %v5694_v26 = vshll.u32 %v16843_v41, 16 }
 0x2a4   :  { %14633 = vst [vmem:[#allocation2 + $0x98] sm:$0xff] %v14539_v0   ;;  %v2679_v10 = vmul.f32 0.25, %v2649_v58  ;;  %v2652_v21 = vadd.f32 %v19051_v44, %v2290_v18  ;;  %v2013_v13 = vadd.f32 %v18775_v62, %v15884_v4  ;;  %v16841_v32 = vld [vmem:[#allocation2 + $0x88] sm:$0xff]   ;;  %v3257_v2 = vshll.u32 %v16840_v14, 16 }
 0x2a5   :  { %v2288_v27 = vmax.f32 %v1992_v5, 0.0  ;;  %v2004_v29 = vpop.f32.mrf.mxu0  ;;  %v3261_v31 = vshrl.u32 %v16840_v14, 16  ;;  %v3267_v35 = vrot.slane %v3265_v46, 1  ;;  %v5686_v3 = vshll.u32 %v16841_v32, 16 }
 0x2a6   :  { %v2682_v24 = vmul.f32 0.25, %v2652_v21  ;;  %v2293_v8 = vmax.f32 %v2013_v13, 0.0  ;;  %v2005_v45 = vadd.f32 %v18775_v62, %v2004_v29  ;;  %v3259_v9 = vrot.slane %v3257_v2, 1 }
 0x2a7   :  { %v2650_v42 = vadd.f32 %v18916_v25, %v2288_v27  ;;  %v15885_v59 = vpop.f32.mrf.mxu0  ;;  %v5690_v44 = vshrl.u32 %v16841_v32, 16  ;;  %v5688_v22 = vrot.slane %v5686_v3, 1  ;;  %v5696_v5 = vrot.slane %v5694_v26, 1 }
 0x2a8   :  { %v14554_v47 = vpack.c.bf16 %v2682_v24, %v2681_v57  ;;  %v2655_v40 = vadd.f32 %v19060_v23, %v2293_v8  ;;  %v2291_v34 = vmax.f32 %v2005_v45, 0.0  ;;  %v2016_v53 = vadd.f32 %v18775_v62, %v15885_v59 }
 0x2a9   :  { %v2680_v52 = vmul.f32 0.25, %v2650_v42  ;;  %v2007_v39 = vpop.f32.mrf.mxu0  ;;  %v3260_v36 = vsel %vm3120_vm0, %v3255_v30, %v3259_v9  ;;  %v3263_v43 = vor.u32 %v3261_v31, %v3259_v9  ;;  %v5689_v23 = vsel %vm3120_vm0, %v5684_v28, %v5688_v22 }
 0x2aa   :  { %14636 = vst [vmem:[#allocation2 + $0xb0] sm:$0xff] %v14554_v47   ;;  %v2685_v33 = vmul.f32 0.25, %v2655_v40  ;;  %v2653_v25 = vadd.f32 %v18931_v63, %v2291_v34  ;;  %v2294_v16 = vmax.f32 %v2016_v53, 0.0  ;;  %v2008_v1 = vadd.f32 %v18775_v62, %v2007_v39  ;;  %15946 = vmatprep.mubr.bf16.mxu1 %v3260_v36  ;;  %16263 = vmatmul.mubr.bf16.gmra.mxu0 %v5689_v23  ;;  %v16846_v31 = vld [vmem:[#allocation2 + $0xa0] sm:$0xff]  }
 0x2ab   :  { %v14549_v48 = vpack.c.bf16 %v2680_v52, %v2679_v10  ;;  %v15888_v20 = vpop.f32.mrf.mxu0  ;;  %v3268_v51 = vsel %vm3120_vm0, %v3263_v43, %v3267_v35  ;;  %v5692_v55 = vor.u32 %v5690_v44, %v5688_v22  ;;  %v16844_v54 = vld [vmem:[#allocation2 + $0x98] sm:$0xff]   ;;  %v3269_v4 = vshrl.u32 %v19095_v11, 16 }
 0x2ac   :  { %v2683_v0 = vmul.f32 0.25, %v2653_v25  ;;  %v2656_v57 = vadd.f32 %v19063_v38, %v2294_v16  ;;  %v2292_v58 = vmax.f32 %v2008_v1, 0.0  ;;  %v2029_v18 = vadd.f32 %v18775_v62, %v15888_v20  ;;  %15947 = vmatmul.mubr.bf16.gmra.mxu1 %v3268_v51  ;;  %v19117_v30 = vld [vmem:[#allocation2 + $0x98] sm:$0xff]   ;;  %v19139_v51 = vld [vmem:[%s22599_s2] ss:$0 sm:$0xff] }
 0x2ad   :  { %14635 = vst [vmem:[#allocation2 + $0xa8] sm:$0xff] %v14549_v48   ;;  %v2020_v63 = vpop.f32.mrf.mxu0  ;;  %v3273_v14 = vshll.u32 %v16844_v54, 16  ;;  %22676 = vst [vmem:[#allocation12_spill] sm:$0xff] %v19117_v30  ;;  %v5698_v46 = vshrl.u32 %v16843_v41, 16  ;;  %v5697_v32 = vsel %vm3120_vm0, %v5692_v55, %v5696_v5  ;;  %v3271_v27 = vor.u32 %v3269_v4, %v3267_v35  ;;  %v19123_v41 = vld [vmem:[#allocation2 + $0xa0] sm:$0xff]  }
 0x2ae   :  { %v2686_v10 = vmul.f32 0.25, %v2656_v57  ;;  %v2654_v21 = vadd.f32 %v18943_v6, %v2292_v58  ;;  %v2297_v13 = vmax.f32 %v2029_v18, 0.0  ;;  %v2021_v38 = vadd.f32 %v18775_v62, %v2020_v63  ;;  %16266 = vmatprep.mubr.bf16.mxu0 %v5697_v32 }
 0x2af   :  { %v15889_v28 = vpop.f32.mrf.mxu0  ;;  %v3275_v29 = vrot.slane %v3273_v14, 1  ;;  %v5700_v2 = vor.u32 %v5698_v46, %v5696_v5  ;;  %v5702_v59 = vshll.u32 %v19117_v30, 16  ;;  %v3277_v9 = vshrl.u32 %v16844_v54, 16 }
 0x2b0   :  { %v14564_v24 = vpack.c.bf16 %v2686_v10, %v2685_v33  ;;  %v2684_v8 = vmul.f32 0.25, %v2654_v21  ;;  %v2659_v11 = vadd.f32 %v19069_v60, %v2297_v13  ;;  %v2295_v45 = vmax.f32 %v2021_v38, 0.0 }
 0x2b1   :  { %v2032_v6 = vadd.f32 %v18775_v62, %v15889_v28  ;;  %v2023_v3 = vpop.f32.mrf.mxu0  ;;  %v3276_v42 = vsel %vm3120_vm0, %v3271_v27, %v3275_v29  ;;  %v5704_v34 = vrot.slane %v5702_v59, 1  ;;  %v3279_v53 = vor.u32 %v3277_v9, %v3275_v29  ;;  %v19148_v38 = vld [vmem:[#allocation2 + $0xb0] sm:$0xff]  }
 0x2b2   :  { %14638 = vst [vmem:[#allocation2 + $0xc0] sm:$0xff] %v14564_v24   ;;  %v14559_v35 = vpack.c.bf16 %v2684_v8, %v2683_v0  ;;  %v2689_v44 = vmul.f32 0.25, %v2659_v11  ;;  %v2657_v26 = vadd.f32 %v18958_v12, %v2295_v45  ;;  %v2024_v47 = vadd.f32 %v18775_v62, %v2023_v3  ;;  %15950 = vmatprep.mubr.bf16.mxu1 %v3276_v42  ;;  %v19154_v11 = vld [vmem:[#allocation2 + $0xb0] sm:$0xff]  }
 0x2b3   :  { %v2298_v60 = vmax.f32 %v2032_v6, 0.0  ;;  %v15892_v40 = vpop.f32.mrf.mxu0  ;;  %v3281_v52 = vshll.u32 %v16846_v31, 16  ;;  %v5706_v43 = vshrl.u32 %v19117_v30, 16  ;;  %v5705_v12 = vsel %vm3120_vm0, %v5700_v2, %v5704_v34 }
 0x2b4   :  { %14637 = vst [vmem:[#allocation2 + $0xb8] sm:$0xff] %v14559_v35   ;;  %v2687_v39 = vmul.f32 0.25, %v2657_v26  ;;  %v2296_v36 = vmax.f32 %v2024_v47, 0.0  ;;  %v2045_v22 = vadd.f32 %v18775_v62, %v15892_v40  ;;  %v16849_v33 = vld [vmem:[#allocation2 + $0xa8] sm:$0xff]   ;;  %v5710_v48 = vshll.u32 %v19123_v41, 16  ;;  %16267 = vmatmul.mubr.bf16.gmra.mxu0 %v5705_v12 }
 0x2b5   :  { %v2660_v25 = vadd.f32 %v19073_v56, %v2298_v60  ;;  %v2036_v16 = vpop.f32.mrf.mxu0  ;;  %v3283_v1 = vrot.slane %v3281_v52, 1  ;;  %v5708_v55 = vor.u32 %v5706_v43, %v5704_v34  ;;  %v3285_v58 = vshrl.u32 %v16846_v31, 16  ;;  %v19143_v18 = vld [vmem:[#allocation2 + $0xa8] sm:$0xff]   ;;  %v19163_v34 = vld [vmem:[%s22600_s3 + $0xb8] sm:$0xff]  }
 0x2b6   :  { %v2658_v20 = vadd.f32 %v18970_v17, %v2296_v36  ;;  %v2301_v23 = vmax.f32 %v2045_v22, 0.0  ;;  %v2037_v62 = vadd.f32 %v19139_v51, %v2036_v16  ;;  %v5712_v0 = vrot.slane %v5710_v48, 1  ;;  %16058 = vmatprep.subr.bf16.mxu1 %v19163_v34 }
 0x2b7   :  { %v2690_v54 = vmul.f32 0.25, %v2660_v25  ;;  %v3284_v56 = vsel %vm3120_vm0, %v3279_v53, %v3283_v1  ;;  %v15893_v57 = vpop.f32.mrf.mxu0  ;;  %v3287_v21 = vor.u32 %v3285_v58, %v3283_v1  ;;  %v3289_v13 = vshll.u32 %v16849_v33, 16 }
 0x2b8   :  { %v2688_v63 = vmul.f32 0.25, %v2658_v20  ;;  %v2663_v17 = vadd.f32 %v19076_v19, %v2301_v23  ;;  %v2299_v5 = vmax.f32 %v2037_v62, 0.0  ;;  %15951 = vmatmul.mubr.bf16.gmra.mxu1 %v3284_v56  ;;  %v2048_v4 = vadd.f32 %v19139_v51, %v15893_v57 }
 0x2b9   :  { %v14574_v14 = vpack.c.bf16 %v2690_v54, %v2689_v44  ;;  %v5713_v46 = vsel %vm3120_vm0, %v5708_v55, %v5712_v0  ;;  %v2039_v10 = vpop.f32.mrf.mxu0  ;;  %v3291_v31 = vrot.slane %v3289_v13, 1  ;;  %v5714_v24 = vshrl.u32 %v19123_v41, 16  ;;  %v19173_v1 = vld [vmem:[#allocation2 + $0xc0] sm:$0xff]  }
 0x2ba   :  { %v14569_v32 = vpack.c.bf16 %v2688_v63, %v2687_v39  ;;  %v2693_v28 = vmul.f32 0.25, %v2663_v17  ;;  %v2661_v27 = vadd.f32 %v18979_v61, %v2299_v5  ;;  %16270 = vmatprep.mubr.bf16.mxu0 %v5713_v46  ;;  %v2302_v29 = vmax.f32 %v2048_v4, 0.0 }
 0x2bb   :  { %14640 = vst [vmem:[#allocation2 + $0xd0] sm:$0xff] %v14574_v14   ;;  %v2040_v19 = vadd.f32 %v19139_v51, %v2039_v10  ;;  %v15896_v2 = vpop.f32.mrf.mxu0  ;;  %v5718_v8 = vshll.u32 %v19143_v18, 16  ;;  %v3293_v61 = vshrl.u32 %v16849_v33, 16  ;;  %v3292_v59 = vsel %vm3120_vm0, %v3287_v21, %v3291_v31  ;;  %v16853_v22 = vld [vmem:[#allocation2 + $0xb8] sm:$0xff]   ;;  %v19185_v21 = vld [vmem:[#allocation2 + $0xc0] sm:$0xff]  }
 0x2bc   :  { %14639 = vst [vmem:[#allocation2 + $0xc8] sm:$0xff] %v14569_v32   ;;  %v2691_v45 = vmul.f32 0.25, %v2661_v27  ;;  %v2664_v6 = vadd.f32 %v19082_v49, %v2302_v29  ;;  %v2061_v3 = vadd.f32 %v19139_v51, %v15896_v2  ;;  %v5716_v9 = vor.u32 %v5714_v24, %v5712_v0  ;;  %15954 = vmatprep.mubr.bf16.mxu1 %v3292_v59  ;;  %v19169_v43 = vld [vmem:[#allocation2 + $0xb8] sm:$0xff]  }
 0x2bd   :  { %v2300_v42 = vmax.f32 %v2040_v19, 0.0  ;;  %v5720_v35 = vrot.slane %v5718_v8, 1  ;;  %v2052_v44 = vpop.f32.mrf.mxu0  ;;  %v3295_v40 = vor.u32 %v3293_v61, %v3291_v31  ;;  %v3297_v52 = vshll.u32 %v19148_v38, 16 }
 0x2be   :  { %v2694_v26 = vmul.f32 0.25, %v2664_v6  ;;  %v2305_v47 = vmax.f32 %v2061_v3, 0.0  ;;  %v2053_v60 = vadd.f32 %v19139_v51, %v2052_v44  ;;  %v5722_v39 = vshrl.u32 %v19143_v18, 16 }
 0x2bf   :  { %v2662_v49 = vadd.f32 %v18988_v50, %v2300_v42  ;;  %v5721_v53 = vsel %vm3120_vm0, %v5716_v9, %v5720_v35  ;;  %v15897_v36 = vpop.f32.mrf.mxu0  ;;  %v5726_v16 = vshll.u32 %v19154_v11, 16  ;;  %v3299_v48 = vrot.slane %v3297_v52, 1 }
 0x2c0   :  { %v14584_v33 = vpack.c.bf16 %v2694_v26, %v2693_v28  ;;  %v2667_v25 = vadd.f32 %v19091_v37, %v2305_v47  ;;  %16271 = vmatmul.mubr.bf16.gmra.mxu0 %v5721_v53  ;;  %v2303_v12 = vmax.f32 %v2053_v60, 0.0  ;;  %v5724_v20 = vor.u32 %v5722_v39, %v5720_v35 }
 0x2c1   :  { %v2692_v50 = vmul.f32 0.25, %v2662_v49  ;;  %v2064_v23 = vadd.f32 %v19139_v51, %v15897_v36  ;;  %v2055_v62 = vpop.f32.mrf.mxu0  ;;  %v5728_v56 = vrot.slane %v5726_v16, 1  ;;  %v3300_v57 = vsel %vm3120_vm0, %v3295_v40, %v3299_v48 }
 0x2c2   :  { %14642 = vst [vmem:[#allocation2 + $0xe0] sm:$0xff] %v14584_v33   ;;  %v2697_v55 = vmul.f32 0.25, %v2667_v25  ;;  %v2665_v54 = vadd.f32 %v18996_v7, %v2303_v12  ;;  %v2056_v37 = vadd.f32 %v19139_v51, %v2055_v62  ;;  %v3301_v63 = vshrl.u32 %v19148_v38, 16  ;;  %15955 = vmatmul.mubr.bf16.gmra.mxu1 %v3300_v57  ;;  %v22677_v38 = vld [vmem:[#allocation11_spill] sm:$0xff]  ;;  %v19194_v8 = vld [vmem:[#allocation2 + $0xd0] sm:$0xff]  }
 0x2c3   :  { %v14579_v0 = vpack.c.bf16 %v2692_v50, %v2691_v45  ;;  %v2306_v58 = vmax.f32 %v2064_v23, 0.0  ;;  %v5729_v5 = vsel %vm3120_vm0, %v5724_v20, %v5728_v56  ;;  %v3305_v14 = vshll.u32 %v16853_v22, 16  ;;  %v19187_v13 = vld [vmem:[#allocation2 + $0xc8] sm:$0xff]   ;;  %v19199_v44 = vld [vmem:[#allocation2 + $0xd0] sm:$0xff]  }
 0x2c4   :  { %v2695_v17 = vmul.f32 0.25, %v2665_v54  ;;  %v2304_v4 = vmax.f32 %v2056_v37, 0.0  ;;  %16274 = vmatprep.mubr.bf16.mxu0 %v5729_v5  ;;  %v3303_v7 = vor.u32 %v3301_v63, %v3299_v48  ;;  %v5730_v10 = vshrl.u32 %v19154_v11, 16  ;;  %v19191_v19 = vld [vmem:[#allocation2 + $0xc8] sm:$0xff]  }
 0x2c5   :  { %14641 = vst [vmem:[#allocation2 + $0xd8] sm:$0xff] %v14579_v0   ;;  %v2668_v46 = vadd.f32 %v19099_v15, %v2306_v58  ;;  %v5734_v51 = vshll.u32 %v19169_v43, 16  ;;  %v3307_v28 = vrot.slane %v3305_v14, 1  ;;  %v3309_v27 = vshrl.u32 %v16853_v22, 16 }
 0x2c6   :  { %v2666_v32 = vadd.f32 %v22677_v38, %v2304_v4  ;;  %v3313_v29 = vshll.u32 %v19173_v1, 16  ;;  %v5732_v31 = vor.u32 %v5730_v10, %v5728_v56  ;;  %v5738_v24 = vshrl.u32 %v19169_v43, 16 }
 0x2c7   :  { %v2698_v2 = vmul.f32 0.25, %v2668_v46  ;;  %v5736_v15 = vrot.slane %v5734_v51, 1  ;;  %v3308_v6 = vsel %vm3120_vm0, %v3303_v7, %v3307_v28  ;;  %v3311_v3 = vor.u32 %v3309_v27, %v3307_v28 }
 0x2c8   :  { %v2696_v45 = vmul.f32 0.25, %v2666_v32  ;;  %v3315_v61 = vrot.slane %v3313_v29, 1  ;;  %15958 = vmatprep.mubr.bf16.mxu1 %v3308_v6  ;;  %v5742_v35 = vshll.u32 %v19185_v21, 16  ;;  %v3317_v60 = vshrl.u32 %v19173_v1, 16 }
 0x2c9   :  { %v14594_v42 = vpack.c.bf16 %v2698_v2, %v2697_v55  ;;  %v5737_v59 = vsel %vm3120_vm0, %v5732_v31, %v5736_v15  ;;  %v5740_v9 = vor.u32 %v5738_v24, %v5736_v15  ;;  %v3321_v40 = vshll.u32 %v19187_v13, 16  ;;  %v19207_v36 = vld [vmem:[#allocation2 + $0xe0] sm:$0xff]  }
 0x2ca   :  { %v14589_v26 = vpack.c.bf16 %v2696_v45, %v2695_v17  ;;  %16275 = vmatmul.mubr.bf16.gmra.mxu0 %v5737_v59  ;;  %v3316_v47 = vsel %vm3120_vm0, %v3311_v3, %v3315_v61  ;;  %v5744_v49 = vrot.slane %v5742_v35, 1  ;;  %v5746_v53 = vshrl.u32 %v19185_v21, 16  ;;  %v19219_v37 = vld [vmem:[#allocation2 + $0xe0] sm:$0xff]  }
 0x2cb   :  { %14644 = vst [vmem:[#allocation2 + $0xf0] sm:$0xff] %v14594_v42   ;;  %v5750_v52 = vshll.u32 %v19191_v19, 16  ;;  %v3325_v39 = vshrl.u32 %v19187_v13, 16  ;;  %15959 = vmatmul.mubr.bf16.gmra.mxu1 %v3316_v47  ;;  %v3319_v22 = vor.u32 %v3317_v60, %v3315_v61  ;;  %v3323_v33 = vrot.slane %v3321_v40, 1  ;;  %v19244_v47 = vld [vmem:[#allocation2 + $0xf8] sm:$0xff]  }
 0x2cc   :  { %14643 = vst [vmem:[#allocation2 + $0xe8] sm:$0xff] %v14589_v26   ;;  %v3329_v25 = vshll.u32 %v19194_v8, 16  ;;  %v5754_v12 = vshrl.u32 %v19191_v19, 16  ;;  %v19211_v16 = vld [vmem:[#allocation2 + $0xd8] sm:$0xff]   ;;  %v5745_v1 = vsel %vm3120_vm0, %v5740_v9, %v5744_v49  ;;  %v5748_v50 = vor.u32 %v5746_v53, %v5744_v49 }
 0x2cd   :  { %v5752_v48 = vrot.slane %v5750_v52, 1  ;;  %v5758_v20 = vshll.u32 %v19199_v44, 16  ;;  %16278 = vmatprep.mubr.bf16.mxu0 %v5745_v1  ;;  %v3324_v23 = vsel %vm3120_vm0, %v3319_v22, %v3323_v33  ;;  %v3327_v62 = vor.u32 %v3325_v39, %v3323_v33  ;;  %v19217_v56 = vld [vmem:[#allocation2 + $0xd8] sm:$0xff]  }
 0x2ce   :  { %v3331_v55 = vrot.slane %v3329_v25, 1  ;;  %v3333_v54 = vshrl.u32 %v19194_v8, 16  ;;  %15962 = vmatprep.mubr.bf16.mxu1 %v3324_v23  ;;  %v3337_v63 = vshll.u32 %v19211_v16, 16  ;;  %v5766_v5 = vshll.u32 %v19217_v56, 16  ;;  %v16879_v53 = vld [vmem:[#allocation2 + $0xf8] sm:$0xff]  }
 0x2cf   :  { %v5753_v0 = vsel %vm3120_vm0, %v5748_v50, %v5752_v48  ;;  %v5756_v57 = vor.u32 %v5754_v12, %v5752_v48  ;;  %v5760_v58 = vrot.slane %v5758_v20, 1  ;;  %v3345_v7 = vshll.u32 %v19207_v36, 16  ;;  %v19256_v50 = vld [vmem:[%s22600_s3 + $0x238] sm:$0xff]  }
 0x2d0   :  { %v3332_v17 = vsel %vm3120_vm0, %v3327_v62, %v3331_v55  ;;  %v3335_v14 = vor.u32 %v3333_v54, %v3331_v55  ;;  %v3339_v46 = vrot.slane %v3337_v63, 1  ;;  %v5762_v10 = vshrl.u32 %v19199_v44, 16  ;;  %v16885_v55 = vld [vmem:[#allocation2 + $0x100] sm:$0xff]   ;;  %16538 = vmatprep.subr.bf16.mxu0 %v19256_v50 }
 0x2d1   :  { %v5761_v4 = vsel %vm3120_vm0, %v5756_v57, %v5760_v58  ;;  %v5768_v51 = vrot.slane %v5766_v5, 1  ;;  %v5770_v38 = vshrl.u32 %v19217_v56, 16  ;;  %v5774_v32 = vshll.u32 %v19219_v37, 16  ;;  %v16881_v57 = vld [vmem:[#allocation2 + $0x100] ss:$0 sps:$4 sm:$0x11]  }
 0x2d2   :  { %16279 = vmatmul.mubr.bf16.gmra.mxu0 %v5753_v0  ;;  %v3340_v28 = vsel %vm3120_vm0, %v3335_v14, %v3339_v46  ;;  %v3341_v27 = vshrl.u32 %v19211_v16, 16  ;;  %v3347_v2 = vrot.slane %v3345_v7, 1  ;;  %v19234_v15 = vld [vmem:[#allocation2 + $0xf0] sm:$0xff]   ;;  %v5764_v24 = vor.u32 %v5762_v10, %v5760_v58 }
 0x2d3   :  { %16282 = vmatprep.mubr.bf16.mxu0 %v5761_v4  ;;  %v19232_v29 = vld [vmem:[#allocation2 + $0xe8] sm:$0xff]   ;;  %15963 = vmatmul.mubr.bf16.gmra.mxu1 %v3332_v17  ;;  %v5772_v31 = vor.u32 %v5770_v38, %v5768_v51  ;;  %v5776_v6 = vrot.slane %v5774_v32, 1  ;;  %v3349_v42 = vshrl.u32 %v19207_v36, 16  ;;  %v19240_v59 = vld [vmem:[#allocation2 + $0xf0] sm:$0xff]   ;;  %v3361_v49 = vshll.u32 %v19234_v15, 16 }
 0x2d4   :  { %15966 = vmatprep.mubr.bf16.mxu1 %v3340_v28  ;;  %v3343_v45 = vor.u32 %v3341_v27, %v3339_v46  ;;  %v3353_v3 = vshll.u32 %v19232_v29, 16  ;;  %v19237_v61 = vld [vmem:[#allocation2 + $0xe8] sm:$0xff]   ;;  %22678 = vst [vmem:[#allocation22_spill] sm:$0xff] %v19240_v59  ;;  %v5769_v9 = vsel %vm3120_vm0, %v5764_v24, %v5768_v51  ;;  %v3369_v22 = vshll.u32 %v19244_v47, 16 }
 0x2d5   :  { %v5782_v26 = vshll.u32 %v19237_v61, 16  ;;  %v5777_v60 = vsel %vm3120_vm0, %v5772_v31, %v5776_v6  ;;  %v3351_v40 = vor.u32 %v3349_v42, %v3347_v2  ;;  %v5786_v25 = vshrl.u32 %v19237_v61, 16  ;;  %v16886_v27 = vld [vmem:[#allocation2 + $0x108] ss:$0 sps:$4 sm:$0x11]  }
 0x2d6   :  { %v3355_v35 = vrot.slane %v3353_v3, 1  ;;  %v3348_v52 = vsel %vm3120_vm0, %v3343_v45, %v3347_v2  ;;  %v5790_v12 = vshll.u32 %v19240_v59, 16  ;;  %v5798_v1 = vshll.u32 %v16879_v53, 16 }
 0x2d7   :  { %v5784_v39 = vrot.slane %v5782_v26, 1  ;;  %v5778_v48 = vshrl.u32 %v19219_v37, 16  ;;  %v3357_v20 = vshrl.u32 %v19232_v29, 16  ;;  %v3363_v23 = vrot.slane %v3361_v49, 1 }
 0x2d8   :  { %v3356_v33 = vsel %vm3120_vm0, %v3351_v40, %v3355_v35  ;;  %v5792_v58 = vrot.slane %v5790_v12, 1  ;;  %v3365_v63 = vshrl.u32 %v19234_v15, 16  ;;  %v3371_v5 = vrot.slane %v3369_v22, 1  ;;  %v19276_v12 = vpop.f32.mrf.mxu1 }
 0x2d9   :  { %v5788_v62 = vor.u32 %v5786_v25, %v5784_v39  ;;  %v5780_v54 = vor.u32 %v5778_v48, %v5776_v6  ;;  %v3359_v0 = vor.u32 %v3357_v20, %v3355_v35  ;;  %v5800_v4 = vrot.slane %v5798_v1, 1  ;;  %v16913_v1 = vld [vmem:[%s22600_s3 + $0xb0] sm:$0xff]  }
 0x2da   :  { %16283 = vmatmul.mubr.bf16.gmra.mxu0 %v5769_v9  ;;  %v3367_v46 = vor.u32 %v3365_v63, %v3363_v23  ;;  %v5802_v7 = vshrl.u32 %v16879_v53, 16  ;;  %v5806_v10 = vshll.u32 %v16885_v55, 16  ;;  %v3373_v38 = vshrl.u32 %v19244_v47, 16  ;;  %v22679_v53 = vld [vmem:[#allocation8_spill] sm:$0xff]  ;;  %v16890_v63 = vld [vmem:[#allocation2 + $0x18] sm:$0xff]  }
 0x2db   :  { %16286 = vmatprep.mubr.bf16.mxu0 %v5777_v60  ;;  %15967 = vmatmul.mubr.bf16.gmra.mxu1 %v3348_v52  ;;  %v5785_v17 = vsel %vm3120_vm0, %v5780_v54, %v5784_v39  ;;  %v5793_v14 = vsel %vm3120_vm0, %v5788_v62, %v5792_v58  ;;  %v3364_v51 = vsel %vm3120_vm0, %v3359_v0, %v3363_v23  ;;  %v3377_v32 = vshll.u32 %v16881_v57, 16  ;;  %v19291_v23 = vld [vmem:[#allocation2 + $0x8] sm:$0xff]   ;;  %v19298_v54 = vld [vmem:[#allocation2 + $0x10] sm:$0xff]  }
 0x2dc   :  { %15970 = vmatprep.mubr.bf16.mxu1 %v3356_v33  ;;  %v5794_v28 = vshrl.u32 %v19240_v59, 16  ;;  %v3372_v2 = vsel %vm3120_vm0, %v3367_v46, %v3371_v5  ;;  %v5804_v31 = vor.u32 %v5802_v7, %v5800_v4  ;;  %v5808_v24 = vrot.slane %v5806_v10, 1  ;;  %v16888_v33 = vld [vmem:[#allocation2 + $0x10] sm:$0xff]   ;;  %v16921_v10 = vld [vmem:[%s22600_s3 + $0xa0] sm:$0xff]  }
 0x2dd   :  { %v3375_v6 = vor.u32 %v3373_v38, %v3371_v5  ;;  %v3379_v3 = vrot.slane %v3377_v32, 1  ;;  %v5810_v42 = vshrl.u32 %v16885_v55, 16  ;;  %v5814_v9 = vshll.u32 %v16886_v27, 16  ;;  %v19339_v38 = vld [vmem:[#allocation2 + $0xa0] sm:$0xff]  }
 0x2de   :  { %v5796_v45 = vor.u32 %v5794_v28, %v5792_v58  ;;  %v5809_v35 = vsel %vm3120_vm0, %v5804_v31, %v5808_v24  ;;  %v22617_v39 = vrot.slane %v19117_v30, 1  ;;  %v6309_v22 = vrot.slane %v19123_v41, 1  ;;  %v19309_v58 = vpop.f32.mrf.mxu1 }
 0x2df   :  { %v3380_v60 = vsel %vm3120_vm0, %v3375_v6, %v3379_v3  ;;  %v5812_v40 = vor.u32 %v5810_v42, %v5808_v24  ;;  %v5816_v49 = vrot.slane %v5814_v9, 1  ;;  %v6311_v25 = vrot.slane %v19143_v18, 1  ;;  %v19359_v24 = vld [vmem:[#allocation2 + $0x18] sm:$0xff]   ;;  %v19366_v3 = vld [vmem:[#allocation2 + $0x20] sm:$0xff]  }
 0x2e0   :  { %v5801_v26 = vsel %vm3120_vm0, %v5796_v45, %v5800_v4  ;;  %v19284_v48 = vsel %vm4140_vm1, %v22617_v39, %v6309_v22  ;;  %v6313_v20 = vrot.slane %v19154_v11, 1  ;;  %v6315_v18 = vrot.slane %v19169_v43, 1  ;;  %v19302_v11 = vld [vmem:[#allocation2 + $0x88] sm:$0xff]   ;;  %v16891_v4 = vld [vmem:[#allocation2 + $0x20] sm:$0xff]   ;;  %v19345_v27 = vpop.f32.mrf.mxu1 }
 0x2e1   :  { %v5817_v52 = vsel %vm3120_vm0, %v5812_v40, %v5816_v49  ;;  %22680 = vst [vmem:[#allocation25_spill] sm:$0xff] %v19284_v48  ;;  %v19288_v41 = vsel %vm4140_vm1, %v6309_v22, %v6311_v25  ;;  %v6317_v55 = vrot.slane %v19185_v21, 1  ;;  %v6319_v43 = vrot.slane %v19191_v19, 1  ;;  %v16919_v21 = vld [vmem:[%s22600_s3 + $0xa8] sm:$0xff]   ;;  %v16920_v19 = vld [vmem:[%s22600_s3 + $0x230] sm:$0xff]   ;;  %v16925_v40 = vld [vmem:[%s22600_s3 + $0x98] sm:$0xff]  }
 0x2e2   :  { %16287 = vmatmul.mubr.bf16.gmra.mxu0 %v5785_v17  ;;  %22681 = vst [vmem:[#allocation9_spill] sm:$0xff] %v19288_v41  ;;  %v19295_v62 = vsel %vm4140_vm1, %v6311_v25, %v6313_v20  ;;  %v19305_v0 = vsel %vm4140_vm1, %v6313_v20, %v6315_v18  ;;  %v6321_v57 = vrot.slane %v19199_v44, 1  ;;  %v19314_v17 = vld [vmem:[#allocation2 + $0x90] sm:$0xff]   ;;  %v6323_v5 = vrot.slane %v19217_v56, 1  ;;  %v19323_v44 = vld [vmem:[#allocation2 + $0x98] sm:$0xff]   ;;  %v16923_v45 = vld [vmem:[%s22600_s3 + $0x228] sm:$0xff]  }
 0x2e3   :  { %16290 = vmatprep.mubr.bf16.mxu0 %v5793_v14  ;;  %15971 = vmatmul.mubr.bf16.gmra.mxu1 %v3364_v51  ;;  %22682 = vst [vmem:[#allocation11_spill] sm:$0xff] %v19295_v62  ;;  %22683 = vst [vmem:[#allocation8_spill] sm:$0xff] %v19305_v0  ;;  %v19326_v14 = vsel %vm4140_vm1, %v6317_v55, %v6319_v43  ;;  %v6325_v7 = vrot.slane %v19219_v37, 1  ;;  %v6327_v51 = vrot.slane %v19237_v61, 1  ;;  %v22616_v28 = vrot.slane %v19240_v59, 1  ;;  %v19347_v37 = vld [vmem:[#allocation2 + $0xa8] sm:$0xff]  }
 0x2e4   :  { %15974 = vmatprep.mubr.bf16.mxu1 %v3372_v2  ;;  %22685 = vst [vmem:[#allocation40_spill] sm:$0xff] %v19326_v14  ;;  %v19329_v46 = vsel %vm4140_vm1, %v6319_v43, %v6321_v57  ;;  %v19336_v56 = vsel %vm4140_vm1, %v6321_v57, %v6323_v5  ;;  %v7809_v31 = vshll.u32 %v19302_v11, 16  ;;  %v7817_v6 = vshll.u32 %v19314_v17, 16  ;;  %v19385_v25 = vld [vmem:[#allocation2 + $0xb8] sm:$0xff]   ;;  %v16926_v43 = vld [vmem:[%s22600_s3 + $0x220] sm:$0xff]  }
 0x2e5   :  { %22686 = vst [vmem:[#allocation41_spill] sm:$0xff] %v19329_v46  ;;  %22687 = vst [vmem:[#allocation42_spill] sm:$0xff] %v19336_v56  ;;  %v19342_v32 = vsel %vm4140_vm1, %v6323_v5, %v6325_v7  ;;  %v19350_v2 = vsel %vm4140_vm1, %v6325_v7, %v6327_v51  ;;  %v19356_v61 = vsel %vm4140_vm1, %v6327_v51, %v22616_v28  ;;  %v7813_v9 = vshrl.u32 %v19302_v11, 16  ;;  %v19393_v57 = vld [vmem:[#allocation2 + $0xc0] sm:$0xff]   ;;  %v16893_v7 = vld [vmem:[#allocation2 + $0x30] sm:$0xff]  }
 0x2e6   :  { %22688 = vst [vmem:[#allocation43_spill] sm:$0xff] %v19342_v32  ;;  %22689 = vst [vmem:[#allocation44_spill] sm:$0xff] %v19350_v2  ;;  %v19371_v42 = vrot.slane %v7809_v31, 1  ;;  %v7819_v49 = vrot.slane %v7817_v6, 1  ;;  %v7841_v22 = vshll.u32 %v19347_v37, 16  ;;  %v7857_v39 = vshll.u32 %v19385_v25, 16 }
 0x2e7   :  { %22690 = vst [vmem:[#allocation45_spill] sm:$0xff] %v19356_v61  ;;  %v16894_v61 = vld [vmem:[#allocation2 + $0x38] sm:$0xff]   ;;  %v16895_v56 = vld [vmem:[#allocation2 + $0x40] sm:$0xff]  }
 0x2e8   :  { %22691 = vst [vmem:[#allocation46_spill] sm:$0xff] %v19371_v42  ;;  %v16907_v48 = vld [vmem:[#allocation2 + $0xa0] sm:$0xff]  }
 0x2ea   :  { %16291 = vmatmul.mubr.bf16.gmra.mxu0 %v5801_v26  ;;  %v19375_v26 = vpop.f32.mrf.mxu1 }
 0x2eb   :  { %16294 = vmatprep.mubr.bf16.mxu0 %v5809_v35  ;;  %15975 = vmatmul.mubr.bf16.gmra.mxu1 %v3380_v60  ;;  %v7825_v35 = vshll.u32 %v19323_v44, 16  ;;  %v19377_v60 = vpop.f32.mrf.mxu0 }
 0x2ec   :  { %15994 = vmatprep.mubr.bf16.mxu1 %v22679_v53  ;;  %22692 = vst [vmem:[#allocation47_spill] sm:$0xff] %v19377_v60  ;;  %v7821_v53 = vshrl.u32 %v19314_v17, 16  ;;  %v19422_v60 = vld [vmem:[#allocation2 + $0x28] sm:$0xff]  }
 0x2ed   :  { %v7827_v20 = vrot.slane %v7825_v35, 1  ;;  %v19404_v35 = vpop.f32.mrf.mxu0 }
 0x2ee   :  { %22694 = vst [vmem:[#allocation49_spill] sm:$0xff] %v19404_v35  ;;  %v7861_v35 = vshrl.u32 %v19385_v25, 16 }
 0x2f2   :  { %16295 = vmatmul.mubr.bf16.gmra.mxu0 %v5817_v52  ;;  %v7833_v52 = vshll.u32 %v19339_v38, 16 }
 0x2f3   :  { %16394 = vmatprep.mubr.bf16.mxu0 %v16888_v33  ;;  %15995 = vmatmul.mubr.bf16.vlgmr.msra.gmra.mxu1 %v19291_v23  ;;  %v16892_v33 = vld [vmem:[#allocation2 + $0x28] sm:$0xff]  }
 0x2f4   :  { %15998 = vmatprep.mubr.bf16.mxu1 %v19298_v54  ;;  %16059 = vmatpush3.bf16.msra.mxu1 %v19163_v34  ;;  %v19317_v34 = vsel %vm4140_vm1, %v6315_v18, %v6317_v55  ;;  %v7829_v18 = vshrl.u32 %v19323_v44, 16  ;;  %v7837_v55 = vshrl.u32 %v19339_v38, 16  ;;  %v7835_v5 = vrot.slane %v7833_v52, 1  ;;  %v19409_v52 = vld [vmem:[#allocation2 + $0xd0] sm:$0xff]  }
 0x2f5   :  { %16060 = vmatprep.subr.bf16.mxu1 %v16913_v1  ;;  %22684 = vst [vmem:[#allocation39_spill] sm:$0xff] %v19317_v34  ;;  %v7881_v59 = vshll.u32 %v19409_v52, 16  ;;  %v16905_v34 = vld [vmem:[#allocation2 + $0x90] sm:$0xff]  }
 0x2f6   :  { %v7831_v31 = vor.u32 %v7829_v18, %v7827_v20  ;;  %v19415_v18 = vld [vmem:[#allocation2 + $0xd8] sm:$0xff]  }
 0x2f7   :  { %v7883_v32 = vrot.slane %v7881_v59, 1  ;;  %v16933_v59 = vld [vmem:[%s22600_s3 + $0x80] sm:$0xff]  }
 0x2f8   :  { %16061 = vmatpush3.bf16.msra.mxu1 %v16913_v1  ;;  %v7815_v1 = vor.u32 %v7813_v9, %v19371_v42  ;;  %v19402_v9 = vpop.f32.mrf.mxu1 }
 0x2f9   :  { %16062 = vmatprep.subr.bf16.mxu1 %v16919_v21 }
 0x2fa   :  { %16395 = vmatmul.mubr.bf16.vlgmr.msra.gmra.mxu0 %v16890_v63  ;;  %v19395_v63 = vld [vmem:[#allocation2 + $0xc8] sm:$0xff]   ;;  %v19399_v51 = vsel %vm3120_vm0, %v7815_v1, %v7819_v49 }
 0x2fb   :  { %16398 = vmatprep.mubr.bf16.mxu0 %v16891_v4  ;;  %16539 = vmatpush3.bf16.msra.mxu0 %v19256_v50  ;;  %v19369_v50 = vld [vmem:[#allocation2 + $0xb0] sm:$0xff]   ;;  %v7843_v4 = vrot.slane %v7841_v22, 1  ;;  %22693 = vst [vmem:[#allocation48_spill] sm:$0xff] %v19399_v51  ;;  %v16930_v51 = vld [vmem:[%s22600_s3 + $0x88] sm:$0xff]  }
 0x2fc   :  { %15999 = vmatmul.mubr.bf16.gmra.mxu1 %v19359_v24  ;;  %16540 = vmatprep.subr.bf16.mxu0 %v16920_v19  ;;  %v7849_v6 = vshll.u32 %v19369_v50, 16  ;;  %v7853_v1 = vshrl.u32 %v19369_v50, 16 }
 0x2fd   :  { %16002 = vmatprep.mubr.bf16.mxu1 %v19366_v3  ;;  %16063 = vmatpush3.bf16.msra.mxu1 %v16919_v21  ;;  %v7823_v21 = vor.u32 %v7821_v53, %v7819_v49  ;;  %v16927_v53 = vld [vmem:[%s22600_s3 + $0x90] sm:$0xff]   ;;  %v7839_v49 = vor.u32 %v7837_v55, %v7835_v5 }
 0x2fe   :  { %16064 = vmatprep.subr.bf16.mxu1 %v16921_v10  ;;  %v7851_v28 = vrot.slane %v7849_v6, 1 }
 0x2ff   :  { %16541 = vmatpush3.bf16.msra.mxu0 %v16920_v19  ;;  %v7845_v19 = vshrl.u32 %v19347_v37, 16  ;;  %v19431_v55 = vsel %vm3120_vm0, %v7839_v49, %v7843_v4  ;;  %v19445_v49 = vpop.f32.mrf.mxu1 }
 0x300   :  { %16542 = vmatprep.subr.bf16.mxu0 %v16923_v45  ;;  %22697 = vst [vmem:[#allocation52_spill] sm:$0xff] %v19431_v55  ;;  %v19447_v55 = vpop.f32.mrf.mxu0 }
 0x301   :  { %16065 = vmatpush3.bf16.msra.mxu1 %v16921_v10  ;;  %v19412_v10 = vsel %vm3120_vm0, %v7823_v21, %v7827_v20  ;;  %v7847_v22 = vor.u32 %v7845_v19, %v7843_v4  ;;  %v16929_v20 = vld [vmem:[%s22600_s3 + $0x218] sm:$0xff]   ;;  %v7865_v21 = vshll.u32 %v19393_v57, 16  ;;  %v7873_v19 = vshll.u32 %v19395_v63, 16  ;;  %22699 = vst [vmem:[#allocation54_spill] sm:$0xff] %v19447_v55  ;;  %v19470_v46 = vpop.f32.mrf.mxu1 }
 0x302   :  { %16399 = vmatmul.mubr.bf16.gmra.mxu0 %v16892_v33  ;;  %16066 = vmatprep.subr.bf16.mxu1 %v16925_v40  ;;  %22695 = vst [vmem:[#allocation50_spill] sm:$0xff] %v19412_v10  ;;  %v19418_v33 = vsel %vm3120_vm0, %v7831_v31, %v7835_v5  ;;  %v7869_v5 = vshrl.u32 %v19393_v57, 16  ;;  %v19439_v31 = vld [vmem:[#allocation2 + $0xe8] sm:$0xff]   ;;  %v7859_v10 = vrot.slane %v7857_v39, 1  ;;  %v7877_v4 = vshrl.u32 %v19395_v63, 16  ;;  %v19472_v14 = vpop.f32.mrf.mxu0 }
 0x303   :  { %16402 = vmatprep.mubr.bf16.mxu0 %v16893_v7  ;;  %16543 = vmatpush3.bf16.msra.mxu0 %v16923_v45  ;;  %22696 = vst [vmem:[#allocation51_spill] sm:$0xff] %v19418_v33  ;;  %v19428_v45 = vld [vmem:[#allocation2 + $0xe0] sm:$0xff]   ;;  %v19436_v7 = vld [vmem:[#allocation2 + $0x30] sm:$0xff]   ;;  %v19442_v6 = vsel %vm3120_vm0, %v7847_v22, %v7851_v28  ;;  %v7855_v33 = vor.u32 %v7853_v1, %v7851_v28  ;;  %v7867_v42 = vrot.slane %v7865_v21, 1  ;;  %v7885_v22 = vshrl.u32 %v19409_v52, 16 }
 0x304   :  { %16003 = vmatmul.mubr.bf16.gmra.mxu1 %v19422_v60  ;;  %16544 = vmatprep.subr.bf16.mxu0 %v16926_v43  ;;  %22698 = vst [vmem:[#allocation53_spill] sm:$0xff] %v19442_v6  ;;  %v19454_v28 = vld [vmem:[#allocation2 + $0xf0] sm:$0xff]   ;;  %v7863_v1 = vor.u32 %v7861_v35, %v7859_v10  ;;  %v7889_v6 = vshll.u32 %v19415_v18, 16  ;;  %v7893_v55 = vshrl.u32 %v19415_v18, 16  ;;  %22702 = vst [vmem:[#allocation57_spill] sm:$0xff] %v19472_v14  ;;  %v19485_v14 = vld [vmem:[#allocation2 + $0x38] sm:$0xff]  }
 0x305   :  { %16006 = vmatprep.mubr.bf16.mxu1 %v19436_v7  ;;  %16067 = vmatpush3.bf16.msra.mxu1 %v16925_v40  ;;  %v7875_v40 = vrot.slane %v7873_v19, 1  ;;  %v19457_v39 = vsel %vm3120_vm0, %v7855_v33, %v7859_v10  ;;  %v16932_v21 = vld [vmem:[%s22600_s3 + $0x210] sm:$0xff]   ;;  %v7871_v19 = vor.u32 %v7869_v5, %v7867_v42  ;;  %v7901_v10 = vshrl.u32 %v19428_v45, 16 }
 0x306   :  { %16068 = vmatprep.subr.bf16.mxu1 %v16927_v53  ;;  %22700 = vst [vmem:[#allocation55_spill] sm:$0xff] %v19457_v39  ;;  %v19466_v33 = vsel %vm3120_vm0, %v7863_v1, %v7867_v42  ;;  %v7891_v35 = vrot.slane %v7889_v6, 1  ;;  %v7905_v39 = vshll.u32 %v19439_v31, 16  ;;  %v7887_v5 = vor.u32 %v7885_v22, %v7883_v32 }
 0x307   :  { %16545 = vmatpush3.bf16.msra.mxu0 %v16926_v43  ;;  %v7879_v2 = vor.u32 %v7877_v4, %v7875_v40  ;;  %v7897_v43 = vshll.u32 %v19428_v45, 16  ;;  %22701 = vst [vmem:[#allocation56_spill] sm:$0xff] %v19466_v33  ;;  %v7909_v33 = vshrl.u32 %v19439_v31, 16 }
 0x308   :  { %16546 = vmatprep.subr.bf16.mxu0 %v16929_v20  ;;  %v7895_v4 = vor.u32 %v7893_v55, %v7891_v35  ;;  %v7907_v1 = vrot.slane %v7905_v39, 1  ;;  %v19502_v39 = vpop.f32.mrf.mxu1 }
 0x309   :  { %16069 = vmatpush3.bf16.msra.mxu1 %v16927_v53  ;;  %v19478_v53 = vsel %vm3120_vm0, %v7871_v19, %v7875_v40  ;;  %v19481_v42 = vsel %vm3120_vm0, %v7879_v2, %v7883_v32  ;;  %v7899_v6 = vrot.slane %v7897_v43, 1  ;;  %v16936_v2 = vld [vmem:[%s22600_s3 + $0x208] sm:$0xff]   ;;  %v19492_v32 = vsel %vm3120_vm0, %v7887_v5, %v7891_v35  ;;  %v19504_v19 = vpop.f32.mrf.mxu0 }
 0x30a   :  { %16403 = vmatmul.mubr.bf16.gmra.mxu0 %v16894_v61  ;;  %16070 = vmatprep.subr.bf16.mxu1 %v16930_v51  ;;  %22703 = vst [vmem:[#allocation58_spill] sm:$0xff] %v19478_v53  ;;  %22704 = vst [vmem:[#allocation59_spill] sm:$0xff] %v19481_v42  ;;  %v7913_v61 = vshll.u32 %v19454_v28, 16  ;;  %v7911_v40 = vor.u32 %v7909_v33, %v7907_v1  ;;  %v16940_v33 = vld [vmem:[%s22600_s3 + $0x200] sm:$0xff]   ;;  %v19516_v5 = vpop.f32.mrf.mxu1 }
 0x30b   :  { %16406 = vmatprep.mubr.bf16.mxu0 %v16895_v56  ;;  %16547 = vmatpush3.bf16.msra.mxu0 %v16929_v20  ;;  %22705 = vst [vmem:[#allocation60_spill] sm:$0xff] %v19492_v32  ;;  %v7903_v56 = vor.u32 %v7901_v10, %v7899_v6  ;;  %v19494_v20 = vld [vmem:[#allocation2 + $0x40] sm:$0xff]   ;;  %v19498_v55 = vsel %vm3120_vm0, %v7895_v4, %v7899_v6  ;;  %22708 = vst [vmem:[#allocation63_spill] sm:$0xff] %v19504_v19  ;;  %v16897_v10 = vld [vmem:[#allocation2 + $0x50] sm:$0xff]   ;;  %v19518_v6 = vpop.f32.mrf.mxu0 }
 0x30c   :  { %16007 = vmatmul.mubr.bf16.gmra.mxu1 %v19485_v14  ;;  %16548 = vmatprep.subr.bf16.mxu0 %v16932_v21  ;;  %22706 = vst [vmem:[#allocation61_spill] sm:$0xff] %v19498_v55  ;;  %v19500_v22 = vrot.slane %v7913_v61, 1  ;;  %22711 = vst [vmem:[#allocation66_spill] sm:$0xff] %v19516_v5  ;;  %v19523_v4 = vld [vmem:[#allocation2 + $0x50] sm:$0xff]  }
 0x30d   :  { %16010 = vmatprep.mubr.bf16.mxu1 %v19494_v20  ;;  %16071 = vmatpush3.bf16.msra.mxu1 %v16930_v51  ;;  %v19507_v43 = vsel %vm3120_vm0, %v7903_v56, %v7907_v1  ;;  %v16896_v51 = vld [vmem:[#allocation2 + $0x48] sm:$0xff]   ;;  %22712 = vst [vmem:[#allocation67_spill] sm:$0xff] %v19518_v6  ;;  %v19526_v1 = vpop.f32.mrf.mxu1  ;;  %v19528_v61 = vpop.f32.mrf.mxu0  ;;  %v16899_v56 = vld [vmem:[#allocation2 + $0x60] sm:$0xff]  }
 0x30e   :  { %22707 = vst [vmem:[#allocation62_spill] sm:$0xff] %v19500_v22  ;;  %16072 = vmatprep.subr.bf16.mxu1 %v16933_v59  ;;  %22709 = vst [vmem:[#allocation64_spill] sm:$0xff] %v19507_v43  ;;  %v19511_v35 = vsel %vm3120_vm0, %v7911_v40, %v19500_v22  ;;  %v16901_v43 = vld [vmem:[#allocation2 + $0x70] sm:$0xff]  }
 0x30f   :  { %16549 = vmatpush3.bf16.msra.mxu0 %v16932_v21  ;;  %22710 = vst [vmem:[#allocation65_spill] sm:$0xff] %v19511_v35  ;;  %v19520_v21 = vld [vmem:[#allocation2 + $0x48] sm:$0xff]   ;;  %22713 = vst [vmem:[#allocation68_spill] sm:$0xff] %v19526_v1  ;;  %v19530_v40 = vpop.f32.mrf.mxu1 }
 0x310   :  { %16550 = vmatprep.subr.bf16.mxu0 %v16936_v2  ;;  %22714 = vst [vmem:[#allocation69_spill] sm:$0xff] %v19528_v61  ;;  %22715 = vst [vmem:[#allocation70_spill] sm:$0xff] %v19530_v40  ;;  %v16915_v40 = vld [vmem:[#allocation2 + $0xd0] sm:$0xff]  }
 0x311   :  { %16073 = vmatpush3.bf16.msra.mxu1 %v16933_v59  ;;  %v16898_v59 = vld [vmem:[#allocation2 + $0x58] sm:$0xff]   ;;  %v19540_v35 = vpop.f32.mrf.mxu1 }
 0x312   :  { %16407 = vmatmul.mubr.bf16.gmra.mxu0 %v16896_v51  ;;  %v19532_v51 = vpop.f32.mrf.mxu0  ;;  %22717 = vst [vmem:[#allocation72_spill] sm:$0xff] %v19540_v35 }
 0x313   :  { %16410 = vmatprep.mubr.bf16.mxu0 %v16897_v10  ;;  %16551 = vmatpush3.bf16.msra.mxu0 %v16936_v2  ;;  %22716 = vst [vmem:[#allocation71_spill] sm:$0xff] %v19532_v51  ;;  %v19534_v2 = vld [vmem:[#allocation2 + $0x58] sm:$0xff]   ;;  %v19537_v10 = vld [vmem:[#allocation2 + $0x60] sm:$0xff]   ;;  %v19544_v55 = vpop.f32.mrf.mxu1 }
 0x314   :  { %16011 = vmatmul.mubr.bf16.gmra.mxu1 %v19520_v21  ;;  %16552 = vmatprep.subr.bf16.mxu0 %v16940_v33  ;;  %v19542_v22 = vpop.f32.mrf.mxu0  ;;  %22719 = vst [vmem:[#allocation74_spill] sm:$0xff] %v19544_v55  ;;  %v16903_v51 = vld [vmem:[#allocation2 + $0x80] sm:$0xff]  }
 0x315   :  { %16014 = vmatprep.mubr.bf16.mxu1 %v19523_v4  ;;  %22718 = vst [vmem:[#allocation73_spill] sm:$0xff] %v19542_v22  ;;  %v19554_v42 = vpop.f32.mrf.mxu1  ;;  %v16902_v22 = vld [vmem:[#allocation2 + $0x78] sm:$0xff]   ;;  %v16912_v55 = vld [vmem:[#allocation2 + $0xc0] sm:$0xff]  }
 0x316   :  { %v19546_v32 = vpop.f32.mrf.mxu0  ;;  %22721 = vst [vmem:[#allocation76_spill] sm:$0xff] %v19554_v42  ;;  %v16911_v42 = vld [vmem:[#allocation2 + $0xb8] sm:$0xff]  }
 0x317   :  { %16553 = vmatpush3.bf16.msra.mxu0 %v16940_v33  ;;  %v16900_v33 = vld [vmem:[#allocation2 + $0x68] sm:$0xff]   ;;  %22720 = vst [vmem:[#allocation75_spill] sm:$0xff] %v19546_v32  ;;  %v19558_v61 = vpop.f32.mrf.mxu1 }
 0x318   :  { %v19556_v53 = vpop.f32.mrf.mxu0  ;;  %22723 = vst [vmem:[#allocation78_spill] sm:$0xff] %v19558_v61  ;;  %v19613_v61 = vld [vmem:[#allocation2 + $0xb0] sm:$0xff]  }
 0x319   :  { %22722 = vst [vmem:[#allocation77_spill] sm:$0xff] %v19556_v53  ;;  %v19568_v32 = vpop.f32.mrf.mxu1  ;;  %v16904_v53 = vld [vmem:[#allocation2 + $0x88] sm:$0xff]  }
 0x31a   :  { %16411 = vmatmul.mubr.bf16.gmra.mxu0 %v16898_v59  ;;  %v19548_v59 = vld [vmem:[#allocation2 + $0x68] sm:$0xff]   ;;  %v19560_v6 = vpop.f32.mrf.mxu0  ;;  %22725 = vst [vmem:[#allocation80_spill] sm:$0xff] %v19568_v32 }
 0x31b   :  { %16414 = vmatprep.mubr.bf16.mxu0 %v16899_v56  ;;  %v19551_v56 = vld [vmem:[#allocation2 + $0x70] sm:$0xff]   ;;  %22724 = vst [vmem:[#allocation79_spill] sm:$0xff] %v19560_v6  ;;  %v19572_v0 = vpop.f32.mrf.mxu1  ;;  %v19610_v32 = vld [vmem:[#allocation2 + $0xa8] sm:$0xff]  }
 0x31c   :  { %16015 = vmatmul.mubr.bf16.gmra.mxu1 %v19534_v2  ;;  %v19570_v19 = vpop.f32.mrf.mxu0  ;;  %22727 = vst [vmem:[#allocation82_spill] sm:$0xff] %v19572_v0 }
 0x31d   :  { %16018 = vmatprep.mubr.bf16.mxu1 %v19537_v10  ;;  %22726 = vst [vmem:[#allocation81_spill] sm:$0xff] %v19570_v19  ;;  %v19582_v6 = vpop.f32.mrf.mxu1  ;;  %v16906_v19 = vld [vmem:[#allocation2 + $0x98] sm:$0xff]  }
 0x31e   :  { %v19574_v62 = vpop.f32.mrf.mxu0  ;;  %22729 = vst [vmem:[#allocation84_spill] sm:$0xff] %v19582_v6 }
 0x31f   :  { %22728 = vst [vmem:[#allocation83_spill] sm:$0xff] %v19574_v62  ;;  %v19586_v30 = vpop.f32.mrf.mxu1 }
 0x320   :  { %v19584_v41 = vpop.f32.mrf.mxu0  ;;  %22731 = vst [vmem:[#allocation86_spill] sm:$0xff] %v19586_v30 }
 0x321   :  { %22730 = vst [vmem:[#allocation85_spill] sm:$0xff] %v19584_v41  ;;  %v19599_v41 = vld [vmem:[%s22600_s3 + $0xf8] sm:$0xff]   ;;  %v19601_v62 = vpop.f32.mrf.mxu1 }
 0x322   :  { %16415 = vmatmul.mubr.bf16.gmra.mxu0 %v16900_v33  ;;  %v19565_v33 = vld [vmem:[#allocation2 + $0x80] sm:$0xff]   ;;  %v19588_v0 = vpop.f32.mrf.mxu0  ;;  %22733 = vst [vmem:[#allocation88_spill] sm:$0xff] %v19601_v62  ;;  %16138 = vmatprep.subr.bf16.mxu1 %v19599_v41 }
 0x323   :  { %16418 = vmatprep.mubr.bf16.mxu0 %v16901_v43  ;;  %v19562_v43 = vld [vmem:[#allocation2 + $0x78] sm:$0xff]   ;;  %22732 = vst [vmem:[#allocation87_spill] sm:$0xff] %v19588_v0  ;;  %v19606_v0 = vpop.f32.mrf.mxu1 }
 0x324   :  { %16019 = vmatmul.mubr.bf16.gmra.mxu1 %v19548_v59  ;;  %v19603_v30 = vpop.f32.mrf.mxu0  ;;  %22735 = vst [vmem:[#allocation90_spill] sm:$0xff] %v19606_v0 }
 0x325   :  { %16022 = vmatprep.mubr.bf16.mxu1 %v19551_v56  ;;  %22734 = vst [vmem:[#allocation89_spill] sm:$0xff] %v19603_v30  ;;  %v19616_v62 = vpop.f32.mrf.mxu1 }
 0x326   :  { %v19608_v6 = vpop.f32.mrf.mxu0  ;;  %22737 = vst [vmem:[#allocation92_spill] sm:$0xff] %v19616_v62 }
 0x327   :  { %22736 = vst [vmem:[#allocation91_spill] sm:$0xff] %v19608_v6  ;;  %v19620_v35 = vpop.f32.mrf.mxu1 }
 0x328   :  { %v19618_v30 = vpop.f32.mrf.mxu0  ;;  %22739 = vst [vmem:[#allocation94_spill] sm:$0xff] %v19620_v35 }
 0x329   :  { %22738 = vst [vmem:[#allocation93_spill] sm:$0xff] %v19618_v30  ;;  %v19630_v6 = vpop.f32.mrf.mxu1  ;;  %v16914_v30 = vld [vmem:[#allocation2 + $0xc8] sm:$0xff]  }
 0x32a   :  { %16419 = vmatmul.mubr.bf16.gmra.mxu0 %v16902_v22  ;;  %v19576_v22 = vld [vmem:[#allocation2 + $0x88] sm:$0xff]   ;;  %v19622_v0 = vpop.f32.mrf.mxu0  ;;  %22741 = vst [vmem:[#allocation96_spill] sm:$0xff] %v19630_v6  ;;  %v16918_v6 = vld [vmem:[#allocation2 + $0xe0] sm:$0xff]  }
 0x32b   :  { %16422 = vmatprep.mubr.bf16.mxu0 %v16903_v51  ;;  %v19579_v51 = vld [vmem:[#allocation2 + $0x90] sm:$0xff]   ;;  %22740 = vst [vmem:[#allocation95_spill] sm:$0xff] %v19622_v0  ;;  %v19634_v1 = vpop.f32.mrf.mxu1  ;;  %v16916_v0 = vld [vmem:[#allocation2 + $0xd8] sm:$0xff]  }
 0x32c   :  { %16023 = vmatmul.mubr.bf16.gmra.mxu1 %v19562_v43  ;;  %v19632_v62 = vpop.f32.mrf.mxu0 }
 0x32d   :  { %16026 = vmatprep.mubr.bf16.mxu1 %v19565_v33  ;;  %22742 = vst [vmem:[#allocation97_spill] sm:$0xff] %v19632_v62 }
 0x32e   :  { %v19636_v35 = vpop.f32.mrf.mxu0 }
 0x32f   :  { %22743 = vst [vmem:[#allocation98_spill] sm:$0xff] %v19636_v35 }
 0x332   :  { %16423 = vmatmul.mubr.bf16.gmra.mxu0 %v16904_v53  ;;  %v19593_v53 = vld [vmem:[#allocation2 + $0xa0] sm:$0xff]  }
 0x333   :  { %16426 = vmatprep.mubr.bf16.mxu0 %v16905_v34  ;;  %v19590_v34 = vld [vmem:[#allocation2 + $0x98] sm:$0xff]  }
 0x334   :  { %16027 = vmatmul.mubr.bf16.gmra.mxu1 %v19576_v22 }
 0x335   :  { %16030 = vmatprep.mubr.bf16.mxu1 %v19579_v51 }
 0x33a   :  { %16427 = vmatmul.mubr.bf16.gmra.mxu0 %v16906_v19  ;;  %v16910_v19 = vld [vmem:[#allocation2 + $0xb0] sm:$0xff]  }
 0x33b   :  { %16430 = vmatprep.mubr.bf16.mxu0 %v16907_v48  ;;  %v16909_v48 = vld [vmem:[#allocation2 + $0xa8] sm:$0xff]  }
 0x33c   :  { %16031 = vmatmul.mubr.bf16.gmra.mxu1 %v19590_v34 }
 0x33d   :  { %16034 = vmatprep.mubr.bf16.mxu1 %v19593_v53 }
 0x342   :  { %16431 = vmatmul.mubr.bf16.gmra.mxu0 %v16909_v48  ;;  %v19624_v48 = vld [vmem:[#allocation2 + $0xb8] sm:$0xff]  }
 0x343   :  { %16434 = vmatprep.mubr.bf16.mxu0 %v16910_v19  ;;  %v19627_v19 = vld [vmem:[#allocation2 + $0xc0] sm:$0xff]  }
 0x344   :  { %16035 = vmatmul.mubr.bf16.gmra.mxu1 %v19610_v32 }
 0x345   :  { %16038 = vmatprep.mubr.bf16.mxu1 %v19613_v61 }
 0x34a   :  { %16435 = vmatmul.mubr.bf16.gmra.mxu0 %v16911_v42  ;;  %v19640_v42 = vpop.f32.mrf.mxu1 }
 0x34b   :  { %16438 = vmatprep.mubr.bf16.mxu0 %v16912_v55  ;;  %22744 = vst [vmem:[#allocation99_spill] sm:$0xff] %v19640_v42  ;;  %v19642_v55 = vpop.f32.mrf.mxu0 }
 0x34c   :  { %16039 = vmatmul.mubr.bf16.gmra.mxu1 %v19624_v48  ;;  %22745 = vst [vmem:[#allocation100_spill] sm:$0xff] %v19642_v55  ;;  %v19644_v5 = vpop.f32.mrf.mxu1  ;;  %v16924_v55 = vld [vmem:[#allocation2 + $0xf0] sm:$0xff]  }
 0x34d   :  { %16042 = vmatprep.mubr.bf16.mxu1 %v19627_v19  ;;  %22746 = vst [vmem:[#allocation101_spill] sm:$0xff] %v19644_v5  ;;  %v19646_v62 = vpop.f32.mrf.mxu0 }
 0x34e   :  { %22747 = vst [vmem:[#allocation102_spill] sm:$0xff] %v19646_v62  ;;  %v17394_v62 = vld [vmem:[#allocation2 + $0x4] sm:$0xf] }
 0x352   :  { %16439 = vmatmul.mubr.bf16.gmra.mxu0 %v16914_v30  ;;  %v19650_v30 = vpop.f32.mrf.mxu1 }
 0x353   :  { %16442 = vmatprep.mubr.bf16.mxu0 %v16915_v40  ;;  %22748 = vst [vmem:[#allocation103_spill] sm:$0xff] %v19650_v30  ;;  %v4142_v30 = vrot.slane %v19291_v23, 1  ;;  %v16935_v23 = vld [vmem:[#allocation2 + $0x108] sm:$0xff]  }
 0x354   :  { %16043 = vmatmul.mubr.bf16.gmra.mxu1 %v19187_v13  ;;  %v19652_v13 = vpop.f32.mrf.mxu0 }
 0x355   :  { %16046 = vmatprep.mubr.bf16.mxu1 %v19194_v8  ;;  %22749 = vst [vmem:[#allocation104_spill] sm:$0xff] %v19652_v13  ;;  %v16922_v8 = vld [vmem:[#allocation2 + $0xe8] sm:$0xff]  }
 0x356   :  { %v19656_v35 = vpop.f32.mrf.mxu0 }
 0x357   :  { %22751 = vst [vmem:[#allocation106_spill] sm:$0xff] %v19656_v35  ;;  %v8382_v35 = vld [vmem:[#allocation2 + $0x10] sm:$0xe] }
 0x35a   :  { %16443 = vmatmul.mubr.bf16.gmra.mxu0 %v16916_v0  ;;  %v4119_v0 = vld [vmem:[#allocation2] sm:$0xe] }
 0x35b   :  { %16446 = vmatprep.mubr.bf16.mxu0 %v16918_v6  ;;  %v13718_v13 = vcombine.low %v4119_v0, %v17394_v62  ;;  %v17396_v0 = vld [vmem:[#allocation2 + $0x18] sm:$0xff]  }
 0x35c   :  { %16047 = vmatmul.mubr.bf16.gmra.mxu1 %v19211_v16  ;;  %v16928_v16 = vld [vmem:[#allocation2 + $0xf8] sm:$0xff]   ;;  %v8404_v42 = vrot.slane %v17396_v0, 1 }
 0x35d   :  { %16050 = vmatprep.mubr.bf16.mxu1 %v19207_v36  ;;  %v19662_v36 = vpop.f32.mrf.mxu0 }
 0x35e   :  { %22753 = vst [vmem:[#allocation108_spill] sm:$0xff] %v19662_v36  ;;  %v17395_v36 = vld [vmem:[#allocation2 + $0x14] sm:$0xf] }
 0x35f   :  { %v19654_v40 = vpop.f32.mrf.mxu1 }
 0x360   :  { %22750 = vst [vmem:[#allocation105_spill] sm:$0xff] %v19654_v40  ;;  %v16934_v40 = vld [vmem:[#allocation2 + $0x100] sm:$0xff]  }
 0x361   :  { %v19658_v5 = vpop.f32.mrf.mxu1 }
 0x362   :  { %16447 = vmatmul.mubr.bf16.gmra.mxu0 %v16922_v8  ;;  %22752 = vst [vmem:[#allocation107_spill] sm:$0xff] %v19658_v5  ;;  %v19667_v8 = vpop.f32.mrf.mxu0 }
 0x363   :  { %16450 = vmatprep.mubr.bf16.mxu0 %v16924_v55  ;;  %v19664_v6 = vpop.f32.mrf.mxu1  ;;  %22755 = vst [vmem:[#allocation110_spill] sm:$0xff] %v19667_v8  ;;  %v4141_v55 = vrot.slane %v13718_v13, 1 }
 0x364   :  { %16051 = vmatmul.mubr.bf16.gmra.mxu1 %v19232_v29  ;;  %22754 = vst [vmem:[#allocation109_spill] sm:$0xff] %v19664_v6  ;;  %v13994_v6 = vcombine.low %v8382_v35, %v17395_v36 }
 0x365   :  { %16054 = vmatprep.mubr.bf16.mxu1 %v19234_v15  ;;  %v19669_v5 = vpop.f32.mrf.mxu1  ;;  %v4143_v29 = vsel %vm4140_vm1, %v4141_v55, %v4142_v30 }
 0x36a   :  { %16451 = vmatmul.mubr.bf16.gmra.mxu0 %v16928_v16  ;;  %v19673_v15 = vpop.f32.mrf.mxu0  ;;  %v8403_v16 = vrot.slane %v13994_v6, 1 }
 0x36b   :  { %16454 = vmatprep.mubr.bf16.mxu0 %v16934_v40  ;;  %22756 = vst [vmem:[#allocation111_spill] sm:$0xff] %v19673_v15  ;;  %v4146_v40 = vrot.slane %v19359_v24, 1  ;;  %v4144_v15 = vrot.slane %v19298_v54, 1 }
 0x36c   :  { %16055 = vmatmul.mubr.bf16.gmra.mxu1 %v19244_v47  ;;  %v19675_v62 = vpop.f32.mrf.mxu1  ;;  %v19677_v8 = vpop.f32.mrf.mxu0  ;;  %v8405_v35 = vsel %vm4140_vm1, %v8403_v16, %v8404_v42 }
 0x36d   :  { %16074 = vmatprep.mubr.bf16.mxu1 %v4143_v29  ;;  %22757 = vst [vmem:[#allocation112_spill] sm:$0xff] %v19677_v8  ;;  %v16964_v29 = vld [vmem:[%s22600_s3 + $0xf0] sm:$0xff]   ;;  %v4145_v6 = vsel %vm4140_vm1, %v4142_v30, %v4144_v15  ;;  %v4147_v24 = vsel %vm4140_vm1, %v4144_v15, %v4146_v40  ;;  %v4150_v15 = vrot.slane %v19422_v60, 1 }
 0x36e   :  { %v19679_v13 = vpop.f32.mrf.mxu1  ;;  %v19682_v47 = vpop.f32.mrf.mxu0 }
 0x36f   :  { %22758 = vst [vmem:[#allocation113_spill] sm:$0xff] %v19682_v47 }
 0x370   :  { %v19684_v55 = vpop.f32.mrf.mxu1  ;;  %v19688_v36 = vpop.f32.mrf.mxu0 }
 0x371   :  { %22759 = vst [vmem:[#allocation114_spill] sm:$0xff] %v19688_v36  ;;  %v16969_v36 = vld [vmem:[%s22600_s3 + $0xe8] sm:$0xff]  }
 0x372   :  { %16455 = vmatmul.mubr.bf16.gmra.mxu0 %v16935_v23  ;;  %v19695_v0 = vpop.f32.mrf.mxu1  ;;  %v17397_v23 = vld [vmem:[#allocation2 + $0x28] sm:$0xff]  }
 0x373   :  { %16554 = vmatprep.mubr.bf16.mxu0 %v8405_v35  ;;  %v8408_v16 = vrot.slane %v17397_v23, 1  ;;  %v17398_v35 = vld [vmem:[#allocation2 + $0x20] sm:$0xff]  }
 0x374   :  { %16075 = vmatmul.mubr.bf16.vlgmr.msra.gmra.mxu1 %v4145_v6  ;;  %v19698_v54 = vpop.f32.mrf.mxu0  ;;  %v8406_v47 = vrot.slane %v17398_v35, 1  ;;  %v16970_v35 = vld [vmem:[%s22600_s3 + $0xe0] sm:$0xff]  }
 0x375   :  { %16078 = vmatprep.mubr.bf16.mxu1 %v4147_v24  ;;  %16139 = vmatpush3.bf16.msra.mxu1 %v19599_v41  ;;  %22760 = vst [vmem:[#allocation115_spill] sm:$0xff] %v19698_v54  ;;  %v4148_v41 = vrot.slane %v19366_v3, 1 }
 0x376   :  { %16140 = vmatprep.subr.bf16.mxu1 %v16964_v29  ;;  %v19705_v6 = vpop.f32.mrf.mxu0  ;;  %v8407_v24 = vsel %vm4140_vm1, %v8404_v42, %v8406_v47  ;;  %v8409_v23 = vsel %vm4140_vm1, %v8406_v47, %v8408_v16  ;;  %v17399_v47 = vld [vmem:[#allocation2 + $0x38] sm:$0xff]  }
 0x377   :  { %22761 = vst [vmem:[#allocation116_spill] sm:$0xff] %v19705_v6  ;;  %v4149_v60 = vsel %vm4140_vm1, %v4146_v40, %v4148_v41  ;;  %v4151_v42 = vsel %vm4140_vm1, %v4148_v41, %v4150_v15  ;;  %v17400_v6 = vld [vmem:[#allocation2 + $0x30] sm:$0xff]   ;;  %v4154_v41 = vrot.slane %v19485_v14, 1 }
 0x378   :  { %v19703_v30 = vpop.f32.mrf.mxu1  ;;  %v19713_v8 = vpop.f32.mrf.mxu0 }
 0x379   :  { %16141 = vmatpush3.bf16.msra.mxu1 %v16964_v29  ;;  %22763 = vst [vmem:[#allocation118_spill] sm:$0xff] %v19713_v8  ;;  %v16973_v8 = vld [vmem:[%s22600_s3 + $0xd8] sm:$0xff]  }
 0x37a   :  { %16555 = vmatmul.mubr.bf16.vlgmr.msra.gmra.mxu0 %v8407_v24  ;;  %v19711_v54 = vpop.f32.mrf.mxu1  ;;  %16142 = vmatprep.subr.bf16.mxu1 %v16969_v36  ;;  %v19722_v29 = vpop.f32.mrf.mxu0  ;;  %v8412_v24 = vrot.slane %v17399_v47, 1 }
 0x37b   :  { %22762 = vst [vmem:[#allocation117_spill] sm:$0xff] %v19711_v54  ;;  %16558 = vmatprep.mubr.bf16.mxu0 %v8409_v23  ;;  %22765 = vst [vmem:[#allocation120_spill] sm:$0xff] %v19722_v29  ;;  %v8410_v23 = vrot.slane %v17400_v6, 1  ;;  %v16974_v6 = vld [vmem:[%s22600_s3 + $0xd0] sm:$0xff]  }
 0x37c   :  { %16079 = vmatmul.mubr.bf16.gmra.mxu1 %v4149_v60  ;;  %v19720_v3 = vpop.f32.mrf.mxu1 }
 0x37d   :  { %22764 = vst [vmem:[#allocation119_spill] sm:$0xff] %v19720_v3  ;;  %16082 = vmatprep.mubr.bf16.mxu1 %v4151_v42  ;;  %16143 = vmatpush3.bf16.msra.mxu1 %v16969_v36  ;;  %v8411_v60 = vsel %vm4140_vm1, %v8408_v16, %v8410_v23  ;;  %v4152_v42 = vrot.slane %v19436_v7, 1  ;;  %v8413_v36 = vsel %vm4140_vm1, %v8410_v23, %v8412_v24  ;;  %v17401_v23 = vld [vmem:[#allocation2 + $0x48] sm:$0xff]  }
 0x37e   :  { %16144 = vmatprep.subr.bf16.mxu1 %v16970_v35  ;;  %v19727_v54 = vpop.f32.mrf.mxu1 }
 0x37f   :  { %22766 = vst [vmem:[#allocation121_spill] sm:$0xff] %v19727_v54  ;;  %v4153_v29 = vsel %vm4140_vm1, %v4150_v15, %v4152_v42  ;;  %v4155_v14 = vsel %vm4140_vm1, %v4152_v42, %v4154_v41  ;;  %v16975_v15 = vld [vmem:[%s22600_s3 + $0xc8] sm:$0xff]   ;;  %v4158_v42 = vrot.slane %v19520_v21, 1 }
 0x380   :  { %v19729_v40 = vpop.f32.mrf.mxu0 }
 0x381   :  { %22767 = vst [vmem:[#allocation122_spill] sm:$0xff] %v19729_v40  ;;  %16145 = vmatpush3.bf16.msra.mxu1 %v16970_v35 }
 0x382   :  { %16559 = vmatmul.mubr.bf16.gmra.mxu0 %v8411_v60  ;;  %v19735_v47 = vpop.f32.mrf.mxu0  ;;  %16146 = vmatprep.subr.bf16.mxu1 %v16973_v8  ;;  %v19741_v40 = vpop.f32.mrf.mxu1  ;;  %v8416_v60 = vrot.slane %v17401_v23, 1 }
 0x383   :  { %22768 = vst [vmem:[#allocation123_spill] sm:$0xff] %v19735_v47  ;;  %16562 = vmatprep.mubr.bf16.mxu0 %v8413_v36  ;;  %22769 = vst [vmem:[#allocation124_spill] sm:$0xff] %v19741_v40  ;;  %v17402_v36 = vld [vmem:[#allocation2 + $0x40] sm:$0xff]  }
 0x384   :  { %16083 = vmatmul.mubr.bf16.gmra.mxu1 %v4153_v29  ;;  %v19744_v7 = vpop.f32.mrf.mxu0  ;;  %v19746_v16 = vpop.f32.mrf.mxu1  ;;  %v8414_v47 = vrot.slane %v17402_v36, 1  ;;  %v16977_v36 = vld [vmem:[%s22600_s3 + $0xc0] sm:$0xff]  }
 0x385   :  { %22770 = vst [vmem:[#allocation125_spill] sm:$0xff] %v19744_v7  ;;  %16086 = vmatprep.mubr.bf16.mxu1 %v4155_v14  ;;  %16147 = vmatpush3.bf16.msra.mxu1 %v16973_v8  ;;  %22771 = vst [vmem:[#allocation126_spill] sm:$0xff] %v19746_v16  ;;  %v4156_v8 = vrot.slane %v19494_v20, 1 }
 0x386   :  { %v19748_v35 = vpop.f32.mrf.mxu0  ;;  %16148 = vmatprep.subr.bf16.mxu1 %v16974_v6  ;;  %v19753_v29 = vpop.f32.mrf.mxu1  ;;  %v8415_v14 = vsel %vm4140_vm1, %v8412_v24, %v8414_v47  ;;  %v8417_v23 = vsel %vm4140_vm1, %v8414_v47, %v8416_v60 }
 0x387   :  { %22772 = vst [vmem:[#allocation127_spill] sm:$0xff] %v19748_v35  ;;  %22773 = vst [vmem:[#allocation128_spill] sm:$0xff] %v19753_v29  ;;  %v4157_v21 = vsel %vm4140_vm1, %v4154_v41, %v4156_v8  ;;  %v4159_v24 = vsel %vm4140_vm1, %v4156_v8, %v4158_v42  ;;  %v4160_v8 = vrot.slane %v19523_v4, 1 }
 0x388   :  { %v19758_v7 = vpop.f32.mrf.mxu1 }
 0x389   :  { %16149 = vmatpush3.bf16.msra.mxu1 %v16974_v6  ;;  %22774 = vst [vmem:[#allocation129_spill] sm:$0xff] %v19758_v7  ;;  %v17404_v7 = vld [vmem:[#allocation2 + $0x50] sm:$0xff]  }
 0x38a   :  { %v19760_v35 = vpop.f32.mrf.mxu0  ;;  %16563 = vmatmul.mubr.bf16.gmra.mxu0 %v8415_v14  ;;  %16150 = vmatprep.subr.bf16.mxu1 %v16975_v15  ;;  %v17403_v14 = vld [vmem:[#allocation2 + $0x58] sm:$0xff]  }
 0x38b   :  { %22775 = vst [vmem:[#allocation130_spill] sm:$0xff] %v19760_v35  ;;  %16566 = vmatprep.mubr.bf16.mxu0 %v8417_v23  ;;  %v19767_v29 = vpop.f32.mrf.mxu1  ;;  %v8420_v35 = vrot.slane %v17403_v14, 1  ;;  %v8418_v23 = vrot.slane %v17404_v7, 1  ;;  %v4161_v7 = vsel %vm4140_vm1, %v4158_v42, %v4160_v8  ;;  %v4166_v42 = vrot.slane %v19548_v59, 1 }
 0x38c   :  { %22776 = vst [vmem:[#allocation131_spill] sm:$0xff] %v19767_v29  ;;  %16087 = vmatmul.mubr.bf16.gmra.mxu1 %v4157_v21  ;;  %v19769_v20 = vpop.f32.mrf.mxu0  ;;  %v4162_v21 = vrot.slane %v19534_v2, 1  ;;  %v16982_v29 = vld [vmem:[#allocation2 + $0x30] sm:$0xff]  }
 0x38d   :  { %22777 = vst [vmem:[#allocation132_spill] sm:$0xff] %v19769_v20  ;;  %16090 = vmatprep.mubr.bf16.mxu1 %v4159_v24  ;;  %16151 = vmatpush3.bf16.msra.mxu1 %v16975_v15  ;;  %v19772_v6 = vpop.f32.mrf.mxu1  ;;  %v8419_v20 = vsel %vm4140_vm1, %v8416_v60, %v8418_v23  ;;  %v8421_v14 = vsel %vm4140_vm1, %v8418_v23, %v8420_v35 }
 0x38e   :  { %22778 = vst [vmem:[#allocation133_spill] sm:$0xff] %v19772_v6  ;;  %v19774_v47 = vpop.f32.mrf.mxu0  ;;  %16152 = vmatprep.subr.bf16.mxu1 %v16977_v36  ;;  %v4163_v2 = vsel %vm4140_vm1, %v4160_v8, %v4162_v21 }
 0x38f   :  { %22779 = vst [vmem:[#allocation134_spill] sm:$0xff] %v19774_v47  ;;  %v19776_v16 = vpop.f32.mrf.mxu1 }
 0x390   :  { %22780 = vst [vmem:[#allocation135_spill] sm:$0xff] %v19776_v16  ;;  %v19778_v41 = vpop.f32.mrf.mxu0 }
 0x391   :  { %22781 = vst [vmem:[#allocation136_spill] sm:$0xff] %v19778_v41  ;;  %16153 = vmatpush3.bf16.msra.mxu1 %v16977_v36  ;;  %v19783_v15 = vpop.f32.mrf.mxu1  ;;  %v17405_v36 = vld [vmem:[#allocation2 + $0x68] sm:$0xff]  }
 0x392   :  { %22782 = vst [vmem:[#allocation137_spill] sm:$0xff] %v19783_v15  ;;  %v19785_v24 = vpop.f32.mrf.mxu0  ;;  %16567 = vmatmul.mubr.bf16.gmra.mxu0 %v8419_v20  ;;  %v17406_v20 = vld [vmem:[#allocation2 + $0x60] sm:$0xff]  }
 0x393   :  { %22783 = vst [vmem:[#allocation138_spill] sm:$0xff] %v19785_v24  ;;  %16570 = vmatprep.mubr.bf16.mxu0 %v8421_v14  ;;  %v19789_v47 = vpop.f32.mrf.mxu1  ;;  %v8424_v24 = vrot.slane %v17405_v36, 1  ;;  %v8422_v15 = vrot.slane %v17406_v20, 1  ;;  %v16952_v36 = vld [vmem:[#allocation2 + $0x78] sm:$0xff]  }
 0x394   :  { %22784 = vst [vmem:[#allocation139_spill] sm:$0xff] %v19789_v47  ;;  %16091 = vmatmul.mubr.bf16.gmra.mxu1 %v4161_v7  ;;  %v19791_v41 = vpop.f32.mrf.mxu0 }
 0x395   :  { %22785 = vst [vmem:[#allocation140_spill] sm:$0xff] %v19791_v41  ;;  %16094 = vmatprep.mubr.bf16.mxu1 %v4163_v2  ;;  %v19794_v4 = vpop.f32.mrf.mxu1  ;;  %v8423_v7 = vsel %vm4140_vm1, %v8420_v35, %v8422_v15  ;;  %v4164_v41 = vrot.slane %v19537_v10, 1 }
 0x396   :  { %22786 = vst [vmem:[#allocation141_spill] sm:$0xff] %v19794_v4  ;;  %v19796_v60 = vpop.f32.mrf.mxu0  ;;  %v16980_v4 = vld [vmem:[#allocation2 + $0x20] sm:$0xff]  }
 0x397   :  { %22787 = vst [vmem:[#allocation142_spill] sm:$0xff] %v19796_v60  ;;  %v19798_v23 = vpop.f32.mrf.mxu1  ;;  %v8425_v60 = vsel %vm4140_vm1, %v8422_v15, %v8424_v24  ;;  %v4165_v20 = vsel %vm4140_vm1, %v4162_v21, %v4164_v41  ;;  %v4167_v59 = vsel %vm4140_vm1, %v4164_v41, %v4166_v42  ;;  %v4168_v21 = vrot.slane %v19551_v56, 1 }
 0x398   :  { %22788 = vst [vmem:[#allocation143_spill] sm:$0xff] %v19798_v23  ;;  %v19800_v14 = vpop.f32.mrf.mxu0 }
 0x399   :  { %22789 = vst [vmem:[#allocation144_spill] sm:$0xff] %v19800_v14  ;;  %v19805_v8 = vpop.f32.mrf.mxu1 }
 0x39a   :  { %22790 = vst [vmem:[#allocation145_spill] sm:$0xff] %v19805_v8  ;;  %v19807_v2 = vpop.f32.mrf.mxu0  ;;  %16571 = vmatmul.mubr.bf16.gmra.mxu0 %v8423_v7  ;;  %v8428_v8 = vrot.slane %v16952_v36, 1 }
 0x39b   :  { %22791 = vst [vmem:[#allocation146_spill] sm:$0xff] %v19807_v2  ;;  %16574 = vmatprep.mubr.bf16.mxu0 %v8425_v60  ;;  %v19811_v23 = vpop.f32.mrf.mxu1  ;;  %v17407_v2 = vld [vmem:[#allocation2 + $0x70] sm:$0xff]  }
 0x39c   :  { %22792 = vst [vmem:[#allocation147_spill] sm:$0xff] %v19811_v23  ;;  %16095 = vmatmul.mubr.bf16.gmra.mxu1 %v4165_v20  ;;  %v19813_v14 = vpop.f32.mrf.mxu0  ;;  %v8426_v7 = vrot.slane %v17407_v2, 1  ;;  %v4170_v20 = vrot.slane %v19562_v43, 1  ;;  %v16953_v23 = vld [vmem:[#allocation2 + $0x80] sm:$0xff]   ;;  %v4169_v2 = vsel %vm4140_vm1, %v4166_v42, %v4168_v21 }
 0x39d   :  { %22793 = vst [vmem:[#allocation148_spill] sm:$0xff] %v19813_v14  ;;  %16098 = vmatprep.mubr.bf16.mxu1 %v4167_v59  ;;  %v19816_v10 = vpop.f32.mrf.mxu1  ;;  %v8430_v43 = vrot.slane %v16953_v23, 1 }
 0x39e   :  { %22794 = vst [vmem:[#allocation149_spill] sm:$0xff] %v19816_v10  ;;  %v19818_v35 = vpop.f32.mrf.mxu0  ;;  %v8427_v14 = vsel %vm4140_vm1, %v8424_v24, %v8426_v7  ;;  %v4171_v56 = vsel %vm4140_vm1, %v4168_v21, %v4170_v20 }
 0x39f   :  { %22795 = vst [vmem:[#allocation150_spill] sm:$0xff] %v19818_v35  ;;  %v19820_v15 = vpop.f32.mrf.mxu1  ;;  %v8429_v35 = vsel %vm4140_vm1, %v8426_v7, %v8428_v8  ;;  %v4172_v7 = vrot.slane %v19565_v33, 1 }
 0x3a0   :  { %22796 = vst [vmem:[#allocation151_spill] sm:$0xff] %v19820_v15  ;;  %v19822_v60 = vpop.f32.mrf.mxu0 }
 0x3a1   :  { %22797 = vst [vmem:[#allocation152_spill] sm:$0xff] %v19822_v60  ;;  %v19827_v41 = vpop.f32.mrf.mxu1 }
 0x3a2   :  { %22798 = vst [vmem:[#allocation153_spill] sm:$0xff] %v19827_v41  ;;  %v19829_v59 = vpop.f32.mrf.mxu0  ;;  %16575 = vmatmul.mubr.bf16.gmra.mxu0 %v8427_v14  ;;  %v8432_v14 = vrot.slane %v19302_v11, 1  ;;  %v4173_v11 = vsel %vm4140_vm1, %v4170_v20, %v4172_v7  ;;  %v4178_v20 = vrot.slane %v19590_v34, 1 }
 0x3a3   :  { %22799 = vst [vmem:[#allocation154_spill] sm:$0xff] %v19829_v59  ;;  %16578 = vmatprep.mubr.bf16.mxu0 %v8429_v35  ;;  %v19833_v36 = vpop.f32.mrf.mxu1 }
 0x3a4   :  { %22800 = vst [vmem:[#allocation155_spill] sm:$0xff] %v19833_v36  ;;  %16099 = vmatmul.mubr.bf16.gmra.mxu1 %v4169_v2  ;;  %v19835_v60 = vpop.f32.mrf.mxu0  ;;  %v4174_v2 = vrot.slane %v19576_v22, 1  ;;  %v8433_v23 = vsel %vm4140_vm1, %v8430_v43, %v8432_v14 }
 0x3a5   :  { %22801 = vst [vmem:[#allocation156_spill] sm:$0xff] %v19835_v60  ;;  %16102 = vmatprep.mubr.bf16.mxu1 %v4171_v56  ;;  %v19838_v24 = vpop.f32.mrf.mxu1  ;;  %v8431_v60 = vsel %vm4140_vm1, %v8428_v8, %v8430_v43 }
 0x3a6   :  { %22802 = vst [vmem:[#allocation157_spill] sm:$0xff] %v19838_v24  ;;  %v19840_v41 = vpop.f32.mrf.mxu0  ;;  %v17414_v24 = vld [vmem:[#allocation2 + $0xf8] sm:$0xff]  }
 0x3a7   :  { %22803 = vst [vmem:[#allocation158_spill] sm:$0xff] %v19840_v41  ;;  %v19844_v35 = vpop.f32.mrf.mxu1 }
 0x3a8   :  { %22804 = vst [vmem:[#allocation159_spill] sm:$0xff] %v19844_v35  ;;  %v19846_v42 = vpop.f32.mrf.mxu0  ;;  %v17413_v35 = vld [vmem:[#allocation2 + $0xf0] sm:$0xff]  }
 0x3a9   :  { %22805 = vst [vmem:[#allocation160_spill] sm:$0xff] %v19846_v42  ;;  %v19850_v59 = vpop.f32.mrf.mxu1  ;;  %v4175_v42 = vsel %vm4140_vm1, %v4172_v7, %v4174_v2 }
 0x3aa   :  { %22806 = vst [vmem:[#allocation161_spill] sm:$0xff] %v19850_v59  ;;  %v19852_v21 = vpop.f32.mrf.mxu0  ;;  %16579 = vmatmul.mubr.bf16.gmra.mxu0 %v8431_v60  ;;  %v8434_v60 = vrot.slane %v19314_v17, 1 }
 0x3ab   :  { %22807 = vst [vmem:[#allocation162_spill] sm:$0xff] %v19852_v21  ;;  %16582 = vmatprep.mubr.bf16.mxu0 %v8433_v23  ;;  %v19856_v56 = vpop.f32.mrf.mxu1  ;;  %v8436_v21 = vrot.slane %v19323_v44, 1 }
 0x3ac   :  { %22808 = vst [vmem:[#allocation163_spill] sm:$0xff] %v19856_v56  ;;  %16103 = vmatmul.mubr.bf16.gmra.mxu1 %v4173_v11  ;;  %v19858_v33 = vpop.f32.mrf.mxu0  ;;  %v8435_v23 = vsel %vm4140_vm1, %v8432_v14, %v8434_v60  ;;  %v4176_v11 = vrot.slane %v19579_v51, 1  ;;  %v8440_v51 = vrot.slane %v19347_v37, 1  ;;  %v17412_v56 = vld [vmem:[#allocation2 + $0xe0] sm:$0xff]  }
 0x3ad   :  { %22809 = vst [vmem:[#allocation164_spill] sm:$0xff] %v19858_v33  ;;  %16106 = vmatprep.mubr.bf16.mxu1 %v4175_v42  ;;  %v19861_v22 = vpop.f32.mrf.mxu1  ;;  %v8437_v42 = vsel %vm4140_vm1, %v8434_v60, %v8436_v21  ;;  %v4182_v60 = vrot.slane %v19610_v32, 1  ;;  %v19904_v32 = vld [vmem:[%s22600_s3 + $0x178] sm:$0xff]   ;;  %v4196_v59 = vrot.slane %v17412_v56, 1 }
 0x3ae   :  { %22810 = vst [vmem:[#allocation165_spill] sm:$0xff] %v19861_v22  ;;  %v19863_v8 = vpop.f32.mrf.mxu0  ;;  %v4177_v44 = vsel %vm4140_vm1, %v4174_v2, %v4176_v11  ;;  %v4179_v17 = vsel %vm4140_vm1, %v4176_v11, %v4178_v20  ;;  %16298 = vmatprep.subr.bf16.mxu1 %v19904_v32 }
 0x3af   :  { %22811 = vst [vmem:[#allocation166_spill] sm:$0xff] %v19863_v8  ;;  %v19867_v43 = vpop.f32.mrf.mxu1 }
 0x3b0   :  { %22812 = vst [vmem:[#allocation167_spill] sm:$0xff] %v19867_v43  ;;  %v19872_v33 = vpop.f32.mrf.mxu0  ;;  %v17410_v43 = vld [vmem:[#allocation2 + $0xd0] sm:$0xff]  }
 0x3b1   :  { %22813 = vst [vmem:[#allocation168_spill] sm:$0xff] %v19872_v33  ;;  %v19874_v7 = vpop.f32.mrf.mxu1  ;;  %v8438_v33 = vrot.slane %v19339_v38, 1  ;;  %v4192_v22 = vrot.slane %v17410_v43, 1  ;;  %v8456_v43 = vrot.slane %v19439_v31, 1 }
 0x3b2   :  { %22814 = vst [vmem:[#allocation169_spill] sm:$0xff] %v19874_v7  ;;  %16583 = vmatmul.mubr.bf16.gmra.mxu0 %v8435_v23  ;;  %v19881_v34 = vpop.f32.mrf.mxu0  ;;  %v4188_v7 = vrot.slane %v19627_v19, 1  ;;  %v8452_v19 = vrot.slane %v19415_v18, 1 }
 0x3b3   :  { %16586 = vmatprep.mubr.bf16.mxu0 %v8437_v42  ;;  %v19878_v8 = vpop.f32.mrf.mxu1  ;;  %22815 = vst [vmem:[#allocation170_spill] sm:$0xff] %v19881_v34  ;;  %v8439_v2 = vsel %vm4140_vm1, %v8436_v21, %v8438_v33  ;;  %v4180_v42 = vrot.slane %v19593_v53, 1 }
 0x3b4   :  { %16107 = vmatmul.mubr.bf16.gmra.mxu1 %v4177_v44  ;;  %v19892_v44 = vpop.f32.mrf.mxu0 }
 0x3b5   :  { %16110 = vmatprep.mubr.bf16.mxu1 %v4179_v17  ;;  %v19883_v14 = vpop.f32.mrf.mxu1  ;;  %22816 = vst [vmem:[#allocation171_spill] sm:$0xff] %v19892_v44  ;;  %v8441_v17 = vsel %vm4140_vm1, %v8438_v33, %v8440_v51  ;;  %v4181_v37 = vsel %vm4140_vm1, %v4178_v20, %v4180_v42  ;;  %v4183_v38 = vsel %vm4140_vm1, %v4180_v42, %v4182_v60  ;;  %v8444_v33 = vrot.slane %v19385_v25, 1 }
 0x3b6   :  { %v19906_v53 = vpop.f32.mrf.mxu0  ;;  %v4186_v42 = vrot.slane %v19624_v48, 1 }
 0x3b7   :  { %v19887_v23 = vpop.f32.mrf.mxu1  ;;  %22817 = vst [vmem:[#allocation172_spill] sm:$0xff] %v19906_v53 }
 0x3b9   :  { %v19894_v11 = vpop.f32.mrf.mxu1 }
 0x3ba   :  { %16587 = vmatmul.mubr.bf16.gmra.mxu0 %v8439_v2  ;;  %v8442_v2 = vrot.slane %v19369_v50, 1 }
 0x3bb   :  { %16590 = vmatprep.mubr.bf16.mxu0 %v8441_v17 }
 0x3bc   :  { %v19898_v34 = vpop.f32.mrf.mxu1  ;;  %16111 = vmatmul.mubr.bf16.gmra.mxu1 %v4181_v37  ;;  %v8443_v17 = vsel %vm4140_vm1, %v8440_v51, %v8442_v2  ;;  %v4184_v37 = vrot.slane %v19613_v61, 1  ;;  %v8445_v53 = vsel %vm4140_vm1, %v8442_v2, %v8444_v33  ;;  %v8448_v61 = vrot.slane %v19395_v63, 1  ;;  %v17408_v2 = vld [vmem:[#allocation2 + $0xc8] sm:$0xff]  }
 0x3bd   :  { %16114 = vmatprep.mubr.bf16.mxu1 %v4183_v38  ;;  %v19918_v38 = vpop.f32.mrf.mxu0  ;;  %v4189_v63 = vsel %vm4140_vm1, %v4186_v42, %v4188_v7 }
 0x3be   :  { %v19908_v21 = vpop.f32.mrf.mxu1  ;;  %22818 = vst [vmem:[#allocation173_spill] sm:$0xff] %v19918_v38  ;;  %v4185_v50 = vsel %vm4140_vm1, %v4182_v60, %v4184_v37  ;;  %v4187_v41 = vsel %vm4140_vm1, %v4184_v37, %v4186_v42  ;;  %v8446_v38 = vrot.slane %v19393_v57, 1 }
 0x3bf   :  { %v19927_v48 = vpop.f32.mrf.mxu0 }
 0x3c0   :  { %v19913_v20 = vpop.f32.mrf.mxu1  ;;  %22819 = vst [vmem:[#allocation174_spill] sm:$0xff] %v19927_v48  ;;  %v8447_v60 = vsel %vm4140_vm1, %v8444_v33, %v8446_v38 }
 0x3c2   :  { %v19920_v44 = vpop.f32.mrf.mxu1  ;;  %16591 = vmatmul.mubr.bf16.gmra.mxu0 %v8443_v17 }
 0x3c3   :  { %16594 = vmatprep.mubr.bf16.mxu0 %v8445_v53  ;;  %v4190_v53 = vrot.slane %v17408_v2, 1 }
 0x3c4   :  { %v19924_v25 = vpop.f32.mrf.mxu1  ;;  %16115 = vmatmul.mubr.bf16.gmra.mxu1 %v4185_v50  ;;  %v19937_v50 = vpop.f32.mrf.mxu0 }
 0x3c5   :  { %16118 = vmatprep.mubr.bf16.mxu1 %v4187_v41  ;;  %22820 = vst [vmem:[#allocation175_spill] sm:$0xff] %v19937_v50  ;;  %v8449_v41 = vsel %vm4140_vm1, %v8446_v38, %v8448_v61  ;;  %v4191_v57 = vsel %vm4140_vm1, %v4188_v7, %v4190_v53  ;;  %v8450_v50 = vrot.slane %v19409_v52, 1  ;;  %v17409_v38 = vld [vmem:[#allocation2 + $0xd8] sm:$0xff]   ;;  %v4193_v18 = vsel %vm4140_vm1, %v4190_v53, %v4192_v22 }
 0x3c6   :  { %v19929_v51 = vpop.f32.mrf.mxu1  ;;  %v19946_v2 = vpop.f32.mrf.mxu0 }
 0x3c7   :  { %22821 = vst [vmem:[#allocation176_spill] sm:$0xff] %v19946_v2  ;;  %v8451_v42 = vsel %vm4140_vm1, %v8448_v61, %v8450_v50 }
 0x3c8   :  { %v19933_v17 = vpop.f32.mrf.mxu1 }
 0x3ca   :  { %v19939_v37 = vpop.f32.mrf.mxu1  ;;  %16595 = vmatmul.mubr.bf16.gmra.mxu0 %v8447_v60 }
 0x3cb   :  { %16598 = vmatprep.mubr.bf16.mxu0 %v8449_v41  ;;  %v4194_v41 = vrot.slane %v17409_v38, 1 }
 0x3cc   :  { %v19943_v48 = vpop.f32.mrf.mxu1  ;;  %16119 = vmatmul.mubr.bf16.gmra.mxu1 %v4189_v63  ;;  %v19955_v63 = vpop.f32.mrf.mxu0 }
 0x3cd   :  { %16122 = vmatprep.mubr.bf16.mxu1 %v4191_v57  ;;  %22822 = vst [vmem:[#allocation177_spill] sm:$0xff] %v19955_v63  ;;  %v8453_v57 = vsel %vm4140_vm1, %v8450_v50, %v8452_v19  ;;  %v4195_v52 = vsel %vm4140_vm1, %v4192_v22, %v4194_v41  ;;  %v8454_v63 = vrot.slane %v19428_v45, 1  ;;  %v17411_v50 = vld [vmem:[#allocation2 + $0xe8] sm:$0xff]   ;;  %v4197_v45 = vsel %vm4140_vm1, %v4194_v41, %v4196_v59 }
 0x3ce   :  { %v19948_v33 = vpop.f32.mrf.mxu1  ;;  %v19964_v38 = vpop.f32.mrf.mxu0  ;;  %v4202_v41 = vrot.slane %v17414_v24, 1  ;;  %v17415_v24 = vld [vmem:[#allocation2 + $0x100] ss:$0 sps:$4 sm:$0x11]  }
 0x3cf   :  { %22823 = vst [vmem:[#allocation178_spill] sm:$0xff] %v19964_v38  ;;  %v8455_v53 = vsel %vm4140_vm1, %v8452_v19, %v8454_v63  ;;  %v19978_v38 = vld [vmem:[#allocation2 + $0xf8] sm:$0xff]  }
 0x3d0   :  { %v19952_v60 = vpop.f32.mrf.mxu1  ;;  %22825 = vst [vmem:[#allocation180_spill] sm:$0xff] %v19978_v38 }
 0x3d2   :  { %v19957_v7 = vpop.f32.mrf.mxu1  ;;  %16599 = vmatmul.mubr.bf16.gmra.mxu0 %v8451_v42 }
 0x3d3   :  { %16602 = vmatprep.mubr.bf16.mxu0 %v8453_v57  ;;  %v4198_v57 = vrot.slane %v17411_v50, 1 }
 0x3d4   :  { %v19961_v2 = vpop.f32.mrf.mxu1  ;;  %16123 = vmatmul.mubr.bf16.gmra.mxu1 %v4193_v18  ;;  %v19973_v18 = vpop.f32.mrf.mxu0 }
 0x3d5   :  { %16126 = vmatprep.mubr.bf16.mxu1 %v4195_v52  ;;  %22824 = vst [vmem:[#allocation179_spill] sm:$0xff] %v19973_v18  ;;  %v8457_v52 = vsel %vm4140_vm1, %v8454_v63, %v8456_v43  ;;  %v4199_v50 = vsel %vm4140_vm1, %v4196_v59, %v4198_v57  ;;  %v8458_v18 = vrot.slane %v19454_v28, 1 }
 0x3d6   :  { %v19966_v61 = vpop.f32.mrf.mxu1  ;;  %v19984_v19 = vpop.f32.mrf.mxu0 }
 0x3d7   :  { %22826 = vst [vmem:[#allocation181_spill] sm:$0xff] %v19984_v19  ;;  %v8459_v36 = vsel %vm4140_vm1, %v8456_v43, %v8458_v18  ;;  %v4204_v43 = vrot.slane %v17415_v24, 1  ;;  %v17002_v24 = vld [vmem:[%s22600_s3 + $0x170] sm:$0xff]  }
 0x3d8   :  { %v19970_v42 = vpop.f32.mrf.mxu1 }
 0x3da   :  { %v19975_v22 = vpop.f32.mrf.mxu1  ;;  %16603 = vmatmul.mubr.bf16.gmra.mxu0 %v8455_v53  ;;  %v22623_v53 = vrot.slane %v19978_v38, 1 }
 0x3db   :  { %16606 = vmatprep.mubr.bf16.mxu0 %v8457_v52  ;;  %v4200_v52 = vrot.slane %v17413_v35, 1 }
 0x3dc   :  { %v19981_v31 = vpop.f32.mrf.mxu1  ;;  %16127 = vmatmul.mubr.bf16.gmra.mxu1 %v4197_v45  ;;  %v19993_v45 = vpop.f32.mrf.mxu0 }
 0x3dd   :  { %16130 = vmatprep.mubr.bf16.mxu1 %v4199_v50  ;;  %22827 = vst [vmem:[#allocation182_spill] sm:$0xff] %v19993_v45  ;;  %v8461_v50 = vsel %vm4140_vm1, %v8458_v18, %v22623_v53  ;;  %v4201_v28 = vsel %vm4140_vm1, %v4198_v57, %v4200_v52  ;;  %v4203_v35 = vsel %vm4140_vm1, %v4200_v52, %v4202_v41  ;;  %v16976_v18 = vld [vmem:[#allocation2 + $0x8] sm:$0xff]   ;;  %v16979_v53 = vld [vmem:[#allocation2 + $0x18] sm:$0xff]  }
 0x3de   :  { %v19986_v56 = vpop.f32.mrf.mxu1 }
 0x3e0   :  { %v19990_v63 = vpop.f32.mrf.mxu1 }
 0x3e2   :  { %v19995_v59 = vpop.f32.mrf.mxu1  ;;  %16607 = vmatmul.mubr.bf16.gmra.mxu0 %v8459_v36  ;;  %v4205_v36 = vsel %vm4140_vm1, %v4202_v41, %v4204_v43 }
 0x3e3   :  { %16610 = vmatprep.mubr.bf16.mxu0 %v8461_v50 }
 0x3e4   :  { %v20001_v19 = vpop.f32.mrf.mxu1  ;;  %16131 = vmatmul.mubr.bf16.gmra.mxu1 %v4201_v28 }
 0x3e5   :  { %16134 = vmatprep.mubr.bf16.mxu1 %v4203_v35  ;;  %v16978_v35 = vld [vmem:[#allocation2 + $0x10] sm:$0xff]  }
 0x3e6   :  { %v20004_v15 = vpop.f32.mrf.mxu1 }
 0x3e8   :  { %v20006_v45 = vpop.f32.mrf.mxu1 }
 0x3ea   :  { %v20009_v38 = vpop.f32.mrf.mxu1 }
 0x3ec   :  { %v20011_v50 = vpop.f32.mrf.mxu1  ;;  %16135 = vmatmul.mubr.bf16.gmra.mxu1 %v4205_v36  ;;  %v17007_v36 = vld [vmem:[%s22600_s3 + $0x168] sm:$0xff]  }
 0x3ed   :  { %16154 = vmatprep.mubr.bf16.mxu1 %v16976_v18 }
 0x3ee   :  { %v20013_v57 = vpop.f32.mrf.mxu1 }
 0x3f0   :  { %v20015_v28 = vpop.f32.mrf.mxu1 }
 0x3f2   :  { %v20017_v52 = vpop.f32.mrf.mxu1 }
 0x3f4   :  { %v20022_v41 = vpop.f32.mrf.mxu1  ;;  %16155 = vmatmul.mubr.bf16.vlgmr.msra.gmra.mxu1 %v16978_v35  ;;  %v16981_v35 = vld [vmem:[#allocation2 + $0x28] sm:$0xff]  }
 0x3f5   :  { %16158 = vmatprep.mubr.bf16.mxu1 %v16979_v53  ;;  %16299 = vmatpush3.bf16.msra.mxu1 %v19904_v32  ;;  %v17009_v53 = vld [vmem:[%s22600_s3 + $0x160] sm:$0xff]  }
 0x3f6   :  { %v20025_v43 = vpop.f32.mrf.mxu1  ;;  %16300 = vmatprep.subr.bf16.mxu1 %v17002_v24 }
 0x3f8   :  { %v20030_v18 = vpop.f32.mrf.mxu1 }
 0x3f9   :  { %16301 = vmatpush3.bf16.msra.mxu1 %v17002_v24  ;;  %v17011_v24 = vld [vmem:[%s22600_s3 + $0x158] sm:$0xff]  }
 0x3fa   :  { %v20032_v10 = vpop.f32.mrf.mxu1  ;;  %16302 = vmatprep.subr.bf16.mxu1 %v17007_v36 }
 0x3fc   :  { %v20037_v32 = vpop.f32.mrf.mxu1  ;;  %16159 = vmatmul.mubr.bf16.gmra.mxu1 %v16980_v4  ;;  %v17012_v4 = vld [vmem:[%s22600_s3 + $0x150] sm:$0xff]  }
 0x3fd   :  { %16162 = vmatprep.mubr.bf16.mxu1 %v16981_v35  ;;  %16303 = vmatpush3.bf16.msra.mxu1 %v17007_v36  ;;  %v16983_v35 = vld [vmem:[#allocation2 + $0x38] sm:$0xff]  }
 0x3fe   :  { %v20039_v47 = vpop.f32.mrf.mxu1  ;;  %16304 = vmatprep.subr.bf16.mxu1 %v17009_v53 }
 0x3ff   :  { %22828 = vst [vmem:[#allocation183_spill] sm:$0xff] %v20039_v47 }
 0x400   :  { %v20044_v16 = vpop.f32.mrf.mxu1 }
 0x401   :  { %22829 = vst [vmem:[#allocation184_spill] sm:$0xff] %v20044_v16  ;;  %16305 = vmatpush3.bf16.msra.mxu1 %v17009_v53  ;;  %v17015_v53 = vld [vmem:[%s22600_s3 + $0x148] sm:$0xff]   ;;  %v16984_v16 = vld [vmem:[#allocation2 + $0x40] sm:$0xff]  }
 0x402   :  { %v20046_v6 = vpop.f32.mrf.mxu1  ;;  %16306 = vmatprep.subr.bf16.mxu1 %v17011_v24 }
 0x403   :  { %22830 = vst [vmem:[#allocation185_spill] sm:$0xff] %v20046_v6 }
 0x404   :  { %v20051_v36 = vpop.f32.mrf.mxu1  ;;  %16163 = vmatmul.mubr.bf16.gmra.mxu1 %v16982_v29  ;;  %v17017_v29 = vld [vmem:[%s22600_s3 + $0x140] sm:$0xff]  }
 0x405   :  { %22831 = vst [vmem:[#allocation186_spill] sm:$0xff] %v20051_v36  ;;  %16166 = vmatprep.mubr.bf16.mxu1 %v16983_v35  ;;  %16307 = vmatpush3.bf16.msra.mxu1 %v17011_v24  ;;  %v16985_v35 = vld [vmem:[#allocation2 + $0x48] sm:$0xff]  }
 0x406   :  { %v20053_v40 = vpop.f32.mrf.mxu1  ;;  %16308 = vmatprep.subr.bf16.mxu1 %v17012_v4 }
 0x407   :  { %22832 = vst [vmem:[#allocation187_spill] sm:$0xff] %v20053_v40 }
 0x408   :  { %v20058_v6 = vpop.f32.mrf.mxu1 }
 0x409   :  { %22833 = vst [vmem:[#allocation188_spill] sm:$0xff] %v20058_v6  ;;  %16309 = vmatpush3.bf16.msra.mxu1 %v17012_v4  ;;  %v16987_v6 = vld [vmem:[#allocation2 + $0x58] sm:$0xff]  }
 0x40a   :  { %v20060_v54 = vpop.f32.mrf.mxu1  ;;  %16310 = vmatprep.subr.bf16.mxu1 %v17015_v53 }
 0x40b   :  { %22834 = vst [vmem:[#allocation189_spill] sm:$0xff] %v20060_v54  ;;  %v16986_v54 = vld [vmem:[#allocation2 + $0x50] sm:$0xff]  }
 0x40c   :  { %v20065_v24 = vpop.f32.mrf.mxu1  ;;  %16167 = vmatmul.mubr.bf16.gmra.mxu1 %v16984_v16 }
 0x40d   :  { %22835 = vst [vmem:[#allocation190_spill] sm:$0xff] %v20065_v24  ;;  %16170 = vmatprep.mubr.bf16.mxu1 %v16985_v35  ;;  %16311 = vmatpush3.bf16.msra.mxu1 %v17015_v53  ;;  %v16988_v53 = vld [vmem:[#allocation2 + $0x60] sm:$0xff]   ;;  %v16989_v35 = vld [vmem:[#allocation2 + $0x68] sm:$0xff]  }
 0x40e   :  { %v20067_v40 = vpop.f32.mrf.mxu1  ;;  %16312 = vmatprep.subr.bf16.mxu1 %v17017_v29 }
 0x40f   :  { %22836 = vst [vmem:[#allocation191_spill] sm:$0xff] %v20067_v40 }
 0x410   :  { %v20069_v36 = vpop.f32.mrf.mxu1 }
 0x411   :  { %22837 = vst [vmem:[#allocation192_spill] sm:$0xff] %v20069_v36  ;;  %16313 = vmatpush3.bf16.msra.mxu1 %v17017_v29  ;;  %v16991_v36 = vld [vmem:[#allocation2 + $0x78] sm:$0xff]  }
 0x412   :  { %v20071_v4 = vpop.f32.mrf.mxu1 }
 0x413   :  { %22838 = vst [vmem:[#allocation193_spill] sm:$0xff] %v20071_v4 }
 0x414   :  { %v20073_v3 = vpop.f32.mrf.mxu1  ;;  %16171 = vmatmul.mubr.bf16.gmra.mxu1 %v16986_v54  ;;  %v16990_v54 = vld [vmem:[#allocation2 + $0x70] sm:$0xff]  }
 0x415   :  { %22839 = vst [vmem:[#allocation194_spill] sm:$0xff] %v20073_v3  ;;  %16174 = vmatprep.mubr.bf16.mxu1 %v16987_v6 }
 0x416   :  { %v20075_v47 = vpop.f32.mrf.mxu1 }
 0x417   :  { %22840 = vst [vmem:[#allocation195_spill] sm:$0xff] %v20075_v47 }
 0x418   :  { %v20077_v24 = vpop.f32.mrf.mxu1 }
 0x419   :  { %22841 = vst [vmem:[#allocation196_spill] sm:$0xff] %v20077_v24 }
 0x41a   :  { %v20079_v16 = vpop.f32.mrf.mxu1 }
 0x41b   :  { %22842 = vst [vmem:[#allocation197_spill] sm:$0xff] %v20079_v16 }
 0x41c   :  { %v20081_v40 = vpop.f32.mrf.mxu1  ;;  %16175 = vmatmul.mubr.bf16.gmra.mxu1 %v16988_v53  ;;  %v16992_v53 = vld [vmem:[#allocation2 + $0x80] sm:$0xff]  }
 0x41d   :  { %22843 = vst [vmem:[#allocation198_spill] sm:$0xff] %v20081_v40  ;;  %16178 = vmatprep.mubr.bf16.mxu1 %v16989_v35  ;;  %v16993_v35 = vld [vmem:[#allocation2 + $0x88] sm:$0xff]  }
 0x41e   :  { %v20083_v29 = vpop.f32.mrf.mxu1 }
 0x41f   :  { %22844 = vst [vmem:[#allocation199_spill] sm:$0xff] %v20083_v29 }
 0x420   :  { %v20085_v4 = vpop.f32.mrf.mxu1 }
 0x421   :  { %22845 = vst [vmem:[#allocation200_spill] sm:$0xff] %v20085_v4 }
 0x422   :  { %v20087_v3 = vpop.f32.mrf.mxu1 }
 0x423   :  { %22846 = vst [vmem:[#allocation201_spill] sm:$0xff] %v20087_v3 }
 0x424   :  { %v20089_v6 = vpop.f32.mrf.mxu1  ;;  %16179 = vmatmul.mubr.bf16.gmra.mxu1 %v16990_v54  ;;  %v16994_v54 = vld [vmem:[#allocation2 + $0x90] sm:$0xff]  }
 0x425   :  { %22847 = vst [vmem:[#allocation202_spill] sm:$0xff] %v20089_v6  ;;  %16182 = vmatprep.mubr.bf16.mxu1 %v16991_v36  ;;  %v3873_v36 = vadd.f32 %v19878_v8, %v19276_v12 }
 0x426   :  { %v20091_v24 = vpop.f32.mrf.mxu1 }
 0x427   :  { %22848 = vst [vmem:[#allocation203_spill] sm:$0xff] %v20091_v24  ;;  %v16995_v24 = vld [vmem:[#allocation2 + $0x98] sm:$0xff]  }
 0x428   :  { %v20093_v16 = vpop.f32.mrf.mxu1 }
 0x429   :  { %22849 = vst [vmem:[#allocation204_spill] sm:$0xff] %v20093_v16 }
 0x42a   :  { %v20095_v47 = vpop.f32.mrf.mxu1 }
 0x42b   :  { %22850 = vst [vmem:[#allocation205_spill] sm:$0xff] %v20095_v47  ;;  %v3865_v47 = vadd.f32 %v19883_v14, %v19309_v58  ;;  %v3889_v58 = vadd.f32 %v19898_v34, %v19402_v9  ;;  %v3892_v9 = vadd.f32 %v19913_v20, %v19470_v46  ;;  %v22855_v46 = vld [vmem:[#allocation68_spill] sm:$0xff] }
 0x42c   :  { %v20097_v40 = vpop.f32.mrf.mxu1  ;;  %16183 = vmatmul.mubr.bf16.gmra.mxu1 %v16992_v53  ;;  %v3897_v20 = vadd.f32 %v19929_v51, %v22855_v46 }
 0x42d   :  { %16186 = vmatprep.mubr.bf16.mxu1 %v16993_v35  ;;  %v3876_v35 = vadd.f32 %v19887_v23, %v19345_v27  ;;  %v3881_v27 = vadd.f32 %v19908_v21, %v19445_v49  ;;  %v3884_v49 = vadd.f32 %v19920_v44, %v19502_v39  ;;  %v22856_v39 = vld [vmem:[#allocation70_spill] sm:$0xff] }
 0x42e   :  { %v20099_v4 = vpop.f32.mrf.mxu1  ;;  %v3908_v44 = vadd.f32 %v19933_v17, %v22856_v39 }
 0x42f   :  { %22851 = vst [vmem:[#allocation206_spill] sm:$0xff] %v20099_v4  ;;  %v3868_v4 = vadd.f32 %v19894_v11, %v19375_v26  ;;  %v20130_v26 = vld [vmem:[%s22600_s3 + $0x1f8] sm:$0xff]  }
 0x430   :  { %v20101_v3 = vpop.f32.mrf.mxu1  ;;  %16458 = vmatprep.subr.bf16.mxu1 %v20130_v26 }
 0x431   :  { %22852 = vst [vmem:[#allocation207_spill] sm:$0xff] %v20101_v3 }
 0x432   :  { %v20103_v29 = vpop.f32.mrf.mxu1 }
 0x433   :  { %22853 = vst [vmem:[#allocation208_spill] sm:$0xff] %v20103_v29 }
 0x434   :  { %v16076_v16 = vpop.f32.mrf.mxu1  ;;  %16187 = vmatmul.mubr.bf16.gmra.mxu1 %v16994_v54  ;;  %v16996_v54 = vld [vmem:[#allocation2 + $0xa0] sm:$0xff]  }
 0x435   :  { %v20109_v6 = vadd.f32 %v16076_v16, %v3873_v36  ;;  %16190 = vmatprep.mubr.bf16.mxu1 %v16995_v24  ;;  %v16998_v24 = vld [vmem:[#allocation2 + $0xa8] sm:$0xff]   ;;  %v22854_v36 = vld [vmem:[#allocation66_spill] sm:$0xff] }
 0x436   :  { %v4320_v53 = vpop.f32.mrf.mxu1 }
 0x437   :  { %v20113_v3 = vadd.f32 %v4320_v53, %v3865_v47  ;;  %v3905_v53 = vadd.f32 %v19924_v25, %v22854_v36  ;;  %v17003_v36 = vld [vmem:[#allocation2 + $0xc8] sm:$0xff]  }
 0x438   :  { %v16077_v29 = vpop.f32.mrf.mxu1 }
 0x439   :  { %v20117_v12 = vadd.f32 %v16077_v29, %v3876_v35  ;;  %v16999_v29 = vld [vmem:[#allocation2 + $0xb0] sm:$0xff]  }
 0x43a   :  { %v4323_v8 = vpop.f32.mrf.mxu1 }
 0x43b   :  { %v20121_v14 = vadd.f32 %v4323_v8, %v3868_v4  ;;  %v17000_v8 = vld [vmem:[#allocation2 + $0xb8] sm:$0xff]  }
 0x43c   :  { %v16080_v16 = vpop.f32.mrf.mxu1  ;;  %16191 = vmatmul.mubr.bf16.gmra.mxu1 %v16996_v54 }
 0x43d   :  { %v20125_v47 = vadd.f32 %v16080_v16, %v3889_v58  ;;  %16194 = vmatprep.mubr.bf16.mxu1 %v16998_v24 }
 0x43e   :  { %v4336_v23 = vpop.f32.mrf.mxu1 }
 0x43f   :  { %v20134_v34 = vadd.f32 %v4336_v23, %v3881_v27  ;;  %v22857_v23 = vld [vmem:[#allocation72_spill] sm:$0xff] }
 0x440   :  { %v16081_v11 = vpop.f32.mrf.mxu1  ;;  %v3900_v25 = vadd.f32 %v19939_v37, %v22857_v23  ;;  %v22860_v37 = vld [vmem:[#allocation78_spill] sm:$0xff] }
 0x441   :  { %v20139_v21 = vadd.f32 %v16081_v11, %v3892_v9 }
 0x442   :  { %v4339_v4 = vpop.f32.mrf.mxu1 }
 0x443   :  { %v20143_v35 = vadd.f32 %v4339_v4, %v3884_v49  ;;  %v17001_v49 = vld [vmem:[#allocation2 + $0xc0] sm:$0xff]  }
 0x444   :  { %v16084_v54 = vpop.f32.mrf.mxu1  ;;  %16195 = vmatmul.mubr.bf16.gmra.mxu1 %v16999_v29  ;;  %v22858_v4 = vld [vmem:[#allocation74_spill] sm:$0xff] }
 0x445   :  { %v20147_v58 = vadd.f32 %v16084_v54, %v3905_v53  ;;  %16198 = vmatprep.mubr.bf16.mxu1 %v17000_v8  ;;  %v3921_v51 = vadd.f32 %v19943_v48, %v22858_v4  ;;  %v22859_v8 = vld [vmem:[#allocation76_spill] sm:$0xff]  ;;  %v17005_v4 = vld [vmem:[#allocation2 + $0xd8] sm:$0xff]  }
 0x446   :  { %v4352_v24 = vpop.f32.mrf.mxu1  ;;  %v3913_v17 = vadd.f32 %v19948_v33, %v22859_v8 }
 0x447   :  { %v20151_v16 = vadd.f32 %v4352_v24, %v3897_v20  ;;  %v3924_v20 = vadd.f32 %v19952_v60, %v22860_v37 }
 0x448   :  { %v16085_v27 = vpop.f32.mrf.mxu1 }
 0x449   :  { %v20155_v9 = vadd.f32 %v16085_v27, %v3908_v44  ;;  %v22861_v44 = vld [vmem:[#allocation80_spill] sm:$0xff] }
 0x44a   :  { %v4355_v11 = vpop.f32.mrf.mxu1  ;;  %v3916_v48 = vadd.f32 %v19957_v7, %v22861_v44  ;;  %v22864_v7 = vld [vmem:[#allocation86_spill] sm:$0xff]  ;;  %v20189_v44 = vpop.f32.mrf.mxu0 }
 0x44b   :  { %v20159_v29 = vadd.f32 %v4355_v11, %v3900_v25  ;;  %v17004_v25 = vld [vmem:[#allocation2 + $0xd0] sm:$0xff]   ;;  %v22862_v11 = vld [vmem:[#allocation82_spill] sm:$0xff]  ;;  %22866 = vst [vmem:[#allocation66_spill] sm:$0xff] %v20189_v44 }
 0x44c   :  { %v16088_v53 = vpop.f32.mrf.mxu1  ;;  %16199 = vmatmul.mubr.bf16.gmra.mxu1 %v17001_v49  ;;  %v3937_v33 = vadd.f32 %v19961_v2, %v22862_v11 }
 0x44d   :  { %v20163_v54 = vadd.f32 %v16088_v53, %v3921_v51  ;;  %16202 = vmatprep.mubr.bf16.mxu1 %v17003_v36  ;;  %v22863_v36 = vld [vmem:[#allocation84_spill] sm:$0xff] }
 0x44e   :  { %v4368_v46 = vpop.f32.mrf.mxu1  ;;  %v3929_v60 = vadd.f32 %v19966_v61, %v22863_v36  ;;  %v22867_v61 = vld [vmem:[#allocation90_spill] sm:$0xff] }
 0x44f   :  { %v20167_v24 = vadd.f32 %v4368_v46, %v3913_v17  ;;  %v3940_v17 = vadd.f32 %v19970_v42, %v22864_v7  ;;  %v22868_v42 = vld [vmem:[#allocation92_spill] sm:$0xff] }
 0x450   :  { %v16089_v39 = vpop.f32.mrf.mxu1 }
 0x451   :  { %v20171_v27 = vadd.f32 %v16089_v39, %v3924_v20  ;;  %v22865_v20 = vld [vmem:[#allocation88_spill] sm:$0xff] }
 0x452   :  { %v4371_v23 = vpop.f32.mrf.mxu1  ;;  %v3932_v2 = vadd.f32 %v19975_v22, %v22865_v20  ;;  %v20199_v22 = vpop.f32.mrf.mxu0 }
 0x453   :  { %v20175_v49 = vadd.f32 %v4371_v23, %v3916_v48  ;;  %v17006_v23 = vld [vmem:[#allocation2 + $0xe0] sm:$0xff]   ;;  %22869 = vst [vmem:[#allocation68_spill] sm:$0xff] %v20199_v22 }
 0x454   :  { %v16092_v51 = vpop.f32.mrf.mxu1  ;;  %16203 = vmatmul.mubr.bf16.gmra.mxu1 %v17004_v25  ;;  %v3953_v25 = vadd.f32 %v19981_v31, %v22867_v61 }
 0x455   :  { %v20179_v53 = vadd.f32 %v16092_v51, %v3937_v33  ;;  %16206 = vmatprep.mubr.bf16.mxu1 %v17005_v4  ;;  %v17008_v33 = vld [vmem:[#allocation2 + $0xe8] sm:$0xff]   ;;  %v3945_v51 = vadd.f32 %v19986_v56, %v22868_v42  ;;  %v20209_v56 = vpop.f32.mrf.mxu0 }
 0x456   :  { %v4384_v8 = vpop.f32.mrf.mxu1  ;;  %22872 = vst [vmem:[#allocation70_spill] sm:$0xff] %v20209_v56  ;;  %v17416_v42 = vld [vmem:[#allocation2 + $0xc] sm:$0xf] }
 0x457   :  { %v20183_v46 = vadd.f32 %v4384_v8, %v3929_v60  ;;  %v22870_v8 = vld [vmem:[#allocation94_spill] sm:$0xff] }
 0x458   :  { %v16093_v37 = vpop.f32.mrf.mxu1  ;;  %v3956_v7 = vadd.f32 %v19990_v63, %v22870_v8 }
 0x459   :  { %v20187_v39 = vadd.f32 %v16093_v37, %v3940_v17  ;;  %v22871_v37 = vld [vmem:[#allocation96_spill] sm:$0xff] }
 0x45a   :  { %v4387_v48 = vpop.f32.mrf.mxu1  ;;  %v3948_v20 = vadd.f32 %v19995_v59, %v22871_v37  ;;  %v22875_v37 = vld [vmem:[#allocation101_spill] sm:$0xff] }
 0x45b   :  { %v20193_v11 = vadd.f32 %v4387_v48, %v3932_v2  ;;  %v17013_v48 = vld [vmem:[#allocation2 + $0xf8] sm:$0xff]   ;;  %v3972_v56 = vadd.f32 %v20006_v45, %v22875_v37 }
 0x45c   :  { %v16096_v4 = vpop.f32.mrf.mxu1  ;;  %16207 = vmatmul.mubr.bf16.gmra.mxu1 %v17006_v23  ;;  %v6251_v23 = vld [vmem:[#allocation2 + $0x8] sm:$0xe] }
 0x45d   :  { %v20197_v36 = vadd.f32 %v16096_v4, %v3953_v25  ;;  %16210 = vmatprep.mubr.bf16.mxu1 %v17008_v33  ;;  %v17010_v25 = vld [vmem:[#allocation2 + $0xf0] sm:$0xff]   ;;  %v3969_v33 = vadd.f32 %v20001_v19, %v19634_v1  ;;  %v17014_v19 = vld [vmem:[#allocation2 + $0x100] sm:$0xff]  }
 0x45e   :  { %v4400_v60 = vpop.f32.mrf.mxu1 }
 0x45f   :  { %v20203_v17 = vadd.f32 %v4400_v60, %v3945_v51  ;;  %v13856_v51 = vcombine.low %v6251_v23, %v17416_v42  ;;  %v22873_v60 = vld [vmem:[#allocation99_spill] sm:$0xff]  ;;  %v22878_v42 = vld [vmem:[#allocation105_spill] sm:$0xff] }
 0x460   :  { %v16097_v31 = vpop.f32.mrf.mxu1  ;;  %v3961_v59 = vadd.f32 %v20004_v15, %v22873_v60  ;;  %v3985_v60 = vadd.f32 %v20011_v50, %v22878_v42  ;;  %v17418_v50 = vld [vmem:[#allocation2 + $0x18] sm:$0xff]  }
 0x461   :  { %v20207_v2 = vadd.f32 %v16097_v31, %v3956_v7  ;;  %v20219_v7 = vpop.f32.mrf.mxu0 }
 0x462   :  { %v4403_v61 = vpop.f32.mrf.mxu1  ;;  %22874 = vst [vmem:[#allocation72_spill] sm:$0xff] %v20219_v7 }
 0x463   :  { %v20213_v4 = vadd.f32 %v4403_v61, %v3948_v20  ;;  %v6272_v20 = vrot.slane %v13856_v51, 1  ;;  %v22876_v61 = vld [vmem:[#allocation103_spill] sm:$0xff]  ;;  %v20229_v15 = vpop.f32.mrf.mxu0 }
 0x464   :  { %v16100_v63 = vpop.f32.mrf.mxu1  ;;  %16211 = vmatmul.mubr.bf16.gmra.mxu1 %v17010_v25  ;;  %v3964_v23 = vadd.f32 %v20009_v38, %v22876_v61  ;;  %22877 = vst [vmem:[#allocation74_spill] sm:$0xff] %v20229_v15  ;;  %v22879_v51 = vld [vmem:[#allocation107_spill] sm:$0xff]  ;;  %v22920_v15 = vld [vmem:[#allocation192_spill] sm:$0xff] }
 0x465   :  { %v20217_v8 = vadd.f32 %v16100_v63, %v3969_v33  ;;  %16214 = vmatprep.mubr.bf16.mxu1 %v17013_v48  ;;  %v17417_v48 = vld [vmem:[#allocation2 + $0x10] sm:$0xff]  }
 0x466   :  { %v4416_v31 = vpop.f32.mrf.mxu1  ;;  %v6273_v63 = vrot.slane %v17417_v48, 1 }
 0x467   :  { %v20223_v22 = vadd.f32 %v4416_v31, %v3961_v59  ;;  %v3977_v31 = vadd.f32 %v20013_v57, %v22879_v51 }
 0x468   :  { %v16101_v1 = vpop.f32.mrf.mxu1  ;;  %v6274_v59 = vsel %vm4140_vm1, %v6272_v20, %v6273_v63 }
 0x469   :  { %v20227_v25 = vadd.f32 %v16101_v1, %v3972_v56  ;;  %v20240_v56 = vpop.f32.mrf.mxu0  ;;  %v22881_v1 = vld [vmem:[#allocation109_spill] sm:$0xff] }
 0x46a   :  { %v4419_v33 = vpop.f32.mrf.mxu1  ;;  %22880 = vst [vmem:[#allocation76_spill] sm:$0xff] %v20240_v56  ;;  %v3988_v61 = vadd.f32 %v20015_v28, %v22881_v1  ;;  %v4001_v28 = vadd.f32 %v20022_v41, %v19675_v62  ;;  %v17020_v41 = vld [vmem:[%s22600_s3 + $0x1e8] sm:$0xff]  }
 0x46b   :  { %v20233_v7 = vadd.f32 %v4419_v33, %v3964_v23  ;;  %v6275_v23 = vrot.slane %v17418_v50, 1  ;;  %v20250_v57 = vpop.f32.mrf.mxu0  ;;  %v22919_v56 = vld [vmem:[#allocation135_spill] sm:$0xff] }
 0x46c   :  { %v16104_v45 = vpop.f32.mrf.mxu1  ;;  %16215 = vmatmul.mubr.bf16.gmra.mxu1 %v17014_v19  ;;  %v3980_v19 = vadd.f32 %v20017_v52, %v19669_v5  ;;  %22882 = vst [vmem:[#allocation78_spill] sm:$0xff] %v20250_v57 }
 0x46d   :  { %v20238_v38 = vadd.f32 %v16104_v45, %v3985_v60  ;;  %16314 = vmatprep.mubr.bf16.mxu1 %v6274_v59  ;;  %v17019_v60 = vld [vmem:[%s22600_s3 + $0x1f0] sm:$0xff]   ;;  %v6276_v59 = vsel %vm4140_vm1, %v6273_v63, %v6275_v23  ;;  %v4004_v63 = vadd.f32 %v20030_v18, %v19684_v55  ;;  %v4017_v55 = vadd.f32 %v20037_v32, %v19703_v30  ;;  %v17022_v30 = vld [vmem:[%s22600_s3 + $0x1d8] sm:$0xff]   ;;  %v22892_v32 = vld [vmem:[#allocation119_spill] sm:$0xff] }
 0x46e   :  { %v4432_v37 = vpop.f32.mrf.mxu1 }
 0x46f   :  { %v20244_v48 = vadd.f32 %v4432_v37, %v3977_v31  ;;  %v22883_v31 = vld [vmem:[#allocation10_spill] sm:$0xff]  ;;  %v3993_v37 = vadd.f32 %v20025_v43, %v19679_v13  ;;  %v3996_v13 = vadd.f32 %v20032_v10, %v19695_v0  ;;  %v22888_v0 = vld [vmem:[#allocation117_spill] sm:$0xff]  ;;  %v22889_v10 = vld [vmem:[#allocation183_spill] sm:$0xff] }
 0x470   :  { %v16105_v33 = vpop.f32.mrf.mxu1  ;;  %v22884_v5 = vrot.slane %v22883_v31, 1 }
 0x471   :  { %v20248_v20 = vadd.f32 %v16105_v33, %v3988_v61  ;;  %v20268_v61 = vpop.f32.mrf.mxu0 }
 0x472   :  { %v4435_v42 = vpop.f32.mrf.mxu1  ;;  %v6278_v52 = vsel %vm4140_vm1, %v6275_v23, %v22884_v5  ;;  %22885 = vst [vmem:[#allocation80_spill] sm:$0xff] %v20268_v61  ;;  %v22911_v61 = vld [vmem:[#allocation190_spill] sm:$0xff] }
 0x473   :  { %v20257_v45 = vadd.f32 %v4435_v42, %v3980_v19  ;;  %v17021_v19 = vld [vmem:[%s22600_s3 + $0x1e0] sm:$0xff]  }
 0x474   :  { %v16108_v51 = vpop.f32.mrf.mxu1  ;;  %16315 = vmatmul.mubr.bf16.vlgmr.msra.gmra.mxu1 %v6276_v59  ;;  %v4009_v59 = vadd.f32 %v22889_v10, %v22888_v0  ;;  %v22897_v0 = vld [vmem:[#allocation124_spill] sm:$0xff]  ;;  %v22898_v10 = vld [vmem:[#allocation186_spill] sm:$0xff] }
 0x475   :  { %v20265_v1 = vadd.f32 %v16108_v51, %v4001_v28  ;;  %16318 = vmatprep.mubr.bf16.mxu1 %v6278_v52  ;;  %16459 = vmatpush3.bf16.msra.mxu1 %v20130_v26  ;;  %v20281_v26 = vpop.f32.mrf.mxu0  ;;  %v22887_v28 = vld [vmem:[#allocation14_spill] sm:$0xff]  ;;  %v22890_v51 = vld [vmem:[#allocation15_spill] sm:$0xff]  ;;  %v22893_v52 = vld [vmem:[#allocation184_spill] sm:$0xff] }
 0x476   :  { %v4448_v62 = vpop.f32.mrf.mxu1  ;;  %16460 = vmatprep.subr.bf16.mxu1 %v17019_v60  ;;  %22886 = vst [vmem:[#allocation82_spill] sm:$0xff] %v20281_v26  ;;  %v22910_v26 = vld [vmem:[#allocation131_spill] sm:$0xff] }
 0x477   :  { %v20275_v50 = vadd.f32 %v4448_v62, %v3993_v37  ;;  %v20296_v31 = vpop.f32.mrf.mxu0  ;;  %v4020_v37 = vadd.f32 %v22893_v52, %v22892_v32  ;;  %v22899_v32 = vld [vmem:[#allocation16_spill] sm:$0xff]  ;;  %v22900_v52 = vld [vmem:[#allocation126_spill] sm:$0xff] }
 0x478   :  { %v16109_v23 = vpop.f32.mrf.mxu1  ;;  %22891 = vst [vmem:[#allocation84_spill] sm:$0xff] %v20296_v31 }
 0x479   :  { %v20279_v43 = vadd.f32 %v16109_v23, %v4004_v63  ;;  %16461 = vmatpush3.bf16.msra.mxu1 %v17019_v60  ;;  %v22894_v23 = vld [vmem:[#allocation121_spill] sm:$0xff] }
 0x47a   :  { %v4451_v33 = vpop.f32.mrf.mxu1  ;;  %16462 = vmatprep.subr.bf16.mxu1 %v17020_v41 }
 0x47b   :  { %v20288_v18 = vadd.f32 %v4451_v33, %v3996_v13  ;;  %v22895_v13 = vld [vmem:[#allocation185_spill] sm:$0xff] }
 0x47c   :  { %v16112_v42 = vpop.f32.mrf.mxu1  ;;  %16319 = vmatmul.mubr.bf16.gmra.mxu1 %v22887_v28  ;;  %v4012_v33 = vadd.f32 %v22895_v13, %v22894_v23  ;;  %v17023_v28 = vld [vmem:[%s22600_s3 + $0x1d0] sm:$0xff]  }
 0x47d   :  { %v20293_v60 = vadd.f32 %v16112_v42, %v4017_v55  ;;  %16322 = vmatprep.mubr.bf16.mxu1 %v22890_v51  ;;  %16463 = vmatpush3.bf16.msra.mxu1 %v17020_v41  ;;  %v20309_v41 = vpop.f32.mrf.mxu0  ;;  %v4033_v51 = vadd.f32 %v22898_v10, %v22897_v0  ;;  %v22902_v23 = vld [vmem:[#allocation17_spill] sm:$0xff]  ;;  %v22905_v0 = vld [vmem:[#allocation188_spill] sm:$0xff] }
 0x47e   :  { %v4464_v5 = vpop.f32.mrf.mxu1  ;;  %16464 = vmatprep.subr.bf16.mxu1 %v17021_v19  ;;  %22896 = vst [vmem:[#allocation86_spill] sm:$0xff] %v20309_v41 }
 0x47f   :  { %v20303_v62 = vadd.f32 %v4464_v5, %v4009_v59  ;;  %v20324_v13 = vpop.f32.mrf.mxu0 }
 0x480   :  { %v16113_v63 = vpop.f32.mrf.mxu1  ;;  %22903 = vst [vmem:[#allocation88_spill] sm:$0xff] %v20324_v13  ;;  %v17025_v13 = vld [vmem:[%s22600_s3 + $0x1c0] sm:$0xff]  }
 0x481   :  { %v20307_v55 = vadd.f32 %v16113_v63, %v4020_v37  ;;  %16465 = vmatpush3.bf16.msra.mxu1 %v17021_v19  ;;  %v22901_v37 = vld [vmem:[#allocation187_spill] sm:$0xff] }
 0x482   :  { %v4467_v42 = vpop.f32.mrf.mxu1  ;;  %16466 = vmatprep.subr.bf16.mxu1 %v17022_v30  ;;  %v4025_v63 = vadd.f32 %v22901_v37, %v22900_v52  ;;  %v22906_v52 = vld [vmem:[#allocation129_spill] sm:$0xff] }
 0x483   :  { %v20316_v59 = vadd.f32 %v4467_v42, %v4012_v33  ;;  %v17024_v33 = vld [vmem:[%s22600_s3 + $0x1c8] sm:$0xff]  }
 0x484   :  { %v16116_v5 = vpop.f32.mrf.mxu1  ;;  %16323 = vmatmul.mubr.bf16.gmra.mxu1 %v22899_v32  ;;  %v22904_v42 = vld [vmem:[#allocation128_spill] sm:$0xff] }
 0x485   :  { %v20321_v19 = vadd.f32 %v16116_v5, %v4033_v51  ;;  %16326 = vmatprep.mubr.bf16.mxu1 %v22902_v23  ;;  %16467 = vmatpush3.bf16.msra.mxu1 %v17022_v30  ;;  %v4036_v10 = vadd.f32 %v22905_v0, %v22904_v42  ;;  %v22907_v51 = vld [vmem:[#allocation189_spill] sm:$0xff]  ;;  %v20337_v30 = vpop.f32.mrf.mxu0  ;;  %v4049_v42 = vadd.f32 %v22911_v61, %v22910_v26  ;;  %v22913_v0 = vld [vmem:[#allocation18_spill] sm:$0xff] }
 0x486   :  { %v4480_v41 = vpop.f32.mrf.mxu1  ;;  %16468 = vmatprep.subr.bf16.mxu1 %v17023_v28  ;;  %v4028_v5 = vadd.f32 %v22907_v51, %v22906_v52  ;;  %22909 = vst [vmem:[#allocation92_spill] sm:$0xff] %v20337_v30  ;;  %v22914_v52 = vld [vmem:[#allocation133_spill] sm:$0xff]  ;;  %v22917_v51 = vld [vmem:[#allocation19_spill] sm:$0xff]  ;;  %v4052_v61 = vadd.f32 %v22920_v15, %v22919_v56 }
 0x487   :  { %v20331_v32 = vadd.f32 %v4480_v41, %v4025_v63  ;;  %v20352_v30 = vpop.f32.mrf.mxu0  ;;  %v22930_v15 = vld [vmem:[#allocation141_spill] sm:$0xff]  ;;  %v22931_v56 = vld [vmem:[#allocation195_spill] sm:$0xff] }
 0x488   :  { %v16117_v31 = vpop.f32.mrf.mxu1  ;;  %22918 = vst [vmem:[#allocation99_spill] sm:$0xff] %v20352_v30 }
 0x489   :  { %v20335_v37 = vadd.f32 %v16117_v31, %v4036_v10  ;;  %16469 = vmatpush3.bf16.msra.mxu1 %v17023_v28  ;;  %v22915_v31 = vld [vmem:[#allocation191_spill] sm:$0xff] }
 0x48a   :  { %v4483_v23 = vpop.f32.mrf.mxu1  ;;  %16470 = vmatprep.subr.bf16.mxu1 %v17024_v33  ;;  %v4041_v10 = vadd.f32 %v22915_v31, %v22914_v52  ;;  %v22927_v52 = vld [vmem:[#allocation194_spill] sm:$0xff] }
 0x48b   :  { %22908 = vst [vmem:[#allocation90_spill] sm:$0xff] %v20335_v37  ;;  %v20344_v41 = vadd.f32 %v4483_v23, %v4028_v5  ;;  %v22922_v23 = vld [vmem:[#allocation137_spill] sm:$0xff] }
 0x48c   :  { %v16120_v63 = vpop.f32.mrf.mxu1  ;;  %16327 = vmatmul.mubr.bf16.gmra.mxu1 %v22913_v0  ;;  %v22923_v0 = vld [vmem:[#allocation193_spill] sm:$0xff] }
 0x48d   :  { %22912 = vst [vmem:[#allocation94_spill] sm:$0xff] %v20344_v41  ;;  %v20349_v28 = vadd.f32 %v16120_v63, %v4049_v42  ;;  %16330 = vmatprep.mubr.bf16.mxu1 %v22917_v51  ;;  %16471 = vmatpush3.bf16.msra.mxu1 %v17024_v33  ;;  %v4044_v44 = vadd.f32 %v22923_v0, %v22922_v23  ;;  %v20362_v42 = vpop.f32.mrf.mxu0  ;;  %v22926_v33 = vld [vmem:[#allocation139_spill] sm:$0xff]  ;;  %v22933_v23 = vld [vmem:[#allocation21_spill] sm:$0xff]  ;;  %v22936_v0 = vld [vmem:[#allocation196_spill] sm:$0xff] }
 0x48e   :  { %v4496_v57 = vpop.f32.mrf.mxu1  ;;  %16472 = vmatprep.subr.bf16.mxu1 %v17025_v13  ;;  %22925 = vst [vmem:[#allocation105_spill] sm:$0xff] %v20362_v42  ;;  %v4065_v31 = vadd.f32 %v22927_v52, %v22926_v33  ;;  %v22939_v33 = vld [vmem:[#allocation197_spill] sm:$0xff] }
 0x48f   :  { %22916 = vst [vmem:[#allocation96_spill] sm:$0xff] %v20349_v28  ;;  %v20356_v26 = vadd.f32 %v4496_v57, %v4041_v10  ;;  %v22929_v28 = vld [vmem:[#allocation20_spill] sm:$0xff]  ;;  %v4057_v57 = vadd.f32 %v22931_v56, %v22930_v15  ;;  %v22943_v15 = vld [vmem:[#allocation198_spill] sm:$0xff] }
 0x490   :  { %v16121_v5 = vpop.f32.mrf.mxu1 }
 0x491   :  { %22921 = vst [vmem:[#allocation101_spill] sm:$0xff] %v20356_v26  ;;  %v20360_v41 = vadd.f32 %v16121_v5, %v4052_v61  ;;  %16473 = vmatpush3.bf16.msra.mxu1 %v17025_v13  ;;  %v20374_v61 = vpop.f32.mrf.mxu0  ;;  %v22935_v5 = vld [vmem:[#allocation143_spill] sm:$0xff]  ;;  %v22955_v26 = vld [vmem:[#allocation201_spill] sm:$0xff] }
 0x492   :  { %v4499_v63 = vpop.f32.mrf.mxu1  ;;  %22934 = vst [vmem:[#allocation10_spill] sm:$0xff] %v20374_v61  ;;  %v4068_v42 = vadd.f32 %v22936_v0, %v22935_v5  ;;  %v22946_v5 = vld [vmem:[#allocation149_spill] sm:$0xff] }
 0x493   :  { %22924 = vst [vmem:[#allocation103_spill] sm:$0xff] %v20360_v41  ;;  %v20366_v51 = vadd.f32 %v4499_v63, %v4044_v44  ;;  %v22938_v63 = vld [vmem:[#allocation145_spill] sm:$0xff] }
 0x494   :  { %v16124_v30 = vpop.f32.mrf.mxu1  ;;  %16331 = vmatmul.mubr.bf16.gmra.mxu1 %v22929_v28  ;;  %v4060_v52 = vadd.f32 %v22939_v33, %v22938_v63  ;;  %v22951_v63 = vld [vmem:[#allocation151_spill] sm:$0xff]  ;;  %v22952_v33 = vld [vmem:[#allocation200_spill] sm:$0xff] }
 0x495   :  { %22928 = vst [vmem:[#allocation107_spill] sm:$0xff] %v20366_v51  ;;  %v20371_v10 = vadd.f32 %v16124_v30, %v4065_v31  ;;  %16334 = vmatprep.mubr.bf16.mxu1 %v22933_v23  ;;  %v20384_v51 = vpop.f32.mrf.mxu0  ;;  %v22942_v31 = vld [vmem:[#allocation147_spill] sm:$0xff] }
 0x496   :  { %v4512_v13 = vpop.f32.mrf.mxu1  ;;  %22941 = vst [vmem:[#allocation183_spill] sm:$0xff] %v20384_v51  ;;  %v4081_v56 = vadd.f32 %v22943_v15, %v22942_v31  ;;  %v4084_v51 = vadd.f32 %v22952_v33, %v22951_v63  ;;  %v17420_v15 = vld [vmem:[#allocation2 + $0x80] sm:$0xff]  }
 0x497   :  { %22932 = vst [vmem:[#allocation109_spill] sm:$0xff] %v20371_v10  ;;  %v20378_v41 = vadd.f32 %v4512_v13, %v4057_v57  ;;  %v22945_v10 = vld [vmem:[#allocation23_spill] sm:$0xff] }
 0x498   :  { %v16125_v44 = vpop.f32.mrf.mxu1  ;;  %v22947_v57 = vld [vmem:[#allocation199_spill] sm:$0xff] }
 0x499   :  { %22937 = vst [vmem:[#allocation14_spill] sm:$0xff] %v20378_v41  ;;  %v20382_v28 = vadd.f32 %v16125_v44, %v4068_v42  ;;  %v4073_v13 = vadd.f32 %v22947_v57, %v22946_v5  ;;  %v22949_v41 = vld [vmem:[#allocation24_spill] sm:$0xff]  ;;  %v20396_v42 = vpop.f32.mrf.mxu0  ;;  %v22958_v57 = vld [vmem:[#allocation155_spill] sm:$0xff] }
 0x49a   :  { %v4515_v30 = vpop.f32.mrf.mxu1  ;;  %22950 = vst [vmem:[#allocation184_spill] sm:$0xff] %v20396_v42  ;;  %v22959_v42 = vld [vmem:[#allocation202_spill] sm:$0xff] }
 0x49b   :  { %22940 = vst [vmem:[#allocation117_spill] sm:$0xff] %v20382_v28  ;;  %v20388_v23 = vadd.f32 %v4515_v30, %v4060_v52  ;;  %v17419_v52 = vld [vmem:[#allocation2 + $0x78] sm:$0xff]  }
 0x49c   :  { %v16128_v61 = vpop.f32.mrf.mxu1  ;;  %16335 = vmatmul.mubr.bf16.gmra.mxu1 %v22945_v10  ;;  %v6299_v30 = vrot.slane %v17419_v52, 1  ;;  %v6301_v10 = vrot.slane %v17420_v15, 1  ;;  %v22963_v15 = vld [vmem:[#allocation157_spill] sm:$0xff] }
 0x49d   :  { %22944 = vst [vmem:[#allocation15_spill] sm:$0xff] %v20388_v23  ;;  %v20393_v0 = vadd.f32 %v16128_v61, %v4081_v56  ;;  %16338 = vmatprep.mubr.bf16.mxu1 %v22949_v41  ;;  %v22954_v23 = vld [vmem:[#allocation153_spill] sm:$0xff]  ;;  %v20406_v56 = vpop.f32.mrf.mxu0 }
 0x49e   :  { %v4528_v44 = vpop.f32.mrf.mxu1  ;;  %v4076_v5 = vadd.f32 %v22955_v26, %v22954_v23  ;;  %22957 = vst [vmem:[#allocation124_spill] sm:$0xff] %v20406_v56  ;;  %v6302_v52 = vsel %vm4140_vm1, %v6299_v30, %v6301_v10  ;;  %v22964_v26 = vld [vmem:[#allocation203_spill] sm:$0xff] }
 0x49f   :  { %22948 = vst [vmem:[#allocation119_spill] sm:$0xff] %v20393_v0  ;;  %v20400_v28 = vadd.f32 %v4528_v44, %v4073_v13  ;;  %v4097_v0 = vadd.f32 %v22959_v42, %v22958_v57  ;;  %v22961_v13 = vld [vmem:[#allocation13_spill] sm:$0xff]  ;;  %v22967_v42 = vld [vmem:[#allocation159_spill] sm:$0xff] }
 0x4a0   :  { %v16129_v31 = vpop.f32.mrf.mxu1  ;;  %v22962_v44 = vrot.slane %v22961_v13, 1  ;;  %v17421_v13 = vld [vmem:[#allocation2 + $0x88] sm:$0xff]  }
 0x4a1   :  { %22953 = vst [vmem:[#allocation121_spill] sm:$0xff] %v20400_v28  ;;  %v20404_v61 = vadd.f32 %v16129_v31, %v4084_v51  ;;  %v4089_v51 = vadd.f32 %v22964_v26, %v22963_v15  ;;  %v20420_v31 = vpop.f32.mrf.mxu0  ;;  %v22972_v26 = vld [vmem:[#allocation163_spill] sm:$0xff] }
 0x4a2   :  { %v4531_v41 = vpop.f32.mrf.mxu1  ;;  %v6300_v63 = vsel %vm4140_vm1, %v22962_v44, %v6299_v30  ;;  %22966 = vst [vmem:[#allocation126_spill] sm:$0xff] %v20420_v31  ;;  %v6303_v44 = vrot.slane %v17421_v13, 1  ;;  %v4113_v31 = vadd.f32 %v20097_v40, %v22972_v26  ;;  %v22980_v26 = vld [vmem:[#allocation208_spill] sm:$0xff] }
 0x4a3   :  { %22956 = vst [vmem:[#allocation185_spill] sm:$0xff] %v20404_v61  ;;  %v20410_v37 = vadd.f32 %v4531_v41, %v4076_v5  ;;  %v22968_v5 = vld [vmem:[#allocation204_spill] sm:$0xff]  ;;  %v22970_v61 = vld [vmem:[#allocation205_spill] sm:$0xff]  ;;  %v20430_v15 = vpop.f32.mrf.mxu0 }
 0x4a4   :  { %v16132_v33 = vpop.f32.mrf.mxu1  ;;  %16339 = vmatmul.mubr.bf16.gmra.mxu1 %v6300_v63  ;;  %v4100_v41 = vadd.f32 %v22968_v5, %v22967_v42  ;;  %v22969_v63 = vld [vmem:[#allocation161_spill] sm:$0xff]  ;;  %22971 = vst [vmem:[#allocation187_spill] sm:$0xff] %v20430_v15  ;;  %v22978_v15 = vld [vmem:[#allocation207_spill] sm:$0xff] }
 0x4a5   :  { %22960 = vst [vmem:[#allocation186_spill] sm:$0xff] %v20410_v37  ;;  %v20418_v23 = vadd.f32 %v16132_v33, %v4097_v0  ;;  %16342 = vmatprep.mubr.bf16.mxu1 %v6302_v52  ;;  %v4092_v30 = vadd.f32 %v22970_v61, %v22969_v63  ;;  %v17422_v33 = vld [vmem:[#allocation2 + $0x90] sm:$0xff]   ;;  %v22975_v61 = vld [vmem:[#allocation206_spill] sm:$0xff]  ;;  %v20442_v13 = vpop.f32.mrf.mxu0 }
 0x4a6   :  { %v4544_v56 = vpop.f32.mrf.mxu1  ;;  %v6305_v52 = vrot.slane %v17422_v33, 1  ;;  %v22974_v5 = vld [vmem:[#allocation165_spill] sm:$0xff]  ;;  %22976 = vst [vmem:[#allocation128_spill] sm:$0xff] %v20442_v13  ;;  %v22977_v33 = vld [vmem:[#allocation167_spill] sm:$0xff] }
 0x4a7   :  { %22965 = vst [vmem:[#allocation16_spill] sm:$0xff] %v20418_v23  ;;  %v20424_v57 = vadd.f32 %v4544_v56, %v4089_v51  ;;  %v6304_v56 = vsel %vm4140_vm1, %v6301_v10, %v6303_v44  ;;  %v4116_v40 = vadd.f32 %v22978_v15, %v22977_v33  ;;  %v22979_v10 = vld [vmem:[#allocation169_spill] sm:$0xff] }
 0x4a8   :  { %v16133_v37 = vpop.f32.mrf.mxu1  ;;  %v6306_v42 = vsel %vm4140_vm1, %v6303_v44, %v6305_v52  ;;  %v20452_v44 = vpop.f32.mrf.mxu0 }
 0x4a9   :  { %v20428_v28 = vadd.f32 %v16133_v37, %v4100_v41  ;;  %v4105_v37 = vadd.f32 %v22975_v61, %v22974_v5  ;;  %22981 = vst [vmem:[#allocation188_spill] sm:$0xff] %v20452_v44 }
 0x4aa   :  { %v4547_v0 = vpop.f32.mrf.mxu1 }
 0x4ab   :  { %v20434_v23 = vadd.f32 %v4547_v0, %v4092_v30 }
 0x4ac   :  { %v16136_v51 = vpop.f32.mrf.mxu1  ;;  %16343 = vmatmul.mubr.bf16.gmra.mxu1 %v6304_v56  ;;  %v4108_v56 = vadd.f32 %v22980_v26, %v22979_v10 }
 0x4ad   :  { %22973 = vst [vmem:[#allocation17_spill] sm:$0xff] %v20434_v23  ;;  %v20440_v41 = vadd.f32 %v16136_v51, %v4113_v31  ;;  %16346 = vmatprep.mubr.bf16.mxu1 %v6306_v42  ;;  %v22982_v51 = vld [vmem:[#allocation12_spill] sm:$0xff] }
 0x4ae   :  { %v4560_v63 = vpop.f32.mrf.mxu1  ;;  %v22983_v42 = vrot.slane %v22982_v51, 1  ;;  %v22988_v51 = vld [vmem:[#allocation11_spill] sm:$0xff] }
 0x4af   :  { %v20446_v30 = vadd.f32 %v4560_v63, %v4105_v37  ;;  %v22984_v37 = vld [vmem:[#allocation25_spill] sm:$0xff]  ;;  %v20463_v63 = vpop.f32.mrf.mxu0 }
 0x4b0   :  { %v16137_v0 = vpop.f32.mrf.mxu1  ;;  %v6308_v61 = vsel %vm4140_vm1, %v6305_v52, %v22983_v42  ;;  %22985 = vst [vmem:[#allocation129_spill] sm:$0xff] %v20463_v63 }
 0x4b1   :  { %v20450_v23 = vadd.f32 %v16137_v0, %v4116_v40  ;;  %v20471_v26 = vpop.f32.mrf.mxu0 }
 0x4b2   :  { %v4563_v5 = vpop.f32.mrf.mxu1  ;;  %22986 = vst [vmem:[#allocation189_spill] sm:$0xff] %v20471_v26 }
 0x4b3   :  { %v20454_v31 = vadd.f32 %v4563_v5, %v4108_v56 }
 0x4b4   :  { %v16156_v13 = vpop.f32.mrf.mxu1  ;;  %16347 = vmatmul.mubr.bf16.gmra.mxu1 %v6308_v61 }
 0x4b5   :  { %v20460_v15 = vadd.f32 %v16156_v13, %v20109_v6  ;;  %16350 = vmatprep.mubr.bf16.mxu1 %v22984_v37  ;;  %v22987_v13 = vld [vmem:[#allocation9_spill] sm:$0xff] }
 0x4b6   :  { %v4994_v33 = vpop.f32.mrf.mxu1 }
 0x4b7   :  { %v20466_v40 = vadd.f32 %v4994_v33, %v20113_v3  ;;  %v20481_v3 = vpop.f32.mrf.mxu0 }
 0x4b8   :  { %v16157_v0 = vpop.f32.mrf.mxu1  ;;  %22989 = vst [vmem:[#allocation131_spill] sm:$0xff] %v20481_v3 }
 0x4b9   :  { %v20469_v10 = vadd.f32 %v16157_v0, %v20117_v12 }
 0x4ba   :  { %v4997_v52 = vpop.f32.mrf.mxu1 }
 0x4bb   :  { %v20474_v56 = vadd.f32 %v4997_v52, %v20121_v14  ;;  %v20489_v14 = vpop.f32.mrf.mxu0  ;;  %v22991_v52 = vld [vmem:[#allocation8_spill] sm:$0xff] }
 0x4bc   :  { %v16160_v6 = vpop.f32.mrf.mxu1  ;;  %16351 = vmatmul.mubr.bf16.gmra.mxu1 %v22987_v13  ;;  %22990 = vst [vmem:[#allocation190_spill] sm:$0xff] %v20489_v14  ;;  %v22992_v13 = vld [vmem:[#allocation39_spill] sm:$0xff] }
 0x4bd   :  { %v20478_v5 = vadd.f32 %v16160_v6, %v20125_v47  ;;  %16354 = vmatprep.mubr.bf16.mxu1 %v22988_v51  ;;  %v17423_v14 = vld [vmem:[#allocation2 + $0x100] sm:$0xff]  }
 0x4be   :  { %v5010_v42 = vpop.f32.mrf.mxu1 }
 0x4bf   :  { %v20484_v12 = vadd.f32 %v5010_v42, %v20134_v34  ;;  %v20499_v34 = vpop.f32.mrf.mxu0 }
 0x4c0   :  { %v16161_v61 = vpop.f32.mrf.mxu1  ;;  %22993 = vst [vmem:[#allocation18_spill] sm:$0xff] %v20499_v34  ;;  %v22996_v34 = vld [vmem:[#allocation41_spill] sm:$0xff] }
 0x4c1   :  { %v20487_v37 = vadd.f32 %v16161_v61, %v20139_v21 }
 0x4c2   :  { %v5013_v33 = vpop.f32.mrf.mxu1 }
 0x4c3   :  { %v20492_v0 = vadd.f32 %v5013_v33, %v20143_v35  ;;  %v20507_v35 = vpop.f32.mrf.mxu0 }
 0x4c4   :  { %v16164_v47 = vpop.f32.mrf.mxu1  ;;  %16355 = vmatmul.mubr.bf16.gmra.mxu1 %v22991_v52  ;;  %22994 = vst [vmem:[#allocation133_spill] sm:$0xff] %v20507_v35 }
 0x4c5   :  { %v20496_v6 = vadd.f32 %v16164_v47, %v20147_v58  ;;  %16358 = vmatprep.mubr.bf16.mxu1 %v22992_v13  ;;  %v22995_v47 = vld [vmem:[#allocation40_spill] sm:$0xff] }
 0x4c6   :  { %v5026_v51 = vpop.f32.mrf.mxu1 }
 0x4c7   :  { %v20502_v21 = vadd.f32 %v5026_v51, %v20151_v16  ;;  %v20517_v16 = vpop.f32.mrf.mxu0 }
 0x4c8   :  { %v16165_v42 = vpop.f32.mrf.mxu1  ;;  %22997 = vst [vmem:[#allocation191_spill] sm:$0xff] %v20517_v16  ;;  %v23000_v16 = vld [vmem:[#allocation43_spill] sm:$0xff] }
 0x4c9   :  { %v20505_v61 = vadd.f32 %v16165_v42, %v20155_v9 }
 0x4ca   :  { %v5029_v33 = vpop.f32.mrf.mxu1 }
 0x4cb   :  { %v20510_v52 = vadd.f32 %v5029_v33, %v20159_v29  ;;  %v20525_v29 = vpop.f32.mrf.mxu0 }
 0x4cc   :  { %v16168_v58 = vpop.f32.mrf.mxu1  ;;  %16359 = vmatmul.mubr.bf16.gmra.mxu1 %v22995_v47  ;;  %22998 = vst [vmem:[#allocation19_spill] sm:$0xff] %v20525_v29 }
 0x4cd   :  { %v20514_v13 = vadd.f32 %v16168_v58, %v20163_v54  ;;  %16362 = vmatprep.mubr.bf16.mxu1 %v22996_v34  ;;  %v22999_v58 = vld [vmem:[#allocation42_spill] sm:$0xff] }
 0x4ce   :  { %v5042_v51 = vpop.f32.mrf.mxu1 }
 0x4cf   :  { %v20520_v9 = vadd.f32 %v5042_v51, %v20167_v24  ;;  %v20535_v24 = vpop.f32.mrf.mxu0 }
 0x4d0   :  { %v16169_v42 = vpop.f32.mrf.mxu1  ;;  %23001 = vst [vmem:[#allocation135_spill] sm:$0xff] %v20535_v24  ;;  %v23005_v24 = vld [vmem:[#allocation45_spill] sm:$0xff] }
 0x4d1   :  { %v20523_v35 = vadd.f32 %v16169_v42, %v20171_v27 }
 0x4d2   :  { %v5045_v33 = vpop.f32.mrf.mxu1 }
 0x4d3   :  { %v20528_v47 = vadd.f32 %v5045_v33, %v20175_v49  ;;  %v20543_v49 = vpop.f32.mrf.mxu0 }
 0x4d4   :  { %v16172_v54 = vpop.f32.mrf.mxu1  ;;  %16363 = vmatmul.mubr.bf16.gmra.mxu1 %v22999_v58  ;;  %23002 = vst [vmem:[#allocation192_spill] sm:$0xff] %v20543_v49  ;;  %v17424_v49 = vld [vmem:[#allocation2 + $0xf8] sm:$0xff]  }
 0x4d5   :  { %v20532_v34 = vadd.f32 %v16172_v54, %v20179_v53  ;;  %16366 = vmatprep.mubr.bf16.mxu1 %v23000_v16  ;;  %v23004_v54 = vld [vmem:[#allocation44_spill] sm:$0xff]  ;;  %v6331_v3 = vrot.slane %v17424_v49, 1 }
 0x4d6   :  { %v5058_v51 = vpop.f32.mrf.mxu1 }
 0x4d7   :  { %v20538_v27 = vadd.f32 %v5058_v51, %v20183_v46  ;;  %v20553_v46 = vpop.f32.mrf.mxu0 }
 0x4d8   :  { %v16173_v42 = vpop.f32.mrf.mxu1  ;;  %23006 = vst [vmem:[#allocation193_spill] sm:$0xff] %v20553_v46  ;;  %v23009_v46 = vld [vmem:[#allocation22_spill] sm:$0xff] }
 0x4d9   :  { %v20541_v29 = vadd.f32 %v16173_v42, %v20187_v39  ;;  %v6333_v39 = vrot.slane %v17423_v14, 1  ;;  %v23010_v26 = vrot.slane %v23009_v46, 1 }
 0x4da   :  { %v5061_v33 = vpop.f32.mrf.mxu1 }
 0x4db   :  { %v20546_v58 = vadd.f32 %v5061_v33, %v20193_v11  ;;  %v6332_v14 = vsel %vm4140_vm1, %v23010_v26, %v6331_v3 }
 0x4dc   :  { %v16176_v53 = vpop.f32.mrf.mxu1  ;;  %16367 = vmatmul.mubr.bf16.gmra.mxu1 %v23004_v54  ;;  %v20561_v54 = vpop.f32.mrf.mxu0 }
 0x4dd   :  { %23003 = vst [vmem:[#allocation137_spill] sm:$0xff] %v20546_v58  ;;  %v20550_v16 = vadd.f32 %v16176_v53, %v20197_v36  ;;  %16370 = vmatprep.mubr.bf16.mxu1 %v23005_v24  ;;  %23007 = vst [vmem:[#allocation139_spill] sm:$0xff] %v20561_v54  ;;  %v6334_v53 = vsel %vm4140_vm1, %v6331_v3, %v6333_v39 }
 0x4de   :  { %v5074_v51 = vpop.f32.mrf.mxu1  ;;  %v20573_v54 = vpop.f32.mrf.mxu0 }
 0x4df   :  { %v20556_v42 = vadd.f32 %v5074_v51, %v20203_v17  ;;  %23011 = vst [vmem:[#allocation20_spill] sm:$0xff] %v20573_v54 }
 0x4e0   :  { %v16177_v11 = vpop.f32.mrf.mxu1 }
 0x4e1   :  { %v20559_v33 = vadd.f32 %v16177_v11, %v20207_v2  ;;  %v17425_v2 = vld [vmem:[#allocation2 + $0x108] ss:$0 sps:$4 sm:$0x11]   ;;  %v17026_v11 = vld [vmem:[#allocation2 + $0x100] sm:$0xff]  }
 0x4e2   :  { %v5077_v36 = vpop.f32.mrf.mxu1  ;;  %v6335_v51 = vrot.slane %v17425_v2, 1  ;;  %v8462_v46 = vrot.slane %v17026_v11, 1 }
 0x4e3   :  { %v20565_v24 = vadd.f32 %v5077_v36, %v20213_v4  ;;  %v7929_v4 = vshll.u32 %v17026_v11, 16 }
 0x4e4   :  { %v16180_v17 = vpop.f32.mrf.mxu1  ;;  %16371 = vmatmul.mubr.bf16.gmra.mxu1 %v6332_v14  ;;  %v6336_v3 = vsel %vm4140_vm1, %v6333_v39, %v6335_v51  ;;  %v23013_v14 = vld [vmem:[#allocation180_spill] sm:$0xff]  ;;  %v23017_v39 = vld [vmem:[#allocation26_spill] sm:$0xff] }
 0x4e5   :  { %23008 = vst [vmem:[#allocation194_spill] sm:$0xff] %v20565_v24  ;;  %v20571_v49 = vadd.f32 %v16180_v17, %v20217_v8  ;;  %16374 = vmatprep.mubr.bf16.mxu1 %v6334_v53  ;;  %v20582_v8 = vpop.f32.mrf.mxu0  ;;  %v23014_v17 = vrot.slane %v23013_v14, 1  ;;  %v7933_v24 = vshrl.u32 %v17026_v11, 16  ;;  %v17028_v14 = vld [vmem:[#allocation2 + $0x110] ss:$0 sps:$4 sm:$0x11]  }
 0x4e6   :  { %v5090_v63 = vpop.f32.mrf.mxu1  ;;  %23012 = vst [vmem:[#allocation141_spill] sm:$0xff] %v20582_v8  ;;  %v7945_v8 = vshll.u32 %v17028_v14, 16 }
 0x4e7   :  { %v20576_v44 = vadd.f32 %v5090_v63, %v20223_v22  ;;  %v8463_v2 = vsel %vm4140_vm1, %v23014_v17, %v8462_v46  ;;  %v20590_v22 = vrot.slane %v7929_v4, 1  ;;  %v17027_v63 = vld [vmem:[#allocation2 + $0x108] sm:$0xff]   ;;  %v20597_v17 = vpop.f32.mrf.mxu0 }
 0x4e8   :  { %v16181_v36 = vpop.f32.mrf.mxu1  ;;  %16611 = vmatmul.mubr.bf16.gmra.mxu0 %v8463_v2  ;;  %23018 = vst [vmem:[#allocation143_spill] sm:$0xff] %v20597_v17  ;;  %v8464_v4 = vrot.slane %v17027_v63, 1  ;;  %v7947_v17 = vrot.slane %v7945_v8, 1  ;;  %v23022_v8 = vld [vmem:[#allocation28_spill] sm:$0xff] }
 0x4e9   :  { %v20579_v26 = vadd.f32 %v16181_v36, %v20227_v25  ;;  %v7935_v51 = vor.u32 %v7933_v24, %v20590_v22  ;;  %v7937_v36 = vshll.u32 %v17027_v63, 16 }
 0x4ea   :  { %v5093_v53 = vpop.f32.mrf.mxu1 }
 0x4eb   :  { %v20588_v54 = vadd.f32 %v5093_v53, %v20233_v7  ;;  %v7941_v53 = vshrl.u32 %v17027_v63, 16  ;;  %v7939_v11 = vrot.slane %v7937_v36, 1 }
 0x4ec   :  { %v16184_v58 = vpop.f32.mrf.mxu1  ;;  %16375 = vmatmul.mubr.bf16.gmra.mxu1 %v6336_v3 }
 0x4ed   :  { %23015 = vst [vmem:[#allocation195_spill] sm:$0xff] %v20588_v54  ;;  %v20593_v25 = vadd.f32 %v16184_v58, %v20238_v38  ;;  %16474 = vmatprep.mubr.bf16.mxu1 %v23017_v39  ;;  %v8465_v38 = vsel %vm4140_vm1, %v8462_v46, %v8464_v4  ;;  %v8466_v58 = vrot.slane %v17028_v14, 1  ;;  %v20607_v24 = vsel %vm3120_vm0, %v7935_v51, %v7939_v11  ;;  %v23021_v14 = vld [vmem:[#allocation27_spill] sm:$0xff] }
 0x4ee   :  { %v5106_v7 = vpop.f32.mrf.mxu1  ;;  %v7943_v54 = vor.u32 %v7941_v53, %v7939_v11  ;;  %16614 = vmatprep.mubr.bf16.mxu0 %v8465_v38  ;;  %v23026_v38 = vld [vmem:[#allocation29_spill] sm:$0xff] }
 0x4ef   :  { %23016 = vst [vmem:[#allocation21_spill] sm:$0xff] %v20593_v25  ;;  %v20600_v2 = vadd.f32 %v5106_v7, %v20244_v48  ;;  %v20609_v25 = vpop.f32.mrf.mxu0  ;;  %v8467_v48 = vsel %vm4140_vm1, %v8464_v4, %v8466_v58 }
 0x4f0   :  { %v16185_v3 = vpop.f32.mrf.mxu1  ;;  %23019 = vst [vmem:[#allocation196_spill] sm:$0xff] %v20609_v25  ;;  %v20616_v46 = vsel %vm3120_vm0, %v7943_v54, %v7947_v17  ;;  %16615 = vmatmul.mubr.bf16.gmra.mxu0 %v8467_v48  ;;  %v23050_v25 = vld [vmem:[#allocation107_spill] sm:$0xff] }
 0x4f1   :  { %v20604_v39 = vadd.f32 %v16185_v3, %v20248_v20  ;;  %v20623_v7 = vpop.f32.mrf.mxu0 }
 0x4f2   :  { %v5109_v63 = vpop.f32.mrf.mxu1  ;;  %23023 = vst [vmem:[#allocation197_spill] sm:$0xff] %v20623_v7 }
 0x4f3   :  { %v20613_v36 = vadd.f32 %v5109_v63, %v20257_v45  ;;  %v20631_v54 = vpop.f32.mrf.mxu0  ;;  %v23027_v63 = vld [vmem:[#allocation30_spill] sm:$0xff] }
 0x4f4   :  { %v16188_v20 = vpop.f32.mrf.mxu1  ;;  %16475 = vmatmul.mubr.bf16.vlgmr.msra.gmra.mxu1 %v23021_v14  ;;  %23024 = vst [vmem:[#allocation147_spill] sm:$0xff] %v20631_v54  ;;  %v23045_v54 = vld [vmem:[#allocation101_spill] sm:$0xff] }
 0x4f5   :  { %23020 = vst [vmem:[#allocation145_spill] sm:$0xff] %v20613_v36  ;;  %v20620_v51 = vadd.f32 %v16188_v20, %v20265_v1  ;;  %16478 = vmatprep.mubr.bf16.mxu1 %v23022_v8 }
 0x4f6   :  { %v5122_v53 = vpop.f32.mrf.mxu1 }
 0x4f7   :  { %v20626_v4 = vadd.f32 %v5122_v53, %v20275_v50  ;;  %v20641_v50 = vpop.f32.mrf.mxu0 }
 0x4f8   :  { %v16189_v45 = vpop.f32.mrf.mxu1  ;;  %23028 = vst [vmem:[#allocation23_spill] sm:$0xff] %v20641_v50 }
 0x4f9   :  { %v20629_v11 = vadd.f32 %v16189_v45, %v20279_v43  ;;  %v23031_v45 = vld [vmem:[#allocation31_spill] sm:$0xff] }
 0x4fa   :  { %v5125_v17 = vpop.f32.mrf.mxu1 }
 0x4fb   :  { %v20634_v3 = vadd.f32 %v5125_v17, %v20288_v18  ;;  %v20649_v18 = vpop.f32.mrf.mxu0 }
 0x4fc   :  { %v16192_v1 = vpop.f32.mrf.mxu1  ;;  %16479 = vmatmul.mubr.bf16.gmra.mxu1 %v23026_v38  ;;  %23029 = vst [vmem:[#allocation149_spill] sm:$0xff] %v20649_v18  ;;  %v23038_v18 = vld [vmem:[#allocation94_spill] sm:$0xff] }
 0x4fd   :  { %23025 = vst [vmem:[#allocation198_spill] sm:$0xff] %v20634_v3  ;;  %v20638_v58 = vadd.f32 %v16192_v1, %v20293_v60  ;;  %16482 = vmatprep.mubr.bf16.mxu1 %v23027_v63  ;;  %v23032_v1 = vld [vmem:[#allocation32_spill] sm:$0xff] }
 0x4fe   :  { %v5138_v48 = vpop.f32.mrf.mxu1 }
 0x4ff   :  { %v20644_v43 = vadd.f32 %v5138_v48, %v20303_v62  ;;  %v20659_v62 = vpop.f32.mrf.mxu0  ;;  %v23035_v48 = vld [vmem:[#allocation90_spill] sm:$0xff] }
 0x500   :  { %v16193_v20 = vpop.f32.mrf.mxu1  ;;  %23033 = vst [vmem:[#allocation24_spill] sm:$0xff] %v20659_v62  ;;  %v23043_v62 = vld [vmem:[#allocation34_spill] sm:$0xff] }
 0x501   :  { %v20647_v14 = vadd.f32 %v16193_v20, %v20307_v55 }
 0x502   :  { %v5141_v8 = vpop.f32.mrf.mxu1 }
 0x503   :  { %v20652_v53 = vadd.f32 %v5141_v8, %v20316_v59  ;;  %v20667_v59 = vpop.f32.mrf.mxu0 }
 0x504   :  { %v16196_v60 = vpop.f32.mrf.mxu1  ;;  %16483 = vmatmul.mubr.bf16.gmra.mxu1 %v23031_v45  ;;  %23037 = vst [vmem:[#allocation153_spill] sm:$0xff] %v20667_v59  ;;  %v23047_v59 = vld [vmem:[#allocation103_spill] sm:$0xff] }
 0x505   :  { %23030 = vst [vmem:[#allocation199_spill] sm:$0xff] %v20652_v53  ;;  %v20656_v17 = vadd.f32 %v16196_v60, %v20321_v19  ;;  %16486 = vmatprep.mubr.bf16.mxu1 %v23032_v1  ;;  %v23040_v60 = vld [vmem:[#allocation33_spill] sm:$0xff]  ;;  %v23041_v1 = vld [vmem:[#allocation96_spill] sm:$0xff] }
 0x506   :  { %v5154_v38 = vpop.f32.mrf.mxu1 }
 0x507   :  { %v20662_v55 = vadd.f32 %v5154_v38, %v20331_v32  ;;  %v20677_v32 = vpop.f32.mrf.mxu0 }
 0x508   :  { %v16197_v63 = vpop.f32.mrf.mxu1  ;;  %23044 = vst [vmem:[#allocation202_spill] sm:$0xff] %v20677_v32  ;;  %v23053_v32 = vld [vmem:[#allocation109_spill] sm:$0xff] }
 0x509   :  { %23034 = vst [vmem:[#allocation151_spill] sm:$0xff] %v20662_v55  ;;  %v20665_v20 = vadd.f32 %v16197_v63, %v23035_v48  ;;  %v23065_v55 = vld [vmem:[#allocation38_spill] sm:$0xff] }
 0x50a   :  { %v5157_v8 = vpop.f32.mrf.mxu1 }
 0x50b   :  { %23036 = vst [vmem:[#allocation200_spill] sm:$0xff] %v20665_v20  ;;  %v20670_v45 = vadd.f32 %v5157_v8, %v23038_v18  ;;  %v20685_v18 = vpop.f32.mrf.mxu0 }
 0x50c   :  { %v16200_v19 = vpop.f32.mrf.mxu1  ;;  %16487 = vmatmul.mubr.bf16.gmra.mxu1 %v23040_v60  ;;  %23049 = vst [vmem:[#allocation203_spill] sm:$0xff] %v20685_v18  ;;  %v23057_v18 = vld [vmem:[#allocation14_spill] sm:$0xff] }
 0x50d   :  { %23039 = vst [vmem:[#allocation201_spill] sm:$0xff] %v20670_v45  ;;  %v20674_v50 = vadd.f32 %v16200_v19, %v23041_v1  ;;  %16490 = vmatprep.mubr.bf16.mxu1 %v23043_v62  ;;  %v23052_v1 = vld [vmem:[#allocation35_spill] sm:$0xff]  ;;  %v17426_v62 = vld [vmem:[#allocation2 + $0x78] sm:$0xff]  }
 0x50e   :  { %v5170_v38 = vpop.f32.mrf.mxu1  ;;  %v7793_v45 = vshll.u32 %v17426_v62, 16  ;;  %v7797_v20 = vshrl.u32 %v17426_v62, 16  ;;  %v23069_v62 = vld [vmem:[#allocation185_spill] sm:$0xff] }
 0x50f   :  { %23042 = vst [vmem:[#allocation155_spill] sm:$0xff] %v20674_v50  ;;  %v20680_v63 = vadd.f32 %v5170_v38, %v23045_v54  ;;  %v23055_v54 = vld [vmem:[#allocation36_spill] sm:$0xff]  ;;  %v20695_v38 = vpop.f32.mrf.mxu0 }
 0x510   :  { %v16201_v48 = vpop.f32.mrf.mxu1  ;;  %23056 = vst [vmem:[#allocation161_spill] sm:$0xff] %v20695_v38 }
 0x511   :  { %23046 = vst [vmem:[#allocation13_spill] sm:$0xff] %v20680_v63  ;;  %v20683_v7 = vadd.f32 %v16201_v48, %v23047_v59  ;;  %v17427_v48 = vld [vmem:[#allocation2 + $0x70] sm:$0xff]   ;;  %v20704_v50 = vpop.f32.mrf.mxu0 }
 0x512   :  { %v5173_v8 = vpop.f32.mrf.mxu1  ;;  %v7789_v3 = vshrl.u32 %v17427_v48, 16  ;;  %23062 = vst [vmem:[#allocation165_spill] sm:$0xff] %v20704_v50 }
 0x513   :  { %23048 = vst [vmem:[#allocation157_spill] sm:$0xff] %v20683_v7  ;;  %v20688_v60 = vadd.f32 %v5173_v8, %v23050_v25  ;;  %v23059_v8 = vld [vmem:[#allocation37_spill] sm:$0xff]  ;;  %v7795_v7 = vrot.slane %v7793_v45, 1  ;;  %v20714_v45 = vpop.f32.mrf.mxu0 }
 0x514   :  { %v16204_v19 = vpop.f32.mrf.mxu1  ;;  %16491 = vmatmul.mubr.bf16.gmra.mxu1 %v23052_v1  ;;  %v23060_v1 = vld [vmem:[#allocation117_spill] sm:$0xff]  ;;  %23067 = vst [vmem:[#allocation167_spill] sm:$0xff] %v20714_v45 }
 0x515   :  { %23051 = vst [vmem:[#allocation159_spill] sm:$0xff] %v20688_v60  ;;  %v20692_v53 = vadd.f32 %v16204_v19, %v23053_v32  ;;  %16494 = vmatprep.mubr.bf16.mxu1 %v23055_v54  ;;  %v7791_v60 = vor.u32 %v7789_v3, %v23059_v8  ;;  %v17428_v19 = vld [vmem:[#allocation2 + $0x80] sm:$0xff]  }
 0x516   :  { %v5186_v59 = vpop.f32.mrf.mxu1  ;;  %v7801_v54 = vshll.u32 %v17428_v19, 16 }
 0x517   :  { %23054 = vst [vmem:[#allocation204_spill] sm:$0xff] %v20692_v53  ;;  %v20698_v36 = vadd.f32 %v5186_v59, %v23057_v18  ;;  %v23063_v53 = vld [vmem:[#allocation15_spill] sm:$0xff]  ;;  %v7796_v18 = vsel %vm3120_vm0, %v7791_v60, %v7795_v7 }
 0x518   :  { %v16205_v25 = vpop.f32.mrf.mxu1  ;;  %v23066_v59 = vld [vmem:[#allocation119_spill] sm:$0xff]  ;;  %v7803_v8 = vrot.slane %v7801_v54, 1  ;;  %v23073_v54 = vld [vmem:[#allocation46_spill] sm:$0xff] }
 0x519   :  { %23058 = vst [vmem:[#allocation205_spill] sm:$0xff] %v20698_v36  ;;  %v20702_v63 = vadd.f32 %v16205_v25, %v23060_v1  ;;  %v23068_v1 = vld [vmem:[#allocation121_spill] sm:$0xff] }
 0x51a   :  { %v5189_v32 = vpop.f32.mrf.mxu1 }
 0x51b   :  { %23061 = vst [vmem:[#allocation163_spill] sm:$0xff] %v20702_v63  ;;  %v20707_v38 = vadd.f32 %v5189_v32, %v23063_v53  ;;  %v7799_v63 = vor.u32 %v7797_v20, %v7795_v7  ;;  %v7805_v32 = vshrl.u32 %v17428_v19, 16  ;;  %v23074_v7 = vld [vmem:[#allocation16_spill] sm:$0xff] }
 0x51c   :  { %v16208_v48 = vpop.f32.mrf.mxu1  ;;  %16495 = vmatmul.mubr.bf16.gmra.mxu1 %v23065_v55  ;;  %v20722_v55 = vpop.f32.mrf.mxu0 }
 0x51d   :  { %23064 = vst [vmem:[#allocation206_spill] sm:$0xff] %v20707_v38  ;;  %v20712_v3 = vadd.f32 %v16208_v48, %v23066_v59  ;;  %16498 = vmatprep.mubr.bf16.mxu1 %v7796_v18  ;;  %23070 = vst [vmem:[#allocation207_spill] sm:$0xff] %v20722_v55  ;;  %v7807_v36 = vor.u32 %v7805_v32, %v7803_v8  ;;  %v23071_v48 = vld [vmem:[#allocation186_spill] sm:$0xff]  ;;  %v7804_v18 = vsel %vm3120_vm0, %v7799_v63, %v7803_v8 }
 0x51e   :  { %v5202_v25 = vpop.f32.mrf.mxu1  ;;  %v20733_v19 = vpop.f32.mrf.mxu0 }
 0x51f   :  { %v20717_v50 = vadd.f32 %v5202_v25, %v23068_v1  ;;  %v7812_v25 = vsel %vm3120_vm0, %v7807_v36, %v23073_v54  ;;  %23075 = vst [vmem:[#allocation208_spill] sm:$0xff] %v20733_v19  ;;  %v23080_v54 = vld [vmem:[#allocation50_spill] sm:$0xff] }
 0x520   :  { %v16209_v53 = vpop.f32.mrf.mxu1  ;;  %v20741_v63 = vpop.f32.mrf.mxu0 }
 0x521   :  { %v20720_v38 = vadd.f32 %v16209_v53, %v23069_v62  ;;  %23076 = vst [vmem:[#allocation12_spill] sm:$0xff] %v20741_v63 }
 0x522   :  { %v5205_v60 = vpop.f32.mrf.mxu1 }
 0x523   :  { %v20725_v59 = vadd.f32 %v5205_v60, %v23071_v48  ;;  %v23077_v60 = vld [vmem:[#allocation17_spill] sm:$0xff] }
 0x524   :  { %v16212_v45 = vpop.f32.mrf.mxu1  ;;  %16499 = vmatmul.mubr.bf16.gmra.mxu1 %v7804_v18 }
 0x525   :  { %23072 = vst [vmem:[#allocation169_spill] sm:$0xff] %v20725_v59  ;;  %v20731_v20 = vadd.f32 %v16212_v45, %v23074_v7  ;;  %16502 = vmatprep.mubr.bf16.mxu1 %v7812_v25  ;;  %v23079_v45 = vld [vmem:[#allocation48_spill] sm:$0xff] }
 0x526   :  { %v5218_v1 = vpop.f32.mrf.mxu1 }
 0x527   :  { %v20736_v53 = vadd.f32 %v5218_v1, %v20424_v57  ;;  %v20751_v57 = vpop.f32.mrf.mxu0 }
 0x528   :  { %v16213_v32 = vpop.f32.mrf.mxu1  ;;  %23081 = vst [vmem:[#allocation9_spill] sm:$0xff] %v20751_v57 }
 0x529   :  { %v20739_v62 = vadd.f32 %v16213_v32, %v20428_v28  ;;  %v20759_v32 = vpop.f32.mrf.mxu0 }
 0x52a   :  { %v5221_v8 = vpop.f32.mrf.mxu1  ;;  %23082 = vst [vmem:[#allocation11_spill] sm:$0xff] %v20759_v32 }
 0x52b   :  { %v20744_v48 = vadd.f32 %v5221_v8, %v23077_v60 }
 0x52c   :  { %v16216_v36 = vpop.f32.mrf.mxu1  ;;  %16503 = vmatmul.mubr.bf16.gmra.mxu1 %v23079_v45 }
 0x52d   :  { %23078 = vst [vmem:[#allocation25_spill] sm:$0xff] %v20744_v48  ;;  %v20748_v18 = vadd.f32 %v16216_v36, %v20440_v41  ;;  %16506 = vmatprep.mubr.bf16.mxu1 %v23080_v54  ;;  %v23084_v41 = vld [vmem:[#allocation47_spill] sm:$0xff] }
 0x52e   :  { %v5234_v25 = vpop.f32.mrf.mxu1  ;;  %v6189_v36 = vadd.f32 %v23084_v41, %v20460_v15  ;;  %v23085_v54 = vld [vmem:[#allocation51_spill] sm:$0xff]  ;;  %v23090_v41 = vld [vmem:[#allocation57_spill] sm:$0xff] }
 0x52f   :  { %v20754_v28 = vadd.f32 %v5234_v25, %v20446_v30  ;;  %v23086_v30 = vld [vmem:[#allocation52_spill] sm:$0xff]  ;;  %v23087_v25 = vld [vmem:[#allocation49_spill] sm:$0xff] }
 0x530   :  { %v16217_v7 = vpop.f32.mrf.mxu1 }
 0x531   :  { %v20757_v1 = vadd.f32 %v16217_v7, %v20450_v23  ;;  %v6187_v23 = vadd.f32 %v23087_v25, %v20466_v40  ;;  %v20772_v7 = vpop.f32.mrf.mxu0  ;;  %v23091_v40 = vld [vmem:[#allocation63_spill] sm:$0xff] }
 0x532   :  { %v5237_v8 = vpop.f32.mrf.mxu1  ;;  %23088 = vst [vmem:[#allocation39_spill] sm:$0xff] %v20772_v7  ;;  %v6193_v25 = vadd.f32 %v23091_v40, %v20478_v5  ;;  %v23096_v40 = vld [vmem:[#allocation71_spill] sm:$0xff] }
 0x533   :  { %v20762_v60 = vadd.f32 %v5237_v8, %v20454_v31  ;;  %v23089_v31 = vld [vmem:[#allocation54_spill] sm:$0xff] }
 0x534   :  { %v16316_v45 = vpop.f32.mrf.mxu1  ;;  %16507 = vmatmul.mubr.bf16.gmra.mxu1 %v23085_v54  ;;  %v6190_v8 = vadd.f32 %v23089_v31, %v20469_v10  ;;  %v23093_v10 = vld [vmem:[#allocation55_spill] sm:$0xff] }
 0x535   :  { %23083 = vst [vmem:[#allocation8_spill] sm:$0xff] %v20762_v60  ;;  %v20767_v57 = vadd.f32 %v16316_v45, %v6189_v36  ;;  %16510 = vmatprep.mubr.bf16.mxu1 %v23086_v30  ;;  %v6188_v36 = vadd.f32 %v23090_v41, %v20474_v56  ;;  %v20782_v45 = vpop.f32.mrf.mxu0 }
 0x536   :  { %v6451_v32 = vpop.f32.mrf.mxu1 }
 0x537   :  { %v20774_v63 = vadd.f32 %v6451_v32, %v6187_v23  ;;  %v23092_v32 = vld [vmem:[#allocation53_spill] sm:$0xff] }
 0x538   :  { %v16317_v60 = vpop.f32.mrf.mxu1 }
 0x539   :  { %v20778_v15 = vadd.f32 %v16317_v60, %v6190_v8  ;;  %v23094_v60 = vld [vmem:[#allocation67_spill] sm:$0xff]  ;;  %v20794_v8 = vpop.f32.mrf.mxu0 }
 0x53a   :  { %v6454_v54 = vpop.f32.mrf.mxu1  ;;  %v6191_v31 = vadd.f32 %v23094_v60, %v20484_v12  ;;  %v23097_v12 = vld [vmem:[#allocation73_spill] sm:$0xff] }
 0x53b   :  { %v20784_v30 = vadd.f32 %v6454_v54, %v6188_v36  ;;  %v23095_v36 = vld [vmem:[#allocation69_spill] sm:$0xff]  ;;  %v6197_v60 = vadd.f32 %v23097_v12, %v20496_v6  ;;  %v23104_v12 = vld [vmem:[#allocation79_spill] sm:$0xff] }
 0x53c   :  { %v16320_v7 = vpop.f32.mrf.mxu1  ;;  %16511 = vmatmul.mubr.bf16.gmra.mxu1 %v23092_v32  ;;  %v6194_v54 = vadd.f32 %v23095_v36, %v20487_v37  ;;  %v23099_v37 = vld [vmem:[#allocation58_spill] sm:$0xff] }
 0x53d   :  { %v20789_v23 = vadd.f32 %v16320_v7, %v6193_v25  ;;  %16514 = vmatprep.mubr.bf16.mxu1 %v23093_v10  ;;  %v6192_v7 = vadd.f32 %v23096_v40, %v20492_v0  ;;  %v20804_v25 = vpop.f32.mrf.mxu0 }
 0x53e   :  { %v6467_v56 = vpop.f32.mrf.mxu1 }
 0x53f   :  { %v20796_v41 = vadd.f32 %v6467_v56, %v6191_v31  ;;  %v23098_v31 = vld [vmem:[#allocation56_spill] sm:$0xff] }
 0x540   :  { %v16321_v19 = vpop.f32.mrf.mxu1 }
 0x541   :  { %v20800_v5 = vadd.f32 %v16321_v19, %v6194_v54  ;;  %v23100_v19 = vld [vmem:[#allocation75_spill] sm:$0xff]  ;;  %v20816_v54 = vpop.f32.mrf.mxu0 }
 0x542   :  { %v6470_v32 = vpop.f32.mrf.mxu1  ;;  %v6195_v36 = vadd.f32 %v23100_v19, %v20502_v21  ;;  %v23106_v21 = vld [vmem:[#allocation81_spill] sm:$0xff] }
 0x543   :  { %v20806_v10 = vadd.f32 %v6470_v32, %v6192_v7  ;;  %v23102_v7 = vld [vmem:[#allocation77_spill] sm:$0xff]  ;;  %v6201_v19 = vadd.f32 %v23106_v21, %v20514_v13  ;;  %v23114_v21 = vld [vmem:[#allocation87_spill] sm:$0xff] }
 0x544   :  { %v16324_v55 = vpop.f32.mrf.mxu1  ;;  %16515 = vmatmul.mubr.bf16.gmra.mxu1 %v23098_v31  ;;  %v6198_v32 = vadd.f32 %v23102_v7, %v20505_v61  ;;  %v23109_v61 = vld [vmem:[#allocation60_spill] sm:$0xff] }
 0x545   :  { %v20811_v56 = vadd.f32 %v16324_v55, %v6197_v60  ;;  %16518 = vmatprep.mubr.bf16.mxu1 %v23099_v37  ;;  %v6196_v55 = vadd.f32 %v23104_v12, %v20510_v52  ;;  %v20826_v60 = vpop.f32.mrf.mxu0 }
 0x546   :  { %v6483_v0 = vpop.f32.mrf.mxu1 }
 0x547   :  { %v20818_v40 = vadd.f32 %v6483_v0, %v6195_v36  ;;  %v23107_v36 = vld [vmem:[#allocation59_spill] sm:$0xff] }
 0x548   :  { %v16325_v48 = vpop.f32.mrf.mxu1 }
 0x549   :  { %23101 = vst [vmem:[#allocation40_spill] sm:$0xff] %v20818_v40  ;;  %v20822_v6 = vadd.f32 %v16325_v48, %v6198_v32  ;;  %v23110_v48 = vld [vmem:[#allocation83_spill] sm:$0xff]  ;;  %v20838_v32 = vpop.f32.mrf.mxu0 }
 0x54a   :  { %v6486_v31 = vpop.f32.mrf.mxu1  ;;  %v6199_v7 = vadd.f32 %v23110_v48, %v20520_v9  ;;  %v23116_v9 = vld [vmem:[#allocation89_spill] sm:$0xff] }
 0x54b   :  { %23103 = vst [vmem:[#allocation41_spill] sm:$0xff] %v20822_v6  ;;  %v20828_v37 = vadd.f32 %v6486_v31, %v6196_v55  ;;  %v23112_v55 = vld [vmem:[#allocation85_spill] sm:$0xff]  ;;  %v6205_v48 = vadd.f32 %v23116_v9, %v20532_v34 }
 0x54c   :  { %v16328_v59 = vpop.f32.mrf.mxu1  ;;  %16519 = vmatmul.mubr.bf16.gmra.mxu1 %v23107_v36  ;;  %v6202_v31 = vadd.f32 %v23112_v55, %v20523_v35  ;;  %v23120_v55 = vld [vmem:[#allocation91_spill] sm:$0xff]  ;;  %v23121_v34 = vld [vmem:[#allocation93_spill] sm:$0xff] }
 0x54d   :  { %23105 = vst [vmem:[#allocation42_spill] sm:$0xff] %v20828_v37  ;;  %v20833_v0 = vadd.f32 %v16328_v59, %v6201_v19  ;;  %16522 = vmatprep.mubr.bf16.mxu1 %v23109_v61  ;;  %v6200_v59 = vadd.f32 %v23114_v21, %v20528_v47  ;;  %v20848_v19 = vpop.f32.mrf.mxu0  ;;  %v6203_v47 = vadd.f32 %v23120_v55, %v20538_v27  ;;  %v23124_v55 = vld [vmem:[#allocation97_spill] sm:$0xff] }
 0x54e   :  { %v6499_v52 = vpop.f32.mrf.mxu1  ;;  %v6206_v9 = vadd.f32 %v23121_v34, %v20541_v29  ;;  %v6209_v40 = vadd.f32 %v23124_v55, %v20550_v16 }
 0x54f   :  { %23108 = vst [vmem:[#allocation43_spill] sm:$0xff] %v20833_v0  ;;  %v20840_v12 = vadd.f32 %v6499_v52, %v6199_v7  ;;  %v23117_v7 = vld [vmem:[#allocation61_spill] sm:$0xff] }
 0x550   :  { %v16329_v37 = vpop.f32.mrf.mxu1  ;;  %v17429_v52 = vld [vmem:[#allocation2 + $0xf8] sm:$0xff]  }
 0x551   :  { %23111 = vst [vmem:[#allocation44_spill] sm:$0xff] %v20840_v12  ;;  %v20844_v13 = vadd.f32 %v16329_v37, %v6202_v31  ;;  %v7921_v12 = vshll.u32 %v17429_v52, 16  ;;  %v23119_v37 = vld [vmem:[#allocation64_spill] sm:$0xff]  ;;  %v20860_v31 = vpop.f32.mrf.mxu0 }
 0x552   :  { %v6502_v36 = vpop.f32.mrf.mxu1 }
 0x553   :  { %23113 = vst [vmem:[#allocation45_spill] sm:$0xff] %v20844_v13  ;;  %v20850_v61 = vadd.f32 %v6502_v36, %v6200_v59  ;;  %v17430_v59 = vld [vmem:[#allocation2 + $0xf0] sm:$0xff]   ;;  %v23122_v13 = vld [vmem:[#allocation62_spill] sm:$0xff] }
 0x554   :  { %v16332_v0 = vpop.f32.mrf.mxu1  ;;  %16523 = vmatmul.mubr.bf16.gmra.mxu1 %v23117_v7  ;;  %v7917_v36 = vshrl.u32 %v17430_v59, 16 }
 0x555   :  { %23115 = vst [vmem:[#allocation22_spill] sm:$0xff] %v20850_v61  ;;  %v20855_v35 = vadd.f32 %v16332_v0, %v6205_v48  ;;  %16526 = vmatprep.mubr.bf16.mxu1 %v23119_v37  ;;  %v7923_v0 = vrot.slane %v7921_v12, 1  ;;  %v7925_v37 = vshrl.u32 %v17429_v52, 16  ;;  %v23126_v12 = vld [vmem:[#allocation98_spill] sm:$0xff] }
 0x556   :  { %v6515_v21 = vpop.f32.mrf.mxu1  ;;  %v7919_v6 = vor.u32 %v7917_v36, %v23122_v13  ;;  %v6207_v13 = vadd.f32 %v23126_v12, %v20556_v42  ;;  %v23128_v42 = vld [vmem:[#allocation104_spill] sm:$0xff] }
 0x557   :  { %23118 = vst [vmem:[#allocation180_spill] sm:$0xff] %v20855_v35  ;;  %v20862_v61 = vadd.f32 %v6515_v21, %v6203_v47  ;;  %v20869_v35 = vpop.f32.mrf.mxu0  ;;  %v23125_v47 = vld [vmem:[#allocation65_spill] sm:$0xff]  ;;  %v7927_v36 = vor.u32 %v7925_v37, %v7923_v0 }
 0x558   :  { %v16333_v7 = vpop.f32.mrf.mxu1  ;;  %v7924_v21 = vsel %vm3120_vm0, %v7919_v6, %v7923_v0  ;;  %v6213_v0 = vadd.f32 %v23128_v42, %v20571_v49  ;;  %v23136_v42 = vld [vmem:[#allocation111_spill] sm:$0xff] }
 0x559   :  { %v20867_v48 = vadd.f32 %v16333_v7, %v6206_v9  ;;  %v20881_v52 = vpop.f32.mrf.mxu0  ;;  %v23127_v7 = vld [vmem:[#allocation100_spill] sm:$0xff] }
 0x55a   :  { %v20871_v27 = vpop.f32.mrf.mxu1  ;;  %v6210_v16 = vadd.f32 %v23127_v7, %v20559_v33 }
 0x55b   :  { %23123 = vst [vmem:[#allocation26_spill] sm:$0xff] %v20867_v48  ;;  %v20891_v6 = vpop.f32.mrf.mxu0 }
 0x55c   :  { %v16336_v59 = vpop.f32.mrf.mxu1  ;;  %16527 = vmatmul.mubr.bf16.gmra.mxu1 %v23125_v47 }
 0x55d   :  { %v20877_v29 = vadd.f32 %v16336_v59, %v6209_v40  ;;  %16530 = vmatprep.mubr.bf16.mxu1 %v7924_v21  ;;  %v7932_v40 = vsel %vm3120_vm0, %v7927_v36, %v20590_v22  ;;  %v23130_v21 = vld [vmem:[#allocation106_spill] sm:$0xff]  ;;  %v20902_v12 = vpop.f32.mrf.mxu0  ;;  %v23132_v36 = vld [vmem:[#allocation108_spill] sm:$0xff] }
 0x55e   :  { %v6531_v34 = vpop.f32.mrf.mxu1  ;;  %v6211_v33 = vadd.f32 %v23130_v21, %v20576_v44 }
 0x55f   :  { %v20883_v9 = vadd.f32 %v6531_v34, %v6207_v13  ;;  %v6214_v34 = vadd.f32 %v23132_v36, %v20579_v26  ;;  %v20910_v49 = vpop.f32.mrf.mxu0  ;;  %v23140_v36 = vld [vmem:[#allocation113_spill] sm:$0xff] }
 0x560   :  { %v16337_v55 = vpop.f32.mrf.mxu1 }
 0x561   :  { %v20887_v48 = vadd.f32 %v16337_v55, %v6210_v16 }
 0x562   :  { %v20893_v59 = vpop.f32.mrf.mxu1 }
 0x564   :  { %v16340_v37 = vpop.f32.mrf.mxu1  ;;  %16531 = vmatmul.mubr.bf16.gmra.mxu1 %v7932_v40  ;;  %v23135_v40 = vld [vmem:[#allocation21_spill] sm:$0xff] }
 0x565   :  { %v20897_v47 = vadd.f32 %v16340_v37, %v6213_v0  ;;  %16534 = vmatprep.mubr.bf16.mxu1 %v20607_v24  ;;  %v6217_v44 = vadd.f32 %v23136_v42, %v23135_v40  ;;  %v23138_v37 = vld [vmem:[#allocation112_spill] sm:$0xff] }
 0x566   :  { %v6547_v13 = vpop.f32.mrf.mxu1  ;;  %v6215_v21 = vadd.f32 %v23138_v37, %v20600_v2  ;;  %v23145_v37 = vld [vmem:[#allocation116_spill] sm:$0xff] }
 0x567   :  { %23129 = vst [vmem:[#allocation27_spill] sm:$0xff] %v20897_v47  ;;  %v20904_v22 = vadd.f32 %v6547_v13, %v6211_v33  ;;  %v20921_v33 = vpop.f32.mrf.mxu0 }
 0x568   :  { %v16341_v7 = vpop.f32.mrf.mxu1 }
 0x569   :  { %23131 = vst [vmem:[#allocation28_spill] sm:$0xff] %v20904_v22  ;;  %v20908_v16 = vadd.f32 %v16341_v7, %v6214_v34  ;;  %v6218_v34 = vadd.f32 %v23140_v36, %v20604_v39  ;;  %v20929_v40 = vpop.f32.mrf.mxu0  ;;  %v23147_v36 = vld [vmem:[#allocation118_spill] sm:$0xff]  ;;  %v23179_v22 = vld [vmem:[#allocation148_spill] sm:$0xff] }
 0x56a   :  { %v20912_v55 = vpop.f32.mrf.mxu1 }
 0x56b   :  { %23133 = vst [vmem:[#allocation29_spill] sm:$0xff] %v20908_v16  ;;  %23134 = vst [vmem:[#allocation30_spill] sm:$0xff] %v20912_v55 }
 0x56c   :  { %v16344_v0 = vpop.f32.mrf.mxu1  ;;  %16535 = vmatmul.mubr.bf16.gmra.mxu1 %v20616_v46  ;;  %v23143_v46 = vld [vmem:[#allocation115_spill] sm:$0xff] }
 0x56d   :  { %v20917_v24 = vadd.f32 %v16344_v0, %v6217_v44  ;;  %v6221_v44 = vadd.f32 %v23143_v46, %v20620_v51  ;;  %v23150_v46 = vld [vmem:[#allocation122_spill] sm:$0xff] }
 0x56e   :  { %v6563_v26 = vpop.f32.mrf.mxu1 }
 0x56f   :  { %23137 = vst [vmem:[#allocation31_spill] sm:$0xff] %v20917_v24  ;;  %v20923_v13 = vadd.f32 %v6563_v26, %v6215_v21  ;;  %v6219_v21 = vadd.f32 %v23145_v37, %v20626_v4  ;;  %v20939_v26 = vpop.f32.mrf.mxu0  ;;  %v23152_v37 = vld [vmem:[#allocation123_spill] sm:$0xff]  ;;  %v23170_v24 = vld [vmem:[#allocation140_spill] sm:$0xff] }
 0x570   :  { %v16345_v7 = vpop.f32.mrf.mxu1 }
 0x571   :  { %23139 = vst [vmem:[#allocation32_spill] sm:$0xff] %v20923_v13  ;;  %v20927_v16 = vadd.f32 %v16345_v7, %v6218_v34  ;;  %v6222_v34 = vadd.f32 %v23147_v36, %v20629_v11  ;;  %v23154_v36 = vld [vmem:[#allocation125_spill] sm:$0xff] }
 0x572   :  { %v20931_v42 = vpop.f32.mrf.mxu1 }
 0x573   :  { %23141 = vst [vmem:[#allocation90_spill] sm:$0xff] %v20927_v16  ;;  %23142 = vst [vmem:[#allocation94_spill] sm:$0xff] %v20931_v42  ;;  %v20947_v42 = vpop.f32.mrf.mxu0 }
 0x574   :  { %v16348_v0 = vpop.f32.mrf.mxu1 }
 0x575   :  { %v20935_v2 = vadd.f32 %v16348_v0, %v6221_v44  ;;  %v6225_v44 = vadd.f32 %v23150_v46, %v20638_v58  ;;  %v23157_v46 = vld [vmem:[#allocation130_spill] sm:$0xff] }
 0x576   :  { %v6579_v13 = vpop.f32.mrf.mxu1 }
 0x577   :  { %23144 = vst [vmem:[#allocation33_spill] sm:$0xff] %v20935_v2  ;;  %v20941_v39 = vadd.f32 %v6579_v13, %v6219_v21  ;;  %v6223_v13 = vadd.f32 %v23152_v37, %v20644_v43  ;;  %v20957_v21 = vpop.f32.mrf.mxu0  ;;  %v23159_v37 = vld [vmem:[#allocation151_spill] sm:$0xff] }
 0x578   :  { %v16349_v7 = vpop.f32.mrf.mxu1 }
 0x579   :  { %23146 = vst [vmem:[#allocation96_spill] sm:$0xff] %v20941_v39  ;;  %v20945_v16 = vadd.f32 %v16349_v7, %v6222_v34  ;;  %v6226_v34 = vadd.f32 %v23154_v36, %v20647_v14  ;;  %v23162_v36 = vld [vmem:[#allocation200_spill] sm:$0xff] }
 0x57a   :  { %v20949_v51 = vpop.f32.mrf.mxu1 }
 0x57b   :  { %23148 = vst [vmem:[#allocation34_spill] sm:$0xff] %v20945_v16  ;;  %23149 = vst [vmem:[#allocation101_spill] sm:$0xff] %v20949_v51  ;;  %v20965_v51 = vpop.f32.mrf.mxu0 }
 0x57c   :  { %v16352_v0 = vpop.f32.mrf.mxu1 }
 0x57d   :  { %v20953_v4 = vadd.f32 %v16352_v0, %v6225_v44  ;;  %v6229_v44 = vadd.f32 %v23157_v46, %v20656_v17  ;;  %v23166_v46 = vld [vmem:[#allocation155_spill] sm:$0xff] }
 0x57e   :  { %v6595_v39 = vpop.f32.mrf.mxu1 }
 0x57f   :  { %23151 = vst [vmem:[#allocation103_spill] sm:$0xff] %v20953_v4  ;;  %v20959_v11 = vadd.f32 %v6595_v39, %v6223_v13  ;;  %v23160_v4 = vld [vmem:[#allocation132_spill] sm:$0xff]  ;;  %v20975_v13 = vpop.f32.mrf.mxu0 }
 0x580   :  { %v16353_v7 = vpop.f32.mrf.mxu1  ;;  %v6227_v39 = vadd.f32 %v23160_v4, %v23159_v37  ;;  %v23169_v37 = vld [vmem:[#allocation13_spill] sm:$0xff] }
 0x581   :  { %23153 = vst [vmem:[#allocation107_spill] sm:$0xff] %v20959_v11  ;;  %v20963_v16 = vadd.f32 %v16353_v7, %v6226_v34  ;;  %v23163_v34 = vld [vmem:[#allocation134_spill] sm:$0xff] }
 0x582   :  { %v20967_v58 = vpop.f32.mrf.mxu1  ;;  %v6230_v7 = vadd.f32 %v23163_v34, %v23162_v36  ;;  %v23173_v34 = vld [vmem:[#allocation142_spill] sm:$0xff] }
 0x583   :  { %23155 = vst [vmem:[#allocation35_spill] sm:$0xff] %v20963_v16  ;;  %23156 = vst [vmem:[#allocation109_spill] sm:$0xff] %v20967_v58  ;;  %v20983_v58 = vpop.f32.mrf.mxu0 }
 0x584   :  { %v16356_v0 = vpop.f32.mrf.mxu1 }
 0x585   :  { %v20971_v43 = vadd.f32 %v16356_v0, %v6229_v44  ;;  %v23167_v44 = vld [vmem:[#allocation138_spill] sm:$0xff] }
 0x586   :  { %v6611_v11 = vpop.f32.mrf.mxu1  ;;  %v6233_v0 = vadd.f32 %v23167_v44, %v23166_v46  ;;  %v23177_v44 = vld [vmem:[#allocation146_spill] sm:$0xff] }
 0x587   :  { %23158 = vst [vmem:[#allocation36_spill] sm:$0xff] %v20971_v43  ;;  %v20977_v14 = vadd.f32 %v6611_v11, %v6227_v39  ;;  %v6231_v11 = vadd.f32 %v23170_v24, %v23169_v37  ;;  %v20993_v39 = vpop.f32.mrf.mxu0  ;;  %v23178_v37 = vld [vmem:[#allocation205_spill] sm:$0xff] }
 0x588   :  { %v16357_v16 = vpop.f32.mrf.mxu1 }
 0x589   :  { %23161 = vst [vmem:[#allocation14_spill] sm:$0xff] %v20977_v14  ;;  %v20981_v2 = vadd.f32 %v16357_v16, %v6230_v7  ;;  %v23172_v16 = vld [vmem:[#allocation157_spill] sm:$0xff] }
 0x58a   :  { %v20985_v17 = vpop.f32.mrf.mxu1  ;;  %v6234_v7 = vadd.f32 %v23173_v34, %v23172_v16  ;;  %v23182_v34 = vld [vmem:[#allocation150_spill] sm:$0xff] }
 0x58b   :  { %23164 = vst [vmem:[#allocation37_spill] sm:$0xff] %v20981_v2  ;;  %23165 = vst [vmem:[#allocation117_spill] sm:$0xff] %v20985_v17  ;;  %v21001_v17 = vpop.f32.mrf.mxu0 }
 0x58c   :  { %v16360_v43 = vpop.f32.mrf.mxu1 }
 0x58d   :  { %v20989_v4 = vadd.f32 %v16360_v43, %v6233_v0  ;;  %v23176_v43 = vld [vmem:[#allocation204_spill] sm:$0xff] }
 0x58e   :  { %v6627_v14 = vpop.f32.mrf.mxu1  ;;  %v6237_v0 = vadd.f32 %v23177_v44, %v23176_v43 }
 0x58f   :  { %23168 = vst [vmem:[#allocation15_spill] sm:$0xff] %v20989_v4  ;;  %v20995_v36 = vadd.f32 %v6627_v14, %v6231_v11  ;;  %v6235_v14 = vadd.f32 %v23179_v22, %v23178_v37  ;;  %v21011_v11 = vpop.f32.mrf.mxu0  ;;  %v23186_v37 = vld [vmem:[#allocation156_spill] sm:$0xff] }
 0x590   :  { %v16361_v2 = vpop.f32.mrf.mxu1 }
 0x591   :  { %23171 = vst [vmem:[#allocation38_spill] sm:$0xff] %v20995_v36  ;;  %v20999_v55 = vadd.f32 %v16361_v2, %v6234_v7  ;;  %v23181_v2 = vld [vmem:[#allocation163_spill] sm:$0xff] }
 0x592   :  { %v21003_v46 = vpop.f32.mrf.mxu1  ;;  %v6238_v7 = vadd.f32 %v23182_v34, %v23181_v2 }
 0x593   :  { %23174 = vst [vmem:[#allocation119_spill] sm:$0xff] %v20999_v55  ;;  %23175 = vst [vmem:[#allocation121_spill] sm:$0xff] %v21003_v46  ;;  %v21019_v46 = vpop.f32.mrf.mxu0 }
 0x594   :  { %v16364_v4 = vpop.f32.mrf.mxu1 }
 0x595   :  { %v21007_v24 = vadd.f32 %v16364_v4, %v6237_v0  ;;  %v23185_v4 = vld [vmem:[#allocation154_spill] sm:$0xff] }
 0x596   :  { %v6643_v36 = vpop.f32.mrf.mxu1  ;;  %v6241_v44 = vadd.f32 %v23185_v4, %v20712_v3  ;;  %v23191_v4 = vld [vmem:[#allocation162_spill] sm:$0xff] }
 0x597   :  { %v21013_v16 = vadd.f32 %v6643_v36, %v6235_v14  ;;  %v6239_v36 = vadd.f32 %v23186_v37, %v20717_v50  ;;  %v21029_v14 = vpop.f32.mrf.mxu0  ;;  %v23193_v37 = vld [vmem:[#allocation164_spill] sm:$0xff] }
 0x598   :  { %v16365_v55 = vpop.f32.mrf.mxu1 }
 0x599   :  { %23180 = vst [vmem:[#allocation185_spill] sm:$0xff] %v21013_v16  ;;  %v21017_v47 = vadd.f32 %v16365_v55, %v6238_v7  ;;  %v23188_v55 = vld [vmem:[#allocation158_spill] sm:$0xff] }
 0x59a   :  { %v21021_v43 = vpop.f32.mrf.mxu1  ;;  %v6242_v34 = vadd.f32 %v23188_v55, %v20720_v38  ;;  %v23195_v55 = vld [vmem:[#allocation166_spill] sm:$0xff] }
 0x59b   :  { %23183 = vst [vmem:[#allocation186_spill] sm:$0xff] %v21017_v47  ;;  %23184 = vst [vmem:[#allocation46_spill] sm:$0xff] %v21021_v43  ;;  %v21037_v43 = vpop.f32.mrf.mxu0 }
 0x59c   :  { %v16368_v0 = vpop.f32.mrf.mxu1 }
 0x59d   :  { %v21025_v22 = vadd.f32 %v16368_v0, %v6241_v44  ;;  %v6245_v44 = vadd.f32 %v23191_v4, %v20731_v20  ;;  %v23198_v4 = vld [vmem:[#allocation170_spill] sm:$0xff] }
 0x59e   :  { %v6659_v16 = vpop.f32.mrf.mxu1 }
 0x59f   :  { %v21031_v2 = vadd.f32 %v6659_v16, %v6239_v36  ;;  %v6243_v16 = vadd.f32 %v23193_v37, %v20736_v53  ;;  %v21047_v36 = vpop.f32.mrf.mxu0  ;;  %v23200_v37 = vld [vmem:[#allocation171_spill] sm:$0xff] }
 0x5a0   :  { %v16369_v7 = vpop.f32.mrf.mxu1 }
 0x5a1   :  { %23187 = vst [vmem:[#allocation16_spill] sm:$0xff] %v21031_v2  ;;  %v21035_v47 = vadd.f32 %v16369_v7, %v6242_v34  ;;  %v6246_v34 = vadd.f32 %v23195_v55, %v20739_v62  ;;  %v23202_v55 = vld [vmem:[#allocation172_spill] sm:$0xff] }
 0x5a2   :  { %v21039_v3 = vpop.f32.mrf.mxu1 }
 0x5a3   :  { %23189 = vst [vmem:[#allocation17_spill] sm:$0xff] %v21035_v47  ;;  %23190 = vst [vmem:[#allocation48_spill] sm:$0xff] %v21039_v3  ;;  %v21055_v3 = vpop.f32.mrf.mxu0 }
 0x5a4   :  { %v16372_v0 = vpop.f32.mrf.mxu1 }
 0x5a5   :  { %v21043_v50 = vadd.f32 %v16372_v0, %v6245_v44  ;;  %v6249_v44 = vadd.f32 %v23198_v4, %v20748_v18  ;;  %v23205_v4 = vld [vmem:[#allocation174_spill] sm:$0xff] }
 0x5a6   :  { %v6675_v2 = vpop.f32.mrf.mxu1 }
 0x5a7   :  { %23192 = vst [vmem:[#allocation50_spill] sm:$0xff] %v21043_v50  ;;  %v21049_v38 = vadd.f32 %v6675_v2, %v6243_v16  ;;  %v6247_v2 = vadd.f32 %v23200_v37, %v20754_v28  ;;  %v21065_v16 = vpop.f32.mrf.mxu0  ;;  %v23206_v37 = vld [vmem:[#allocation175_spill] sm:$0xff] }
 0x5a8   :  { %v16373_v7 = vpop.f32.mrf.mxu1  ;;  %v23210_v50 = vld [vmem:[#allocation179_spill] sm:$0xff] }
 0x5a9   :  { %23194 = vst [vmem:[#allocation47_spill] sm:$0xff] %v21049_v38  ;;  %v21053_v47 = vadd.f32 %v16373_v7, %v6246_v34  ;;  %v6250_v34 = vadd.f32 %v23202_v55, %v20757_v1 }
 0x5aa   :  { %v21057_v20 = vpop.f32.mrf.mxu1 }
 0x5ab   :  { %23196 = vst [vmem:[#allocation51_spill] sm:$0xff] %v21053_v47  ;;  %23197 = vst [vmem:[#allocation52_spill] sm:$0xff] %v21057_v20  ;;  %v21073_v20 = vpop.f32.mrf.mxu0 }
 0x5ac   :  { %v16376_v0 = vpop.f32.mrf.mxu1 }
 0x5ad   :  { %v21061_v53 = vadd.f32 %v16376_v0, %v6249_v44  ;;  %v7382_v44 = vadd.f32 %v23205_v4, %v20767_v57  ;;  %v21092_v57 = vld [vmem:[%s22601_s4] ss:$0 sm:$0xff] }
 0x5ae   :  { %v6691_v38 = vpop.f32.mrf.mxu1 }
 0x5af   :  { %23199 = vst [vmem:[#allocation49_spill] sm:$0xff] %v21061_v53  ;;  %v21067_v62 = vadd.f32 %v6691_v38, %v6247_v2  ;;  %v7380_v53 = vadd.f32 %v23206_v37, %v20774_v63  ;;  %v21081_v38 = vpop.f32.mrf.mxu0 }
 0x5b0   :  { %v16377_v7 = vpop.f32.mrf.mxu1 }
 0x5b1   :  { %23201 = vst [vmem:[#allocation54_spill] sm:$0xff] %v21067_v62  ;;  %v21071_v47 = vadd.f32 %v16377_v7, %v6250_v34  ;;  %v23207_v34 = vld [vmem:[#allocation176_spill] sm:$0xff] }
 0x5b2   :  { %v21075_v18 = vpop.f32.mrf.mxu1  ;;  %v7383_v7 = vadd.f32 %v23207_v34, %v20778_v15  ;;  %v23209_v34 = vld [vmem:[#allocation178_spill] sm:$0xff] }
 0x5b3   :  { %23203 = vst [vmem:[#allocation57_spill] sm:$0xff] %v21071_v47  ;;  %23204 = vst [vmem:[#allocation63_spill] sm:$0xff] %v21075_v18  ;;  %v17031_v47 = vld [vmem:[%s22602_s5 + $0x4] ss:$16 sps:$4 sm:$0xff]   ;;  %v7386_v18 = vadd.f32 %v23209_v34, %v20789_v23 }
 0x5b4   :  { %v16476_v0 = vpop.f32.mrf.mxu1  ;;  %9212 = vmatprep.mubr.bf16.mxu1 %v17031_v47 }
 0x5b5   :  { %v8320_v28 = vadd.f32 %v16476_v0, %v7382_v44  ;;  %v23208_v0 = vld [vmem:[#allocation177_spill] sm:$0xff] }
 0x5b6   :  { %v8063_v2 = vpop.f32.mrf.mxu1 }
 0x5b7   :  { %v8839_v1 = vadd.f32 %v20782_v45, %v8320_v28  ;;  %v8318_v55 = vadd.f32 %v8063_v2, %v7380_v53  ;;  %v7381_v45 = vadd.f32 %v23208_v0, %v20784_v30  ;;  %v21097_v53 = vpop.f32.mrf.mxu0 }
 0x5b8   :  { %v16477_v4 = vpop.f32.mrf.mxu1 }
 0x5b9   :  { %v8837_v63 = vadd.f32 %v20794_v8, %v8318_v55  ;;  %v8321_v44 = vadd.f32 %v16477_v4, %v7383_v7  ;;  %v8910_v28 = vadd.f32 %v21092_v57, %v8839_v1  ;;  %v7384_v8 = vadd.f32 %v23210_v50, %v20796_v41  ;;  %v21108_v4 = vpop.f32.mrf.mxu0 }
 0x5ba   :  { %v8066_v15 = vpop.f32.mrf.mxu1 }
 0x5bb   :  { %v8840_v37 = vadd.f32 %v20804_v25, %v8321_v44  ;;  %v8319_v2 = vadd.f32 %v8066_v15, %v7381_v45  ;;  %v8908_v55 = vadd.f32 %v21092_v57, %v8837_v63  ;;  %v8974_v0 = vmax.f32 %v8910_v28, 0.0  ;;  %v23211_v15 = vld [vmem:[#allocation181_spill] sm:$0xff] }
 0x5bc   :  { %v16480_v62 = vpop.f32.mrf.mxu1  ;;  %v7387_v41 = vadd.f32 %v23211_v15, %v20800_v5 }
 0x5bd   :  { %v8911_v30 = vadd.f32 %v21092_v57, %v8840_v37  ;;  %v8838_v47 = vadd.f32 %v20816_v54, %v8319_v2  ;;  %v8324_v7 = vadd.f32 %v16480_v62, %v7386_v18  ;;  %v8972_v63 = vmax.f32 %v8908_v55, 0.0  ;;  %v23212_v54 = vld [vmem:[#allocation182_spill] sm:$0xff]  ;;  %v21118_v18 = vpop.f32.mrf.mxu0 }
 0x5be   :  { %v8079_v1 = vpop.f32.mrf.mxu1  ;;  %v7385_v62 = vadd.f32 %v23212_v54, %v20806_v10 }
 0x5bf   :  { %v8975_v25 = vmax.f32 %v8911_v30, 0.0  ;;  %v8909_v44 = vadd.f32 %v21092_v57, %v8838_v47  ;;  %v8322_v45 = vadd.f32 %v8079_v1, %v7384_v8  ;;  %v8843_v23 = vadd.f32 %v20826_v60, %v8324_v7  ;;  %v23213_v60 = vld [vmem:[#allocation66_spill] sm:$0xff] }
 0x5c0   :  { %v16481_v50 = vpop.f32.mrf.mxu1  ;;  %v7390_v47 = vadd.f32 %v23213_v60, %v20811_v56 }
 0x5c1   :  { %v21114_v34 = vpack.c.bf16 %v8975_v25, %v8974_v0  ;;  %v8973_v37 = vmax.f32 %v8909_v44, 0.0  ;;  %v8841_v28 = vadd.f32 %v20838_v32, %v8322_v45  ;;  %v8325_v2 = vadd.f32 %v16481_v50, %v7387_v41  ;;  %v23214_v25 = vld [vmem:[#allocation40_spill] sm:$0xff]  ;;  %v21130_v32 = vpop.f32.mrf.mxu0 }
 0x5c2   :  { %v8082_v30 = vpop.f32.mrf.mxu1  ;;  %v8914_v5 = vadd.f32 %v21092_v57, %v8843_v23  ;;  %v23215_v44 = vld [vmem:[#allocation68_spill] sm:$0xff] }
 0x5c3   :  { %v8323_v8 = vadd.f32 %v8082_v30, %v7385_v62  ;;  %v21123_v7 = vpack.c.bf16 %v8973_v37, %v8972_v63  ;;  %v8844_v55 = vadd.f32 %v20848_v19, %v8325_v2  ;;  %v7388_v15 = vadd.f32 %v23215_v44, %v23214_v25  ;;  %v23216_v19 = vld [vmem:[#allocation41_spill] sm:$0xff]  ;;  %v23217_v37 = vld [vmem:[#allocation70_spill] sm:$0xff] }
 0x5c4   :  { %v16484_v1 = vpop.f32.mrf.mxu1  ;;  %v8912_v45 = vadd.f32 %v21092_v57, %v8841_v28  ;;  %v7391_v54 = vadd.f32 %v23217_v37, %v23216_v19  ;;  %v23219_v28 = vld [vmem:[#allocation72_spill] sm:$0xff] }
 0x5c5   :  { %v8842_v0 = vadd.f32 %v20860_v31, %v8323_v8  ;;  %v8328_v10 = vadd.f32 %v16484_v1, %v7390_v47  ;;  %v8915_v41 = vadd.f32 %v21092_v57, %v8844_v55  ;;  %v8978_v31 = vmax.f32 %v8914_v5, 0.0  ;;  %v23218_v47 = vld [vmem:[#allocation42_spill] sm:$0xff]  ;;  %v21141_v55 = vpop.f32.mrf.mxu0 }
 0x5c6   :  { %v8095_v56 = vpop.f32.mrf.mxu1  ;;  %v7389_v1 = vadd.f32 %v23219_v28, %v23218_v47  ;;  %v8976_v25 = vmax.f32 %v8912_v45, 0.0 }
 0x5c7   :  { %v8913_v50 = vadd.f32 %v21092_v57, %v8842_v0  ;;  %v8847_v23 = vadd.f32 %v20869_v35, %v8328_v10  ;;  %v8326_v63 = vadd.f32 %v8095_v56, %v7388_v15  ;;  %v8979_v62 = vmax.f32 %v8915_v41, 0.0  ;;  %v23220_v15 = vld [vmem:[#allocation43_spill] sm:$0xff]  ;;  %v23221_v41 = vld [vmem:[#allocation74_spill] sm:$0xff] }
 0x5c8   :  { %v16485_v2 = vpop.f32.mrf.mxu1  ;;  %v7394_v56 = vadd.f32 %v23221_v41, %v23220_v15 }
 0x5c9   :  { %v8977_v30 = vmax.f32 %v8913_v50, 0.0  ;;  %v8845_v8 = vadd.f32 %v20881_v52, %v8326_v63  ;;  %v8329_v60 = vadd.f32 %v16485_v2, %v7391_v54  ;;  %v21143_v0 = vpack.c.bf16 %v8979_v62, %v8978_v31  ;;  %v23222_v52 = vld [vmem:[#allocation44_spill] sm:$0xff] }
 0x5ca   :  { %v8098_v35 = vpop.f32.mrf.mxu1  ;;  %v8918_v10 = vadd.f32 %v21092_v57, %v8847_v23  ;;  %v23223_v63 = vld [vmem:[#allocation76_spill] sm:$0xff]  ;;  %v21156_v23 = vpop.f32.mrf.mxu0 }
 0x5cb   :  { %v8848_v44 = vadd.f32 %v20891_v6, %v8329_v60  ;;  %v8327_v5 = vadd.f32 %v8098_v35, %v7389_v1  ;;  %v7392_v19 = vadd.f32 %v23223_v63, %v23222_v52  ;;  %v21151_v37 = vpack.c.bf16 %v8977_v30, %v8976_v25  ;;  %v23224_v35 = vld [vmem:[#allocation45_spill] sm:$0xff]  ;;  %v23225_v30 = vld [vmem:[#allocation78_spill] sm:$0xff] }
 0x5cc   :  { %v16488_v50 = vpop.f32.mrf.mxu1  ;;  %v8916_v54 = vadd.f32 %v21092_v57, %v8845_v8  ;;  %v8982_v2 = vmax.f32 %v8918_v10, 0.0  ;;  %v7395_v25 = vadd.f32 %v23225_v30, %v23224_v35 }
 0x5cd   :  { %v8919_v45 = vadd.f32 %v21092_v57, %v8848_v44  ;;  %v8846_v31 = vadd.f32 %v20902_v12, %v8327_v5  ;;  %v8332_v62 = vadd.f32 %v16488_v50, %v7394_v56  ;;  %v23226_v12 = vld [vmem:[#allocation22_spill] sm:$0xff]  ;;  %v23227_v5 = vld [vmem:[#allocation80_spill] sm:$0xff]  ;;  %v21166_v50 = vpop.f32.mrf.mxu0 }
 0x5ce   :  { %v8111_v6 = vpop.f32.mrf.mxu1  ;;  %v8980_v8 = vmax.f32 %v8916_v54, 0.0  ;;  %v7393_v56 = vadd.f32 %v23227_v5, %v23226_v12 }
 0x5cf   :  { %v8983_v60 = vmax.f32 %v8919_v45, 0.0  ;;  %v8917_v47 = vadd.f32 %v21092_v57, %v8846_v31  ;;  %v8330_v28 = vadd.f32 %v8111_v6, %v7392_v19  ;;  %v8851_v1 = vadd.f32 %v20910_v49, %v8332_v62  ;;  %v23228_v19 = vld [vmem:[#allocation137_spill] sm:$0xff]  ;;  %v23229_v45 = vld [vmem:[#allocation95_spill] sm:$0xff]  ;;  %v23230_v62 = vld [vmem:[#allocation180_spill] sm:$0xff]  ;;  %v21181_v12 = vpop.f32.mrf.mxu0 }
 0x5d0   :  { %v16489_v15 = vpop.f32.mrf.mxu1  ;;  %v6204_v49 = vadd.f32 %v23229_v45, %v23228_v19  ;;  %v23231_v6 = vld [vmem:[#allocation82_spill] sm:$0xff] }
 0x5d1   :  { %v21162_v41 = vpack.c.bf16 %v8983_v60, %v8982_v2  ;;  %v8981_v44 = vmax.f32 %v8917_v47, 0.0  ;;  %v8849_v10 = vadd.f32 %v20921_v33, %v8330_v28  ;;  %v8333_v52 = vadd.f32 %v16489_v15, %v7395_v25  ;;  %v23232_v25 = vld [vmem:[#allocation84_spill] sm:$0xff] }
 0x5d2   :  { %v8114_v63 = vpop.f32.mrf.mxu1  ;;  %v7398_v35 = vadd.f32 %v23231_v6, %v23230_v62  ;;  %v8922_v2 = vadd.f32 %v21092_v57, %v8851_v1  ;;  %v6723_v30 = vadd.f32 %v20871_v27, %v6204_v49  ;;  %v7396_v15 = vadd.f32 %v23232_v25, %v20862_v61  ;;  %v23234_v27 = vld [vmem:[#allocation86_spill] sm:$0xff]  ;;  %v21190_v6 = vpop.f32.mrf.mxu0 }
 0x5d3   :  { %v8331_v31 = vadd.f32 %v8114_v63, %v7393_v56  ;;  %v21173_v54 = vpack.c.bf16 %v8981_v44, %v8980_v8  ;;  %v8852_v60 = vadd.f32 %v20929_v40, %v8333_v52  ;;  %v8920_v5 = vadd.f32 %v21092_v57, %v8849_v10  ;;  %v23233_v52 = vld [vmem:[#allocation26_spill] sm:$0xff] }
 0x5d4   :  { %v16492_v47 = vpop.f32.mrf.mxu1  ;;  %v7399_v63 = vadd.f32 %v23234_v27, %v23233_v52 }
 0x5d5   :  { %v8850_v33 = vadd.f32 %v20939_v26, %v8331_v31  ;;  %v8336_v28 = vadd.f32 %v16492_v47, %v7398_v35  ;;  %v8923_v8 = vadd.f32 %v21092_v57, %v8852_v60  ;;  %v8986_v26 = vmax.f32 %v8922_v2, 0.0  ;;  %v23235_v31 = vld [vmem:[#allocation88_spill] sm:$0xff] }
 0x5d6   :  { %v8127_v44 = vpop.f32.mrf.mxu1  ;;  %v7397_v62 = vadd.f32 %v23235_v31, %v6723_v30  ;;  %v8984_v10 = vmax.f32 %v8920_v5, 0.0 }
 0x5d7   :  { %v8921_v1 = vadd.f32 %v21092_v57, %v8850_v33  ;;  %v8855_v40 = vadd.f32 %v20947_v42, %v8336_v28  ;;  %v8334_v56 = vadd.f32 %v8127_v44, %v7396_v15  ;;  %v8987_v19 = vmax.f32 %v8923_v8, 0.0  ;;  %v23236_v33 = vld [vmem:[#allocation194_spill] sm:$0xff]  ;;  %v23238_v8 = vld [vmem:[#allocation92_spill] sm:$0xff] }
 0x5d8   :  { %v16493_v45 = vpop.f32.mrf.mxu1  ;;  %v23237_v28 = vld [vmem:[#allocation102_spill] sm:$0xff]  ;;  %v7402_v44 = vadd.f32 %v23238_v8, %v20877_v29  ;;  %v23240_v29 = vld [vmem:[#allocation105_spill] sm:$0xff] }
 0x5d9   :  { %v8985_v49 = vmax.f32 %v8921_v1, 0.0  ;;  %v8337_v61 = vadd.f32 %v16493_v45, %v7399_v63  ;;  %v21192_v35 = vpack.c.bf16 %v8987_v19, %v8986_v26  ;;  %v8926_v60 = vadd.f32 %v21092_v57, %v8855_v40  ;;  %v23239_v1 = vld [vmem:[#allocation99_spill] sm:$0xff]  ;;  %v21208_v63 = vpop.f32.mrf.mxu0 }
 0x5da   :  { %v8853_v42 = vadd.f32 %v20957_v21, %v8334_v56  ;;  %v8130_v47 = vpop.f32.mrf.mxu1  ;;  %v6208_v25 = vadd.f32 %v23237_v28, %v23236_v33  ;;  %v7400_v5 = vadd.f32 %v23239_v1, %v20883_v9  ;;  %v7403_v45 = vadd.f32 %v23240_v29, %v20887_v48  ;;  %v23245_v1 = vld [vmem:[#allocation183_spill] sm:$0xff] }
 0x5db   :  { %v8856_v2 = vadd.f32 %v20965_v51, %v8337_v61  ;;  %v8335_v15 = vadd.f32 %v8130_v47, %v7397_v62  ;;  %v21203_v52 = vpack.c.bf16 %v8985_v49, %v8984_v10  ;;  %v8990_v51 = vmax.f32 %v8926_v60, 0.0  ;;  %v23241_v10 = vld [vmem:[#allocation10_spill] sm:$0xff]  ;;  %v21218_v33 = vpop.f32.mrf.mxu0 }
 0x5dc   :  { %v16496_v30 = vpop.f32.mrf.mxu1  ;;  %v6727_v40 = vadd.f32 %v20893_v59, %v6208_v25  ;;  %v8924_v26 = vadd.f32 %v21092_v57, %v8853_v42 }
 0x5dd   :  { %v8927_v21 = vadd.f32 %v21092_v57, %v8856_v2  ;;  %v8854_v56 = vadd.f32 %v20975_v13, %v8335_v15  ;;  %v8340_v27 = vadd.f32 %v16496_v30, %v7402_v44  ;;  %v23242_v2 = vld [vmem:[#allocation195_spill] sm:$0xff]  ;;  %v23243_v15 = vld [vmem:[#allocation110_spill] sm:$0xff] }
 0x5de   :  { %v8143_v19 = vpop.f32.mrf.mxu1  ;;  %v7401_v13 = vadd.f32 %v23241_v10, %v6727_v40  ;;  %v8988_v60 = vmax.f32 %v8924_v26, 0.0  ;;  %v6212_v8 = vadd.f32 %v23243_v15, %v23242_v2  ;;  %v23244_v30 = vld [vmem:[#allocation27_spill] sm:$0xff]  ;;  %v23248_v26 = vld [vmem:[#allocation30_spill] sm:$0xff] }
 0x5df   :  { %v8991_v61 = vmax.f32 %v8927_v21, 0.0  ;;  %v8925_v9 = vadd.f32 %v21092_v57, %v8854_v56  ;;  %v8859_v49 = vadd.f32 %v20983_v58, %v8340_v27  ;;  %v8338_v59 = vadd.f32 %v8143_v19, %v7400_v5  ;;  %v23246_v21 = vld [vmem:[#allocation28_spill] sm:$0xff]  ;;  %v23251_v15 = vld [vmem:[#allocation126_spill] sm:$0xff] }
 0x5e0   :  { %v16497_v31 = vpop.f32.mrf.mxu1  ;;  %v7406_v5 = vadd.f32 %v23245_v1, %v23244_v30  ;;  %v23247_v56 = vld [vmem:[#allocation184_spill] sm:$0xff]  ;;  %v6731_v19 = vadd.f32 %v23248_v26, %v6212_v8  ;;  %v23255_v26 = vld [vmem:[#allocation187_spill] sm:$0xff] }
 0x5e1   :  { %v8341_v62 = vadd.f32 %v16497_v31, %v7403_v45  ;;  %v21216_v47 = vpack.c.bf16 %v8991_v61, %v8990_v51  ;;  %v8930_v42 = vadd.f32 %v21092_v57, %v8859_v49  ;;  %v8857_v28 = vadd.f32 %v20993_v39, %v8338_v59  ;;  %v21234_v61 = vpop.f32.mrf.mxu0  ;;  %v23249_v59 = vld [vmem:[#allocation29_spill] sm:$0xff]  ;;  %v23250_v31 = vld [vmem:[#allocation124_spill] sm:$0xff] }
 0x5e2   :  { %v8146_v48 = vpop.f32.mrf.mxu1  ;;  %v8989_v25 = vmax.f32 %v8925_v9, 0.0  ;;  %v7404_v27 = vadd.f32 %v23247_v56, %v23246_v21 }
 0x5e3   :  { %v8860_v58 = vadd.f32 %v21001_v17, %v8341_v62  ;;  %v8339_v44 = vadd.f32 %v8146_v48, %v7401_v13  ;;  %v8994_v17 = vmax.f32 %v8930_v42, 0.0  ;;  %v8928_v9 = vadd.f32 %v21092_v57, %v8857_v28 }
 0x5e4   :  { %v16500_v40 = vpop.f32.mrf.mxu1  ;;  %v21229_v51 = vpack.c.bf16 %v8989_v25, %v8988_v60  ;;  %v7407_v62 = vadd.f32 %v23250_v31, %v23249_v59 }
 0x5e5   :  { %v8931_v39 = vadd.f32 %v21092_v57, %v8860_v58  ;;  %v8858_v29 = vadd.f32 %v21011_v11, %v8339_v44  ;;  %v8344_v45 = vadd.f32 %v16500_v40, %v7406_v5  ;;  %v7405_v11 = vadd.f32 %v23251_v15, %v6731_v19  ;;  %v21244_v58 = vpop.f32.mrf.mxu0  ;;  %v23252_v5 = vld [vmem:[#allocation145_spill] sm:$0xff]  ;;  %v23253_v40 = vld [vmem:[#allocation114_spill] sm:$0xff] }
 0x5e6   :  { %v8159_v49 = vpop.f32.mrf.mxu1  ;;  %v8992_v42 = vmax.f32 %v8928_v9, 0.0  ;;  %v6216_v21 = vadd.f32 %v23253_v40, %v23252_v5  ;;  %v23261_v40 = vld [vmem:[#allocation129_spill] sm:$0xff] }
 0x5e7   :  { %v8995_v10 = vmax.f32 %v8931_v39, 0.0  ;;  %v8929_v13 = vadd.f32 %v21092_v57, %v8858_v29  ;;  %v8863_v60 = vadd.f32 %v21019_v46, %v8344_v45  ;;  %v8342_v48 = vadd.f32 %v8159_v49, %v7404_v27  ;;  %v23254_v27 = vld [vmem:[#allocation31_spill] sm:$0xff]  ;;  %v23256_v29 = vld [vmem:[#allocation32_spill] sm:$0xff]  ;;  %v23258_v49 = vld [vmem:[#allocation94_spill] sm:$0xff] }
 0x5e8   :  { %v16501_v25 = vpop.f32.mrf.mxu1  ;;  %v7410_v19 = vadd.f32 %v23255_v26, %v23254_v27  ;;  %v23257_v45 = vld [vmem:[#allocation128_spill] sm:$0xff]  ;;  %v6735_v59 = vadd.f32 %v23258_v49, %v6216_v21  ;;  %v23265_v49 = vld [vmem:[#allocation189_spill] sm:$0xff] }
 0x5e9   :  { %v8345_v2 = vadd.f32 %v16501_v25, %v7407_v62  ;;  %v21242_v8 = vpack.c.bf16 %v8995_v10, %v8994_v17  ;;  %v8934_v28 = vadd.f32 %v21092_v57, %v8863_v60  ;;  %v8861_v44 = vadd.f32 %v21029_v14, %v8342_v48  ;;  %v21260_v10 = vpop.f32.mrf.mxu0  ;;  %v23259_v48 = vld [vmem:[#allocation90_spill] sm:$0xff]  ;;  %v23260_v25 = vld [vmem:[#allocation188_spill] sm:$0xff] }
 0x5ea   :  { %v8162_v30 = vpop.f32.mrf.mxu1  ;;  %v8993_v1 = vmax.f32 %v8929_v13, 0.0  ;;  %v7408_v17 = vadd.f32 %v23257_v45, %v23256_v29 }
 0x5eb   :  { %v8864_v46 = vadd.f32 %v21037_v43, %v8345_v2  ;;  %v8343_v56 = vadd.f32 %v8162_v30, %v7405_v11  ;;  %v8998_v43 = vmax.f32 %v8934_v28, 0.0  ;;  %v8932_v13 = vadd.f32 %v21092_v57, %v8861_v44 }
 0x5ec   :  { %v16504_v39 = vpop.f32.mrf.mxu1  ;;  %v21255_v9 = vpack.c.bf16 %v8993_v1, %v8992_v42  ;;  %v7411_v2 = vadd.f32 %v23260_v25, %v23259_v48 }
 0x5ed   :  { %v8935_v14 = vadd.f32 %v21092_v57, %v8864_v46  ;;  %v8862_v31 = vadd.f32 %v21047_v36, %v8343_v56  ;;  %v8348_v62 = vadd.f32 %v16504_v39, %v7410_v19  ;;  %v7409_v36 = vadd.f32 %v23261_v40, %v6735_v59  ;;  %v21270_v46 = vpop.f32.mrf.mxu0  ;;  %v23262_v19 = vld [vmem:[#allocation198_spill] sm:$0xff]  ;;  %v23263_v39 = vld [vmem:[#allocation120_spill] sm:$0xff] }
 0x5ee   :  { %v8175_v60 = vpop.f32.mrf.mxu1  ;;  %v8996_v28 = vmax.f32 %v8932_v13, 0.0  ;;  %v6220_v29 = vadd.f32 %v23263_v39, %v23262_v19  ;;  %v23271_v39 = vld [vmem:[#allocation18_spill] sm:$0xff] }
 0x5ef   :  { %v8999_v15 = vmax.f32 %v8935_v14, 0.0  ;;  %v8933_v11 = vadd.f32 %v21092_v57, %v8862_v31  ;;  %v8867_v42 = vadd.f32 %v21055_v3, %v8348_v62  ;;  %v8346_v30 = vadd.f32 %v8175_v60, %v7408_v17  ;;  %v23264_v17 = vld [vmem:[#allocation33_spill] sm:$0xff]  ;;  %v23266_v31 = vld [vmem:[#allocation96_spill] sm:$0xff]  ;;  %v23267_v62 = vld [vmem:[#allocation131_spill] sm:$0xff] }
 0x5f0   :  { %v16505_v1 = vpop.f32.mrf.mxu1  ;;  %v7414_v59 = vadd.f32 %v23265_v49, %v23264_v17  ;;  %v23268_v60 = vld [vmem:[#allocation101_spill] sm:$0xff] }
 0x5f1   :  { %v8349_v5 = vadd.f32 %v16505_v1, %v7411_v2  ;;  %v21268_v21 = vpack.c.bf16 %v8999_v15, %v8998_v43  ;;  %v8938_v44 = vadd.f32 %v21092_v57, %v8867_v42  ;;  %v8865_v56 = vadd.f32 %v21065_v16, %v8346_v30  ;;  %v21286_v15 = vpop.f32.mrf.mxu0  ;;  %v23269_v30 = vld [vmem:[#allocation34_spill] sm:$0xff] }
 0x5f2   :  { %v8178_v27 = vpop.f32.mrf.mxu1  ;;  %v8997_v26 = vmax.f32 %v8933_v11, 0.0  ;;  %v7412_v43 = vadd.f32 %v23267_v62, %v23266_v31  ;;  %v6739_v48 = vadd.f32 %v23268_v60, %v6220_v29  ;;  %v23270_v1 = vld [vmem:[#allocation190_spill] sm:$0xff] }
 0x5f3   :  { %v8868_v3 = vadd.f32 %v21073_v20, %v8349_v5  ;;  %v8347_v45 = vadd.f32 %v8178_v27, %v7409_v36  ;;  %v9002_v20 = vmax.f32 %v8938_v44, 0.0  ;;  %v8936_v11 = vadd.f32 %v21092_v57, %v8865_v56  ;;  %v21295_v44 = vpop.f32.mrf.mxu0  ;;  %v23272_v56 = vld [vmem:[#allocation199_spill] sm:$0xff] }
 0x5f4   :  { %v16508_v14 = vpop.f32.mrf.mxu1  ;;  %v21281_v13 = vpack.c.bf16 %v8997_v26, %v8996_v28  ;;  %v7415_v5 = vadd.f32 %v23270_v1, %v23269_v30  ;;  %v7413_v29 = vadd.f32 %v23271_v39, %v6739_v48  ;;  %v23279_v39 = vld [vmem:[#allocation35_spill] sm:$0xff] }
 0x5f5   :  { %v8939_v16 = vadd.f32 %v21092_v57, %v8868_v3  ;;  %v8866_v25 = vadd.f32 %v21081_v38, %v8347_v45  ;;  %v8352_v2 = vadd.f32 %v16508_v14, %v7414_v59  ;;  %v23273_v45 = vld [vmem:[#allocation127_spill] sm:$0xff]  ;;  %v9000_v49 = vmax.f32 %v8936_v11, 0.0 }
 0x5f6   :  { %v8191_v42 = vpop.f32.mrf.mxu1  ;;  %v6224_v17 = vadd.f32 %v23273_v45, %v23272_v56  ;;  %v23281_v56 = vld [vmem:[#allocation135_spill] sm:$0xff] }
 0x5f7   :  { %v9003_v40 = vmax.f32 %v8939_v16, 0.0  ;;  %v8937_v36 = vadd.f32 %v21092_v57, %v8866_v25  ;;  %v8871_v28 = vadd.f32 %v21097_v53, %v8352_v2  ;;  %v8350_v27 = vadd.f32 %v8191_v42, %v7412_v43  ;;  %v23274_v43 = vld [vmem:[#allocation103_spill] sm:$0xff]  ;;  %v23276_v16 = vld [vmem:[#allocation109_spill] sm:$0xff] }
 0x5f8   :  { %v16509_v26 = vpop.f32.mrf.mxu1  ;;  %v6743_v48 = vadd.f32 %v23276_v16, %v6224_v17  ;;  %v23278_v42 = vld [vmem:[#allocation191_spill] sm:$0xff]  ;;  %v23285_v16 = vld [vmem:[#allocation136_spill] sm:$0xff] }
 0x5f9   :  { %v8869_v19 = vadd.f32 %v21108_v4, %v8350_v27  ;;  %v8353_v38 = vadd.f32 %v16509_v26, %v7415_v5  ;;  %v9051_v3 = vpack.c.bf16 %v9003_v40, %v9002_v20  ;;  %v9001_v14 = vmax.f32 %v8937_v36, 0.0  ;;  %v23275_v4 = vld [vmem:[#allocation133_spill] sm:$0xff]  ;;  %v23277_v20 = vld [vmem:[#allocation107_spill] sm:$0xff]  ;;  %v21310_v40 = vpop.f32.mrf.mxu0 }
 0x5fa   :  { %v8194_v59 = vpop.f32.mrf.mxu1  ;;  %v8942_v31 = vadd.f32 %v21092_v57, %v8871_v28  ;;  %v7418_v60 = vadd.f32 %v23275_v4, %v23274_v43  ;;  %v7416_v11 = vadd.f32 %v23278_v42, %v23277_v20  ;;  %v23282_v43 = vld [vmem:[#allocation36_spill] sm:$0xff] }
 0x5fb   :  { %v8872_v53 = vadd.f32 %v21118_v18, %v8353_v38  ;;  %v8351_v62 = vadd.f32 %v8194_v59, %v7413_v29  ;;  %15136 = vmatprep.subr.bf16.mxu1 %v9051_v3  ;;  %v9050_v2 = vpack.c.bf16 %v9001_v14, %v9000_v49  ;;  %v8940_v30 = vadd.f32 %v21092_v57, %v8869_v19  ;;  %v23280_v29 = vld [vmem:[#allocation19_spill] sm:$0xff]  ;;  %v21322_v14 = vpop.f32.mrf.mxu0  ;;  %v23283_v4 = vld [vmem:[#allocation192_spill] sm:$0xff] }
 0x5fc   :  { %v16512_v25 = vpop.f32.mrf.mxu1  ;;  %15137 = vmatpush3.bf16.msra.mxu1 %v21192_v35  ;;  %v9006_v28 = vmax.f32 %v8942_v31, 0.0  ;;  %v7419_v3 = vadd.f32 %v23280_v29, %v23279_v39 }
 0x5fd   :  { %v8943_v1 = vadd.f32 %v21092_v57, %v8872_v53  ;;  %v8870_v18 = vadd.f32 %v21130_v32, %v8351_v62  ;;  %v8356_v5 = vadd.f32 %v16512_v25, %v7418_v60  ;;  %15138 = vmatprep.subr.bf16.mxu1 %v9050_v2  ;;  %v7417_v32 = vadd.f32 %v23281_v56, %v6743_v48  ;;  %v23284_v60 = vld [vmem:[#allocation201_spill] sm:$0xff] }
 0x5fe   :  { %v8207_v36 = vpop.f32.mrf.mxu1  ;;  %v9004_v45 = vmax.f32 %v8940_v30, 0.0  ;;  %v6228_v48 = vadd.f32 %v23285_v16, %v23284_v60  ;;  %v23287_v30 = vld [vmem:[#allocation193_spill] sm:$0xff]  ;;  %v23294_v60 = vld [vmem:[#allocation15_spill] sm:$0xff] }
 0x5ff   :  { %v9007_v27 = vmax.f32 %v8943_v1, 0.0  ;;  %v8941_v26 = vadd.f32 %v21092_v57, %v8870_v18  ;;  %v8354_v35 = vadd.f32 %v8207_v36, %v7416_v11  ;;  %v8875_v38 = vadd.f32 %v21141_v55, %v8356_v5  ;;  %v23286_v11 = vld [vmem:[#allocation14_spill] sm:$0xff]  ;;  %v21338_v18 = vpop.f32.mrf.mxu0  ;;  %v23288_v5 = vld [vmem:[#allocation117_spill] sm:$0xff] }
 0x600   :  { %v16513_v19 = vpop.f32.mrf.mxu1  ;;  %15139 = vmatpush3.bf16.msra.mxu1 %v21203_v52  ;;  %v7422_v52 = vadd.f32 %v23283_v4, %v23282_v43  ;;  %v7420_v1 = vadd.f32 %v23287_v30, %v23286_v11  ;;  %v6747_v36 = vadd.f32 %v23288_v5, %v6228_v48 }
 0x601   :  { %v21318_v17 = vpack.c.bf16 %v9007_v27, %v9006_v28  ;;  %v9005_v49 = vmax.f32 %v8941_v26, 0.0  ;;  %v8873_v59 = vadd.f32 %v21156_v23, %v8354_v35  ;;  %15140 = vmatprep.subr.bf16.mxu1 %v21268_v21  ;;  %v8357_v31 = vadd.f32 %v16513_v19, %v7419_v3  ;;  %v23289_v35 = vld [vmem:[#allocation37_spill] sm:$0xff] }
 0x602   :  { %v8210_v55 = vpop.f32.mrf.mxu1  ;;  %v8946_v25 = vadd.f32 %v21092_v57, %v8875_v38 }
 0x603   :  { %v21324_v53 = vpack.c.bf16 %v9005_v49, %v9004_v45  ;;  %v8355_v62 = vadd.f32 %v8210_v55, %v7417_v32  ;;  %v8876_v2 = vadd.f32 %v21166_v50, %v8357_v31  ;;  %v8944_v21 = vadd.f32 %v21092_v57, %v8873_v59  ;;  %v21348_v32 = vpop.f32.mrf.mxu0  ;;  %v23291_v45 = vld [vmem:[#allocation159_spill] sm:$0xff]  ;;  %v23292_v49 = vld [vmem:[#allocation144_spill] sm:$0xff] }
 0x604   :  { %v16516_v23 = vpop.f32.mrf.mxu1  ;;  %15141 = vmatpush3.bf16.msra.mxu1 %v21162_v41  ;;  %v9010_v39 = vmax.f32 %v8946_v25, 0.0  ;;  %v6232_v59 = vadd.f32 %v23292_v49, %v23291_v45  ;;  %v23293_v55 = vld [vmem:[#allocation20_spill] sm:$0xff] }
 0x605   :  { %v8874_v20 = vadd.f32 %v21181_v12, %v8355_v62  ;;  %v8360_v42 = vadd.f32 %v16516_v23, %v7422_v52  ;;  %15142 = vmatprep.subr.bf16.mxu1 %v21281_v13  ;;  %v8947_v28 = vadd.f32 %v21092_v57, %v8876_v2  ;;  %v23290_v12 = vld [vmem:[#allocation139_spill] sm:$0xff]  ;;  %v9008_v3 = vmax.f32 %v8944_v21, 0.0  ;;  %v23296_v2 = vld [vmem:[#allocation121_spill] sm:$0xff]  ;;  %v21368_v30 = vpop.f32.mrf.mxu0 }
 0x606   :  { %v8223_v50 = vpop.f32.mrf.mxu1  ;;  %v7423_v38 = vadd.f32 %v23290_v12, %v23289_v35  ;;  %v7421_v62 = vadd.f32 %v23293_v55, %v6747_v36  ;;  %v6751_v23 = vadd.f32 %v23296_v2, %v6232_v59  ;;  %v23299_v36 = vld [vmem:[#allocation119_spill] sm:$0xff] }
 0x607   :  { %v8945_v27 = vadd.f32 %v21092_v57, %v8874_v20  ;;  %v8879_v41 = vadd.f32 %v21190_v6, %v8360_v42  ;;  %v8358_v26 = vadd.f32 %v8223_v50, %v7420_v1  ;;  %v9011_v13 = vmax.f32 %v8947_v28, 0.0  ;;  %v23297_v20 = vld [vmem:[#allocation38_spill] sm:$0xff]  ;;  %v23298_v42 = vld [vmem:[#allocation143_spill] sm:$0xff]  ;;  %v23300_v28 = vld [vmem:[#allocation196_spill] sm:$0xff] }
 0x608   :  { %v16517_v29 = vpop.f32.mrf.mxu1  ;;  %15143 = vmatpush3.bf16.msra.mxu1 %v21173_v54  ;;  %v7424_v11 = vadd.f32 %v23298_v42, %v23297_v20  ;;  %v17029_v20 = vld [vmem:[%s22602_s5] ss:$16 sps:$4 sm:$0xff]  }
 0x609   :  { %v9009_v19 = vmax.f32 %v8945_v27, 0.0  ;;  %v8361_v56 = vadd.f32 %v16517_v29, %v7423_v38  ;;  %15144 = vmatprep.subr.bf16.mxu1 %v21242_v8  ;;  %v21352_v6 = vpack.c.bf16 %v9011_v13, %v9010_v39  ;;  %v8877_v31 = vadd.f32 %v21208_v63, %v8358_v26  ;;  %v23295_v8 = vld [vmem:[#allocation141_spill] sm:$0xff]  ;;  %v21382_v29 = vpop.f32.mrf.mxu0 }
 0x60a   :  { %v8226_v43 = vpop.f32.mrf.mxu1  ;;  %v8950_v54 = vadd.f32 %v21092_v57, %v8879_v41  ;;  %v7426_v16 = vadd.f32 %v23295_v8, %v23294_v60  ;;  %v23307_v60 = vld [vmem:[#allocation23_spill] sm:$0xff] }
 0x60b   :  { %v21356_v4 = vpack.c.bf16 %v9009_v19, %v9008_v3  ;;  %v8880_v52 = vadd.f32 %v21218_v33, %v8361_v56  ;;  %v8359_v48 = vadd.f32 %v8226_v43, %v7421_v62  ;;  %v8948_v33 = vadd.f32 %v21092_v57, %v8877_v31  ;;  %v23302_v3 = vld [vmem:[#allocation206_spill] sm:$0xff]  ;;  %v23303_v19 = vld [vmem:[#allocation152_spill] sm:$0xff] }
 0x60c   :  { %v16520_v25 = vpop.f32.mrf.mxu1  ;;  %15145 = vmatpush3.bf16.msra.mxu1 %v21143_v0  ;;  %v7427_v0 = vadd.f32 %v23300_v28, %v23299_v36  ;;  %v9014_v50 = vmax.f32 %v8950_v54, 0.0  ;;  %v23305_v62 = vld [vmem:[#allocation46_spill] sm:$0xff] }
 0x60d   :  { %v8951_v63 = vadd.f32 %v21092_v57, %v8880_v52  ;;  %v8364_v21 = vadd.f32 %v16520_v25, %v7426_v16  ;;  %15146 = vmatprep.subr.bf16.mxu1 %v21255_v9  ;;  %v8878_v1 = vadd.f32 %v21234_v61, %v8359_v48  ;;  %v23301_v61 = vld [vmem:[#allocation197_spill] sm:$0xff]  ;;  %v9012_v56 = vmax.f32 %v8948_v33, 0.0 }
 0x60e   :  { %v8239_v5 = vpop.f32.mrf.mxu1  ;;  %v7425_v13 = vadd.f32 %v23301_v61, %v6751_v23  ;;  %v23306_v52 = vld [vmem:[#allocation185_spill] sm:$0xff] }
 0x60f   :  { %v9015_v27 = vmax.f32 %v8951_v63, 0.0  ;;  %v8883_v41 = vadd.f32 %v21244_v58, %v8364_v21  ;;  %v8362_v26 = vadd.f32 %v8239_v5, %v7424_v11  ;;  %v8949_v9 = vadd.f32 %v21092_v57, %v8878_v1  ;;  %v23308_v11 = vld [vmem:[#allocation186_spill] sm:$0xff]  ;;  %v23309_v33 = vld [vmem:[#allocation149_spill] sm:$0xff] }
 0x610   :  { %v16521_v35 = vpop.f32.mrf.mxu1  ;;  %15147 = vmatpush3.bf16.msra.mxu1 %v21151_v37  ;;  %v6236_v58 = vadd.f32 %v23303_v19, %v23302_v3  ;;  %v7428_v8 = vadd.f32 %v23307_v60, %v23306_v52  ;;  %v17034_v5 = vld [vmem:[%s22602_s5 + $0x24] ss:$16 sps:$4 sm:$0xff]  }
 0x611   :  { %v21377_v12 = vpack.c.bf16 %v9015_v27, %v9014_v50  ;;  %v8881_v38 = vadd.f32 %v21260_v10, %v8362_v26  ;;  %v8365_v39 = vadd.f32 %v16521_v35, %v7427_v0  ;;  %15148 = vmatprep.subr.bf16.mxu1 %v21216_v47  ;;  %v9013_v45 = vmax.f32 %v8949_v9, 0.0  ;;  %v23304_v10 = vld [vmem:[#allocation147_spill] sm:$0xff]  ;;  %v23310_v50 = vld [vmem:[#allocation24_spill] sm:$0xff]  ;;  %v23311_v9 = vld [vmem:[#allocation169_spill] sm:$0xff] }
 0x612   :  { %v8242_v49 = vpop.f32.mrf.mxu1  ;;  %v8954_v59 = vadd.f32 %v21092_v57, %v8883_v41  ;;  %v7430_v55 = vadd.f32 %v23304_v10, %v21007_v24  ;;  %v6755_v47 = vadd.f32 %v23305_v62, %v6236_v58  ;;  %v21400_v24 = vpop.f32.mrf.mxu0  ;;  %v23312_v35 = vld [vmem:[#allocation160_spill] sm:$0xff]  ;;  %v23313_v61 = vld [vmem:[#allocation153_spill] sm:$0xff]  ;;  %v23318_v52 = vld [vmem:[#allocation203_spill] sm:$0xff] }
 0x613   :  { %v8884_v37 = vadd.f32 %v21270_v46, %v8365_v39  ;;  %v8363_v31 = vadd.f32 %v8242_v49, %v7425_v13  ;;  %v21391_v43 = vpack.c.bf16 %v9013_v45, %v9012_v56  ;;  %v8952_v16 = vadd.f32 %v21092_v57, %v8881_v38 }
 0x614   :  { %v16524_v54 = vpop.f32.mrf.mxu1  ;;  %15149 = vmatpush3.bf16.msra.mxu1 %v21114_v34  ;;  %v9018_v23 = vmax.f32 %v8954_v59, 0.0  ;;  %v7429_v27 = vadd.f32 %v23310_v50, %v6755_v47  ;;  %v6240_v38 = vadd.f32 %v23312_v35, %v23311_v9  ;;  %v7434_v13 = vadd.f32 %v23313_v61, %v21025_v22  ;;  %v23323_v50 = vld [vmem:[#allocation165_spill] sm:$0xff]  ;;  %v23325_v9 = vld [vmem:[#allocation167_spill] sm:$0xff] }
 0x615   :  { %v8955_v48 = vadd.f32 %v21092_v57, %v8884_v37  ;;  %v8882_v46 = vadd.f32 %v21286_v15, %v8363_v31  ;;  %v8368_v25 = vadd.f32 %v16524_v54, %v7430_v55  ;;  %15150 = vmatprep.subr.bf16.mxu1 %v21229_v51  ;;  %v7431_v15 = vadd.f32 %v23309_v33, %v23308_v11  ;;  %v21410_v51 = vpop.f32.mrf.mxu0  ;;  %v23315_v37 = vld [vmem:[#allocation16_spill] sm:$0xff]  ;;  %v23316_v31 = vld [vmem:[#allocation202_spill] sm:$0xff] }
 0x616   :  { %v8255_v2 = vpop.f32.mrf.mxu1  ;;  %v9016_v36 = vmax.f32 %v8952_v16, 0.0  ;;  %v7432_v10 = vadd.f32 %v23316_v31, %v23315_v37  ;;  %v23328_v37 = vld [vmem:[#allocation207_spill] sm:$0xff] }
 0x617   :  { %v9019_v63 = vmax.f32 %v8955_v48, 0.0  ;;  %v8953_v21 = vadd.f32 %v21092_v57, %v8882_v46  ;;  %v8366_v34 = vadd.f32 %v8255_v2, %v7428_v8  ;;  %v8887_v42 = vadd.f32 %v21295_v44, %v8368_v25  ;;  %v8806_v56 = vpop.f32.mrf.mxu0  ;;  %v17032_v8 = vld [vmem:[%s22602_s5 + $0x20] ss:$16 sps:$4 sm:$0xff]   ;;  %v17037_v2 = vld [vmem:[%s22602_s5 + $0x44] ss:$16 sps:$4 sm:$0xff]  }
 0x618   :  { %v16525_v1 = vpop.f32.mrf.mxu1  ;;  %15151 = vmatpush3.bf16.msra.mxu1 %v21123_v7 }
 0x619   :  { %v21415_v28 = vpack.c.bf16 %v9019_v63, %v9018_v23  ;;  %v9017_v0 = vmax.f32 %v8953_v21, 0.0  ;;  %v8885_v44 = vadd.f32 %v21310_v40, %v8366_v34  ;;  %v8369_v41 = vadd.f32 %v16525_v1, %v7431_v15  ;;  %v23314_v40 = vld [vmem:[#allocation48_spill] sm:$0xff]  ;;  %v16613_v25 = vpop.f32.mrf.mxu0  ;;  %v23319_v21 = vld [vmem:[#allocation161_spill] sm:$0xff] }
 0x61a   :  { %v8258_v26 = vpop.f32.mrf.mxu1  ;;  %v8958_v3 = vadd.f32 %v21092_v57, %v8887_v42  ;;  %v6759_v45 = vadd.f32 %v23314_v40, %v6240_v38  ;;  %v23320_v15 = vld [vmem:[#allocation25_spill] sm:$0xff]  ;;  %v23321_v1 = vld [vmem:[#allocation168_spill] sm:$0xff] }
 0x61b   :  { %v21421_v7 = vpack.c.bf16 %v9017_v0, %v9016_v36  ;;  %v8367_v39 = vadd.f32 %v8258_v26, %v7429_v27  ;;  %9213 = vmatmul.mubr.bf16.vlgmr.msra.gmra.mxu1 %v17029_v20  ;;  %v8888_v19 = vadd.f32 %v21322_v14, %v8369_v41  ;;  %v8956_v55 = vadd.f32 %v21092_v57, %v8885_v44  ;;  %v23317_v14 = vld [vmem:[#allocation17_spill] sm:$0xff]  ;;  %v23322_v0 = vld [vmem:[#allocation50_spill] sm:$0xff]  ;;  %v23324_v26 = vld [vmem:[#allocation47_spill] sm:$0xff] }
 0x61c   :  { %v16528_v58 = vpop.f32.mrf.mxu1  ;;  %9220 = vmatprep.mubr.bf16.mxu1 %v17034_v5  ;;  %v7435_v60 = vadd.f32 %v23318_v52, %v23317_v14  ;;  %v7433_v34 = vadd.f32 %v23319_v21, %v6759_v45  ;;  %v6244_v5 = vadd.f32 %v23321_v1, %v23320_v15  ;;  %v7438_v27 = vadd.f32 %v23323_v50, %v23322_v0  ;;  %v23329_v52 = vld [vmem:[#allocation208_spill] sm:$0xff]  ;;  %v23332_v21 = vld [vmem:[#allocation49_spill] sm:$0xff]  ;;  %v23334_v15 = vld [vmem:[#allocation54_spill] sm:$0xff] }
 0x61d   :  { %v8886_v49 = vadd.f32 %v21338_v18, %v8367_v39  ;;  %v8372_v59 = vadd.f32 %v16528_v58, %v7434_v13  ;;  %v8959_v22 = vadd.f32 %v21092_v57, %v8888_v19  ;;  %v9022_v18 = vmax.f32 %v8958_v3, 0.0  ;;  %v23326_v39 = vld [vmem:[#allocation52_spill] sm:$0xff]  ;;  %v23335_v1 = vld [vmem:[#allocation9_spill] sm:$0xff] }
 0x61e   :  { %v8271_v62 = vpop.f32.mrf.mxu1  ;;  %v9020_v20 = vmax.f32 %v8956_v55, 0.0  ;;  %v7436_v35 = vadd.f32 %v23325_v9, %v23324_v26  ;;  %v6763_v61 = vadd.f32 %v23326_v39, %v6244_v5  ;;  %v7440_v5 = vadd.f32 %v23335_v1, %v23334_v15  ;;  %v23337_v9 = vld [vmem:[#allocation57_spill] sm:$0xff] }
 0x61f   :  { %v8957_v47 = vadd.f32 %v21092_v57, %v8886_v49  ;;  %v8370_v54 = vadd.f32 %v8271_v62, %v7432_v10  ;;  %v9023_v16 = vmax.f32 %v8959_v22, 0.0  ;;  %v8891_v48 = vadd.f32 %v21348_v32, %v8372_v59  ;;  %v23327_v59 = vld [vmem:[#allocation51_spill] sm:$0xff]  ;;  %v17061_v15 = vld [vmem:[%s22603_s6 + $0x78] sm:$0xff]  }
 0x620   :  { %v16529_v46 = vpop.f32.mrf.mxu1  ;;  %v7439_v31 = vadd.f32 %v23328_v37, %v23327_v59  ;;  %v17035_v10 = vld [vmem:[%s22602_s5 + $0x40] ss:$16 sps:$4 sm:$0xff]   ;;  %v17062_v1 = vld [vmem:[%s22603_s6 + $0x38] sm:$0xff]  }
 0x621   :  { %v9021_v23 = vmax.f32 %v8957_v47, 0.0  ;;  %v8373_v63 = vadd.f32 %v16529_v46, %v7435_v60  ;;  %v8889_v42 = vadd.f32 %v21368_v30, %v8370_v54  ;;  %v21445_v33 = vpack.c.bf16 %v9023_v16, %v9022_v18  ;;  %v8809_v30 = vpop.f32.mrf.mxu0  ;;  %v17040_v47 = vld [vmem:[%s22602_s5 + $0x64] ss:$16 sps:$4 sm:$0xff]   ;;  %v23330_v46 = vld [vmem:[#allocation8_spill] sm:$0xff] }
 0x622   :  { %v8274_v11 = vpop.f32.mrf.mxu1  ;;  %v8962_v44 = vadd.f32 %v21092_v57, %v8891_v48  ;;  %v7437_v60 = vadd.f32 %v23329_v52, %v6763_v61 }
 0x623   :  { %v8892_v32 = vadd.f32 %v21382_v29, %v8373_v63  ;;  %v8371_v36 = vadd.f32 %v8274_v11, %v7433_v34  ;;  %9221 = vmatmul.mubr.bf16.gmra.mxu1 %v17032_v8  ;;  %v21455_v38 = vpack.c.bf16 %v9021_v23, %v9020_v20  ;;  %v8960_v19 = vadd.f32 %v21092_v57, %v8889_v42  ;;  %v23333_v34 = vld [vmem:[#allocation12_spill] sm:$0xff] }
 0x624   :  { %v16532_v41 = vpop.f32.mrf.mxu1  ;;  %9228 = vmatprep.mubr.bf16.mxu1 %v17037_v2  ;;  %v9026_v55 = vmax.f32 %v8962_v44, 0.0  ;;  %v23331_v2 = vld [vmem:[#allocation173_spill] sm:$0xff]  ;;  %v7442_v20 = vadd.f32 %v23333_v34, %v23332_v21 }
 0x625   :  { %v8963_v13 = vadd.f32 %v21092_v57, %v8892_v32  ;;  %v8890_v29 = vadd.f32 %v21400_v24, %v8371_v36  ;;  %v8376_v3 = vadd.f32 %v16532_v41, %v7438_v27  ;;  %v16616_v24 = vpop.f32.mrf.mxu0  ;;  %v9024_v8 = vmax.f32 %v8960_v19, 0.0  ;;  %v23336_v36 = vld [vmem:[#allocation63_spill] sm:$0xff] }
 0x626   :  { %v8287_v58 = vpop.f32.mrf.mxu1  ;;  %v6248_v23 = vadd.f32 %v23331_v2, %v23330_v46  ;;  %v17038_v19 = vld [vmem:[%s22602_s5 + $0x60] ss:$16 sps:$4 sm:$0xff]  }
 0x627   :  { %v9027_v40 = vmax.f32 %v8963_v13, 0.0  ;;  %v8961_v45 = vadd.f32 %v21092_v57, %v8890_v29  ;;  %v8374_v49 = vadd.f32 %v8287_v58, %v7436_v35  ;;  %v8895_v22 = vadd.f32 %v21410_v51, %v8376_v3  ;;  %v8822_v32 = vpop.f32.mrf.mxu0  ;;  %v23338_v35 = vld [vmem:[#allocation11_spill] sm:$0xff] }
 0x628   :  { %v16533_v62 = vpop.f32.mrf.mxu1  ;;  %v6767_v0 = vadd.f32 %v23336_v36, %v6248_v23  ;;  %v7443_v39 = vadd.f32 %v23338_v35, %v23337_v9  ;;  %v17064_v36 = vld [vmem:[%s22603_s6 + $0x30] sm:$0xff]   ;;  %v17070_v35 = vld [vmem:[%s22603_s6 + $0x20] sm:$0xff]  }
 0x629   :  { %v9025_v54 = vmax.f32 %v8961_v45, 0.0  ;;  %v8377_v14 = vadd.f32 %v16533_v62, %v7439_v31  ;;  %v8893_v18 = vadd.f32 %v8806_v56, %v8374_v49  ;;  %v21472_v48 = vpack.c.bf16 %v9027_v40, %v9026_v55  ;;  %v16617_v40 = vpop.f32.mrf.mxu0  ;;  %v23339_v31 = vld [vmem:[#allocation39_spill] sm:$0xff]  ;;  %v17079_v9 = vld [vmem:[%s22603_s6 + $0xd0] sm:$0xff]  }
 0x62a   :  { %v8290_v16 = vpop.f32.mrf.mxu1  ;;  %v8966_v42 = vadd.f32 %v21092_v57, %v8895_v22 }
 0x62b   :  { %v8375_v63 = vadd.f32 %v8290_v16, %v7437_v60  ;;  %v8896_v51 = vadd.f32 %v16613_v25, %v8377_v14  ;;  %9229 = vmatmul.mubr.bf16.gmra.mxu1 %v17035_v10  ;;  %v9062_v56 = vpack.c.bf16 %v9025_v54, %v9024_v8  ;;  %v9084_v25 = vld [vmem:[%s22602_s5 + $0x80] sm:$0xff]  ;;  %v8964_v41 = vadd.f32 %v21092_v57, %v8893_v18  ;;  %v8825_v14 = vpop.f32.mrf.mxu0 }
 0x62c   :  { %v16536_v11 = vpop.f32.mrf.mxu1  ;;  %9236 = vmatprep.mubr.bf16.mxu1 %v17040_v47  ;;  %v14021_v45 = vcombine.high %v9084_v25, %v9084_v25  ;;  %v7441_v10 = vadd.f32 %v23339_v31, %v6767_v0  ;;  %v14020_v23 = vcombine.low %v9084_v25, %v9084_v25  ;;  %v17071_v0 = vld [vmem:[%s22603_s6 + $0xe0] sm:$0xff]   ;;  %v17066_v25 = vld [vmem:[%s22603_s6 + $0x28] sm:$0xff]  }
 0x62d   :  { %v8967_v50 = vadd.f32 %v21092_v57, %v8896_v51  ;;  %v8380_v27 = vadd.f32 %v16536_v11, %v7442_v20  ;;  %v8894_v44 = vadd.f32 %v8809_v30, %v8375_v63  ;;  %v9030_v30 = vmax.f32 %v8966_v42, 0.0  ;;  %v17045_v63 = vld [vmem:[%s22602_s5 + $0xc] ss:$16 sps:$4 sm:$0xff]   ;;  %v17059_v42 = vld [vmem:[%s22603_s6 + $0xf0] sm:$0xff]   ;;  %v17086_v31 = vld [vmem:[%s22603_s6] sm:$0xff]  }
 0x62e   :  { %v8303_v26 = vpop.f32.mrf.mxu1  ;;  %v9028_v55 = vmax.f32 %v8964_v41, 0.0  ;;  %v17060_v11 = vld [vmem:[%s22603_s6 + $0xb0] sm:$0xff]   ;;  %v17069_v41 = vld [vmem:[%s22603_s6 + $0x60] sm:$0xff]  }
 0x62f   :  { %v9031_v61 = vmax.f32 %v8967_v50, 0.0  ;;  %v8965_v13 = vadd.f32 %v21092_v57, %v8894_v44  ;;  %v8378_v29 = vadd.f32 %v8303_v26, %v7440_v5  ;;  %v8899_v3 = vadd.f32 %v16616_v24, %v8380_v27  ;;  %v17063_v5 = vld [vmem:[%s22603_s6 + $0x70] sm:$0xff]   ;;  %v17065_v50 = vld [vmem:[%s22603_s6 + $0x68] sm:$0xff]   ;;  %v17072_v27 = vld [vmem:[%s22603_s6 + $0xa0] sm:$0xff]  }
 0x630   :  { %v16537_v58 = vpop.f32.mrf.mxu1  ;;  %v17075_v44 = vld [vmem:[%s22603_s6 + $0xd8] sm:$0xff]  }
 0x631   :  { %v9029_v49 = vmax.f32 %v8965_v13, 0.0  ;;  %v8381_v59 = vadd.f32 %v16537_v58, %v7443_v39  ;;  %v8897_v37 = vadd.f32 %v8822_v32, %v8378_v29  ;;  %v9065_v62 = vpack.c.bf16 %v9031_v61, %v9030_v30  ;;  %v17067_v32 = vld [vmem:[%s22603_s6 + $0xe8] sm:$0xff]   ;;  %v17076_v26 = vld [vmem:[%s22603_s6 + $0x98] sm:$0xff]   ;;  %v17080_v61 = vld [vmem:[%s22603_s6 + $0x90] sm:$0xff]  }
 0x632   :  { %v8306_v22 = vpop.f32.mrf.mxu1  ;;  %v8970_v47 = vadd.f32 %v21092_v57, %v8899_v3  ;;  %v17073_v39 = vld [vmem:[%s22603_s6 + $0x58] sm:$0xff]   ;;  %v17083_v13 = vld [vmem:[%s22603_s6 + $0xc8] sm:$0xff]   ;;  %v17077_v3 = vld [vmem:[%s22603_s6 + $0x50] sm:$0xff]  }
 0x633   :  { %v8379_v54 = vadd.f32 %v8306_v22, %v7441_v10  ;;  %v8900_v24 = vadd.f32 %v16617_v40, %v8381_v59  ;;  %9237 = vmatmul.mubr.bf16.gmra.mxu1 %v17038_v19  ;;  %v9064_v52 = vpack.c.bf16 %v9029_v49, %v9028_v55  ;;  %v8968_v60 = vadd.f32 %v21092_v57, %v8897_v37  ;;  %v17074_v29 = vld [vmem:[%s22603_s6 + $0x18] sm:$0xff]   ;;  %v17084_v19 = vld [vmem:[%s22603_s6 + $0x88] sm:$0xff]   ;;  %v17087_v30 = vld [vmem:[%s22603_s6 + $0xc0] sm:$0xff]  }
 0x634   :  { %9244 = vmatprep.mubr.bf16.mxu1 %v14021_v45  ;;  %v9034_v16 = vmax.f32 %v8970_v47, 0.0  ;;  %v17078_v58 = vld [vmem:[%s22603_s6 + $0x10] sm:$0xff]   ;;  %v17081_v40 = vld [vmem:[%s22603_s6 + $0x48] sm:$0xff]   ;;  %v17088_v45 = vld [vmem:[%s22603_s6 + $0x80] sm:$0xff]  }
 0x635   :  { %v8971_v8 = vadd.f32 %v21092_v57, %v8900_v24  ;;  %v8898_v18 = vadd.f32 %v8825_v14, %v8379_v54  ;;  %v9032_v51 = vmax.f32 %v8968_v60, 0.0  ;;  %v17091_v49 = vld [vmem:[%s22603_s6 + $0x1f8] sm:$0xff]   ;;  %v17082_v59 = vld [vmem:[%s22603_s6 + $0x8] sm:$0xff]   ;;  %v17085_v37 = vld [vmem:[%s22603_s6 + $0x40] sm:$0xff]  }
 0x636   :  { %v17089_v10 = vld [vmem:[%s22603_s6 + $0x178] sm:$0xff]  }
 0x637   :  { %v9035_v46 = vmax.f32 %v8971_v8, 0.0  ;;  %v8969_v2 = vadd.f32 %v21092_v57, %v8898_v18  ;;  %v17043_v57 = vld [vmem:[%s22602_s5 + $0x8] ss:$16 sps:$4 sm:$0xff]  }
 0x639   :  { %v9033_v21 = vmax.f32 %v8969_v2, 0.0  ;;  %v9067_v34 = vpack.c.bf16 %v9035_v46, %v9034_v16 }
 0x63b   :  { %15182 = vmatprep.subr.bf16.mxu1 %v9067_v34  ;;  %v9066_v20 = vpack.c.bf16 %v9033_v21, %v9032_v51  ;;  %9245 = vmatmul.mubr.bf16.gmra.mxu1 %v14020_v23 }
 0x63c   :  { %15183 = vmatpush3.bf16.msra.mxu1 %v21415_v28  ;;  %9284 = vmatprep.mubr.bf16.mxu1 %v17045_v63  ;;  %v17052_v28 = vld [vmem:[%s22602_s5 + $0x68] ss:$16 sps:$4 sm:$0xff]  }
 0x63d   :  { %15184 = vmatprep.subr.bf16.mxu1 %v9066_v20 }
 0x640   :  { %15185 = vmatpush3.bf16.msra.mxu1 %v21421_v7 }
 0x641   :  { %15186 = vmatprep.subr.bf16.mxu1 %v9065_v62 }
 0x644   :  { %15187 = vmatpush3.bf16.msra.mxu1 %v21377_v12  ;;  %v17048_v12 = vld [vmem:[%s22602_s5 + $0x2c] ss:$16 sps:$4 sm:$0xff]  }
 0x645   :  { %15188 = vmatprep.subr.bf16.mxu1 %v9064_v52 }
 0x648   :  { %15189 = vmatpush3.bf16.msra.mxu1 %v21391_v43  ;;  %v9085_v43 = vld [vmem:[%s22602_s5 + $0x88] sm:$0xff] }
 0x649   :  { %15190 = vmatprep.subr.bf16.mxu1 %v21472_v48  ;;  %v14023_v7 = vcombine.high %v9085_v43, %v9085_v43  ;;  %v17058_v48 = vld [vmem:[%s22603_s6 + $0xb8] sm:$0xff]  }
 0x64c   :  { %15191 = vmatpush3.bf16.msra.mxu1 %v21352_v6  ;;  %v17046_v6 = vld [vmem:[%s22602_s5 + $0x28] ss:$16 sps:$4 sm:$0xff]  }
 0x64d   :  { %15192 = vmatprep.subr.bf16.mxu1 %v9062_v56  ;;  %v17068_v56 = vld [vmem:[%s22603_s6 + $0xa8] sm:$0xff]  }
 0x650   :  { %15193 = vmatpush3.bf16.msra.mxu1 %v21356_v4  ;;  %v17054_v4 = vld [vmem:[%s22602_s5 + $0x6c] ss:$16 sps:$4 sm:$0xff]  }
 0x651   :  { %15194 = vmatprep.subr.bf16.mxu1 %v21445_v33  ;;  %v14022_v33 = vcombine.low %v9085_v43, %v9085_v43 }
 0x654   :  { %15195 = vmatpush3.bf16.msra.mxu1 %v21318_v17  ;;  %v17051_v17 = vld [vmem:[%s22602_s5 + $0x4c] ss:$16 sps:$4 sm:$0xff]  }
 0x655   :  { %15196 = vmatprep.subr.bf16.mxu1 %v21455_v38  ;;  %v17057_v38 = vld [vmem:[%s22603_s6 + $0xf8] sm:$0xff]  }
 0x656   :  { %15250 = vmatprep.subr.bf16.mxu0 %v17057_v38 }
 0x657   :  { %15251 = vmatpush3.bf16.msra.mxu0 %v17058_v48 }
 0x658   :  { %15197 = vmatpush3.bf16.msra.mxu1 %v21324_v53  ;;  %v17049_v53 = vld [vmem:[%s22602_s5 + $0x48] ss:$16 sps:$4 sm:$0xff]   ;;  %15252 = vmatprep.subr.bf16.mxu0 %v17059_v42 }
 0x659   :  { %15228 = vmatprep.subr.bf16.mxu1 %v17061_v15 }
 0x65b   :  { %9285 = vmatmul.mubr.bf16.vlgmr.msra.gmra.mxu1 %v17043_v57  ;;  %15253 = vmatpush3.bf16.msra.mxu0 %v17060_v11 }
 0x65c   :  { %9292 = vmatprep.mubr.bf16.mxu1 %v17048_v12  ;;  %15229 = vmatpush3.bf16.msra.mxu1 %v17062_v1 }
 0x65d   :  { %15230 = vmatprep.subr.bf16.mxu1 %v17063_v5  ;;  %15254 = vmatprep.subr.bf16.mxu0 %v17067_v32 }
 0x65f   :  { %15255 = vmatpush3.bf16.msra.mxu0 %v17068_v56  ;;  %v17454_v56 = vmov 1966171168  }
 0x660   :  { %15256 = vmatprep.subr.bf16.mxu0 %v17071_v0  ;;  %15231 = vmatpush3.bf16.msra.mxu1 %v17064_v36  ;;  %v9401_v36 = vunpack.c.l.s4 %v17454_v56  ;;  %v9403_v0 = vlaneseq }
 0x661   :  { %15232 = vmatprep.subr.bf16.mxu1 %v17065_v50 }
 0x663   :  { %9293 = vmatmul.mubr.bf16.gmra.mxu1 %v17046_v6  ;;  %15257 = vmatpush3.bf16.msra.mxu0 %v17072_v27 }
 0x664   :  { %9300 = vmatprep.mubr.bf16.mxu1 %v17051_v17  ;;  %15258 = vmatprep.subr.bf16.mxu0 %v17075_v44 }
 0x665   :  { %15233 = vmatpush3.bf16.msra.mxu1 %v17066_v25 }
 0x666   :  { %15234 = vmatprep.subr.bf16.mxu1 %v17069_v41  ;;  %v9402_v41 = vunpack.c.0.s8 %v9401_v36 }
 0x667   :  { %15259 = vmatpush3.bf16.msra.mxu0 %v17076_v26  ;;  %v9404_v26 = vshrl.u32 %v9403_v0, 7 }
 0x668   :  { %15260 = vmatprep.subr.bf16.mxu0 %v17079_v9 }
 0x669   :  { %15235 = vmatpush3.bf16.msra.mxu1 %v17070_v35 }
 0x66a   :  { %15236 = vmatprep.subr.bf16.mxu1 %v17073_v39 }
 0x66b   :  { %9301 = vmatmul.mubr.bf16.gmra.mxu1 %v17049_v53  ;;  %15261 = vmatpush3.bf16.msra.mxu0 %v17080_v61 }
 0x66c   :  { %9308 = vmatprep.mubr.bf16.mxu1 %v17054_v4  ;;  %15262 = vmatprep.subr.bf16.mxu0 %v17083_v13 }
 0x66d   :  { %15237 = vmatpush3.bf16.msra.mxu1 %v17074_v29  ;;  %v21648_v29 = vsub.s32 %v9402_v41, %v9404_v26 }
 0x66e   :  { %15238 = vmatprep.subr.bf16.mxu1 %v17077_v3 }
 0x66f   :  { %15263 = vmatpush3.bf16.msra.mxu0 %v17084_v19 }
 0x670   :  { %15264 = vmatprep.subr.bf16.mxu0 %v17087_v30 }
 0x671   :  { %15239 = vmatpush3.bf16.msra.mxu1 %v17078_v58 }
 0x672   :  { %15240 = vmatprep.subr.bf16.mxu1 %v17081_v40 }
 0x673   :  { %9309 = vmatmul.mubr.bf16.gmra.mxu1 %v17052_v28  ;;  %15265 = vmatpush3.bf16.msra.mxu0 %v17088_v45 }
 0x674   :  { %9316 = vmatprep.mubr.bf16.mxu1 %v14023_v7  ;;  %15294 = vmatprep.subr.bf16.mxu0 %v17091_v49 }
 0x675   :  { %15241 = vmatpush3.bf16.msra.mxu1 %v17082_v59 }
 0x676   :  { %15242 = vmatprep.subr.bf16.mxu1 %v17085_v37 }
 0x679   :  { %15243 = vmatpush3.bf16.msra.mxu1 %v17086_v31 }
 0x67a   :  { %15272 = vmatprep.subr.bf16.mxu1 %v17089_v10 }
 0x67b   :  { %9317 = vmatmul.mubr.bf16.gmra.mxu1 %v14022_v33 }
 0x6db   :  { %v15152_v55 = vpop.f32.mrf.mxu1 }
 0x6dd   :  { %v15153_v22 = vpop.f32.mrf.mxu1 }
 0x6de   :  { %v15154_v62 = vadd.f32 %v15153_v22, %v15152_v55 }
 0x6df   :  { %v15155_v47 = vpop.f32.mrf.mxu1 }
 0x6e1   :  { %v15156_v54 = vpop.f32.mrf.mxu1 }
 0x6e2   :  { %v15157_v24 = vadd.f32 %v15156_v54, %v15155_v47 }
 0x6e3   :  { %v15158_v14 = vpop.f32.mrf.mxu1 }
 0x6e5   :  { %v15159_v52 = vpop.f32.mrf.mxu1 }
 0x6e6   :  { %v15160_v60 = vadd.f32 %v15159_v52, %v15158_v14 }
 0x6e7   :  { %v15161_v8 = vpop.f32.mrf.mxu1 }
 0x6e9   :  { %v15162_v18 = vpop.f32.mrf.mxu1 }
 0x6ea   :  { %v15163_v16 = vadd.f32 %v15162_v18, %v15161_v8 }
 0x6eb   :  { %v15164_v46 = vpop.f32.mrf.mxu1 }
 0x6ed   :  { %v15165_v2 = vpop.f32.mrf.mxu1 }
 0x6ee   :  { %v21638_v23 = vadd.f32 %v15165_v2, %v15164_v46 }
 0x6ef   :  { %v15167_v63 = vpop.f32.mrf.mxu1 }
 0x6f1   :  { %v15168_v51 = vpop.f32.mrf.mxu1 }
 0x6f2   :  { %v21640_v21 = vadd.f32 %v15168_v51, %v15167_v63 }
 0x6f3   :  { %v15170_v34 = vpop.f32.mrf.mxu1 }
 0x6f5   :  { %v15171_v20 = vpop.f32.mrf.mxu1 }
 0x6f6   :  { %v21642_v57 = vadd.f32 %v15171_v20, %v15170_v34 }
 0x6f7   :  { %v15173_v12 = vpop.f32.mrf.mxu1 }
 0x6f9   :  { %v15174_v6 = vpop.f32.mrf.mxu1 }
 0x6fa   :  { %v21644_v17 = vadd.f32 %v15174_v6, %v15173_v12 }
 0x6fb   :  { %v15176_v53 = vpop.f32.mrf.mxu1 }
 0x6fd   :  { %v15177_v4 = vpop.f32.mrf.mxu1 }
 0x6fe   :  { %v21646_v43 = vadd.f32 %v15177_v4, %v15176_v53 }
 0x6ff   :  { %v15179_v28 = vpop.f32.mrf.mxu1 }
 0x701   :  { %v15180_v7 = vpop.f32.mrf.mxu1 }
 0x71b   :  { %v15198_v33 = vpop.f32.mrf.mxu1 }
 0x71d   :  { %v15199_v38 = vpop.f32.mrf.mxu1 }
 0x71e   :  { %v15200_v42 = vadd.f32 %v15199_v38, %v15198_v33 }
 0x71f   :  { %v15201_v48 = vpop.f32.mrf.mxu1 }
 0x720   :  { %v9287_v5 = vadd.f32 %v15200_v42, %v15154_v62 }
 0x721   :  { %v15202_v11 = vpop.f32.mrf.mxu1 }
 0x722   :  { %v15203_v15 = vadd.f32 %v15202_v11, %v15201_v48 }
 0x723   :  { %v15204_v1 = vpop.f32.mrf.mxu1 }
 0x724   :  { %v9290_v32 = vadd.f32 %v15203_v15, %v15157_v24 }
 0x725   :  { %v15205_v50 = vpop.f32.mrf.mxu1 }
 0x726   :  { %v14599_v27 = vpack.c.bf16 %v9290_v32, %v9287_v5  ;;  %v15206_v25 = vadd.f32 %v15205_v50, %v15204_v1 }
 0x727   :  { %v15207_v44 = vpop.f32.mrf.mxu1 }
 0x728   :  { %14600 = vst [vmem:[#allocation3] sm:$0xff] %v14599_v27   ;;  %v9295_v61 = vadd.f32 %v15206_v25, %v15160_v60 }
 0x729   :  { %v15208_v9 = vpop.f32.mrf.mxu1 }
 0x72a   :  { %v15209_v35 = vadd.f32 %v15208_v9, %v15207_v44 }
 0x72b   :  { %v15210_v39 = vpop.f32.mrf.mxu1 }
 0x72c   :  { %v9298_v13 = vadd.f32 %v15209_v35, %v15163_v16 }
 0x72d   :  { %v15211_v3 = vpop.f32.mrf.mxu1 }
 0x72e   :  { %v14604_v19 = vpack.c.bf16 %v9298_v13, %v9295_v61  ;;  %v15212_v37 = vadd.f32 %v15211_v3, %v15210_v39 }
 0x72f   :  { %v9370_v30 = vld [vmem:[#allocation3] sm:$0x1]  ;;  %v14033_v58 = vld.sshfl [vmem:[#allocation3] sm:$0x10 pattern:$0x75316420]  ;;  %v15213_v40 = vpop.f32.mrf.mxu1 }
 0x730   :  { %9371 = vst [vmem:[#allocation4] sm:$0x1] %v9370_v30  ;;  %v9381_v45 = vcombine.high %v14033_v58, %v14033_v58  ;;  %v14035_v49 = vld.sshfl [vmem:[#allocation3] sm:$0x2 pattern:$0x75316420]  ;;  %v9303_v16 = vadd.f32 %v15212_v37, %v21638_v23 }
 0x731   :  { %v9430_v59 = vld [vmem:[#allocation3 + $0x4] sm:$0x1]  ;;  %14645 = vst [vmem:[#allocation3 + $0x8] sm:$0xff] %v14604_v19   ;;  %v9406_v31 = vrot.slane %v14035_v49, %v21648_v29  ;;  %v15214_v55 = vpop.f32.mrf.mxu1 }
 0x732   :  { %v14036_v10 = vld.sshfl [vmem:[#allocation3] sm:$0x20 pattern:$0x75316420]  ;;  %9431 = vst [vmem:[#allocation4 + $0x4] sm:$0x1] %v9430_v59  ;;  %v15215_v47 = vadd.f32 %v15214_v55, %v15213_v40 }
 0x733   :  { %14034 = vst.sshfl [vmem:[#allocation4 + $0x1] sm:$0x1 pattern:$0x73625140] %v9381_v45  ;;  %v9419_v22 = vcombine.high %v14036_v10, %v14036_v10  ;;  %v9407_v54 = vcombine.high %v9406_v31, %v9406_v31  ;;  %v15216_v52 = vpop.f32.mrf.mxu1 }
 0x734   :  { %v14037_v62 = vld.sshfl [vmem:[#allocation3 + $0x4] sm:$0x10 pattern:$0x75316420]  ;;  %v9306_v46 = vadd.f32 %v15215_v47, %v21640_v21 }
 0x735   :  { %v9441_v24 = vcombine.high %v14037_v62, %v14037_v62  ;;  %v14039_v14 = vld.sshfl [vmem:[#allocation3 + $0x4] sm:$0x2 pattern:$0x75316420]  ;;  %v9426_v60 = vrot.slane %v9419_v22, %v21648_v29  ;;  %9409 = vst [vmem:[#allocation4 + $0x2] sm:$0x1] %v9407_v54  ;;  %v15217_v63 = vpop.f32.mrf.mxu1 }
 0x736   :  { %v9466_v8 = vrot.slane %v14039_v14, %v21648_v29  ;;  %v14040_v18 = vld.sshfl [vmem:[#allocation3 + $0x4] sm:$0x20 pattern:$0x75316420]  ;;  %v14609_v20 = vpack.c.bf16 %v9306_v46, %v9303_v16  ;;  %v15218_v21 = vadd.f32 %v15217_v63, %v15216_v52 }
 0x737   :  { %14038 = vst.sshfl [vmem:[#allocation4 + $0x5] sm:$0x1 pattern:$0x73625140] %v9441_v24  ;;  %v9479_v2 = vcombine.high %v14040_v18, %v14040_v18  ;;  %v9427_v51 = vcombine.high %v9426_v60, %v9426_v60  ;;  %v15219_v4 = vpop.f32.mrf.mxu1 }
 0x738   :  { %v9467_v34 = vcombine.high %v9466_v8, %v9466_v8  ;;  %v9490_v6 = vld [vmem:[#allocation3 + $0x8] sm:$0x1]  ;;  %v14041_v53 = vld.sshfl [vmem:[#allocation3 + $0x8] sm:$0x10 pattern:$0x75316420]  ;;  %v9311_v44 = vadd.f32 %v15218_v21, %v21642_v57 }
 0x739   :  { %v9486_v12 = vrot.slane %v9479_v2, %v21648_v29  ;;  %9429 = vst [vmem:[#allocation4 + $0x3] sm:$0x1] %v9427_v51  ;;  %9491 = vst [vmem:[#allocation4 + $0x8] sm:$0x1] %v9490_v6  ;;  %v9501_v28 = vcombine.high %v14041_v53, %v14041_v53  ;;  %v9550_v23 = vld [vmem:[#allocation3 + $0xc] sm:$0x1]  ;;  %v15220_v42 = vpop.f32.mrf.mxu1 }
 0x73a   :  { %9469 = vst [vmem:[#allocation4 + $0x6] sm:$0x1] %v9467_v34  ;;  %v14043_v7 = vld.sshfl [vmem:[#allocation3 + $0x8] sm:$0x2 pattern:$0x75316420]  ;;  %v15221_v1 = vadd.f32 %v15220_v42, %v15219_v4 }
 0x73b   :  { %14646 = vst [vmem:[#allocation3 + $0x10] sm:$0xff] %v14609_v20   ;;  %v9487_v33 = vcombine.high %v9486_v12, %v9486_v12  ;;  %v9526_v38 = vrot.slane %v14043_v7, %v21648_v29  ;;  %v14044_v48 = vld.sshfl [vmem:[#allocation3 + $0x8] sm:$0x20 pattern:$0x75316420]  ;;  %v15222_v36 = vpop.f32.mrf.mxu1  ;;  %v17090_v2 = vld [vmem:[%s22603_s6 + $0x138] sm:$0xff]  }
 0x73c   :  { %9551 = vst [vmem:[#allocation4 + $0xc] sm:$0x1] %v9550_v23  ;;  %14042 = vst.sshfl [vmem:[#allocation4 + $0x9] sm:$0x1 pattern:$0x73625140] %v9501_v28  ;;  %v9539_v11 = vcombine.high %v14044_v48, %v14044_v48  ;;  %v9314_v25 = vadd.f32 %v15221_v1, %v21644_v17 }
 0x73d   :  { %v14045_v15 = vld.sshfl [vmem:[#allocation3 + $0xc] sm:$0x10 pattern:$0x75316420]  ;;  %9489 = vst [vmem:[#allocation4 + $0x7] sm:$0x1] %v9487_v33  ;;  %v9527_v5 = vcombine.high %v9526_v38, %v9526_v38  ;;  %v15223_v26 = vpop.f32.mrf.mxu1 }
 0x73e   :  { %v9561_v32 = vcombine.high %v14045_v15, %v14045_v15  ;;  %v14047_v56 = vld.sshfl [vmem:[#allocation3 + $0xc] sm:$0x2 pattern:$0x75316420]  ;;  %v9546_v0 = vrot.slane %v9539_v11, %v21648_v29  ;;  %v14614_v39 = vpack.c.bf16 %v9314_v25, %v9311_v44  ;;  %v15224_v61 = vadd.f32 %v15223_v26, %v15222_v36  ;;  %v17093_v34 = vld [vmem:[%s22603_s6 + $0x170] sm:$0xff]   ;;  %v17092_v38 = vld [vmem:[%s22603_s6 + $0x1b8] sm:$0xff]  }
 0x73f   :  { %v9586_v50 = vrot.slane %v14047_v56, %v21648_v29  ;;  %v14048_v27 = vld.sshfl [vmem:[#allocation3 + $0xc] sm:$0x20 pattern:$0x75316420]  ;;  %9529 = vst [vmem:[#allocation4 + $0xa] sm:$0x1] %v9527_v5  ;;  %v15225_v30 = vpop.f32.mrf.mxu1 }
 0x740   :  { %14046 = vst.sshfl [vmem:[#allocation4 + $0xd] sm:$0x1 pattern:$0x73625140] %v9561_v32  ;;  %v9599_v41 = vcombine.high %v14048_v27, %v14048_v27  ;;  %v9547_v9 = vcombine.high %v9546_v0, %v9546_v0  ;;  %14647 = vst [vmem:[#allocation3 + $0x18] sm:$0xff] %v14614_v39   ;;  %v9319_v17 = vadd.f32 %v15224_v61, %v21646_v43  ;;  %v17094_v1 = vld [vmem:[%s22603_s6 + $0x130] sm:$0xff]  }
 0x741   :  { %v9587_v35 = vcombine.high %v9586_v50, %v9586_v50  ;;  %v15226_v37 = vpop.f32.mrf.mxu1  ;;  %v17095_v5 = vld [vmem:[%s22603_s6 + $0x1f0] sm:$0xff]   ;;  %v17097_v25 = vld [vmem:[%s22603_s6 + $0x168] sm:$0xff]  }
 0x742   :  { %v9606_v13 = vrot.slane %v9599_v41, %v21648_v29  ;;  %v9610_v3 = vld [vmem:[#allocation3 + $0x10] sm:$0x1]  ;;  %v14049_v19 = vld.sshfl [vmem:[#allocation3 + $0x10] sm:$0x10 pattern:$0x75316420]  ;;  %v14445_v22 = vpack.c.bf16 %v9319_v17, %v9319_v17 }
 0x743   :  { %9549 = vst [vmem:[#allocation4 + $0xb] sm:$0x1] %v9547_v9  ;;  %9589 = vst [vmem:[#allocation4 + $0xe] sm:$0x1] %v9587_v35  ;;  %v9621_v58 = vcombine.high %v14049_v19, %v14049_v19  ;;  %v9670_v40 = vld [vmem:[#allocation3 + $0x14] sm:$0x1] }
 0x744   :  { %9611 = vst [vmem:[#allocation4 + $0x10] sm:$0x1] %v9610_v3  ;;  %v14051_v57 = vld.sshfl [vmem:[#allocation3 + $0x10] sm:$0x2 pattern:$0x75316420]  ;;  %v9607_v45 = vcombine.high %v9606_v13, %v9606_v13 }
 0x745   :  { %v9646_v49 = vrot.slane %v14051_v57, %v21648_v29  ;;  %v14052_v59 = vld.sshfl [vmem:[#allocation3 + $0x10] sm:$0x20 pattern:$0x75316420]  ;;  %9671 = vst [vmem:[#allocation4 + $0x14] sm:$0x1] %v9670_v40 }
 0x746   :  { %v9910_v31 = vld [vmem:[#allocation4] sm:$0xff]  ;;  %14050 = vst.sshfl [vmem:[#allocation4 + $0x11] sm:$0x1 pattern:$0x73625140] %v9621_v58  ;;  %v9659_v10 = vcombine.high %v14052_v59, %v14052_v59  ;;  %v17096_v35 = vld [vmem:[%s22603_s6 + $0x1b0] sm:$0xff]  }
 0x747   :  { %v14053_v55 = vld.sshfl [vmem:[#allocation3 + $0x14] sm:$0x10 pattern:$0x75316420]  ;;  %9609 = vst [vmem:[#allocation4 + $0xf] sm:$0x1] %v9607_v45  ;;  %v10510_v62 = vrot.slane %v9910_v31, %v21648_v29  ;;  %v9647_v47 = vcombine.high %v9646_v49, %v9646_v49  ;;  %v10503_v14 = vcombine.high %v9910_v31, %v9910_v31 }
 0x748   :  { %v9681_v54 = vcombine.high %v14053_v55, %v14053_v55  ;;  %v14055_v24 = vld.sshfl [vmem:[#allocation3 + $0x14] sm:$0x2 pattern:$0x75316420]  ;;  %v9666_v43 = vrot.slane %v9659_v10, %v21648_v29  ;;  %9369 = vst [vmem:[#allocation3 + $0x20] sm:$0xf] %v14445_v22 }
 0x749   :  { %v9706_v52 = vrot.slane %v14055_v24, %v21648_v29  ;;  %v14056_v60 = vld.sshfl [vmem:[#allocation3 + $0x14] sm:$0x20 pattern:$0x75316420]  ;;  %v10518_v8 = vcombine.high %v10510_v62, %v10510_v62  ;;  %9649 = vst [vmem:[#allocation4 + $0x12] sm:$0x1] %v9647_v47  ;;  %v21668_v16 = vrot.slane %v10503_v14, %v21648_v29  ;;  %v10526_v46 = vrot.slane %v10510_v62, %v21648_v29 }
 0x74a   :  { %14054 = vst.sshfl [vmem:[#allocation4 + $0x15] sm:$0x1 pattern:$0x73625140] %v9681_v54  ;;  %v9719_v18 = vcombine.high %v14056_v60, %v14056_v60  ;;  %v9667_v63 = vcombine.high %v9666_v43, %v9666_v43  ;;  %v9730_v6 = vld [vmem:[#allocation3 + $0x18] sm:$0x1] }
 0x74b   :  { %v9707_v51 = vcombine.high %v9706_v52, %v9706_v52  ;;  %v10540_v20 = vrot.slane %v10518_v8, %v21648_v29  ;;  %v14057_v53 = vld.sshfl [vmem:[#allocation3 + $0x18] sm:$0x10 pattern:$0x75316420]  ;;  %v10519_v4 = vcombine.high %v21668_v16, %v21668_v16  ;;  %9731 = vst [vmem:[#allocation4 + $0x18] sm:$0x1] %v9730_v6  ;;  %v10548_v15 = vcombine.high %v10526_v46, %v10526_v46 }
 0x74c   :  { %v9726_v12 = vrot.slane %v9719_v18, %v21648_v29  ;;  %9669 = vst [vmem:[#allocation4 + $0x13] sm:$0x1] %v9667_v63  ;;  %v9741_v28 = vcombine.high %v14057_v53, %v14057_v53  ;;  %v14059_v7 = vld.sshfl [vmem:[#allocation3 + $0x18] sm:$0x2 pattern:$0x75316420] }
 0x74d   :  { %9709 = vst [vmem:[#allocation4 + $0x16] sm:$0x1] %v9707_v51  ;;  %v9790_v23 = vld [vmem:[#allocation3 + $0x1c] sm:$0x1]  ;;  %12519 = vmatprep.mubr.bf16.mxu1 %v10540_v20  ;;  %v10550_v33 = vcombine.high %v10540_v20, %v10540_v20  ;;  %v9766_v48 = vrot.slane %v14059_v7, %v21648_v29  ;;  %v10547_v11 = vrot.slane %v10519_v4, %v21648_v29  ;;  %v17099_v19 = vld [vmem:[%s22603_s6 + $0x1e8] sm:$0xff]   ;;  %v17101_v49 = vld [vmem:[%s22603_s6 + $0x160] sm:$0xff]  }
 0x74e   :  { %v9727_v21 = vcombine.high %v9726_v12, %v9726_v12  ;;  %v14060_v42 = vld.sshfl [vmem:[#allocation3 + $0x18] sm:$0x20 pattern:$0x75316420]  ;;  %9791 = vst [vmem:[#allocation4 + $0x1c] sm:$0x1] %v9790_v23  ;;  %12520 = vmatmul.mubr.bf16.vlgmr.msra.gmra.mxu1 %v10526_v46 }
 0x74f   :  { %14058 = vst.sshfl [vmem:[#allocation4 + $0x19] sm:$0x1 pattern:$0x73625140] %v9741_v28  ;;  %v9779_v32 = vcombine.high %v14060_v42, %v14060_v42  ;;  %15273 = vmatpush3.bf16.msra.mxu1 %v17090_v2  ;;  %12559 = vmatprep.mubr.bf16.mxu0 %v10550_v33  ;;  %v9767_v36 = vcombine.high %v9766_v48, %v9766_v48  ;;  %v9850_v27 = vld [vmem:[#allocation3 + $0x20] sm:$0x1] }
 0x750   :  { %v14061_v56 = vld.sshfl [vmem:[#allocation3 + $0x1c] sm:$0x10 pattern:$0x75316420]  ;;  %9729 = vst [vmem:[#allocation4 + $0x17] sm:$0x1] %v9727_v21  ;;  %v10551_v44 = vcombine.high %v10547_v11, %v10547_v11  ;;  %12560 = vmatmul.mubr.bf16.vlgmr.msra.gmra.mxu0 %v10548_v15  ;;  %15274 = vmatprep.subr.bf16.mxu1 %v17093_v34  ;;  %v10533_v21 = vrot.slane %v21668_v16, %v21648_v29 }
 0x751   :  { %v9801_v0 = vcombine.high %v14061_v56, %v14061_v56  ;;  %v14063_v50 = vld.sshfl [vmem:[#allocation3 + $0x1c] sm:$0x2 pattern:$0x75316420]  ;;  %v9786_v41 = vrot.slane %v9779_v32, %v21648_v29  ;;  %9851 = vst [vmem:[#allocation4 + $0x20] sm:$0x1] %v9850_v27  ;;  %15295 = vmatpush3.bf16.msra.mxu0 %v17092_v38  ;;  %12599 = vmatprep.mubr.bf16.mxu1 %v10547_v11 }
 0x752   :  { %v9826_v26 = vrot.slane %v14063_v50, %v21648_v29  ;;  %v14064_v9 = vld.sshfl [vmem:[#allocation3 + $0x1c] sm:$0x20 pattern:$0x75316420]  ;;  %9769 = vst [vmem:[#allocation4 + $0x1a] sm:$0x1] %v9767_v36  ;;  %15296 = vmatprep.subr.bf16.mxu0 %v17095_v5  ;;  %12639 = vmatprep.mubr.bf16.mxu0 %v10551_v44  ;;  %v10549_v11 = vcombine.high %v10533_v21, %v10533_v21 }
 0x753   :  { %14062 = vst.sshfl [vmem:[#allocation4 + $0x1d] sm:$0x1 pattern:$0x73625140] %v9801_v0  ;;  %v9839_v39 = vcombine.high %v14064_v9, %v14064_v9  ;;  %v9787_v13 = vcombine.high %v9786_v41, %v9786_v41  ;;  %15275 = vmatpush3.bf16.msra.mxu1 %v17094_v1  ;;  %v17098_v57 = vld [vmem:[%s22603_s6 + $0x128] sm:$0xff]   ;;  %v17103_v55 = vld [vmem:[%s22603_s6 + $0x1e0] sm:$0xff]  }
 0x754   :  { %v14065_v61 = vld.sshfl [vmem:[#allocation3 + $0x20] sm:$0x10 pattern:$0x75316420]  ;;  %v9827_v3 = vcombine.high %v9826_v26, %v9826_v26  ;;  %15276 = vmatprep.subr.bf16.mxu1 %v17097_v25  ;;  %v17100_v31 = vld [vmem:[%s22603_s6 + $0x1a8] sm:$0xff]   ;;  %v17105_v47 = vld [vmem:[%s22603_s6 + $0x158] sm:$0xff]  }
 0x755   :  { %v9861_v30 = vcombine.high %v14065_v61, %v14065_v61  ;;  %v14067_v58 = vld.sshfl [vmem:[#allocation3 + $0x20] sm:$0x2 pattern:$0x75316420]  ;;  %v9846_v40 = vrot.slane %v9839_v39, %v21648_v29  ;;  %9789 = vst [vmem:[#allocation4 + $0x1b] sm:$0x1] %v9787_v13  ;;  %15297 = vmatpush3.bf16.msra.mxu0 %v17096_v35 }
 0x756   :  { %v9886_v17 = vrot.slane %v14067_v58, %v21648_v29  ;;  %v14068_v45 = vld.sshfl [vmem:[#allocation3 + $0x20] sm:$0x20 pattern:$0x75316420]  ;;  %9829 = vst [vmem:[#allocation4 + $0x1e] sm:$0x1] %v9827_v3  ;;  %15298 = vmatprep.subr.bf16.mxu0 %v17099_v19 }
 0x757   :  { %14066 = vst.sshfl [vmem:[#allocation4 + $0x21] sm:$0x1 pattern:$0x73625140] %v9861_v30  ;;  %v9899_v59 = vcombine.high %v14068_v45, %v14068_v45  ;;  %v9847_v37 = vcombine.high %v9846_v40, %v9846_v40  ;;  %15277 = vmatpush3.bf16.msra.mxu1 %v17098_v57  ;;  %v17102_v62 = vld [vmem:[%s22603_s6 + $0x120] sm:$0xff]   ;;  %v17107_v14 = vld [vmem:[%s22603_s6 + $0x1d8] sm:$0xff]  }
 0x758   :  { %v9887_v10 = vcombine.high %v9886_v17, %v9886_v17  ;;  %15278 = vmatprep.subr.bf16.mxu1 %v17101_v49  ;;  %v17104_v24 = vld [vmem:[%s22603_s6 + $0x1a0] sm:$0xff]   ;;  %v17106_v43 = vld [vmem:[%s22603_s6 + $0x118] sm:$0xff]   ;;  %v17109_v52 = vld [vmem:[%s22603_s6 + $0x150] sm:$0xff]  }
 0x759   :  { %v9906_v22 = vrot.slane %v9899_v59, %v21648_v29  ;;  %9849 = vst [vmem:[#allocation4 + $0x1f] sm:$0x1] %v9847_v37  ;;  %15299 = vmatpush3.bf16.msra.mxu0 %v17100_v31  ;;  %v17108_v60 = vld [vmem:[%s22603_s6 + $0x198] sm:$0xff]   ;;  %v17111_v8 = vld [vmem:[%s22603_s6 + $0x1d0] sm:$0xff]   ;;  %v17113_v46 = vld [vmem:[%s22603_s6 + $0x148] sm:$0xff]  }
 0x75a   :  { %9889 = vst [vmem:[#allocation4 + $0x22] sm:$0x1] %v9887_v10  ;;  %15300 = vmatprep.subr.bf16.mxu0 %v17103_v55  ;;  %v17110_v18 = vld [vmem:[%s22603_s6 + $0x110] sm:$0xff]   ;;  %v17115_v51 = vld [vmem:[%s22603_s6 + $0x1c8] sm:$0xff]   ;;  %v17117_v12 = vld [vmem:[%s22603_s6 + $0x140] sm:$0xff]  }
 0x75b   :  { %v9907_v54 = vcombine.high %v9906_v22, %v9906_v22  ;;  %15279 = vmatpush3.bf16.msra.mxu1 %v17102_v62  ;;  %v21748_v2 = vld [vmem:[#allocation4 + $0x8] sm:$0xff]  ;;  %v17119_v53 = vld [vmem:[%s22603_s6 + $0x1c0] sm:$0xff]   ;;  %v17121_v7 = vld [vmem:[%s22603_s6 + $0x278] sm:$0xff]  }
 0x75c   :  { %15280 = vmatprep.subr.bf16.mxu1 %v17105_v47  ;;  %v17112_v63 = vld [vmem:[%s22603_s6 + $0x190] sm:$0xff]   ;;  %v17114_v34 = vld [vmem:[%s22603_s6 + $0x108] sm:$0xff]   ;;  %v21761_v20 = vrot.slane %v21748_v2, %v21648_v29  ;;  %v17118_v4 = vld [vmem:[%s22603_s6 + $0x100] sm:$0xff]   ;;  %v10552_v19 = vcombine.high %v21748_v2, %v21748_v2 }
 0x75d   :  { %9909 = vst [vmem:[#allocation4 + $0x23] sm:$0x1] %v9907_v54  ;;  %15301 = vmatpush3.bf16.msra.mxu0 %v17104_v24  ;;  %v17116_v6 = vld [vmem:[%s22603_s6 + $0x188] sm:$0xff]   ;;  %v17120_v23 = vld [vmem:[%s22603_s6 + $0x180] sm:$0xff]   ;;  %v17123_v33 = vld [vmem:[%s22603_s6 + $0x2f8] sm:$0xff]  }
 0x75e   :  { %15302 = vmatprep.subr.bf16.mxu0 %v17107_v14  ;;  %v10567_v28 = vcombine.high %v21761_v20, %v21761_v20  ;;  %v17122_v38 = vld [vmem:[%s22603_s6 + $0x238] sm:$0xff]   ;;  %v17125_v42 = vld [vmem:[%s22603_s6 + $0x270] sm:$0xff]   ;;  %v17129_v32 = vld [vmem:[%s22603_s6 + $0x268] sm:$0xff]   ;;  %v21867_v17 = vrot.slane %v10552_v19, %v21648_v29  ;;  %v10575_v22 = vrot.slane %v21761_v20, %v21648_v29 }
 0x75f   :  { %15281 = vmatpush3.bf16.msra.mxu1 %v17106_v43  ;;  %v17124_v16 = vld [vmem:[%s22603_s6 + $0x2b8] sm:$0xff]   ;;  %v17127_v15 = vld [vmem:[%s22603_s6 + $0x2f0] sm:$0xff]   ;;  %v17131_v36 = vld [vmem:[%s22603_s6 + $0x2e8] sm:$0xff]  }
 0x760   :  { %15282 = vmatprep.subr.bf16.mxu1 %v17109_v52  ;;  %v10589_v48 = vrot.slane %v10567_v28, %v21648_v29  ;;  %v17126_v5 = vld [vmem:[%s22603_s6 + $0x230] sm:$0xff]   ;;  %v17130_v0 = vld [vmem:[%s22603_s6 + $0x228] sm:$0xff]   ;;  %v17133_v50 = vld [vmem:[%s22603_s6 + $0x260] sm:$0xff]   ;;  %v10568_v31 = vcombine.high %v21867_v17, %v21867_v17  ;;  %v10597_v43 = vcombine.high %v10575_v22, %v10575_v22 }
 0x761   :  { %15303 = vmatpush3.bf16.msra.mxu0 %v17108_v60  ;;  %v17128_v56 = vld [vmem:[%s22603_s6 + $0x2b0] sm:$0xff]   ;;  %v17132_v27 = vld [vmem:[%s22603_s6 + $0x2a8] sm:$0xff]   ;;  %v17135_v44 = vld [vmem:[%s22603_s6 + $0x2e0] sm:$0xff]  }
 0x762   :  { %15304 = vmatprep.subr.bf16.mxu0 %v17111_v8  ;;  %v10599_v1 = vcombine.high %v10589_v48, %v10589_v48  ;;  %v17134_v25 = vld [vmem:[%s22603_s6 + $0x220] sm:$0xff]   ;;  %v17137_v41 = vld [vmem:[%s22603_s6 + $0x258] sm:$0xff]   ;;  %v17141_v39 = vld [vmem:[%s22603_s6 + $0x250] sm:$0xff]   ;;  %v10596_v54 = vrot.slane %v10568_v31, %v21648_v29 }
 0x763   :  { %15283 = vmatpush3.bf16.msra.mxu1 %v17110_v18  ;;  %v17136_v26 = vld [vmem:[%s22603_s6 + $0x2a0] sm:$0xff]   ;;  %v17139_v9 = vld [vmem:[%s22603_s6 + $0x2d8] sm:$0xff]   ;;  %v17143_v13 = vld [vmem:[%s22603_s6 + $0x2d0] sm:$0xff]  }
 0x764   :  { %15284 = vmatprep.subr.bf16.mxu1 %v17113_v46  ;;  %v17138_v35 = vld [vmem:[%s22603_s6 + $0x218] sm:$0xff]   ;;  %v17142_v3 = vld [vmem:[%s22603_s6 + $0x210] sm:$0xff]   ;;  %v17145_v30 = vld [vmem:[%s22603_s6 + $0x248] sm:$0xff]   ;;  %v10600_v60 = vcombine.high %v10596_v54, %v10596_v54 }
 0x765   :  { %15305 = vmatpush3.bf16.msra.mxu0 %v17112_v63  ;;  %v17140_v61 = vld [vmem:[%s22603_s6 + $0x298] sm:$0xff]   ;;  %v17144_v58 = vld [vmem:[%s22603_s6 + $0x290] sm:$0xff]   ;;  %v17147_v57 = vld [vmem:[%s22603_s6 + $0x2c8] sm:$0xff]  }
 0x766   :  { %15306 = vmatprep.subr.bf16.mxu0 %v17115_v51  ;;  %v17146_v40 = vld [vmem:[%s22603_s6 + $0x208] sm:$0xff]   ;;  %v17149_v45 = vld [vmem:[%s22603_s6 + $0x240] sm:$0xff]   ;;  %v17153_v10 = vld [vmem:[%s22603_s6 + $0x378] sm:$0xff]  }
 0x767   :  { %15285 = vmatpush3.bf16.msra.mxu1 %v17114_v34  ;;  %v17148_v49 = vld [vmem:[%s22603_s6 + $0x288] sm:$0xff]   ;;  %v17151_v59 = vld [vmem:[%s22603_s6 + $0x2c0] sm:$0xff]   ;;  %v17156_v62 = vld [vmem:[%s22603_s6 + $0x3f8] sm:$0xff]  }
 0x768   :  { %15286 = vmatprep.subr.bf16.mxu1 %v17117_v12  ;;  %v17150_v37 = vld [vmem:[%s22603_s6 + $0x200] sm:$0xff]   ;;  %v17154_v47 = vld [vmem:[%s22603_s6 + $0x338] sm:$0xff]   ;;  %v17158_v24 = vld [vmem:[%s22603_s6 + $0x370] sm:$0xff]  }
 0x769   :  { %15307 = vmatpush3.bf16.msra.mxu0 %v17116_v6  ;;  %v17152_v55 = vld [vmem:[%s22603_s6 + $0x280] sm:$0xff]   ;;  %v17157_v14 = vld [vmem:[%s22603_s6 + $0x3b8] sm:$0xff]   ;;  %v17160_v52 = vld [vmem:[%s22603_s6 + $0x3f0] sm:$0xff]  }
 0x76a   :  { %15308 = vmatprep.subr.bf16.mxu0 %v17119_v53  ;;  %v17159_v8 = vld [vmem:[%s22603_s6 + $0x330] sm:$0xff]   ;;  %v17162_v18 = vld [vmem:[%s22603_s6 + $0x368] sm:$0xff]   ;;  %v17166_v51 = vld [vmem:[%s22603_s6 + $0x360] sm:$0xff]  }
 0x76b   :  { %15287 = vmatpush3.bf16.msra.mxu1 %v17118_v4  ;;  %v17161_v46 = vld [vmem:[%s22603_s6 + $0x3b0] sm:$0xff]   ;;  %v17164_v2 = vld [vmem:[%s22603_s6 + $0x3e8] sm:$0xff]   ;;  %v17168_v20 = vld [vmem:[%s22603_s6 + $0x3e0] sm:$0xff]  }
 0x76c   :  { %15316 = vmatprep.subr.bf16.mxu1 %v17121_v7  ;;  %v17163_v63 = vld [vmem:[%s22603_s6 + $0x328] sm:$0xff]   ;;  %v17167_v12 = vld [vmem:[%s22603_s6 + $0x320] sm:$0xff]   ;;  %v17170_v6 = vld [vmem:[%s22603_s6 + $0x358] sm:$0xff]  }
 0x76d   :  { %15309 = vmatpush3.bf16.msra.mxu0 %v17120_v23  ;;  %v17165_v34 = vld [vmem:[%s22603_s6 + $0x3a8] sm:$0xff]   ;;  %v17169_v53 = vld [vmem:[%s22603_s6 + $0x3a0] sm:$0xff]   ;;  %v17172_v4 = vld [vmem:[%s22603_s6 + $0x3d8] sm:$0xff]  }
 0x76e   :  { %12600 = vmatmul.mubr.bf16.vlgmr.msra.gmra.mxu1 %v10533_v21  ;;  %15338 = vmatprep.subr.bf16.mxu0 %v17123_v33  ;;  %v17171_v28 = vld [vmem:[%s22603_s6 + $0x318] sm:$0xff]   ;;  %v17174_v7 = vld [vmem:[%s22603_s6 + $0x350] sm:$0xff]  }
 0x76f   :  { %15317 = vmatpush3.bf16.msra.mxu1 %v17122_v38  ;;  %12679 = vmatprep.mubr.bf16.mxu1 %v10589_v48  ;;  %v17173_v23 = vld [vmem:[%s22603_s6 + $0x398] sm:$0xff]   ;;  %v17176_v21 = vld [vmem:[%s22603_s6 + $0x3d0] sm:$0xff]   ;;  %v17178_v38 = vld [vmem:[%s22603_s6 + $0x348] sm:$0xff]  }
 0x770   :  { %12640 = vmatmul.mubr.bf16.vlgmr.msra.gmra.mxu0 %v10549_v11  ;;  %15318 = vmatprep.subr.bf16.mxu1 %v17125_v42  ;;  %v17175_v33 = vld [vmem:[%s22603_s6 + $0x310] sm:$0xff]   ;;  %v17179_v11 = vld [vmem:[%s22603_s6 + $0x308] sm:$0xff]   ;;  %v17203_v31 = vld [vmem:[%s22603_s6 + $0x418] sm:$0xff]  }
 0x771   :  { %15339 = vmatpush3.bf16.msra.mxu0 %v17124_v16  ;;  %12719 = vmatprep.mubr.bf16.mxu0 %v10599_v1  ;;  %v21961_v48 = vld [vmem:[#allocation4 + $0x10] sm:$0xff]  ;;  %v17180_v16 = vld [vmem:[%s22603_s6 + $0x3c8] sm:$0xff]   ;;  %v17182_v1 = vld [vmem:[%s22603_s6 + $0x340] sm:$0xff]  }
 0x772   :  { %15340 = vmatprep.subr.bf16.mxu0 %v17127_v15  ;;  %v17177_v42 = vld [vmem:[%s22603_s6 + $0x390] sm:$0xff]   ;;  %v21974_v15 = vrot.slane %v21961_v48, %v21648_v29 }
 0x773   :  { %15319 = vmatpush3.bf16.msra.mxu1 %v17126_v5  ;;  %v17181_v5 = vld [vmem:[%s22603_s6 + $0x388] sm:$0xff]   ;;  %v17193_v19 = vld [vmem:[%s22603_s6 + $0x4b0] sm:$0xff]  }
 0x774   :  { %15320 = vmatprep.subr.bf16.mxu1 %v17129_v32  ;;  %v17184_v32 = vld [vmem:[%s22603_s6 + $0x3c0] sm:$0xff]  }
 0x775   :  { %15341 = vmatpush3.bf16.msra.mxu0 %v17128_v56  ;;  %v17183_v56 = vld [vmem:[%s22603_s6 + $0x300] sm:$0xff]  }
 0x776   :  { %15342 = vmatprep.subr.bf16.mxu0 %v17131_v36  ;;  %v10616_v36 = vcombine.high %v21974_v15, %v21974_v15 }
 0x777   :  { %15321 = vmatpush3.bf16.msra.mxu1 %v17130_v0  ;;  %v17186_v0 = vld [vmem:[%s22603_s6 + $0x478] sm:$0xff]  }
 0x778   :  { %15322 = vmatprep.subr.bf16.mxu1 %v17133_v50  ;;  %v17185_v50 = vld [vmem:[%s22603_s6 + $0x380] sm:$0xff]  }
 0x779   :  { %15343 = vmatpush3.bf16.msra.mxu0 %v17132_v27  ;;  %v10582_v27 = vrot.slane %v21867_v17, %v21648_v29  ;;  %v17200_v17 = vld [vmem:[%s22603_s6 + $0x4e0] sm:$0xff]  }
 0x77a   :  { %15344 = vmatprep.subr.bf16.mxu0 %v17135_v44  ;;  %v17188_v44 = vld [vmem:[%s22603_s6 + $0x4f8] sm:$0xff]  }
 0x77b   :  { %15323 = vmatpush3.bf16.msra.mxu1 %v17134_v25  ;;  %v17187_v25 = vld [vmem:[%s22603_s6 + $0x438] sm:$0xff]  }
 0x77c   :  { %15324 = vmatprep.subr.bf16.mxu1 %v17137_v41  ;;  %v10638_v41 = vrot.slane %v10616_v36, %v21648_v29  ;;  %v17236_v36 = vld [vmem:[%s22603_s6 + $0x518] sm:$0xff]  }
 0x77d   :  { %15345 = vmatpush3.bf16.msra.mxu0 %v17136_v26  ;;  %v17190_v26 = vld [vmem:[%s22603_s6 + $0x470] sm:$0xff]  }
 0x77e   :  { %15346 = vmatprep.subr.bf16.mxu0 %v17139_v9  ;;  %v17189_v9 = vld [vmem:[%s22603_s6 + $0x4b8] sm:$0xff]  }
 0x77f   :  { %15325 = vmatpush3.bf16.msra.mxu1 %v17138_v35  ;;  %v10598_v35 = vcombine.high %v10582_v27, %v10582_v27 }
 0x780   :  { %15326 = vmatprep.subr.bf16.mxu1 %v17141_v39  ;;  %v17192_v39 = vld [vmem:[%s22603_s6 + $0x4f0] sm:$0xff]  }
 0x781   :  { %15347 = vmatpush3.bf16.msra.mxu0 %v17140_v61  ;;  %v10648_v61 = vcombine.high %v10638_v41, %v10638_v41 }
 0x782   :  { %15348 = vmatprep.subr.bf16.mxu0 %v17143_v13  ;;  %v17191_v13 = vld [vmem:[%s22603_s6 + $0x430] sm:$0xff]  }
 0x783   :  { %15327 = vmatpush3.bf16.msra.mxu1 %v17142_v3  ;;  %v17194_v3 = vld [vmem:[%s22603_s6 + $0x468] sm:$0xff]  }
 0x784   :  { %15328 = vmatprep.subr.bf16.mxu1 %v17145_v30  ;;  %v17196_v30 = vld [vmem:[%s22603_s6 + $0x4e8] sm:$0xff]  }
 0x785   :  { %15349 = vmatpush3.bf16.msra.mxu0 %v17144_v58  ;;  %v17195_v58 = vld [vmem:[%s22603_s6 + $0x428] sm:$0xff]  }
 0x786   :  { %15350 = vmatprep.subr.bf16.mxu0 %v17147_v57  ;;  %v17198_v57 = vld [vmem:[%s22603_s6 + $0x460] sm:$0xff]  }
 0x787   :  { %15329 = vmatpush3.bf16.msra.mxu1 %v17146_v40  ;;  %v17197_v40 = vld [vmem:[%s22603_s6 + $0x4a8] sm:$0xff]  }
 0x788   :  { %15330 = vmatprep.subr.bf16.mxu1 %v17149_v45  ;;  %v17199_v45 = vld [vmem:[%s22603_s6 + $0x420] sm:$0xff]  }
 0x789   :  { %15351 = vmatpush3.bf16.msra.mxu0 %v17148_v49  ;;  %v17202_v49 = vld [vmem:[%s22603_s6 + $0x458] sm:$0xff]  }
 0x78a   :  { %15352 = vmatprep.subr.bf16.mxu0 %v17151_v59  ;;  %v17201_v59 = vld [vmem:[%s22603_s6 + $0x4a0] sm:$0xff]  }
 0x78b   :  { %15331 = vmatpush3.bf16.msra.mxu1 %v17150_v37  ;;  %v17204_v37 = vld [vmem:[%s22603_s6 + $0x4d8] sm:$0xff]  }
 0x78c   :  { %15360 = vmatprep.subr.bf16.mxu1 %v17153_v10  ;;  %v17206_v10 = vld [vmem:[%s22603_s6 + $0x450] sm:$0xff]  }
 0x78d   :  { %15353 = vmatpush3.bf16.msra.mxu0 %v17152_v55  ;;  %v17205_v55 = vld [vmem:[%s22603_s6 + $0x498] sm:$0xff]  }
 0x78e   :  { %12680 = vmatmul.mubr.bf16.vlgmr.msra.gmra.mxu1 %v10575_v22  ;;  %15382 = vmatprep.subr.bf16.mxu0 %v17156_v62  ;;  %v17208_v22 = vld [vmem:[%s22603_s6 + $0x4d0] sm:$0xff]  }
 0x78f   :  { %15361 = vmatpush3.bf16.msra.mxu1 %v17154_v47  ;;  %12759 = vmatprep.mubr.bf16.mxu1 %v10596_v54  ;;  %v17207_v62 = vld [vmem:[%s22603_s6 + $0x410] sm:$0xff]   ;;  %v10601_v47 = vcombine.high %v21961_v48, %v21961_v48  ;;  %v17210_v54 = vld [vmem:[%s22603_s6 + $0x448] sm:$0xff]  }
 0x790   :  { %12720 = vmatmul.mubr.bf16.vlgmr.msra.gmra.mxu0 %v10597_v43  ;;  %15362 = vmatprep.subr.bf16.mxu1 %v17158_v24  ;;  %v17209_v24 = vld [vmem:[%s22603_s6 + $0x490] sm:$0xff]   ;;  %v17211_v43 = vld [vmem:[%s22603_s6 + $0x408] sm:$0xff]  }
 0x791   :  { %15383 = vmatpush3.bf16.msra.mxu0 %v17157_v14  ;;  %12799 = vmatprep.mubr.bf16.mxu0 %v10600_v60  ;;  %v17212_v14 = vld [vmem:[%s22603_s6 + $0x4c8] sm:$0xff]   ;;  %v17214_v60 = vld [vmem:[%s22603_s6 + $0x440] sm:$0xff]  }
 0x792   :  { %15384 = vmatprep.subr.bf16.mxu0 %v17160_v52  ;;  %v22080_v52 = vrot.slane %v10601_v47, %v21648_v29  ;;  %v17229_v48 = vld [vmem:[%s22603_s6 + $0x5e8] sm:$0xff]   ;;  %v17258_v47 = vld [vmem:[%s22603_s6 + $0x6b0] sm:$0xff]  }
 0x793   :  { %15363 = vmatpush3.bf16.msra.mxu1 %v17159_v8  ;;  %v17213_v8 = vld [vmem:[%s22603_s6 + $0x488] sm:$0xff]  }
 0x794   :  { %15364 = vmatprep.subr.bf16.mxu1 %v17162_v18  ;;  %v17216_v18 = vld [vmem:[%s22603_s6 + $0x4c0] sm:$0xff]  }
 0x795   :  { %15385 = vmatpush3.bf16.msra.mxu0 %v17161_v46  ;;  %v17215_v46 = vld [vmem:[%s22603_s6 + $0x400] sm:$0xff]  }
 0x796   :  { %15386 = vmatprep.subr.bf16.mxu0 %v17164_v2  ;;  %v10617_v2 = vcombine.high %v22080_v52, %v22080_v52 }
 0x797   :  { %15365 = vmatpush3.bf16.msra.mxu1 %v17163_v63  ;;  %v17218_v63 = vld [vmem:[%s22603_s6 + $0x578] sm:$0xff]  }
 0x798   :  { %15366 = vmatprep.subr.bf16.mxu1 %v17166_v51  ;;  %v17217_v51 = vld [vmem:[%s22603_s6 + $0x480] sm:$0xff]  }
 0x799   :  { %15387 = vmatpush3.bf16.msra.mxu0 %v17165_v34  ;;  %v10624_v34 = vrot.slane %v21974_v15, %v21648_v29  ;;  %v17233_v15 = vld [vmem:[%s22603_s6 + $0x5e0] sm:$0xff]  }
 0x79a   :  { %15388 = vmatprep.subr.bf16.mxu0 %v17168_v20  ;;  %v17221_v20 = vld [vmem:[%s22603_s6 + $0x5f8] sm:$0xff]  }
 0x79b   :  { %15367 = vmatpush3.bf16.msra.mxu1 %v17167_v12  ;;  %v17219_v12 = vld [vmem:[%s22603_s6 + $0x538] sm:$0xff]  }
 0x79c   :  { %15368 = vmatprep.subr.bf16.mxu1 %v17170_v6  ;;  %v10645_v6 = vrot.slane %v10617_v2, %v21648_v29  ;;  %v17268_v2 = vld [vmem:[%s22603_s6 + $0x618] sm:$0xff]  }
 0x79d   :  { %15389 = vmatpush3.bf16.msra.mxu0 %v17169_v53  ;;  %v17223_v53 = vld [vmem:[%s22603_s6 + $0x570] sm:$0xff]  }
 0x79e   :  { %15390 = vmatprep.subr.bf16.mxu0 %v17172_v4  ;;  %v17222_v4 = vld [vmem:[%s22603_s6 + $0x5b8] sm:$0xff]  }
 0x79f   :  { %15369 = vmatpush3.bf16.msra.mxu1 %v17171_v28  ;;  %v10646_v28 = vcombine.high %v10624_v34, %v10624_v34 }
 0x7a0   :  { %15370 = vmatprep.subr.bf16.mxu1 %v17174_v7  ;;  %v17225_v7 = vld [vmem:[%s22603_s6 + $0x5f0] sm:$0xff]  }
 0x7a1   :  { %15391 = vmatpush3.bf16.msra.mxu0 %v17173_v23  ;;  %v10649_v23 = vcombine.high %v10645_v6, %v10645_v6 }
 0x7a2   :  { %15392 = vmatprep.subr.bf16.mxu0 %v17176_v21  ;;  %v17224_v21 = vld [vmem:[%s22603_s6 + $0x530] sm:$0xff]  }
 0x7a3   :  { %15371 = vmatpush3.bf16.msra.mxu1 %v17175_v33  ;;  %v17227_v33 = vld [vmem:[%s22603_s6 + $0x568] sm:$0xff]  }
 0x7a4   :  { %15372 = vmatprep.subr.bf16.mxu1 %v17178_v38  ;;  %v17226_v38 = vld [vmem:[%s22603_s6 + $0x5b0] sm:$0xff]  }
 0x7a5   :  { %15393 = vmatpush3.bf16.msra.mxu0 %v17177_v42  ;;  %v17228_v42 = vld [vmem:[%s22603_s6 + $0x528] sm:$0xff]  }
 0x7a6   :  { %15394 = vmatprep.subr.bf16.mxu0 %v17180_v16  ;;  %v17231_v16 = vld [vmem:[%s22603_s6 + $0x560] sm:$0xff]  }
 0x7a7   :  { %15373 = vmatpush3.bf16.msra.mxu1 %v17179_v11  ;;  %v17230_v11 = vld [vmem:[%s22603_s6 + $0x5a8] sm:$0xff]  }
 0x7a8   :  { %15374 = vmatprep.subr.bf16.mxu1 %v17182_v1  ;;  %v17232_v1 = vld [vmem:[%s22603_s6 + $0x520] sm:$0xff]  }
 0x7a9   :  { %15395 = vmatpush3.bf16.msra.mxu0 %v17181_v5  ;;  %v17235_v5 = vld [vmem:[%s22603_s6 + $0x558] sm:$0xff]  }
 0x7aa   :  { %15396 = vmatprep.subr.bf16.mxu0 %v17184_v32  ;;  %v17234_v32 = vld [vmem:[%s22603_s6 + $0x5a0] sm:$0xff]  }
 0x7ab   :  { %15375 = vmatpush3.bf16.msra.mxu1 %v17183_v56  ;;  %v17237_v56 = vld [vmem:[%s22603_s6 + $0x5d8] sm:$0xff]  }
 0x7ac   :  { %15404 = vmatprep.subr.bf16.mxu1 %v17186_v0  ;;  %v17239_v0 = vld [vmem:[%s22603_s6 + $0x550] sm:$0xff]  }
 0x7ad   :  { %15397 = vmatpush3.bf16.msra.mxu0 %v17185_v50  ;;  %v17238_v50 = vld [vmem:[%s22603_s6 + $0x598] sm:$0xff]  }
 0x7ae   :  { %12760 = vmatmul.mubr.bf16.vlgmr.msra.gmra.mxu1 %v10582_v27  ;;  %15426 = vmatprep.subr.bf16.mxu0 %v17188_v44  ;;  %v17241_v27 = vld [vmem:[%s22603_s6 + $0x5d0] sm:$0xff]  }
 0x7af   :  { %15405 = vmatpush3.bf16.msra.mxu1 %v17187_v25  ;;  %12839 = vmatprep.mubr.bf16.mxu1 %v10638_v41  ;;  %v17240_v44 = vld [vmem:[%s22603_s6 + $0x510] sm:$0xff]   ;;  %v17243_v25 = vld [vmem:[%s22603_s6 + $0x548] sm:$0xff]   ;;  %v22174_v41 = vld [vmem:[#allocation4 + $0x18] sm:$0xff] }
 0x7b0   :  { %12800 = vmatmul.mubr.bf16.vlgmr.msra.gmra.mxu0 %v10598_v35  ;;  %15406 = vmatprep.subr.bf16.mxu1 %v17190_v26  ;;  %v17242_v26 = vld [vmem:[%s22603_s6 + $0x590] sm:$0xff]   ;;  %v17244_v35 = vld [vmem:[%s22603_s6 + $0x508] sm:$0xff]  }
 0x7b1   :  { %15427 = vmatpush3.bf16.msra.mxu0 %v17189_v9  ;;  %12879 = vmatprep.mubr.bf16.mxu0 %v10648_v61  ;;  %v17245_v9 = vld [vmem:[%s22603_s6 + $0x5c8] sm:$0xff]   ;;  %v17247_v61 = vld [vmem:[%s22603_s6 + $0x540] sm:$0xff]  }
 0x7b2   :  { %15428 = vmatprep.subr.bf16.mxu0 %v17192_v39  ;;  %v22187_v39 = vrot.slane %v22174_v41, %v21648_v29 }
 0x7b3   :  { %15407 = vmatpush3.bf16.msra.mxu1 %v17191_v13  ;;  %v17246_v13 = vld [vmem:[%s22603_s6 + $0x588] sm:$0xff]  }
 0x7b4   :  { %15408 = vmatprep.subr.bf16.mxu1 %v17194_v3  ;;  %v17249_v3 = vld [vmem:[%s22603_s6 + $0x5c0] sm:$0xff]  }
 0x7b5   :  { %15429 = vmatpush3.bf16.msra.mxu0 %v17193_v19  ;;  %v17248_v19 = vld [vmem:[%s22603_s6 + $0x500] sm:$0xff]  }
 0x7b6   :  { %15430 = vmatprep.subr.bf16.mxu0 %v17196_v30  ;;  %v10665_v30 = vcombine.high %v22187_v39, %v22187_v39 }
 0x7b7   :  { %15409 = vmatpush3.bf16.msra.mxu1 %v17195_v58  ;;  %v17251_v58 = vld [vmem:[%s22603_s6 + $0x678] sm:$0xff]  }
 0x7b8   :  { %15410 = vmatprep.subr.bf16.mxu1 %v17198_v57  ;;  %v17250_v57 = vld [vmem:[%s22603_s6 + $0x580] sm:$0xff]  }
 0x7b9   :  { %15431 = vmatpush3.bf16.msra.mxu0 %v17197_v40  ;;  %v10631_v40 = vrot.slane %v22080_v52, %v21648_v29  ;;  %v17265_v52 = vld [vmem:[%s22603_s6 + $0x6e0] sm:$0xff]  }
 0x7ba   :  { %15432 = vmatprep.subr.bf16.mxu0 %v17200_v17  ;;  %v17253_v17 = vld [vmem:[%s22603_s6 + $0x6f8] sm:$0xff]  }
 0x7bb   :  { %15411 = vmatpush3.bf16.msra.mxu1 %v17199_v45  ;;  %v17252_v45 = vld [vmem:[%s22603_s6 + $0x638] sm:$0xff]  }
 0x7bc   :  { %15412 = vmatprep.subr.bf16.mxu1 %v17202_v49  ;;  %v10687_v49 = vrot.slane %v10665_v30, %v21648_v29 }
 0x7bd   :  { %15433 = vmatpush3.bf16.msra.mxu0 %v17201_v59  ;;  %v17255_v59 = vld [vmem:[%s22603_s6 + $0x670] sm:$0xff]  }
 0x7be   :  { %15434 = vmatprep.subr.bf16.mxu0 %v17204_v37  ;;  %v17254_v37 = vld [vmem:[%s22603_s6 + $0x6b8] sm:$0xff]  }
 0x7bf   :  { %15413 = vmatpush3.bf16.msra.mxu1 %v17203_v31  ;;  %v10647_v31 = vcombine.high %v10631_v40, %v10631_v40 }
 0x7c0   :  { %15414 = vmatprep.subr.bf16.mxu1 %v17206_v10  ;;  %v17257_v10 = vld [vmem:[%s22603_s6 + $0x6f0] sm:$0xff]  }
 0x7c1   :  { %15435 = vmatpush3.bf16.msra.mxu0 %v17205_v55  ;;  %v10697_v55 = vcombine.high %v10687_v49, %v10687_v49 }
 0x7c2   :  { %15436 = vmatprep.subr.bf16.mxu0 %v17208_v22  ;;  %v17256_v22 = vld [vmem:[%s22603_s6 + $0x630] sm:$0xff]  }
 0x7c3   :  { %15415 = vmatpush3.bf16.msra.mxu1 %v17207_v62  ;;  %v17259_v62 = vld [vmem:[%s22603_s6 + $0x668] sm:$0xff]  }
 0x7c4   :  { %15416 = vmatprep.subr.bf16.mxu1 %v17210_v54  ;;  %v17261_v54 = vld [vmem:[%s22603_s6 + $0x6e8] sm:$0xff]  }
 0x7c5   :  { %15437 = vmatpush3.bf16.msra.mxu0 %v17209_v24  ;;  %v17260_v24 = vld [vmem:[%s22603_s6 + $0x628] sm:$0xff]  }
 0x7c6   :  { %15438 = vmatprep.subr.bf16.mxu0 %v17212_v14  ;;  %v17263_v14 = vld [vmem:[%s22603_s6 + $0x660] sm:$0xff]  }
 0x7c7   :  { %15417 = vmatpush3.bf16.msra.mxu1 %v17211_v43  ;;  %v17262_v43 = vld [vmem:[%s22603_s6 + $0x6a8] sm:$0xff]  }
 0x7c8   :  { %15418 = vmatprep.subr.bf16.mxu1 %v17214_v60  ;;  %v17264_v60 = vld [vmem:[%s22603_s6 + $0x620] sm:$0xff]  }
 0x7c9   :  { %15439 = vmatpush3.bf16.msra.mxu0 %v17213_v8  ;;  %v17267_v8 = vld [vmem:[%s22603_s6 + $0x658] sm:$0xff]  }
 0x7ca   :  { %15440 = vmatprep.subr.bf16.mxu0 %v17216_v18  ;;  %v17266_v18 = vld [vmem:[%s22603_s6 + $0x6a0] sm:$0xff]  }
 0x7cb   :  { %15419 = vmatpush3.bf16.msra.mxu1 %v17215_v46  ;;  %v17269_v46 = vld [vmem:[%s22603_s6 + $0x6d8] sm:$0xff]  }
 0x7cc   :  { %15448 = vmatprep.subr.bf16.mxu1 %v17218_v63  ;;  %v17271_v63 = vld [vmem:[%s22603_s6 + $0x650] sm:$0xff]  }
 0x7cd   :  { %15441 = vmatpush3.bf16.msra.mxu0 %v17217_v51  ;;  %v17270_v51 = vld [vmem:[%s22603_s6 + $0x698] sm:$0xff]  }
 0x7ce   :  { %12840 = vmatmul.mubr.bf16.vlgmr.msra.gmra.mxu1 %v10624_v34  ;;  %15470 = vmatprep.subr.bf16.mxu0 %v17221_v20  ;;  %v17273_v34 = vld [vmem:[%s22603_s6 + $0x6d0] sm:$0xff]  }
 0x7cf   :  { %15449 = vmatpush3.bf16.msra.mxu1 %v17219_v12  ;;  %12919 = vmatprep.mubr.bf16.mxu1 %v10645_v6  ;;  %v17272_v20 = vld [vmem:[%s22603_s6 + $0x610] sm:$0xff]   ;;  %v10650_v12 = vcombine.high %v22174_v41, %v22174_v41  ;;  %v17275_v6 = vld [vmem:[%s22603_s6 + $0x648] sm:$0xff]   ;;  %v14069_v41 = vld [vmem:[%s22604_s7] ss:$0 sm:$0xff] }
 0x7d0   :  { %12880 = vmatmul.mubr.bf16.vlgmr.msra.gmra.mxu0 %v10646_v28  ;;  %15450 = vmatprep.subr.bf16.mxu1 %v17223_v53  ;;  %v17274_v53 = vld [vmem:[%s22603_s6 + $0x690] sm:$0xff]   ;;  %v17276_v28 = vld [vmem:[%s22603_s6 + $0x608] sm:$0xff]  }
 0x7d1   :  { %15471 = vmatpush3.bf16.msra.mxu0 %v17222_v4  ;;  %12959 = vmatprep.mubr.bf16.mxu0 %v10649_v23  ;;  %v17277_v4 = vld [vmem:[%s22603_s6 + $0x6c8] sm:$0xff]   ;;  %v17279_v23 = vld [vmem:[%s22603_s6 + $0x640] sm:$0xff]  }
 0x7d2   :  { %15472 = vmatprep.subr.bf16.mxu0 %v17225_v7  ;;  %v22293_v7 = vrot.slane %v10650_v12, %v21648_v29  ;;  %v17315_v12 = vld [vmem:[%s22603_s6 + $0x780] sm:$0xff]  }
 0x7d3   :  { %15451 = vmatpush3.bf16.msra.mxu1 %v17224_v21  ;;  %v17278_v21 = vld [vmem:[%s22603_s6 + $0x688] sm:$0xff]  }
 0x7d4   :  { %15452 = vmatprep.subr.bf16.mxu1 %v17227_v33  ;;  %v17281_v33 = vld [vmem:[%s22603_s6 + $0x6c0] sm:$0xff]  }
 0x7d5   :  { %15473 = vmatpush3.bf16.msra.mxu0 %v17226_v38  ;;  %v17280_v38 = vld [vmem:[%s22603_s6 + $0x600] sm:$0xff]  }
 0x7d6   :  { %15474 = vmatprep.subr.bf16.mxu0 %v17229_v48  ;;  %v10666_v48 = vcombine.high %v22293_v7, %v22293_v7 }
 0x7d7   :  { %15453 = vmatpush3.bf16.msra.mxu1 %v17228_v42  ;;  %v17283_v42 = vld [vmem:[%s22603_s6 + $0x778] sm:$0xff]  }
 0x7d8   :  { %15454 = vmatprep.subr.bf16.mxu1 %v17231_v16  ;;  %v17282_v16 = vld [vmem:[%s22603_s6 + $0x680] sm:$0xff]  }
 0x7d9   :  { %15475 = vmatpush3.bf16.msra.mxu0 %v17230_v11  ;;  %v10673_v11 = vrot.slane %v22187_v39, %v21648_v29 }
 0x7da   :  { %15476 = vmatprep.subr.bf16.mxu0 %v17233_v15  ;;  %v17286_v15 = vld [vmem:[%s22603_s6 + $0x7f8] sm:$0xff]  }
 0x7db   :  { %15455 = vmatpush3.bf16.msra.mxu1 %v17232_v1  ;;  %v17284_v1 = vld [vmem:[%s22603_s6 + $0x738] sm:$0xff]  }
 0x7dc   :  { %15456 = vmatprep.subr.bf16.mxu1 %v17235_v5  ;;  %v10694_v5 = vrot.slane %v10666_v48, %v21648_v29 }
 0x7dd   :  { %15477 = vmatpush3.bf16.msra.mxu0 %v17234_v32  ;;  %v17288_v32 = vld [vmem:[%s22603_s6 + $0x770] sm:$0xff]  }
 0x7de   :  { %15478 = vmatprep.subr.bf16.mxu0 %v17237_v56  ;;  %v17287_v56 = vld [vmem:[%s22603_s6 + $0x7b8] sm:$0xff]  }
 0x7df   :  { %15457 = vmatpush3.bf16.msra.mxu1 %v17236_v36  ;;  %v10695_v36 = vcombine.high %v10673_v11, %v10673_v11 }
 0x7e0   :  { %15458 = vmatprep.subr.bf16.mxu1 %v17239_v0  ;;  %v17290_v0 = vld [vmem:[%s22603_s6 + $0x7f0] sm:$0xff]  }
 0x7e1   :  { %15479 = vmatpush3.bf16.msra.mxu0 %v17238_v50 }
 0x7e2   :  { %15480 = vmatprep.subr.bf16.mxu0 %v17241_v27  ;;  %v10698_v27 = vcombine.high %v10694_v5, %v10694_v5 }
 0x7e3   :  { %15459 = vmatpush3.bf16.msra.mxu1 %v17240_v44  ;;  %v17289_v44 = vld [vmem:[%s22603_s6 + $0x730] sm:$0xff]  }
 0x7e4   :  { %15460 = vmatprep.subr.bf16.mxu1 %v17243_v25  ;;  %v17292_v25 = vld [vmem:[%s22603_s6 + $0x768] sm:$0xff]  }
 0x7e5   :  { %15481 = vmatpush3.bf16.msra.mxu0 %v17242_v26 }
 0x7e6   :  { %15482 = vmatprep.subr.bf16.mxu0 %v17245_v9 }
 0x7e7   :  { %15461 = vmatpush3.bf16.msra.mxu1 %v17244_v35  ;;  %v17291_v35 = vld [vmem:[%s22603_s6 + $0x7b0] sm:$0xff]  }
 0x7e8   :  { %15462 = vmatprep.subr.bf16.mxu1 %v17247_v61  ;;  %v17294_v61 = vld [vmem:[%s22603_s6 + $0x7e8] sm:$0xff]  }
 0x7e9   :  { %15483 = vmatpush3.bf16.msra.mxu0 %v17246_v13 }
 0x7ea   :  { %15484 = vmatprep.subr.bf16.mxu0 %v17249_v3 }
 0x7eb   :  { %15463 = vmatpush3.bf16.msra.mxu1 %v17248_v19  ;;  %v17293_v19 = vld [vmem:[%s22603_s6 + $0x728] sm:$0xff]  }
 0x7ec   :  { %15492 = vmatprep.subr.bf16.mxu1 %v17251_v58 }
 0x7ed   :  { %15485 = vmatpush3.bf16.msra.mxu0 %v17250_v57  ;;  %v17296_v57 = vld [vmem:[%s22603_s6 + $0x760] sm:$0xff]  }
 0x7ee   :  { %12920 = vmatmul.mubr.bf16.vlgmr.msra.gmra.mxu1 %v10631_v40  ;;  %15514 = vmatprep.subr.bf16.mxu0 %v17253_v17 }
 0x7ef   :  { %15493 = vmatpush3.bf16.msra.mxu1 %v17252_v45  ;;  %12999 = vmatprep.mubr.bf16.mxu1 %v10687_v49  ;;  %v17295_v45 = vld [vmem:[%s22603_s6 + $0x7a8] sm:$0xff]  }
 0x7f0   :  { %12960 = vmatmul.mubr.bf16.vlgmr.msra.gmra.mxu0 %v10647_v31  ;;  %15494 = vmatprep.subr.bf16.mxu1 %v17255_v59  ;;  %v17298_v59 = vld [vmem:[%s22603_s6 + $0x7e0] sm:$0xff]  }
 0x7f1   :  { %15515 = vmatpush3.bf16.msra.mxu0 %v17254_v37  ;;  %13039 = vmatprep.mubr.bf16.mxu0 %v10697_v55  ;;  %v17297_v31 = vld [vmem:[%s22603_s6 + $0x720] sm:$0xff]  }
 0x7f2   :  { %15516 = vmatprep.subr.bf16.mxu0 %v17257_v10  ;;  %v17300_v10 = vld [vmem:[%s22603_s6 + $0x758] sm:$0xff]   ;;  %v17299_v55 = vld [vmem:[%s22603_s6 + $0x7a0] sm:$0xff]  }
 0x7f3   :  { %15495 = vmatpush3.bf16.msra.mxu1 %v17256_v22  ;;  %v17302_v22 = vld [vmem:[%s22603_s6 + $0x7d8] sm:$0xff]  }
 0x7f4   :  { %15496 = vmatprep.subr.bf16.mxu1 %v17259_v62  ;;  %v17301_v62 = vld [vmem:[%s22603_s6 + $0x718] sm:$0xff]  }
 0x7f5   :  { %15517 = vmatpush3.bf16.msra.mxu0 %v17258_v47  ;;  %v17304_v47 = vld [vmem:[%s22603_s6 + $0x750] sm:$0xff]  }
 0x7f6   :  { %15518 = vmatprep.subr.bf16.mxu0 %v17261_v54  ;;  %v17303_v54 = vld [vmem:[%s22603_s6 + $0x798] sm:$0xff]  }
 0x7f7   :  { %15497 = vmatpush3.bf16.msra.mxu1 %v17260_v24  ;;  %v17306_v24 = vld [vmem:[%s22603_s6 + $0x7d0] sm:$0xff]  }
 0x7f8   :  { %15498 = vmatprep.subr.bf16.mxu1 %v17263_v14  ;;  %v17305_v14 = vld [vmem:[%s22603_s6 + $0x710] sm:$0xff]  }
 0x7f9   :  { %15519 = vmatpush3.bf16.msra.mxu0 %v17262_v43  ;;  %v17308_v43 = vld [vmem:[%s22603_s6 + $0x748] sm:$0xff]  }
 0x7fa   :  { %15520 = vmatprep.subr.bf16.mxu0 %v17265_v52  ;;  %v17307_v52 = vld [vmem:[%s22603_s6 + $0x790] sm:$0xff]  }
 0x7fb   :  { %15499 = vmatpush3.bf16.msra.mxu1 %v17264_v60  ;;  %v17310_v60 = vld [vmem:[%s22603_s6 + $0x7c8] sm:$0xff]  }
 0x7fc   :  { %15500 = vmatprep.subr.bf16.mxu1 %v17267_v8  ;;  %v17309_v8 = vld [vmem:[%s22603_s6 + $0x708] sm:$0xff]  }
 0x7fd   :  { %15521 = vmatpush3.bf16.msra.mxu0 %v17266_v18  ;;  %v17312_v18 = vld [vmem:[%s22603_s6 + $0x740] sm:$0xff]  }
 0x7fe   :  { %15522 = vmatprep.subr.bf16.mxu0 %v17269_v46  ;;  %v22404_v46 = vld.sshfl [vmem:[#allocation4 + $0x20] sm:$0x33 pattern:$0x75316420] }
 0x7ff   :  { %15501 = vmatpush3.bf16.msra.mxu1 %v17268_v2  ;;  %v17311_v2 = vld [vmem:[%s22603_s6 + $0x788] sm:$0xff]  }
 0x800   :  { %15502 = vmatprep.subr.bf16.mxu1 %v17271_v63  ;;  %v17314_v63 = vld [vmem:[%s22603_s6 + $0x7c0] sm:$0xff]  }
 0x801   :  { %15523 = vmatpush3.bf16.msra.mxu0 %v17270_v51  ;;  %v17313_v51 = vld [vmem:[%s22603_s6 + $0x700] sm:$0xff]  }
 0x802   :  { %15524 = vmatprep.subr.bf16.mxu0 %v17273_v34  ;;  %v10706_v34 = vcombine.high %v22404_v46, %v22404_v46 }
 0x803   :  { %15503 = vmatpush3.bf16.msra.mxu1 %v17272_v20  ;;  %v17316_v20 = vld [vmem:[%s22603_s6 + $0x878] sm:$0xff]  }
 0x804   :  { %15504 = vmatprep.subr.bf16.mxu1 %v17275_v6  ;;  %v10680_v6 = vrot.slane %v22293_v7, %v21648_v29  ;;  %v17319_v7 = vld [vmem:[%s22603_s6 + $0x8b8] sm:$0xff]  }
 0x805   :  { %15525 = vmatpush3.bf16.msra.mxu0 %v17274_v53  ;;  %v17318_v53 = vld [vmem:[%s22603_s6 + $0x8f8] sm:$0xff]  }
 0x806   :  { %15526 = vmatprep.subr.bf16.mxu0 %v17277_v4  ;;  %v17317_v4 = vld [vmem:[%s22603_s6 + $0x838] sm:$0xff]  }
 0x807   :  { %15505 = vmatpush3.bf16.msra.mxu1 %v17276_v28  ;;  %v10720_v28 = vrot.slane %v10706_v34, %v21648_v29 }
 0x808   :  { %15506 = vmatprep.subr.bf16.mxu1 %v17279_v23  ;;  %v17320_v23 = vld [vmem:[%s22603_s6 + $0x870] sm:$0xff]  }
 0x809   :  { %15527 = vmatpush3.bf16.msra.mxu0 %v17278_v21  ;;  %v10722_v48 = vcombine.high %v10720_v28, %v10720_v28 }
 0x80a   :  { %15528 = vmatprep.subr.bf16.mxu0 %v17281_v33  ;;  %v10696_v33 = vcombine.high %v10680_v6, %v10680_v6 }
 0x80b   :  { %15507 = vmatpush3.bf16.msra.mxu1 %v17280_v38  ;;  %v17322_v38 = vld [vmem:[%s22603_s6 + $0x8f0] sm:$0xff]  }
 0x80c   :  { %15536 = vmatprep.subr.bf16.mxu1 %v17283_v42  ;;  %v17321_v42 = vld [vmem:[%s22603_s6 + $0x830] sm:$0xff]  }
 0x80d   :  { %15529 = vmatpush3.bf16.msra.mxu0 %v17282_v16 }
 0x80e   :  { %13000 = vmatmul.mubr.bf16.vlgmr.msra.gmra.mxu1 %v10673_v11  ;;  %15558 = vmatprep.subr.bf16.mxu0 %v17286_v15  ;;  %v15244_v50 = vpop.f32.mrf.mxu1  ;;  %v17324_v15 = vld [vmem:[%s22603_s6 + $0x868] sm:$0xff]  }
 0x80f   :  { %15537 = vmatpush3.bf16.msra.mxu1 %v17284_v1  ;;  %13079 = vmatprep.mubr.bf16.mxu1 %v10694_v5  ;;  %v17323_v5 = vld [vmem:[%s22603_s6 + $0x8b0] sm:$0xff]  }
 0x810   :  { %13040 = vmatmul.mubr.bf16.vlgmr.msra.gmra.mxu0 %v10695_v36  ;;  %15538 = vmatprep.subr.bf16.mxu1 %v17288_v32  ;;  %v15245_v26 = vpop.f32.mrf.mxu1  ;;  %v15266_v9 = vpop.f32.mrf.mxu0  ;;  %v17326_v36 = vld [vmem:[%s22603_s6 + $0x8e8] sm:$0xff]  }
 0x811   :  { %15559 = vmatpush3.bf16.msra.mxu0 %v17287_v56  ;;  %13119 = vmatprep.mubr.bf16.mxu0 %v10698_v27  ;;  %v15246_v39 = vadd.f32 %v15245_v26, %v15244_v50  ;;  %v17325_v27 = vld [vmem:[%s22603_s6 + $0x828] sm:$0xff]  }
 0x812   :  { %15560 = vmatprep.subr.bf16.mxu0 %v17290_v0  ;;  %v15247_v13 = vpop.f32.mrf.mxu1  ;;  %v15267_v3 = vpop.f32.mrf.mxu0 }
 0x813   :  { %15539 = vmatpush3.bf16.msra.mxu1 %v17289_v44  ;;  %v12522_v30 = vadd.f32 %v15246_v39, %v14069_v41  ;;  %v15268_v58 = vadd.f32 %v15267_v3, %v15266_v9  ;;  %v17328_v41 = vld [vmem:[%s22603_s6 + $0x860] sm:$0xff]   ;;  %v17327_v9 = vld [vmem:[%s22603_s6 + $0x8a8] sm:$0xff]   ;;  %v17332_v13 = vld [vmem:[%s22603_s6 + $0x858] sm:$0xff]  }
 0x814   :  { %15540 = vmatprep.subr.bf16.mxu1 %v17292_v25  ;;  %v15248_v40 = vpop.f32.mrf.mxu1  ;;  %v15269_v17 = vpop.f32.mrf.mxu0  ;;  %v17330_v39 = vld [vmem:[%s22603_s6 + $0x8e0] sm:$0xff]  }
 0x815   :  { %15561 = vmatpush3.bf16.msra.mxu0 %v17291_v35  ;;  %v22357_v49 = vadd.f32 %v15268_v58, %v12522_v30  ;;  %v17331_v3 = vld [vmem:[%s22603_s6 + $0x8a0] sm:$0xff]   ;;  %v17333_v30 = vld [vmem:[%s22603_s6 + $0x818] sm:$0xff]   ;;  %v17336_v58 = vld [vmem:[%s22603_s6 + $0x850] sm:$0xff]  }
 0x816   :  { %15562 = vmatprep.subr.bf16.mxu0 %v17294_v61  ;;  %v15270_v37 = vpop.f32.mrf.mxu0  ;;  %v17329_v61 = vld [vmem:[%s22603_s6 + $0x820] sm:$0xff]   ;;  %v17338_v40 = vld [vmem:[%s22603_s6 + $0x8d0] sm:$0xff]  }
 0x817   :  { %15541 = vmatpush3.bf16.msra.mxu1 %v17293_v19  ;;  %v17334_v19 = vld [vmem:[%s22603_s6 + $0x8d8] sm:$0xff]   ;;  %v17337_v17 = vld [vmem:[%s22603_s6 + $0x810] sm:$0xff]   ;;  %v17341_v37 = vld [vmem:[%s22603_s6 + $0x808] sm:$0xff]  }
 0x818   :  { %15542 = vmatprep.subr.bf16.mxu1 %v17296_v57  ;;  %v17335_v57 = vld [vmem:[%s22603_s6 + $0x898] sm:$0xff]  }
 0x819   :  { %15563 = vmatpush3.bf16.msra.mxu0 %v17295_v45  ;;  %v17340_v45 = vld [vmem:[%s22603_s6 + $0x848] sm:$0xff]  }
 0x81a   :  { %15564 = vmatprep.subr.bf16.mxu0 %v17298_v59  ;;  %v17342_v59 = vld [vmem:[%s22603_s6 + $0x8c8] sm:$0xff]  }
 0x81b   :  { %15543 = vmatpush3.bf16.msra.mxu1 %v17297_v31  ;;  %v17344_v31 = vld [vmem:[%s22603_s6 + $0x840] sm:$0xff]  }
 0x81c   :  { %15544 = vmatprep.subr.bf16.mxu1 %v17300_v10  ;;  %v17343_v10 = vld [vmem:[%s22603_s6 + $0x888] sm:$0xff]  }
 0x81d   :  { %15565 = vmatpush3.bf16.msra.mxu0 %v17299_v55  ;;  %v17346_v55 = vld [vmem:[%s22603_s6 + $0x8c0] sm:$0xff]  }
 0x81e   :  { %15566 = vmatprep.subr.bf16.mxu0 %v17302_v22  ;;  %v17345_v22 = vld [vmem:[%s22603_s6 + $0x800] sm:$0xff]  }
 0x81f   :  { %15545 = vmatpush3.bf16.msra.mxu1 %v17301_v62  ;;  %v17347_v62 = vld [vmem:[%s22603_s6 + $0x880] sm:$0xff]  }
 0x820   :  { %15546 = vmatprep.subr.bf16.mxu1 %v17304_v47  ;;  %v10713_v47 = vrot.slane %v22404_v46, %v21648_v29 }
 0x821   :  { %15567 = vmatpush3.bf16.msra.mxu0 %v17303_v54 }
 0x822   :  { %15568 = vmatprep.subr.bf16.mxu0 %v17306_v24  ;;  %v10721_v54 = vcombine.high %v10713_v47, %v10713_v47 }
 0x823   :  { %15547 = vmatpush3.bf16.msra.mxu1 %v17305_v14 }
 0x824   :  { %15548 = vmatprep.subr.bf16.mxu1 %v17308_v43 }
 0x825   :  { %15569 = vmatpush3.bf16.msra.mxu0 %v17307_v52 }
 0x826   :  { %15570 = vmatprep.subr.bf16.mxu0 %v17310_v60 }
 0x827   :  { %15549 = vmatpush3.bf16.msra.mxu1 %v17309_v8 }
 0x828   :  { %15550 = vmatprep.subr.bf16.mxu1 %v17312_v18 }
 0x829   :  { %15571 = vmatpush3.bf16.msra.mxu0 %v17311_v2 }
 0x82a   :  { %15572 = vmatprep.subr.bf16.mxu0 %v17314_v63 }
 0x82b   :  { %15551 = vmatpush3.bf16.msra.mxu1 %v17313_v51 }
 0x82c   :  { %15580 = vmatprep.subr.bf16.mxu1 %v17316_v20 }
 0x82d   :  { %15573 = vmatpush3.bf16.msra.mxu0 %v17315_v12 }
 0x82e   :  { %v15288_v21 = vpop.f32.mrf.mxu1  ;;  %13080 = vmatmul.mubr.bf16.vlgmr.msra.gmra.mxu1 %v10680_v6  ;;  %15602 = vmatprep.subr.bf16.mxu0 %v17318_v53 }
 0x82f   :  { %15581 = vmatpush3.bf16.msra.mxu1 %v17317_v4  ;;  %13159 = vmatprep.mubr.bf16.mxu1 %v10720_v28 }
 0x830   :  { %v15289_v16 = vpop.f32.mrf.mxu1  ;;  %v15310_v11 = vpop.f32.mrf.mxu0  ;;  %13120 = vmatmul.mubr.bf16.vlgmr.msra.gmra.mxu0 %v10696_v33  ;;  %15582 = vmatprep.subr.bf16.mxu1 %v17320_v23 }
 0x831   :  { %v15290_v1 = vadd.f32 %v15289_v16, %v15288_v21  ;;  %15603 = vmatpush3.bf16.msra.mxu0 %v17319_v7  ;;  %13199 = vmatprep.mubr.bf16.mxu0 %v10722_v48  ;;  %v17348_v48 = vld [vmem:[%s22605_s8 + $0x38] sm:$0xff]   ;;  %v17349_v16 = vld [vmem:[%s22605_s8 + $0x30] sm:$0xff]  }
 0x832   :  { %v15291_v32 = vpop.f32.mrf.mxu1  ;;  %v15311_v56 = vpop.f32.mrf.mxu0  ;;  %15604 = vmatprep.subr.bf16.mxu0 %v17322_v38 }
 0x833   :  { %v12602_v0 = vadd.f32 %v15290_v1, %v22357_v49  ;;  %v15312_v50 = vadd.f32 %v15311_v56, %v15310_v11  ;;  %15583 = vmatpush3.bf16.msra.mxu1 %v17321_v42  ;;  %v17339_v49 = vld [vmem:[%s22603_s6 + $0x890] sm:$0xff]   ;;  %v17455_v42 = vmov 0.0   ;;  %v17350_v11 = vld [vmem:[%s22605_s8 + $0x28] sm:$0xff]   ;;  %v17352_v1 = vld [vmem:[%s22605_s8 + $0x18] sm:$0xff]  }
 0x834   :  { %v15292_v44 = vpop.f32.mrf.mxu1  ;;  %v15313_v25 = vpop.f32.mrf.mxu0  ;;  %15584 = vmatprep.subr.bf16.mxu1 %v17324_v15  ;;  %v17351_v15 = vld [vmem:[%s22605_s8 + $0x20] sm:$0xff]  }
 0x835   :  { %v12642_v26 = vadd.f32 %v15312_v50, %v12602_v0  ;;  %15605 = vmatpush3.bf16.msra.mxu0 %v17323_v5  ;;  %v17353_v25 = vld [vmem:[%s22605_s8 + $0x10] sm:$0xff]  }
 0x836   :  { %v15314_v35 = vpop.f32.mrf.mxu0  ;;  %15606 = vmatprep.subr.bf16.mxu0 %v17326_v36 }
 0x837   :  { %15585 = vmatpush3.bf16.msra.mxu1 %v17325_v27 }
 0x838   :  { %15586 = vmatprep.subr.bf16.mxu1 %v17328_v41 }
 0x839   :  { %15607 = vmatpush3.bf16.msra.mxu0 %v17327_v9 }
 0x83a   :  { %15608 = vmatprep.subr.bf16.mxu0 %v17330_v39  ;;  %v17354_v39 = vld [vmem:[%s22605_s8 + $0x8] sm:$0xff]  }
 0x83b   :  { %15587 = vmatpush3.bf16.msra.mxu1 %v17329_v61  ;;  %v17355_v61 = vld [vmem:[%s22605_s8] sm:$0xff]  }
 0x83c   :  { %15588 = vmatprep.subr.bf16.mxu1 %v17332_v13  ;;  %v17356_v13 = vld [vmem:[%s22607_s10 + $0x38] sm:$0xff]  }
 0x83d   :  { %15609 = vmatpush3.bf16.msra.mxu0 %v17331_v3  ;;  %v17357_v3 = vld [vmem:[%s22607_s10 + $0x30] sm:$0xff]  }
 0x83e   :  { %15610 = vmatprep.subr.bf16.mxu0 %v17334_v19  ;;  %v17358_v19 = vld [vmem:[%s22607_s10 + $0x28] sm:$0xff]  }
 0x83f   :  { %15589 = vmatpush3.bf16.msra.mxu1 %v17333_v30  ;;  %v17359_v30 = vld [vmem:[%s22607_s10 + $0x20] sm:$0xff]  }
 0x840   :  { %15590 = vmatprep.subr.bf16.mxu1 %v17336_v58  ;;  %v17360_v58 = vld [vmem:[%s22607_s10 + $0x18] sm:$0xff]  }
 0x841   :  { %15611 = vmatpush3.bf16.msra.mxu0 %v17335_v57  ;;  %v17361_v57 = vld [vmem:[%s22607_s10 + $0x10] sm:$0xff]  }
 0x842   :  { %15612 = vmatprep.subr.bf16.mxu0 %v17338_v40 }
 0x843   :  { %15591 = vmatpush3.bf16.msra.mxu1 %v17337_v17 }
 0x844   :  { %15592 = vmatprep.subr.bf16.mxu1 %v17340_v45 }
 0x845   :  { %15613 = vmatpush3.bf16.msra.mxu0 %v17339_v49 }
 0x846   :  { %15614 = vmatprep.subr.bf16.mxu0 %v17342_v59 }
 0x847   :  { %15593 = vmatpush3.bf16.msra.mxu1 %v17341_v37 }
 0x848   :  { %15594 = vmatprep.subr.bf16.mxu1 %v17344_v31 }
 0x849   :  { %15615 = vmatpush3.bf16.msra.mxu0 %v17343_v10 }
 0x84a   :  { %15616 = vmatprep.subr.bf16.mxu0 %v17346_v55 }
 0x84b   :  { %15595 = vmatpush3.bf16.msra.mxu1 %v17345_v22 }
 0x84c   :  { %16618 = vmatprep.subr.bf16.mxu1 %v17455_v42 }
 0x84d   :  { %15617 = vmatpush3.bf16.msra.mxu0 %v17347_v62 }
 0x84e   :  { %v15332_v24 = vpop.f32.mrf.mxu1  ;;  %13160 = vmatmul.mubr.bf16.vlgmr.msra.gmra.mxu1 %v10713_v47  ;;  %16638 = vmatprep.subr.bf16.mxu0 %v17455_v42 }
 0x84f   :  { %16619 = vmatpush3.bf16.msra.mxu1 %v17348_v48  ;;  %16634 = vmatprep.mubr.msk.bf16.mxu1 %vm17456_vm2, %v17455_v42 }
 0x850   :  { %v15333_v14 = vpop.f32.mrf.mxu1  ;;  %v15354_v43 = vpop.f32.mrf.mxu0  ;;  %13200 = vmatmul.mubr.bf16.vlgmr.msra.gmra.mxu0 %v10721_v54  ;;  %16620 = vmatprep.subr.bf16.mxu1 %v17455_v42 }
 0x851   :  { %v15334_v52 = vadd.f32 %v15333_v14, %v15332_v24  ;;  %16654 = vmatprep.mubr.msk.bf16.mxu0 %vm17456_vm2, %v17455_v42  ;;  %16639 = vmatpush3.bf16.msra.mxu0 %v17356_v13 }
 0x852   :  { %v15335_v60 = vpop.f32.mrf.mxu1  ;;  %v15355_v8 = vpop.f32.mrf.mxu0  ;;  %16640 = vmatprep.subr.bf16.mxu0 %v17455_v42 }
 0x853   :  { %v12682_v18 = vadd.f32 %v15334_v52, %v12642_v26  ;;  %v15356_v2 = vadd.f32 %v15355_v8, %v15354_v43  ;;  %16621 = vmatpush3.bf16.msra.mxu1 %v17349_v16 }
 0x854   :  { %v15336_v63 = vpop.f32.mrf.mxu1  ;;  %v15357_v51 = vpop.f32.mrf.mxu0  ;;  %16622 = vmatprep.subr.bf16.mxu1 %v17455_v42 }
 0x855   :  { %v12722_v34 = vadd.f32 %v15356_v2, %v12682_v18  ;;  %16641 = vmatpush3.bf16.msra.mxu0 %v17357_v3 }
 0x856   :  { %v15358_v20 = vpop.f32.mrf.mxu0  ;;  %16642 = vmatprep.subr.bf16.mxu0 %v17455_v42 }
 0x857   :  { %16623 = vmatpush3.bf16.msra.mxu1 %v17350_v11 }
 0x858   :  { %16624 = vmatprep.subr.bf16.mxu1 %v17455_v42 }
 0x859   :  { %16643 = vmatpush3.bf16.msra.mxu0 %v17358_v19 }
 0x85a   :  { %16644 = vmatprep.subr.bf16.mxu0 %v17455_v42 }
 0x85b   :  { %16625 = vmatpush3.bf16.msra.mxu1 %v17351_v15 }
 0x85c   :  { %16626 = vmatprep.subr.bf16.mxu1 %v17455_v42 }
 0x85d   :  { %16645 = vmatpush3.bf16.msra.mxu0 %v17359_v30  ;;  %v14368_v30 = vld [vmem:[%s22608_s11] ss:$0 sm:$0xff] }
 0x85e   :  { %16646 = vmatprep.subr.bf16.mxu0 %v17455_v42 }
 0x85f   :  { %16627 = vmatpush3.bf16.msra.mxu1 %v17352_v1 }
 0x860   :  { %16628 = vmatprep.subr.bf16.mxu1 %v17455_v42 }
 0x861   :  { %16647 = vmatpush3.bf16.msra.mxu0 %v17360_v58 }
 0x862   :  { %16648 = vmatprep.subr.bf16.mxu0 %v17455_v42 }
 0x863   :  { %16629 = vmatpush3.bf16.msra.mxu1 %v17353_v25  ;;  %v17362_v25 = vld [vmem:[%s22607_s10 + $0x8] sm:$0xff]  }
 0x864   :  { %16630 = vmatprep.subr.bf16.mxu1 %v17455_v42 }
 0x865   :  { %16649 = vmatpush3.bf16.msra.mxu0 %v17361_v57 }
 0x866   :  { %16650 = vmatprep.subr.bf16.mxu0 %v17455_v42 }
 0x867   :  { %16631 = vmatpush3.bf16.msra.mxu1 %v17354_v39 }
 0x868   :  { %16632 = vmatprep.subr.bf16.mxu1 %v17455_v42 }
 0x869   :  { %16651 = vmatpush3.bf16.msra.mxu0 %v17362_v25 }
 0x86a   :  { %16652 = vmatprep.subr.bf16.mxu0 %v17455_v42 }
 0x86b   :  { %16633 = vmatpush3.bf16.msra.mxu1 %v17355_v61 }
 0x86e   :  { %v15376_v12 = vpop.f32.mrf.mxu1 }
 0x870   :  { %v15377_v29 = vpop.f32.mrf.mxu1  ;;  %v15398_v46 = vpop.f32.mrf.mxu0 }
 0x871   :  { %v15378_v6 = vadd.f32 %v15377_v29, %v15376_v12 }
 0x872   :  { %v15379_v53 = vpop.f32.mrf.mxu1  ;;  %v15399_v4 = vpop.f32.mrf.mxu0 }
 0x873   :  { %v12762_v28 = vadd.f32 %v15378_v6, %v12722_v34  ;;  %v15400_v23 = vadd.f32 %v15399_v4, %v15398_v46 }
 0x874   :  { %v15380_v7 = vpop.f32.mrf.mxu1  ;;  %v15401_v21 = vpop.f32.mrf.mxu0 }
 0x875   :  { %v12802_v33 = vadd.f32 %v15400_v23, %v12762_v28 }
 0x876   :  { %v15402_v38 = vpop.f32.mrf.mxu0 }
 0x88e   :  { %v15420_v5 = vpop.f32.mrf.mxu1 }
 0x890   :  { %v15421_v32 = vpop.f32.mrf.mxu1  ;;  %v15442_v56 = vpop.f32.mrf.mxu0 }
 0x891   :  { %v15422_v36 = vadd.f32 %v15421_v32, %v15420_v5 }
 0x892   :  { %v15423_v0 = vpop.f32.mrf.mxu1  ;;  %v15443_v50 = vpop.f32.mrf.mxu0 }
 0x893   :  { %v12842_v27 = vadd.f32 %v15422_v36, %v12802_v33  ;;  %v15444_v44 = vadd.f32 %v15443_v50, %v15442_v56 }
 0x894   :  { %v15424_v41 = vpop.f32.mrf.mxu1  ;;  %v15445_v26 = vpop.f32.mrf.mxu0 }
 0x895   :  { %v12882_v9 = vadd.f32 %v15444_v44, %v12842_v27  ;;  %v17363_v41 = vld [vmem:[%s22607_s10] sm:$0xff]   ;;  %s17457_s10 = smov [#allocation5]  }
 0x896   :  { %v15446_v35 = vpop.f32.mrf.mxu0  ;;  %16653 = vmatpush3.bf16.msra.mxu0 %v17363_v41  ;;  %v14359_v26 = vld [vmem:[%s22606_s9] ss:$0 sm:$0xff]  ;;  %s13440_s20 = sshll.u32 %s17457_s10, 4  ;;  %s13441_s20 = int_to_ptr.vmem [resolvable:$true] %s13440_s20 }
 0x897   :  { %s17431_s9 = scalar_lea.vmem %s13441_s20, 32  ;;  %p17436_p1 = scmp.lt.s32.totalorder %s13441_s20, %s13441_s20 }
 0x898   :  { %p17432_p0 = scmp.ne.s32.totalorder %s13441_s20, %s17431_s9  ;;  %p17437_p2 = scmp.lt.s32.totalorder %s17431_s9, %s17431_s9 }
 0x89a   :  { %p17438_p3 = por %p17437_p2, %p17436_p1 }
 0x89c   :  { %p17439_p4 = pnand %p17438_p3, %p17432_p0 }
 0x8ae   :  { %v15464_v40 = vpop.f32.mrf.mxu1 }
 0x8b0   :  { %v15465_v17 = vpop.f32.mrf.mxu1  ;;  %v15486_v45 = vpop.f32.mrf.mxu0 }
 0x8b1   :  { %v15466_v49 = vadd.f32 %v15465_v17, %v15464_v40 }
 0x8b2   :  { %v15467_v59 = vpop.f32.mrf.mxu1  ;;  %v15487_v37 = vpop.f32.mrf.mxu0 }
 0x8b3   :  { %v12922_v31 = vadd.f32 %v15466_v49, %v12882_v9  ;;  %v15488_v10 = vadd.f32 %v15487_v37, %v15486_v45 }
 0x8b4   :  { %v15468_v55 = vpop.f32.mrf.mxu1  ;;  %v15489_v22 = vpop.f32.mrf.mxu0 }
 0x8b5   :  { %v12962_v62 = vadd.f32 %v15488_v10, %v12922_v31 }
 0x8b6   :  { %v15490_v47 = vpop.f32.mrf.mxu0 }
 0x8ce   :  { %v15508_v54 = vpop.f32.mrf.mxu1 }
 0x8d0   :  { %v15509_v24 = vpop.f32.mrf.mxu1  ;;  %v15530_v14 = vpop.f32.mrf.mxu0 }
 0x8d1   :  { %v15510_v6 = vadd.f32 %v15509_v24, %v15508_v54 }
 0x8d2   :  { %v15511_v43 = vpop.f32.mrf.mxu1  ;;  %v15531_v52 = vpop.f32.mrf.mxu0 }
 0x8d3   :  { %v13002_v53 = vadd.f32 %v15510_v6, %v12962_v62  ;;  %v15532_v4 = vadd.f32 %v15531_v52, %v15530_v14 }
 0x8d4   :  { %v15512_v60 = vpop.f32.mrf.mxu1  ;;  %v15533_v8 = vpop.f32.mrf.mxu0 }
 0x8d5   :  { %v13042_v23 = vadd.f32 %v15532_v4, %v13002_v53 }
 0x8d6   :  { %v15534_v18 = vpop.f32.mrf.mxu0 }
 0x8ee   :  { %v15552_v2 = vpop.f32.mrf.mxu1 }
 0x8f0   :  { %v15553_v63 = vpop.f32.mrf.mxu1  ;;  %v15574_v51 = vpop.f32.mrf.mxu0 }
 0x8f1   :  { %v15554_v28 = vadd.f32 %v15553_v63, %v15552_v2 }
 0x8f2   :  { %v15555_v34 = vpop.f32.mrf.mxu1  ;;  %v15575_v20 = vpop.f32.mrf.mxu0 }
 0x8f3   :  { %v13082_v7 = vadd.f32 %v15554_v28, %v13042_v23  ;;  %v15576_v21 = vadd.f32 %v15575_v20, %v15574_v51 }
 0x8f4   :  { %v15556_v12 = vpop.f32.mrf.mxu1  ;;  %v15577_v29 = vpop.f32.mrf.mxu0 }
 0x8f5   :  { %v13122_v16 = vadd.f32 %v15576_v21, %v13082_v7 }
 0x8f6   :  { %v15578_v46 = vpop.f32.mrf.mxu0 }
 0x90e   :  { %v15596_v33 = vpop.f32.mrf.mxu1 }
 0x910   :  { %v15597_v38 = vpop.f32.mrf.mxu1  ;;  %v15618_v48 = vpop.f32.mrf.mxu0 }
 0x911   :  { %v15598_v11 = vadd.f32 %v15597_v38, %v15596_v33 }
 0x912   :  { %v15599_v15 = vpop.f32.mrf.mxu1  ;;  %v15619_v1 = vpop.f32.mrf.mxu0 }
 0x913   :  { %v13162_v5 = vadd.f32 %v15598_v11, %v13122_v16  ;;  %v15620_v32 = vadd.f32 %v15619_v1, %v15618_v48 }
 0x914   :  { %v15600_v56 = vpop.f32.mrf.mxu1  ;;  %v15621_v36 = vpop.f32.mrf.mxu0 }
 0x915   :  { %v13202_v0 = vadd.f32 %v15620_v32, %v13162_v5 }
 0x916   :  { %v15622_v50 = vpop.f32.mrf.mxu0 }
 0x917   :  { %v13207_v27 = vmax.f32 %v13202_v0, 0.0 }
 0x919   :  { %v13208_v44 = vpack.c.bf16 %v13207_v27, %v13207_v27 }
 0x91b   :  { %16635 = vmatmul.mubr.bf16.vlgmr.msra.gmra.mxu1 %v13208_v44 }
 0x9db   :  { %v13314_v9 = vpop.f32.mrf.mxu1 }
 0x9dc   :  { %v13315_v35 = vadd.f32 %v14359_v26, %v13314_v9 }
 0x9dd   :  { %v16636_v39 = vpop.f32.mrf.mxu1 }
 0x9de   :  { %v13320_v61 = vmax.f32 %v13315_v35, 0.0 }
 0x9df   :  { %v13317_v13 = vpop.f32.mrf.mxu1 }
 0x9e0   :  { %v13321_v3 = vpack.c.bf16 %v13320_v61, %v13320_v61 }
 0x9e1   :  { %v16637_v19 = vpop.f32.mrf.mxu1 }
 0x9e2   :  { %16655 = vmatmul.mubr.bf16.vlgmr.msra.gmra.mxu0 %v13321_v3 }
 0xaa2   :  { %v13427_v42 = vpop.f32.mrf.mxu0 }
 0xaa3   :  { %v13428_v58 = vadd.f32 %v14368_v30, %v13427_v42 }
 0xaa4   :  { %v16656_v57 = vpop.f32.mrf.mxu0 }
 0xaa5   :  { %13433 = vst [vmem:[#allocation5] sm:$0x3] %v13428_v58 }
 0xaa6   :  { %v13430_v40 = vpop.f32.mrf.mxu0 }
 0xaa7   :  { %17442 = shalt.err (!%p17439_p4)
}
 0xaa8   :  { %13443 = dma.vmem_to_hbm [thread:$0]  %s13441_s20, 32, %s22609_s12, [#allocation6]   ;;  %v16657_v17 = vpop.f32.mrf.mxu0 }
 0xaa9   :  { %17451 = dma.done.wait [#allocation6], 32  }
 0xaaa   :  { %17452 = vsyncadd [#allocation6], 4294967264 }
 0xaab   :  { %13447 = vsyncpa [#allocation6], 1 }

</bundles_post_ra>
